<compile_context>
chip_gen: v7x
topology: tpu7x:2x2x1
jax: 0.10.0
libtpu: 0.0.40
codegen_flags: <defaults>
</compile_context>

<pallas_src>
import functools

import jax
import jax.numpy as jnp
from jax.experimental import pallas as pl
from jax.experimental.pallas import tpu as pltpu


# --------------------------------------------------------------------------------------
# helpers
# --------------------------------------------------------------------------------------
def get_sinusoid_encoding_table(n_position, d_hid):
    """JAX port of seq2squiggle's sinusoidal positional-encoding table (P, D)."""
    pos = jnp.arange(n_position, dtype=jnp.float32)[:, None]               # (P, 1)
    dim = jnp.arange(d_hid, dtype=jnp.float32)[None, :]                    # (1, D)
    angle = pos / jnp.power(10000.0, 2.0 * jnp.floor(dim / 2.0) / d_hid)   # (P, D)
    even = (jnp.arange(d_hid) % 2) == 0
    return jnp.where(even[None, :], jnp.sin(angle), jnp.cos(angle))


def _layer_norm(x, gamma, beta, eps=1e-5):
    mu = jnp.mean(x, axis=-1, keepdims=True)
    var = jnp.mean(jnp.square(x - mu), axis=-1, keepdims=True)
    return (x - mu) * jax.lax.rsqrt(var + eps) * gamma + beta


# --------------------------------------------------------------------------------------
# fused decoder kernel
#   grid = (batch_tiles, n_layers)
#   one grid step == one FFT block applied to bt batch rows; the (bt*L, D) activation
#   lives in a VMEM scratch across the layer axis, only one layer's weights are resident.
# --------------------------------------------------------------------------------------
def _decoder_kernel(x_ref, pos_ref,
                    wqkv_ref, bqkv_ref, wo_ref, bo_ref, ln1g_ref, ln1b_ref,
                    w1_ref, b1_ref, w2_ref, b2_ref, ln2g_ref, ln2b_ref,
                    wout_ref, bout_ref,
                    o_ref,
                    x_scr, attn_scr,
                    *, n_head, d_k, d_v, bt, seq_len, d_model):
    f32 = jnp.float32
    bf16 = jnp.bfloat16
    L, D = seq_len, d_model
    layer = pl.program_id(1)
    n_layers = pl.num_programs(1)

    # -------- first layer step for this batch tile: positional-encoding add ----------
    @pl.when(layer == 0)
    def _():
        x_scr[...] = (x_ref[...] + pos_ref[...][None]).reshape(bt * L, D)

    x = x_scr[...]                                          # (bt*L, D) f32
    residual = x
    xb = x.astype(bf16)

    # -------- multi-head self-attention (post-norm, mask=None as in torch forward) ----
    # Fused QKV projection: one (bt*L, D) @ (D, 3D) bf16 matmul, f32 accumulation.
    qkv = jnp.dot(xb, wqkv_ref[...], preferred_element_type=f32) + bqkv_ref[...]
    wo_b = wo_ref[...]                                      # (D, D) bf16
    scale = 1.0 / (float(d_k) ** 0.5)

    # Attention itself is per batch row (static unroll over the bt rows in this tile).
    for r in range(bt):
        q_r = qkv[r * L:(r + 1) * L, 0 * D:1 * D]
        k_r = qkv[r * L:(r + 1) * L, 1 * D:2 * D]
        v_r = qkv[r * L:(r + 1) * L, 2 * D:3 * D]
        acc = jnp.zeros((L, D), f32)
        for h in range(n_head):                             # static unroll over heads
            qh = (q_r[:, h * d_k:(h + 1) * d_k] * scale).astype(bf16)   # scale folded in
            kh = k_r[:, h * d_k:(h + 1) * d_k].astype(bf16)
            vh = v_r[:, h * d_v:(h + 1) * d_v].astype(bf16)
            s = jnp.einsum("qd,kd->qk", qh, kh, preferred_element_type=f32)   # (L, L)
            s = s - jnp.max(s, axis=-1, keepdims=True)      # numerically stable softmax
            p = jnp.exp(s)
            p = p * pl.reciprocal(jnp.sum(p, axis=-1, keepdims=True), approx=True)
            # concat_h(ctx_h) @ Wo == sum_h p_h @ (v_h @ Wo[h]); the re-association keeps
            # both matmuls of the P@V / Wo path full-width (K=L resp. N=D).
            vwo = jnp.dot(vh, wo_b[h * d_v:(h + 1) * d_v, :],
                          preferred_element_type=f32)       # (L, D)
            acc = acc + jnp.dot(p.astype(bf16), vwo.astype(bf16),
                                preferred_element_type=f32) # (L, D)
        attn_scr[r * L:(r + 1) * L, :] = acc

    attn_out = attn_scr[...] + bo_ref[...]
    y = _layer_norm(attn_out + residual, ln1g_ref[...], ln1b_ref[...])

    # -------- position-wise feed-forward (post-norm) ----------------------------------
    residual = y
    hid = jnp.maximum(
        jnp.dot(y.astype(bf16), w1_ref[...], preferred_element_type=f32) + b1_ref[...],
        0.0)
    ff = jnp.dot(hid.astype(bf16), w2_ref[...], preferred_element_type=f32) + b2_ref[...]
    x_new = _layer_norm(ff + residual, ln2g_ref[...], ln2b_ref[...])
    x_scr[...] = x_new                                      # carry to next layer step

    # -------- last layer step: out_linear (D -> 1) + ReLU, lane-dense -----------------
    @pl.when(layer == n_layers - 1)
    def _():
        x3 = x_new.reshape(bt, L, D)
        proj = jnp.sum(x3 * wout_ref[...][None], axis=-1) + bout_ref[...]   # (bt, L)
        o_ref[...] = jnp.maximum(proj, 0.0)                 # L on the lane axis


# --------------------------------------------------------------------------------------
# wrapper
# --------------------------------------------------------------------------------------
def decoder_forward(params, enc_seq, *, n_head, rows_per_step=2):
    """enc_seq: (B, L, d_model) float32  ->  (B, L, 1) float32."""
    B, L, D = enc_seq.shape
    n_layers = params["wq"].shape[0]
    d_k = d_v = D // n_head
    assert D % 128 == 0, "d_model must be a multiple of 128 (lane width)"
    assert L % 8 == 0, "sequence length must be a multiple of 8 (sublane width)"

    bt = rows_per_step if (B % rows_per_step == 0) else 1   # batch rows per grid step

    # torch adds position_enc (1, n_position, D) to enc_seq (requires L == n_position);
    # we build the table for exactly L positions (same semantics).
    pos_table = get_sinusoid_encoding_table(L, D).astype(jnp.float32)

    bf16 = jnp.bfloat16
    # Fuse Q/K/V weights (one wide matmul per layer) and cast MXU operands to bf16.
    wqkv = jnp.concatenate([params["wq"], params["wk"], params["wv"]], axis=-1).astype(bf16)
    bqkv = jnp.concatenate([params["bq"], params["bk"], params["bv"]], axis=-1)
    wo = params["wo"].astype(bf16)
    w1 = params["w1"].astype(bf16)
    w2 = params["w2"].astype(bf16)
    # Final projection stays f32: it is done as a VPU multiply + lane reduce.
    wout = params["wout"].reshape(1, D).astype(jnp.float32)
    bout = params["bout"].reshape(1, 1).astype(jnp.float32)

    kernel = functools.partial(_decoder_kernel, n_head=n_head, d_k=d_k, d_v=d_v,
                               bt=bt, seq_len=L, d_model=D)

    def layer_spec(arr):
        # One layer's slice resident per grid step; streamed/double-buffered by Pallas
        # along the "arbitrary" layer grid axis.
        rest = arr.shape[1:]
        return pl.BlockSpec((None,) + rest, lambda b, l: (l,) + (0,) * len(rest))

    grid = (B // bt, n_layers)

    out = pl.pallas_call(
        kernel,
        out_shape=jax.ShapeDtypeStruct((B // bt, bt, L), jnp.float32),
        grid=grid,
        in_specs=[
            pl.BlockSpec((bt, L, D), lambda b, l: (b, 0, 0)),   # bt activation rows
            pl.BlockSpec((L, D), lambda b, l: (0, 0)),          # shared pos-enc table
            layer_spec(wqkv), layer_spec(bqkv),
            layer_spec(wo), layer_spec(params["bo"]),
            layer_spec(params["ln1g"]), layer_spec(params["ln1b"]),
            layer_spec(w1), layer_spec(params["b1"]),
            layer_spec(w2), layer_spec(params["b2"]),
            layer_spec(params["ln2g"]), layer_spec(params["ln2b"]),
            pl.BlockSpec((1, D), lambda b, l: (0, 0)),          # wout (lane-dense row)
            pl.BlockSpec((1, 1), lambda b, l: (0, 0)),          # bout
        ],
        out_specs=pl.BlockSpec((None, bt, L), lambda b, l: (b, 0, 0)),
        scratch_shapes=[pltpu.VMEM((bt * L, D), jnp.float32),   # activation carry
                        pltpu.VMEM((bt * L, D), jnp.float32)],  # per-tile attention out
        compiler_params=pltpu.CompilerParams(
            # batch tiles -> megacore on v7x; layer axis is a sequential carry.
            dimension_semantics=("parallel", "arbitrary"),
            # Footprint is small (one layer's weights + (bt*L,D) buffers); 64 MiB leaves
            # room for larger L on v5e/v6e and still fits v7x physical VMEM.
            vmem_limit_bytes=64 * 1024 * 1024),
    )(enc_seq.astype(jnp.float32), pos_table,
      wqkv, bqkv, wo, params["bo"], params["ln1g"], params["ln1b"],
      w1, params["b1"], w2, params["b2"], params["ln2g"], params["ln2b"],
      wout, bout)

    return out.reshape(B, L)[..., None]                     # (B, L, 1) to match torch


# --------------------------------------------------------------------------------------
# plain-JAX reference (mirrors the torch Decoder forward, full f32)
# --------------------------------------------------------------------------------------
def decoder_reference(params, enc_seq, *, n_head):
    B, L, D = enc_seq.shape
    n_layers = params["wq"].shape[0]
    d_k = d_v = D // n_head
    x = enc_seq + get_sinusoid_encoding_table(L, D)[None]
    scale = 1.0 / (float(d_k) ** 0.5)
    for l in range(n_layers):
        res = x
        q = x @ params["wq"][l] + params["bq"][l]
        k = x @ params["wk"][l] + params["bk"][l]
        v = x @ params["wv"][l] + params["bv"][l]
        q = q.reshape(B, L, n_head, d_k).transpose(0, 2, 1, 3)
        k = k.reshape(B, L, n_head, d_k).transpose(0, 2, 1, 3)
        v = v.reshape(B, L, n_head, d_v).transpose(0, 2, 1, 3)
        s = jnp.einsum("bhqd,bhkd->bhqk", q, k) * scale
        p = jax.nn.softmax(s, axis=-1)
        ctx = jnp.einsum("bhqk,bhkd->bhqd", p, v)
        ctx = ctx.transpose(0, 2, 1, 3).reshape(B, L, n_head * d_v)
        attn = ctx @ params["wo"][l] + params["bo"][l]
        x = _layer_norm(attn + res, params["ln1g"][l], params["ln1b"][l])
        res = x
        hid = jnp.maximum(x @ params["w1"][l] + params["b1"][l], 0.0)
        ff = hid @ params["w2"][l] + params["b2"][l]
        x = _layer_norm(ff + res, params["ln2g"][l], params["ln2b"][l])
    return jnp.maximum(x @ params["wout"] + params["bout"], 0.0)


# --------------------------------------------------------------------------------------
# demo / self-check
# --------------------------------------------------------------------------------------
if __name__ == "__main__":
    B, L = 4, 128                      # batch, sequence (== max_signal_len for the demo)
    D, N_HEAD, D_FF, N_LAYERS = 128, 2, 256, 2   # dmodel, decoder_heads, dff, decoder_layers

    key = jax.random.PRNGKey(0)
    ks = iter(jax.random.split(key, 32))
    sd = 1.0 / float(D) ** 0.5
    sf = 1.0 / float(D_FF) ** 0.5

    def u(k, shape, s):
        return jax.random.uniform(k, shape, jnp.float32, -s, s)

    params = {
        "wq": u(next(ks), (N_LAYERS, D, D), sd),   "bq": u(next(ks), (N_LAYERS, 1, D), sd),
        "wk": u(next(ks), (N_LAYERS, D, D), sd),   "bk": u(next(ks), (N_LAYERS, 1, D), sd),
        "wv": u(next(ks), (N_LAYERS, D, D), sd),   "bv": u(next(ks), (N_LAYERS, 1, D), sd),
        "wo": u(next(ks), (N_LAYERS, D, D), sd),   "bo": u(next(ks), (N_LAYERS, 1, D), sd),
        "ln1g": 1.0 + 0.1 * jax.random.normal(next(ks), (N_LAYERS, 1, D), jnp.float32),
        "ln1b": 0.1 * jax.random.normal(next(ks), (N_LAYERS, 1, D), jnp.float32),
        "w1": u(next(ks), (N_LAYERS, D, D_FF), sd), "b1": u(next(ks), (N_LAYERS, 1, D_FF), sd),
        "w2": u(next(ks), (N_LAYERS, D_FF, D), sf), "b2": u(next(ks), (N_LAYERS, 1, D), sf),
        "ln2g": 1.0 + 0.1 * jax.random.normal(next(ks), (N_LAYERS, 1, D), jnp.float32),
        "ln2b": 0.1 * jax.random.normal(next(ks), (N_LAYERS, 1, D), jnp.float32),
        "wout": u(next(ks), (D, 1), sd),            "bout": u(next(ks), (1, 1), sd),
    }

    enc_seq = jax.random.normal(next(ks), (B, L, D), jnp.float32)

    out = decoder_forward(params, enc_seq, n_head=N_HEAD)
    jax.block_until_ready(out)

    ref = decoder_reference(params, enc_seq, n_head=N_HEAD)
    assert out.shape == (B, L, 1)
    # Kernel runs bf16 matmuls (f32 accumulation) vs the pure-f32 reference -> looser
    # tolerance than the f32-only revision (error stays at the ~1% level through 2 blocks).
    err = float(jnp.max(jnp.abs(out - ref)))
    assert jnp.allclose(out, ref, rtol=5e-2, atol=5e-2), err

    print("KERNEL_OK")
</pallas_src>

<mosaic_0001>
module attributes {stable_mosaic.version = 11 : i64} {
  func.func @_decoder_kernel(%arg0: i32, %arg1: i32, %arg2: memref<2x128x128xf32, #tpu.memory_space<vmem>>, %arg3: memref<128x128xf32, #tpu.memory_space<vmem>>, %arg4: memref<1x128x384xbf16, #tpu.memory_space<vmem>>, %arg5: memref<1x1x384xf32, #tpu.memory_space<vmem>>, %arg6: memref<1x128x128xbf16, #tpu.memory_space<vmem>>, %arg7: memref<1x1x128xf32, #tpu.memory_space<vmem>>, %arg8: memref<1x1x128xf32, #tpu.memory_space<vmem>>, %arg9: memref<1x1x128xf32, #tpu.memory_space<vmem>>, %arg10: memref<1x128x256xbf16, #tpu.memory_space<vmem>>, %arg11: memref<1x1x256xf32, #tpu.memory_space<vmem>>, %arg12: memref<1x256x128xbf16, #tpu.memory_space<vmem>>, %arg13: memref<1x1x128xf32, #tpu.memory_space<vmem>>, %arg14: memref<1x1x128xf32, #tpu.memory_space<vmem>>, %arg15: memref<1x1x128xf32, #tpu.memory_space<vmem>>, %arg16: memref<1x128xf32, #tpu.memory_space<vmem>>, %arg17: memref<1x1xf32, #tpu.memory_space<vmem>>, %arg18: memref<1x2x128xf32, #tpu.memory_space<vmem>>, %arg19: memref<256x128xf32, #tpu.memory_space<vmem>>, %arg20: memref<256x128xf32, #tpu.memory_space<vmem>>) attributes {dimension_semantics = [#tpu.dimension_semantics<parallel>, #tpu.dimension_semantics<arbitrary>], iteration_bounds = array<i64: 2, 2>, scalar_prefetch = 0 : i64, scratch_operands = 2 : i64, tpu.core_type = #tpu.core_type<tc>, window_params = [{transform_indices = @transform_0, window_bounds = array<i64: 2, 128, 128>}, {pipeline_mode = #tpu.pipeline_mode<synchronous>, transform_indices = @transform_1, window_bounds = array<i64: 128, 128>}, {transform_indices = @transform_2, window_bounds = array<i64: 1, 128, 384>}, {transform_indices = @transform_3, window_bounds = array<i64: 1, 1, 384>}, {transform_indices = @transform_4, window_bounds = array<i64: 1, 128, 128>}, {transform_indices = @transform_5, window_bounds = array<i64: 1, 1, 128>}, {transform_indices = @transform_6, window_bounds = array<i64: 1, 1, 128>}, {transform_indices = @transform_7, window_bounds = array<i64: 1, 1, 128>}, {transform_indices = @transform_8, window_bounds = array<i64: 1, 128, 256>}, {transform_indices = @transform_9, window_bounds = array<i64: 1, 1, 256>}, {transform_indices = @transform_10, window_bounds = array<i64: 1, 256, 128>}, {transform_indices = @transform_11, window_bounds = array<i64: 1, 1, 128>}, {transform_indices = @transform_12, window_bounds = array<i64: 1, 1, 128>}, {transform_indices = @transform_13, window_bounds = array<i64: 1, 1, 128>}, {pipeline_mode = #tpu.pipeline_mode<synchronous>, transform_indices = @transform_14, window_bounds = array<i64: 1, 128>}, {pipeline_mode = #tpu.pipeline_mode<synchronous>, transform_indices = @transform_15, window_bounds = array<i64: 1, 1>}, {transform_indices = @transform_16, window_bounds = array<i64: 1, 2, 128>}]} {
    %c0_i32 = arith.constant 0 : i32
    %0 = arith.cmpi eq, %arg1, %c0_i32 : i32
    %1 = arith.extui %0 : i1 to i32
    %c0_i32_0 = arith.constant 0 : i32
    %2 = arith.cmpi ne, %1, %c0_i32_0 : i32
    scf.if %2 {
      %c0_85 = arith.constant 0 : index
      %c0_86 = arith.constant 0 : index
      %c0_87 = arith.constant 0 : index
      %205 = vector.load %arg2[%c0_85, %c0_86, %c0_87] : memref<2x128x128xf32, #tpu.memory_space<vmem>>, vector<2x128x128xf32>
      %c0_88 = arith.constant 0 : index
      %c0_89 = arith.constant 0 : index
      %206 = vector.load %arg3[%c0_88, %c0_89] : memref<128x128xf32, #tpu.memory_space<vmem>>, vector<128x128xf32>
      %207 = vector.shape_cast %206 : vector<128x128xf32> to vector<1x128x128xf32>
      %208 = vector.broadcast %207 : vector<1x128x128xf32> to vector<2x128x128xf32>
      %209 = arith.addf %205, %208 : vector<2x128x128xf32>
      %210 = vector.shape_cast %209 : vector<2x128x128xf32> to vector<256x128xf32>
      %c0_90 = arith.constant 0 : index
      %c0_91 = arith.constant 0 : index
      %211 = vector.load %arg19[%c0_90, %c0_91] : memref<256x128xf32, #tpu.memory_space<vmem>>, vector<256x128xf32>
      tpu.vector_store %arg19[%c0_90, %c0_91], %210 {strides = array<i32>} : memref<256x128xf32, #tpu.memory_space<vmem>>, vector<256x128xf32>,
    } else {
    }
    %c0 = arith.constant 0 : index
    %c0_1 = arith.constant 0 : index
    %3 = vector.load %arg19[%c0, %c0_1] : memref<256x128xf32, #tpu.memory_space<vmem>>, vector<256x128xf32>
    %4 = arith.truncf %3 : vector<256x128xf32> to vector<256x128xbf16>
    %c0_2 = arith.constant 0 : index
    %c0_3 = arith.constant 0 : index
    %c0_4 = arith.constant 0 : index
    %5 = vector.load %arg4[%c0_2, %c0_3, %c0_4] : memref<1x128x384xbf16, #tpu.memory_space<vmem>>, vector<1x128x384xbf16>
    %6 = vector.shape_cast %5 : vector<1x128x384xbf16> to vector<128x384xbf16>
    %cst = arith.constant dense<0.000000e+00> : vector<256x384xf32>
    %7 = tpu.matmul %4, %6, %cst {dimension_numbers = #tpu.dot_dimension_numbers<[1], [0], [0], [1], [0, 0, 1, 1], [], []>} : vector<256x128xbf16>, vector<128x384xbf16>, vector<256x384xf32> -> vector<256x384xf32>
    %c0_5 = arith.constant 0 : index
    %c0_6 = arith.constant 0 : index
    %c0_7 = arith.constant 0 : index
    %8 = vector.load %arg5[%c0_5, %c0_6, %c0_7] : memref<1x1x384xf32, #tpu.memory_space<vmem>>, vector<1x1x384xf32>
    %9 = vector.shape_cast %8 : vector<1x1x384xf32> to vector<1x384xf32>
    %10 = vector.broadcast %9 : vector<1x384xf32> to vector<256x384xf32>
    %11 = arith.addf %7, %10 : vector<256x384xf32>
    %c0_8 = arith.constant 0 : index
    %c0_9 = arith.constant 0 : index
    %c0_10 = arith.constant 0 : index
    %12 = vector.load %arg6[%c0_8, %c0_9, %c0_10] : memref<1x128x128xbf16, #tpu.memory_space<vmem>>, vector<1x128x128xbf16>
    %13 = vector.shape_cast %12 : vector<1x128x128xbf16> to vector<128x128xbf16>
    %14 = vector.extract_strided_slice %11 {offsets = [0, 0], sizes = [128, 128], strides = [1, 1]} : vector<256x384xf32> to vector<128x128xf32>
    %15 = vector.extract_strided_slice %11 {offsets = [0, 128], sizes = [128, 128], strides = [1, 1]} : vector<256x384xf32> to vector<128x128xf32>
    %16 = vector.extract_strided_slice %11 {offsets = [0, 256], sizes = [128, 128], strides = [1, 1]} : vector<256x384xf32> to vector<128x128xf32>
    %cst_11 = arith.constant 0.000000e+00 : f32
    %17 = vector.broadcast %cst_11 : f32 to vector<128x128xf32>
    %18 = vector.extract_strided_slice %14 {offsets = [0, 0], sizes = [128, 64], strides = [1, 1]} : vector<128x128xf32> to vector<128x64xf32>
    %cst_12 = arith.constant 1.250000e-01 : f32
    %19 = vector.broadcast %cst_12 : f32 to vector<128x64xf32>
    %20 = arith.mulf %18, %19 : vector<128x64xf32>
    %21 = arith.truncf %20 : vector<128x64xf32> to vector<128x64xbf16>
    %22 = vector.extract_strided_slice %15 {offsets = [0, 0], sizes = [128, 64], strides = [1, 1]} : vector<128x128xf32> to vector<128x64xf32>
    %23 = arith.truncf %22 : vector<128x64xf32> to vector<128x64xbf16>
    %24 = vector.extract_strided_slice %16 {offsets = [0, 0], sizes = [128, 64], strides = [1, 1]} : vector<128x128xf32> to vector<128x64xf32>
    %25 = arith.truncf %24 : vector<128x64xf32> to vector<128x64xbf16>
    "tpu.trace_start"() <{level = 10 : i32, message = "qd,kd->qk"}> : () -> ()
    %cst_13 = arith.constant dense<0.000000e+00> : vector<128x128xf32>
    %26 = tpu.matmul %21, %23, %cst_13 {dimension_numbers = #tpu.dot_dimension_numbers<[1], [1], [0], [0], [0, 0, 1, 0], [], []>} : vector<128x64xbf16>, vector<128x64xbf16>, vector<128x128xf32> -> vector<128x128xf32>
    "tpu.trace_stop"() : () -> ()
    %cst_14 = arith.constant dense<0xFF800000> : vector<128xf32>
    %27 = vector.multi_reduction <maximumf>, %26, %cst_14 [1] : vector<128x128xf32> to vector<128xf32>
    %28 = vector.shape_cast %27 : vector<128xf32> to vector<128x1xf32>
    %29 = vector.broadcast %28 : vector<128x1xf32> to vector<128x128xf32>
    %30 = arith.subf %26, %29 : vector<128x128xf32>
    %31 = math.exp %30 : vector<128x128xf32>
    %cst_15 = arith.constant dense<0.000000e+00> : vector<128xf32>
    %32 = vector.multi_reduction <add>, %31, %cst_15 [1] : vector<128x128xf32> to vector<128xf32>
    %33 = vector.shape_cast %32 : vector<128xf32> to vector<128x1xf32>
    %34 = tpu.reciprocal %33 {approx = true} : vector<128x1xf32> -> vector<128x1xf32>
    %35 = vector.broadcast %34 : vector<128x1xf32> to vector<128x128xf32>
    %36 = arith.mulf %31, %35 : vector<128x128xf32>
    %37 = vector.extract_strided_slice %13 {offsets = [0, 0], sizes = [64, 128], strides = [1, 1]} : vector<128x128xbf16> to vector<64x128xbf16>
    %cst_16 = arith.constant dense<0.000000e+00> : vector<128x128xf32>
    %38 = tpu.matmul %25, %37, %cst_16 {dimension_numbers = #tpu.dot_dimension_numbers<[1], [0], [0], [1], [0, 0, 1, 1], [], []>} : vector<128x64xbf16>, vector<64x128xbf16>, vector<128x128xf32> -> vector<128x128xf32>
    %39 = arith.truncf %36 : vector<128x128xf32> to vector<128x128xbf16>
    %40 = arith.truncf %38 : vector<128x128xf32> to vector<128x128xbf16>
    %cst_17 = arith.constant dense<0.000000e+00> : vector<128x128xf32>
    %41 = tpu.matmul %39, %40, %cst_17 {dimension_numbers = #tpu.dot_dimension_numbers<[1], [0], [0], [1], [0, 0, 1, 1], [], []>} : vector<128x128xbf16>, vector<128x128xbf16>, vector<128x128xf32> -> vector<128x128xf32>
    %42 = arith.addf %17, %41 : vector<128x128xf32>
    %43 = vector.extract_strided_slice %14 {offsets = [0, 64], sizes = [128, 64], strides = [1, 1]} : vector<128x128xf32> to vector<128x64xf32>
    %cst_18 = arith.constant 1.250000e-01 : f32
    %44 = vector.broadcast %cst_18 : f32 to vector<128x64xf32>
    %45 = arith.mulf %43, %44 : vector<128x64xf32>
    %46 = arith.truncf %45 : vector<128x64xf32> to vector<128x64xbf16>
    %47 = vector.extract_strided_slice %15 {offsets = [0, 64], sizes = [128, 64], strides = [1, 1]} : vector<128x128xf32> to vector<128x64xf32>
    %48 = arith.truncf %47 : vector<128x64xf32> to vector<128x64xbf16>
    %49 = vector.extract_strided_slice %16 {offsets = [0, 64], sizes = [128, 64], strides = [1, 1]} : vector<128x128xf32> to vector<128x64xf32>
    %50 = arith.truncf %49 : vector<128x64xf32> to vector<128x64xbf16>
    "tpu.trace_start"() <{level = 10 : i32, message = "qd,kd->qk"}> : () -> ()
    %cst_19 = arith.constant dense<0.000000e+00> : vector<128x128xf32>
    %51 = tpu.matmul %46, %48, %cst_19 {dimension_numbers = #tpu.dot_dimension_numbers<[1], [1], [0], [0], [0, 0, 1, 0], [], []>} : vector<128x64xbf16>, vector<128x64xbf16>, vector<128x128xf32> -> vector<128x128xf32>
    "tpu.trace_stop"() : () -> ()
    %cst_20 = arith.constant dense<0xFF800000> : vector<128xf32>
    %52 = vector.multi_reduction <maximumf>, %51, %cst_20 [1] : vector<128x128xf32> to vector<128xf32>
    %53 = vector.shape_cast %52 : vector<128xf32> to vector<128x1xf32>
    %54 = vector.broadcast %53 : vector<128x1xf32> to vector<128x128xf32>
    %55 = arith.subf %51, %54 : vector<128x128xf32>
    %56 = math.exp %55 : vector<128x128xf32>
    %cst_21 = arith.constant dense<0.000000e+00> : vector<128xf32>
    %57 = vector.multi_reduction <add>, %56, %cst_21 [1] : vector<128x128xf32> to vector<128xf32>
    %58 = vector.shape_cast %57 : vector<128xf32> to vector<128x1xf32>
    %59 = tpu.reciprocal %58 {approx = true} : vector<128x1xf32> -> vector<128x1xf32>
    %60 = vector.broadcast %59 : vector<128x1xf32> to vector<128x128xf32>
    %61 = arith.mulf %56, %60 : vector<128x128xf32>
    %62 = vector.extract_strided_slice %13 {offsets = [64, 0], sizes = [64, 128], strides = [1, 1]} : vector<128x128xbf16> to vector<64x128xbf16>
    %cst_22 = arith.constant dense<0.000000e+00> : vector<128x128xf32>
    %63 = tpu.matmul %50, %62, %cst_22 {dimension_numbers = #tpu.dot_dimension_numbers<[1], [0], [0], [1], [0, 0, 1, 1], [], []>} : vector<128x64xbf16>, vector<64x128xbf16>, vector<128x128xf32> -> vector<128x128xf32>
    %64 = arith.truncf %61 : vector<128x128xf32> to vector<128x128xbf16>
    %65 = arith.truncf %63 : vector<128x128xf32> to vector<128x128xbf16>
    %cst_23 = arith.constant dense<0.000000e+00> : vector<128x128xf32>
    %66 = tpu.matmul %64, %65, %cst_23 {dimension_numbers = #tpu.dot_dimension_numbers<[1], [0], [0], [1], [0, 0, 1, 1], [], []>} : vector<128x128xbf16>, vector<128x128xbf16>, vector<128x128xf32> -> vector<128x128xf32>
    %67 = arith.addf %42, %66 : vector<128x128xf32>
    %c0_24 = arith.constant 0 : index
    %c0_25 = arith.constant 0 : index
    %68 = vector.load %arg20[%c0_24, %c0_25] : memref<256x128xf32, #tpu.memory_space<vmem>>, vector<128x128xf32>
    tpu.vector_store %arg20[%c0_24, %c0_25], %67 {strides = array<i32>} : memref<256x128xf32, #tpu.memory_space<vmem>>, vector<128x128xf32>,
    %69 = vector.extract_strided_slice %11 {offsets = [128, 0], sizes = [128, 128], strides = [1, 1]} : vector<256x384xf32> to vector<128x128xf32>
    %70 = vector.extract_strided_slice %11 {offsets = [128, 128], sizes = [128, 128], strides = [1, 1]} : vector<256x384xf32> to vector<128x128xf32>
    %71 = vector.extract_strided_slice %11 {offsets = [128, 256], sizes = [128, 128], strides = [1, 1]} : vector<256x384xf32> to vector<128x128xf32>
    %cst_26 = arith.constant 0.000000e+00 : f32
    %72 = vector.broadcast %cst_26 : f32 to vector<128x128xf32>
    %73 = vector.extract_strided_slice %69 {offsets = [0, 0], sizes = [128, 64], strides = [1, 1]} : vector<128x128xf32> to vector<128x64xf32>
    %cst_27 = arith.constant 1.250000e-01 : f32
    %74 = vector.broadcast %cst_27 : f32 to vector<128x64xf32>
    %75 = arith.mulf %73, %74 : vector<128x64xf32>
    %76 = arith.truncf %75 : vector<128x64xf32> to vector<128x64xbf16>
    %77 = vector.extract_strided_slice %70 {offsets = [0, 0], sizes = [128, 64], strides = [1, 1]} : vector<128x128xf32> to vector<128x64xf32>
    %78 = arith.truncf %77 : vector<128x64xf32> to vector<128x64xbf16>
    %79 = vector.extract_strided_slice %71 {offsets = [0, 0], sizes = [128, 64], strides = [1, 1]} : vector<128x128xf32> to vector<128x64xf32>
    %80 = arith.truncf %79 : vector<128x64xf32> to vector<128x64xbf16>
    "tpu.trace_start"() <{level = 10 : i32, message = "qd,kd->qk"}> : () -> ()
    %cst_28 = arith.constant dense<0.000000e+00> : vector<128x128xf32>
    %81 = tpu.matmul %76, %78, %cst_28 {dimension_numbers = #tpu.dot_dimension_numbers<[1], [1], [0], [0], [0, 0, 1, 0], [], []>} : vector<128x64xbf16>, vector<128x64xbf16>, vector<128x128xf32> -> vector<128x128xf32>
    "tpu.trace_stop"() : () -> ()
    %cst_29 = arith.constant dense<0xFF800000> : vector<128xf32>
    %82 = vector.multi_reduction <maximumf>, %81, %cst_29 [1] : vector<128x128xf32> to vector<128xf32>
    %83 = vector.shape_cast %82 : vector<128xf32> to vector<128x1xf32>
    %84 = vector.broadcast %83 : vector<128x1xf32> to vector<128x128xf32>
    %85 = arith.subf %81, %84 : vector<128x128xf32>
    %86 = math.exp %85 : vector<128x128xf32>
    %cst_30 = arith.constant dense<0.000000e+00> : vector<128xf32>
    %87 = vector.multi_reduction <add>, %86, %cst_30 [1] : vector<128x128xf32> to vector<128xf32>
    %88 = vector.shape_cast %87 : vector<128xf32> to vector<128x1xf32>
    %89 = tpu.reciprocal %88 {approx = true} : vector<128x1xf32> -> vector<128x1xf32>
    %90 = vector.broadcast %89 : vector<128x1xf32> to vector<128x128xf32>
    %91 = arith.mulf %86, %90 : vector<128x128xf32>
    %92 = vector.extract_strided_slice %13 {offsets = [0, 0], sizes = [64, 128], strides = [1, 1]} : vector<128x128xbf16> to vector<64x128xbf16>
    %cst_31 = arith.constant dense<0.000000e+00> : vector<128x128xf32>
    %93 = tpu.matmul %80, %92, %cst_31 {dimension_numbers = #tpu.dot_dimension_numbers<[1], [0], [0], [1], [0, 0, 1, 1], [], []>} : vector<128x64xbf16>, vector<64x128xbf16>, vector<128x128xf32> -> vector<128x128xf32>
    %94 = arith.truncf %91 : vector<128x128xf32> to vector<128x128xbf16>
    %95 = arith.truncf %93 : vector<128x128xf32> to vector<128x128xbf16>
    %cst_32 = arith.constant dense<0.000000e+00> : vector<128x128xf32>
    %96 = tpu.matmul %94, %95, %cst_32 {dimension_numbers = #tpu.dot_dimension_numbers<[1], [0], [0], [1], [0, 0, 1, 1], [], []>} : vector<128x128xbf16>, vector<128x128xbf16>, vector<128x128xf32> -> vector<128x128xf32>
    %97 = arith.addf %72, %96 : vector<128x128xf32>
    %98 = vector.extract_strided_slice %69 {offsets = [0, 64], sizes = [128, 64], strides = [1, 1]} : vector<128x128xf32> to vector<128x64xf32>
    %cst_33 = arith.constant 1.250000e-01 : f32
    %99 = vector.broadcast %cst_33 : f32 to vector<128x64xf32>
    %100 = arith.mulf %98, %99 : vector<128x64xf32>
    %101 = arith.truncf %100 : vector<128x64xf32> to vector<128x64xbf16>
    %102 = vector.extract_strided_slice %70 {offsets = [0, 64], sizes = [128, 64], strides = [1, 1]} : vector<128x128xf32> to vector<128x64xf32>
    %103 = arith.truncf %102 : vector<128x64xf32> to vector<128x64xbf16>
    %104 = vector.extract_strided_slice %71 {offsets = [0, 64], sizes = [128, 64], strides = [1, 1]} : vector<128x128xf32> to vector<128x64xf32>
    %105 = arith.truncf %104 : vector<128x64xf32> to vector<128x64xbf16>
    "tpu.trace_start"() <{level = 10 : i32, message = "qd,kd->qk"}> : () -> ()
    %cst_34 = arith.constant dense<0.000000e+00> : vector<128x128xf32>
    %106 = tpu.matmul %101, %103, %cst_34 {dimension_numbers = #tpu.dot_dimension_numbers<[1], [1], [0], [0], [0, 0, 1, 0], [], []>} : vector<128x64xbf16>, vector<128x64xbf16>, vector<128x128xf32> -> vector<128x128xf32>
    "tpu.trace_stop"() : () -> ()
    %cst_35 = arith.constant dense<0xFF800000> : vector<128xf32>
    %107 = vector.multi_reduction <maximumf>, %106, %cst_35 [1] : vector<128x128xf32> to vector<128xf32>
    %108 = vector.shape_cast %107 : vector<128xf32> to vector<128x1xf32>
    %109 = vector.broadcast %108 : vector<128x1xf32> to vector<128x128xf32>
    %110 = arith.subf %106, %109 : vector<128x128xf32>
    %111 = math.exp %110 : vector<128x128xf32>
    %cst_36 = arith.constant dense<0.000000e+00> : vector<128xf32>
    %112 = vector.multi_reduction <add>, %111, %cst_36 [1] : vector<128x128xf32> to vector<128xf32>
    %113 = vector.shape_cast %112 : vector<128xf32> to vector<128x1xf32>
    %114 = tpu.reciprocal %113 {approx = true} : vector<128x1xf32> -> vector<128x1xf32>
    %115 = vector.broadcast %114 : vector<128x1xf32> to vector<128x128xf32>
    %116 = arith.mulf %111, %115 : vector<128x128xf32>
    %117 = vector.extract_strided_slice %13 {offsets = [64, 0], sizes = [64, 128], strides = [1, 1]} : vector<128x128xbf16> to vector<64x128xbf16>
    %cst_37 = arith.constant dense<0.000000e+00> : vector<128x128xf32>
    %118 = tpu.matmul %105, %117, %cst_37 {dimension_numbers = #tpu.dot_dimension_numbers<[1], [0], [0], [1], [0, 0, 1, 1], [], []>} : vector<128x64xbf16>, vector<64x128xbf16>, vector<128x128xf32> -> vector<128x128xf32>
    %119 = arith.truncf %116 : vector<128x128xf32> to vector<128x128xbf16>
    %120 = arith.truncf %118 : vector<128x128xf32> to vector<128x128xbf16>
    %cst_38 = arith.constant dense<0.000000e+00> : vector<128x128xf32>
    %121 = tpu.matmul %119, %120, %cst_38 {dimension_numbers = #tpu.dot_dimension_numbers<[1], [0], [0], [1], [0, 0, 1, 1], [], []>} : vector<128x128xbf16>, vector<128x128xbf16>, vector<128x128xf32> -> vector<128x128xf32>
    %122 = arith.addf %97, %121 : vector<128x128xf32>
    %c128 = arith.constant 128 : index
    %c0_39 = arith.constant 0 : index
    %123 = vector.load %arg20[%c128, %c0_39] : memref<256x128xf32, #tpu.memory_space<vmem>>, vector<128x128xf32>
    tpu.vector_store %arg20[%c128, %c0_39], %122 {strides = array<i32>} : memref<256x128xf32, #tpu.memory_space<vmem>>, vector<128x128xf32>,
    %c0_40 = arith.constant 0 : index
    %c0_41 = arith.constant 0 : index
    %124 = vector.load %arg20[%c0_40, %c0_41] : memref<256x128xf32, #tpu.memory_space<vmem>>, vector<256x128xf32>
    %c0_42 = arith.constant 0 : index
    %c0_43 = arith.constant 0 : index
    %c0_44 = arith.constant 0 : index
    %125 = vector.load %arg7[%c0_42, %c0_43, %c0_44] : memref<1x1x128xf32, #tpu.memory_space<vmem>>, vector<1x1x128xf32>
    %126 = vector.shape_cast %125 : vector<1x1x128xf32> to vector<1x128xf32>
    %127 = vector.broadcast %126 : vector<1x128xf32> to vector<256x128xf32>
    %128 = arith.addf %124, %127 : vector<256x128xf32>
    %129 = arith.addf %128, %3 : vector<256x128xf32>
    %c0_45 = arith.constant 0 : index
    %c0_46 = arith.constant 0 : index
    %c0_47 = arith.constant 0 : index
    %130 = vector.load %arg8[%c0_45, %c0_46, %c0_47] : memref<1x1x128xf32, #tpu.memory_space<vmem>>, vector<1x1x128xf32>
    %131 = vector.shape_cast %130 : vector<1x1x128xf32> to vector<1x128xf32>
    %c0_48 = arith.constant 0 : index
    %c0_49 = arith.constant 0 : index
    %c0_50 = arith.constant 0 : index
    %132 = vector.load %arg9[%c0_48, %c0_49, %c0_50] : memref<1x1x128xf32, #tpu.memory_space<vmem>>, vector<1x1x128xf32>
    %133 = vector.shape_cast %132 : vector<1x1x128xf32> to vector<1x128xf32>
    %cst_51 = arith.constant dense<0.000000e+00> : vector<256xf32>
    %134 = vector.multi_reduction <add>, %129, %cst_51 [1] : vector<256x128xf32> to vector<256xf32>
    %135 = vector.shape_cast %134 : vector<256xf32> to vector<256x1xf32>
    %cst_52 = arith.constant 1.280000e+02 : f32
    %136 = vector.broadcast %cst_52 : f32 to vector<256x1xf32>
    %137 = arith.divf %135, %136 : vector<256x1xf32>
    %138 = vector.broadcast %137 : vector<256x1xf32> to vector<256x128xf32>
    %139 = arith.subf %129, %138 : vector<256x128xf32>
    %140 = arith.mulf %139, %139 : vector<256x128xf32>
    %cst_53 = arith.constant dense<0.000000e+00> : vector<256xf32>
    %141 = vector.multi_reduction <add>, %140, %cst_53 [1] : vector<256x128xf32> to vector<256xf32>
    %142 = vector.shape_cast %141 : vector<256xf32> to vector<256x1xf32>
    %cst_54 = arith.constant 1.280000e+02 : f32
    %143 = vector.broadcast %cst_54 : f32 to vector<256x1xf32>
    %144 = arith.divf %142, %143 : vector<256x1xf32>
    %145 = vector.broadcast %137 : vector<256x1xf32> to vector<256x128xf32>
    %146 = arith.subf %129, %145 : vector<256x128xf32>
    %cst_55 = arith.constant 9.99999974E-6 : f32
    %147 = vector.broadcast %cst_55 : f32 to vector<256x1xf32>
    %148 = arith.addf %144, %147 : vector<256x1xf32>
    %149 = math.rsqrt %148 : vector<256x1xf32>
    %150 = vector.broadcast %149 : vector<256x1xf32> to vector<256x128xf32>
    %151 = arith.mulf %146, %150 : vector<256x128xf32>
    %152 = vector.broadcast %131 : vector<1x128xf32> to vector<256x128xf32>
    %153 = arith.mulf %151, %152 : vector<256x128xf32>
    %154 = vector.broadcast %133 : vector<1x128xf32> to vector<256x128xf32>
    %155 = arith.addf %153, %154 : vector<256x128xf32>
    %156 = arith.truncf %155 : vector<256x128xf32> to vector<256x128xbf16>
    %c0_56 = arith.constant 0 : index
    %c0_57 = arith.constant 0 : index
    %c0_58 = arith.constant 0 : index
    %157 = vector.load %arg10[%c0_56, %c0_57, %c0_58] : memref<1x128x256xbf16, #tpu.memory_space<vmem>>, vector<1x128x256xbf16>
    %158 = vector.shape_cast %157 : vector<1x128x256xbf16> to vector<128x256xbf16>
    %cst_59 = arith.constant dense<0.000000e+00> : vector<256x256xf32>
    %159 = tpu.matmul %156, %158, %cst_59 {dimension_numbers = #tpu.dot_dimension_numbers<[1], [0], [0], [1], [0, 0, 1, 1], [], []>} : vector<256x128xbf16>, vector<128x256xbf16>, vector<256x256xf32> -> vector<256x256xf32>
    %c0_60 = arith.constant 0 : index
    %c0_61 = arith.constant 0 : index
    %c0_62 = arith.constant 0 : index
    %160 = vector.load %arg11[%c0_60, %c0_61, %c0_62] : memref<1x1x256xf32, #tpu.memory_space<vmem>>, vector<1x1x256xf32>
    %161 = vector.shape_cast %160 : vector<1x1x256xf32> to vector<1x256xf32>
    %162 = vector.broadcast %161 : vector<1x256xf32> to vector<256x256xf32>
    %163 = arith.addf %159, %162 : vector<256x256xf32>
    %cst_63 = arith.constant 0.000000e+00 : f32
    %164 = vector.broadcast %cst_63 : f32 to vector<256x256xf32>
    %165 = arith.maximumf %163, %164 : vector<256x256xf32>
    %166 = arith.truncf %165 : vector<256x256xf32> to vector<256x256xbf16>
    %c0_64 = arith.constant 0 : index
    %c0_65 = arith.constant 0 : index
    %c0_66 = arith.constant 0 : index
    %167 = vector.load %arg12[%c0_64, %c0_65, %c0_66] : memref<1x256x128xbf16, #tpu.memory_space<vmem>>, vector<1x256x128xbf16>
    %168 = vector.shape_cast %167 : vector<1x256x128xbf16> to vector<256x128xbf16>
    %cst_67 = arith.constant dense<0.000000e+00> : vector<256x128xf32>
    %169 = tpu.matmul %166, %168, %cst_67 {dimension_numbers = #tpu.dot_dimension_numbers<[1], [0], [0], [1], [0, 0, 1, 1], [], []>} : vector<256x256xbf16>, vector<256x128xbf16>, vector<256x128xf32> -> vector<256x128xf32>
    %c0_68 = arith.constant 0 : index
    %c0_69 = arith.constant 0 : index
    %c0_70 = arith.constant 0 : index
    %170 = vector.load %arg13[%c0_68, %c0_69, %c0_70] : memref<1x1x128xf32, #tpu.memory_space<vmem>>, vector<1x1x128xf32>
    %171 = vector.shape_cast %170 : vector<1x1x128xf32> to vector<1x128xf32>
    %172 = vector.broadcast %171 : vector<1x128xf32> to vector<256x128xf32>
    %173 = arith.addf %169, %172 : vector<256x128xf32>
    %174 = arith.addf %173, %155 : vector<256x128xf32>
    %c0_71 = arith.constant 0 : index
    %c0_72 = arith.constant 0 : index
    %c0_73 = arith.constant 0 : index
    %175 = vector.load %arg14[%c0_71, %c0_72, %c0_73] : memref<1x1x128xf32, #tpu.memory_space<vmem>>, vector<1x1x128xf32>
    %176 = vector.shape_cast %175 : vector<1x1x128xf32> to vector<1x128xf32>
    %c0_74 = arith.constant 0 : index
    %c0_75 = arith.constant 0 : index
    %c0_76 = arith.constant 0 : index
    %177 = vector.load %arg15[%c0_74, %c0_75, %c0_76] : memref<1x1x128xf32, #tpu.memory_space<vmem>>, vector<1x1x128xf32>
    %178 = vector.shape_cast %177 : vector<1x1x128xf32> to vector<1x128xf32>
    %cst_77 = arith.constant dense<0.000000e+00> : vector<256xf32>
    %179 = vector.multi_reduction <add>, %174, %cst_77 [1] : vector<256x128xf32> to vector<256xf32>
    %180 = vector.shape_cast %179 : vector<256xf32> to vector<256x1xf32>
    %cst_78 = arith.constant 1.280000e+02 : f32
    %181 = vector.broadcast %cst_78 : f32 to vector<256x1xf32>
    %182 = arith.divf %180, %181 : vector<256x1xf32>
    %183 = vector.broadcast %182 : vector<256x1xf32> to vector<256x128xf32>
    %184 = arith.subf %174, %183 : vector<256x128xf32>
    %185 = arith.mulf %184, %184 : vector<256x128xf32>
    %cst_79 = arith.constant dense<0.000000e+00> : vector<256xf32>
    %186 = vector.multi_reduction <add>, %185, %cst_79 [1] : vector<256x128xf32> to vector<256xf32>
    %187 = vector.shape_cast %186 : vector<256xf32> to vector<256x1xf32>
    %cst_80 = arith.constant 1.280000e+02 : f32
    %188 = vector.broadcast %cst_80 : f32 to vector<256x1xf32>
    %189 = arith.divf %187, %188 : vector<256x1xf32>
    %190 = vector.broadcast %182 : vector<256x1xf32> to vector<256x128xf32>
    %191 = arith.subf %174, %190 : vector<256x128xf32>
    %cst_81 = arith.constant 9.99999974E-6 : f32
    %192 = vector.broadcast %cst_81 : f32 to vector<256x1xf32>
    %193 = arith.addf %189, %192 : vector<256x1xf32>
    %194 = math.rsqrt %193 : vector<256x1xf32>
    %195 = vector.broadcast %194 : vector<256x1xf32> to vector<256x128xf32>
    %196 = arith.mulf %191, %195 : vector<256x128xf32>
    %197 = vector.broadcast %176 : vector<1x128xf32> to vector<256x128xf32>
    %198 = arith.mulf %196, %197 : vector<256x128xf32>
    %199 = vector.broadcast %178 : vector<1x128xf32> to vector<256x128xf32>
    %200 = arith.addf %198, %199 : vector<256x128xf32>
    %c0_82 = arith.constant 0 : index
    %c0_83 = arith.constant 0 : index
    %201 = vector.load %arg19[%c0_82, %c0_83] : memref<256x128xf32, #tpu.memory_space<vmem>>, vector<256x128xf32>
    tpu.vector_store %arg19[%c0_82, %c0_83], %200 {strides = array<i32>} : memref<256x128xf32, #tpu.memory_space<vmem>>, vector<256x128xf32>,
    %c1_i32 = arith.constant 1 : i32
    %202 = arith.cmpi eq, %arg1, %c1_i32 : i32
    %203 = arith.extui %202 : i1 to i32
    %c0_i32_84 = arith.constant 0 : i32
    %204 = arith.cmpi ne, %203, %c0_i32_84 : i32
    scf.if %204 {
      %205 = vector.shape_cast %200 : vector<256x128xf32> to vector<2x128x128xf32>
      %c0_85 = arith.constant 0 : index
      %c0_86 = arith.constant 0 : index
      %206 = vector.load %arg16[%c0_85, %c0_86] : memref<1x128xf32, #tpu.memory_space<vmem>>, vector<1x128xf32>
      %207 = vector.shape_cast %206 : vector<1x128xf32> to vector<1x1x128xf32>
      %208 = vector.broadcast %207 : vector<1x1x128xf32> to vector<2x128x128xf32>
      %209 = arith.mulf %205, %208 : vector<2x128x128xf32>
      %cst_87 = arith.constant dense<0.000000e+00> : vector<2x128xf32>
      %210 = vector.multi_reduction <add>, %209, %cst_87 [2] : vector<2x128x128xf32> to vector<2x128xf32>
      %c0_88 = arith.constant 0 : index
      %c0_89 = arith.constant 0 : index
      %211 = vector.load %arg17[%c0_88, %c0_89] : memref<1x1xf32, #tpu.memory_space<vmem>>, vector<1x1xf32>
      %212 = vector.broadcast %211 : vector<1x1xf32> to vector<2x128xf32>
      %213 = arith.addf %210, %212 : vector<2x128xf32>
      %cst_90 = arith.constant 0.000000e+00 : f32
      %214 = vector.broadcast %cst_90 : f32 to vector<2x128xf32>
      %215 = arith.maximumf %213, %214 : vector<2x128xf32>
      %c0_91 = arith.constant 0 : index
      %c0_92 = arith.constant 0 : index
      %c0_93 = arith.constant 0 : index
      %216 = vector.load %arg18[%c0_91, %c0_92, %c0_93] : memref<1x2x128xf32, #tpu.memory_space<vmem>>, vector<1x2x128xf32>
      %217 = vector.shape_cast %216 : vector<1x2x128xf32> to vector<2x128xf32>
      %218 = vector.shape_cast %215 : vector<2x128xf32> to vector<1x2x128xf32>
      tpu.vector_store %arg18[%c0_91, %c0_92, %c0_93], %218 {strides = array<i32>} : memref<1x2x128xf32, #tpu.memory_space<vmem>>, vector<1x2x128xf32>,
    } else {
    }
    return
  }
  func.func @transform_0(%arg0: i32, %arg1: i32) -> (i32, i32, i32) {
    %c0_i32 = arith.constant 0 : i32
    %c0_i32_0 = arith.constant 0 : i32
    %c0_i32_1 = arith.constant 0 : i32
    return %arg0, %c0_i32, %c0_i32_0 : i32, i32, i32
  }
  func.func @transform_1(%arg0: i32, %arg1: i32) -> (i32, i32) {
    %c0_i32 = arith.constant 0 : i32
    %c0_i32_0 = arith.constant 0 : i32
    %c0_i32_1 = arith.constant 0 : i32
    return %c0_i32, %c0_i32_0 : i32, i32
  }
  func.func @transform_2(%arg0: i32, %arg1: i32) -> (i32, i32, i32) {
    %c0_i32 = arith.constant 0 : i32
    %c0_i32_0 = arith.constant 0 : i32
    %c0_i32_1 = arith.constant 0 : i32
    return %arg1, %c0_i32, %c0_i32_0 : i32, i32, i32
  }
  func.func @transform_3(%arg0: i32, %arg1: i32) -> (i32, i32, i32) {
    %c0_i32 = arith.constant 0 : i32
    %c0_i32_0 = arith.constant 0 : i32
    %c0_i32_1 = arith.constant 0 : i32
    return %arg1, %c0_i32, %c0_i32_0 : i32, i32, i32
  }
  func.func @transform_4(%arg0: i32, %arg1: i32) -> (i32, i32, i32) {
    %c0_i32 = arith.constant 0 : i32
    %c0_i32_0 = arith.constant 0 : i32
    %c0_i32_1 = arith.constant 0 : i32
    return %arg1, %c0_i32, %c0_i32_0 : i32, i32, i32
  }
  func.func @transform_5(%arg0: i32, %arg1: i32) -> (i32, i32, i32) {
    %c0_i32 = arith.constant 0 : i32
    %c0_i32_0 = arith.constant 0 : i32
    %c0_i32_1 = arith.constant 0 : i32
    return %arg1, %c0_i32, %c0_i32_0 : i32, i32, i32
  }
  func.func @transform_6(%arg0: i32, %arg1: i32) -> (i32, i32, i32) {
    %c0_i32 = arith.constant 0 : i32
    %c0_i32_0 = arith.constant 0 : i32
    %c0_i32_1 = arith.constant 0 : i32
    return %arg1, %c0_i32, %c0_i32_0 : i32, i32, i32
  }
  func.func @transform_7(%arg0: i32, %arg1: i32) -> (i32, i32, i32) {
    %c0_i32 = arith.constant 0 : i32
    %c0_i32_0 = arith.constant 0 : i32
    %c0_i32_1 = arith.constant 0 : i32
    return %arg1, %c0_i32, %c0_i32_0 : i32, i32, i32
  }
  func.func @transform_8(%arg0: i32, %arg1: i32) -> (i32, i32, i32) {
    %c0_i32 = arith.constant 0 : i32
    %c0_i32_0 = arith.constant 0 : i32
    %c0_i32_1 = arith.constant 0 : i32
    return %arg1, %c0_i32, %c0_i32_0 : i32, i32, i32
  }
  func.func @transform_9(%arg0: i32, %arg1: i32) -> (i32, i32, i32) {
    %c0_i32 = arith.constant 0 : i32
    %c0_i32_0 = arith.constant 0 : i32
    %c0_i32_1 = arith.constant 0 : i32
    return %arg1, %c0_i32, %c0_i32_0 : i32, i32, i32
  }
  func.func @transform_10(%arg0: i32, %arg1: i32) -> (i32, i32, i32) {
    %c0_i32 = arith.constant 0 : i32
    %c0_i32_0 = arith.constant 0 : i32
    %c0_i32_1 = arith.constant 0 : i32
    return %arg1, %c0_i32, %c0_i32_0 : i32, i32, i32
  }
  func.func @transform_11(%arg0: i32, %arg1: i32) -> (i32, i32, i32) {
    %c0_i32 = arith.constant 0 : i32
    %c0_i32_0 = arith.constant 0 : i32
    %c0_i32_1 = arith.constant 0 : i32
    return %arg1, %c0_i32, %c0_i32_0 : i32, i32, i32
  }
  func.func @transform_12(%arg0: i32, %arg1: i32) -> (i32, i32, i32) {
    %c0_i32 = arith.constant 0 : i32
    %c0_i32_0 = arith.constant 0 : i32
    %c0_i32_1 = arith.constant 0 : i32
    return %arg1, %c0_i32, %c0_i32_0 : i32, i32, i32
  }
  func.func @transform_13(%arg0: i32, %arg1: i32) -> (i32, i32, i32) {
    %c0_i32 = arith.constant 0 : i32
    %c0_i32_0 = arith.constant 0 : i32
    %c0_i32_1 = arith.constant 0 : i32
    return %arg1, %c0_i32, %c0_i32_0 : i32, i32, i32
  }
  func.func @transform_14(%arg0: i32, %arg1: i32) -> (i32, i32) {
    %c0_i32 = arith.constant 0 : i32
    %c0_i32_0 = arith.constant 0 : i32
    %c0_i32_1 = arith.constant 0 : i32
    return %c0_i32, %c0_i32_0 : i32, i32
  }
  func.func @transform_15(%arg0: i32, %arg1: i32) -> (i32, i32) {
    %c0_i32 = arith.constant 0 : i32
    %c0_i32_0 = arith.constant 0 : i32
    %c0_i32_1 = arith.constant 0 : i32
    return %c0_i32, %c0_i32_0 : i32, i32
  }
  func.func @transform_16(%arg0: i32, %arg1: i32) -> (i32, i32, i32) {
    %c0_i32 = arith.constant 0 : i32
    %c0_i32_0 = arith.constant 0 : i32
    %c0_i32_1 = arith.constant 0 : i32
    return %arg0, %c0_i32, %c0_i32_0 : i32, i32, i32
  }
}

</mosaic_0001>

<bundles_post_ra>
// kernel: tpu_custom_call.1
= control target key start
LH: loop header
LB: loop body
LE: loop exit
PB: predicated region body
PF: predicated region fallthrough
CT: control target
= control target key end

     0   :  { %s12304_s0 = inlined_call_operand.hbm [shape: f32[4,128,128], index: 0, kind: input, shape index: {}]   ;;  %s12305_s1 = inlined_call_operand.hbm [shape: f32[128,128], index: 1, kind: input, shape index: {}]   ;;  %s12306_s2 = inlined_call_operand.hbm [shape: bf16[2,128,384], index: 2, kind: input, shape index: {}]   ;;  %s12307_s3 = inlined_call_operand.hbm [shape: f32[2,1,384], index: 3, kind: input, shape index: {}]   ;;  %s12308_s4 = inlined_call_operand.hbm [shape: bf16[2,128,128], index: 4, kind: input, shape index: {}]   ;;  %s12309_s5 = inlined_call_operand.hbm [shape: f32[2,1,128], index: 5, kind: input, shape index: {}]   ;;  %s12310_s6 = inlined_call_operand.hbm [shape: f32[2,1,128], index: 6, kind: input, shape index: {}]   ;;  %s12311_s7 = inlined_call_operand.hbm [shape: f32[2,1,128], index: 7, kind: input, shape index: {}]   ;;  %s12312_s8 = inlined_call_operand.hbm [shape: bf16[2,128,256], index: 8, kind: input, shape index: {}]   ;;  %s12313_s9 = inlined_call_operand.hbm [shape: f32[2,1,256], index: 9, kind: input, shape index: {}]   ;;  %s12314_s10 = inlined_call_operand.hbm [shape: bf16[2,256,128], index: 10, kind: input, shape index: {}]   ;;  %s12315_s11 = inlined_call_operand.hbm [shape: f32[2,1,128], index: 11, kind: input, shape index: {}]   ;;  %s12316_s12 = inlined_call_operand.hbm [shape: f32[2,1,128], index: 12, kind: input, shape index: {}]   ;;  %s12317_s13 = inlined_call_operand.hbm [shape: f32[2,1,128], index: 13, kind: input, shape index: {}]   ;;  %s12318_s14 = inlined_call_operand.hbm [shape: f32[1,128], index: 14, kind: input, shape index: {}]   ;;  %s12319_s15 = inlined_call_operand.<no memory space> [shape: f32[1,1], index: 15, kind: input, shape index: {}]   ;;  %s12320_s16 = inlined_call_operand.hbm [shape: f32[2,2,128], index: 16, kind: output, shape index: {}]  }
   0x1   :  { %12405 = sst [smem:[#allocation76_spill]] %s12304_s0  ;;  %v21_v0 = vstv %s12319_s15 }
   0x2   :  { %12406 = sst [smem:[#allocation77_spill]] %s12305_s1  ;;  %22 = vst [vmem:[#allocation4] sm:$0x1] %v21_v0 }
   0x3   :  { %12407 = sst [smem:[#allocation78_spill]] %s12306_s2 }
   0x4   :  { %12408 = sst [smem:[#allocation79_spill]] %s12307_s3 }
   0x5   :  { %12409 = sst [smem:[#allocation80_spill]] %s12308_s4 }
   0x6   :  { %12410 = sst [smem:[#allocation81_spill]] %s12309_s5 }
   0x7   :  { %12411 = sst [smem:[#allocation82_spill]] %s12310_s6 }
   0x8   :  { %12412 = sst [smem:[#allocation83_spill]] %s12311_s7 }
   0x9   :  { %12413 = sst [smem:[#allocation84_spill]] %s12312_s8 }
   0xa   :  { %12414 = sst [smem:[#allocation85_spill]] %s12313_s9 }
   0xb   :  { %12415 = sst [smem:[#allocation86_spill]] %s12314_s10 }
   0xc   :  { %12416 = sst [smem:[#allocation87_spill]] %s12315_s11 }
   0xd   :  { %12417 = sst [smem:[#allocation88_spill]] %s12316_s12 }
   0xe   :  { %12418 = sst [smem:[#allocation89_spill]] %s12317_s13 }
   0xf   :  { %12419 = sst [smem:[#allocation90_spill]] %s12318_s14 }
  0x10   :  { %12420 = sst [smem:[#allocation91_spill]] %s12320_s16 }
  0x11   :  { %23 = vsyncpa [#allocation6], 0 }
  0x12   :  { %25 = vsyncpa [#allocation6 + $0x1], 0 }
  0x13   :  { %26 = vsyncpa [#allocation9], 0 }
  0x14   :  { %27 = vsyncpa [#allocation7], 0 }
  0x15   :  { %29 = vsyncpa [#allocation7 + $0x1], 0  ;;  %s8953_s23 = smov 0   ;;  %s8955_s24 = smov 0  }
  0x16   :  { %s8957_s25 = smov 0   ;;  %s8959_s26 = smov 0  }
  0x17   :  { %s8961_s27 = smov 0   ;;  %s8963_s28 = smov 0  }
  0x18   :  { %s8965_s29 = smov 0   ;;  %s8967_s15 = smov 0  }
  0x19   :  { %s8969_s30 = smov 0   ;;  %s8971_s0 = smov 0  }
  0x1a   :  { %s8973_s17 = smov 0  }
  0x1b LB: > { %12421 = sst [smem:[#allocation29_spill]] %s8798_s23  ;;  %s44_s18 = sadd.s32 1, %s8830_s30  ;;  %s8838_s17 = sphi %s8973_s17, %s35_s17   ;;  %s8834_s0 = sphi %s8971_s0, %s12596_s0   ;;  %s8830_s30 = sphi %s8969_s30, %s12600_s30   ;;  %s8826_s15 = sphi %s8967_s15, %s12594_s15   ;;  %s8822_s29 = sphi %s8965_s29, %s12599_s29   ;;  %s8818_s28 = sphi %s8963_s28, %s12598_s28   ;;  %s8814_s27 = sphi %s8961_s27, %s12597_s27   ;;  %s8810_s26 = sphi %s8959_s26, %s12592_s26   ;;  %s8806_s25 = sphi %s8957_s25, %s12591_s25   ;;  %s8802_s24 = sphi %s8955_s24, %s12590_s24   ;;  %s8798_s23 = sphi %s8953_s23, %s12589_s23  }
  0x1c   : > { %12422 = sst [smem:[#allocation30_spill]] %s8802_s24  ;;  %s47_s19 = sadd.s32 1, %s8834_s0 }
  0x1d   : > { %12423 = sst [smem:[#allocation31_spill]] %s8806_s25  ;;  %p45_p0 = scmp.ge.s32.totalorder %s44_s18, 2 }
  0x1e   : > { %12424 = sst [smem:[#allocation32_spill]] %s8810_s26  ;;  %s54_s20 = sadd.s32 1, %s8818_s28 }
  0x1f   : > { %12425 = sst [smem:[#allocation33_spill]] %s8814_s27  ;;  %p12333_p1 = scmp.ne.s32.totalorder %s8818_s28, %s8814_s27 }
  0x20   : > { %12426 = sst [smem:[#allocation34_spill]] %s8822_s29  ;;  %p62_p2 = scmp.eq.s32.totalorder %s8838_s17, 0 }
  0x21   : > { %12427 = sst [smem:[#allocation35_spill]] %s8826_s15  ;;  %s12602_s18 = smov (%p45_p0, %s44_s18), 0 }
  0x22   : > { %12428 = sst [smem:[#allocation36_spill]] %s8834_s0  ;;  %s12604_s19 = smov (!%p45_p0, %s47_s19), %s8834_s0 }
  0x23   : > { %12429 = sst [smem:[#allocation37_spill]] %s12602_s18  ;;  %p9020_p3 = por %p62_p2, %p12333_p1 }
  0x24   : > { %s98_s22 = ssub.s32 %s8830_s30, %s12602_s18  ;;  %p49_p4 = scmp.ge.s32.totalorder %s12604_s19, 2 }
  0x25   : > { %p99_p5 = scmp.eq.s32.totalorder %s98_s22, 0  ;;  %s101_s16 = sadd.s32 1, %s8806_s25 }
  0x26   : > { %p108_p6 = scmp.ne.s32.totalorder %s8806_s25, %s8802_s24  ;;  %s12606_s19 = smov (%p49_p4, %s12604_s19), 0 }
  0x27   : > { %12431 = sst [smem:[#allocation38_spill]] %s12606_s19  ;;  %s51_s29 = ssub.s32 %s8834_s0, %s12606_s19 }
  0x28   : > { %s9032_s15 = scalar_select %p99_p5, %s8806_s25, %s101_s16  }
  0x29   : > { %p9036_p7 = por %p108_p6, %p62_p2  ;;  %p52_p8 = scmp.eq.s32.totalorder %s51_s29, 0 }
  0x2a   : > { %12432 = sst [smem:[#allocation39_spill]] %s9032_s15  ;;  %p7650_p9 = scmp.lt.s32.totalorder %s8838_s17, 4 }
  0x2b   : > { %s9041_s14 = scalar_select %p52_p8, %s8818_s28, %s54_s20  }
  0x2c   : > { %s519_s22 = sand.u32 1, %s8838_s17   ;;  %s521_s18 = sand.u32 1, %s8818_s28  }
  0x2d   : > { %12434 = sst [smem:[#allocation40_spill]] %s9041_s14  ;;  %s6582_s1 = sshll.u32 %s521_s18, 8 }
  0x2e   : > { %s6758_s12 = sshll.u32 %s8834_s0, 12  ;;  %s12435_s27 = sld [smem:[#allocation76_spill]] }
  0x2f   : > { %s523_s16 = scalar_lea.vmem [#allocation5], %s6582_s1  ;;  %p9054_p10 = pnand %p7650_p9, %p9020_p3 }
  0x30   : > { %s531_s19 = sshll.u32 %s523_s16, 4  ;;  %s9061_s18 = sand.u32 1, %s8806_s25   ;;  %s9058_s19 = int_to_ptr.vmem [resolvable:$true] %s531_s19 }
  0x31   : > { %p9065_p11 = pnand %p7650_p9, %p9036_p7  ;;  %s9069_s23 = scalar_lea.sflag [#allocation6], %s519_s22 }
  0x32   : > { %p8260_p13 = pneg %p9054_p10 }
  0x34   : > { %s12436_s11 = smov %s12435_s27  ;;  %s9050_s26 = scalar_lea.hbm %s12435_s27, %s6758_s12 }
  0x35   : > { %s12438_s12 = scalar_select %p9065_p11, 1, 0 }
  0x36   : > { %s8258_s1 = scalar_lea.hbm %s9050_s26, 4096  ;;  %s8263_s20 = scalar_lea.hbm %s12436_s11, 8192 }
  0x37   : > { %p8259_p12 = scmp.ne.s32.totalorder %s9050_s26, %s8258_s1  ;;  %p8264_p3 = scmp.lt.u32.totalorder %s9050_s26, %s12436_s11 }
  0x38   : > { %p8265_p4 = scmp.lt.u32.totalorder %s8263_s20, %s8258_s1  ;;  %p8267_p6 = scmp.lt.u32.totalorder %s8258_s1, %s9050_s26 }
  0x39   : > { %p8261_p0 = pnand %p8260_p13, %p8259_p12 }
  0x3a   : > { %p8266_p5 = por %p8265_p4, %p8264_p3 }
  0x3b   : > { %p8262_p2 = pneg %p8261_p0 }
  0x3c   : > { %p8268_p7 = por %p8267_p6, %p8266_p5 }
  0x3e   : > { %p8269_p8 = pnand %p8268_p7, %p8262_p2 }
  0x40   : > { %8272 = shalt.err (!%p8269_p8)
}
  0x41   : > { %s8273_s22 = scalar_lea.vmem %s9058_s19, 4096  ;;  %s8840_s16 = smov [#allocation5]  }
  0x42   : > { %p8274_p9 = scmp.ne.s32.totalorder %s9058_s19, %s8273_s22  ;;  %s8278_s24 = sshll.u32 %s8840_s16, 4  ;;  %s8279_s24 = int_to_ptr.vmem [resolvable:$false] %s8278_s24 }
  0x43   : > { %s8280_s27 = scalar_lea.vmem %s8279_s24, 8192  ;;  %p8281_p1 = scmp.lt.s32.totalorder %s9058_s19, %s8279_s24 }
  0x44   : > { %p8276_p12 = pnand %p8274_p9, %p8260_p13  ;;  %p8282_p3 = scmp.lt.s32.totalorder %s8280_s27, %s8273_s22 }
  0x46   : > { %p8277_p0 = pneg %p8276_p12  ;;  %p8283_p4 = por %p8282_p3, %p8281_p1 }
  0x48   : > { %p8284_p5 = pnand %p8283_p4, %p8277_p0 }
  0x4a   : > { %8287 = shalt.err (!%p8284_p5)
}
  0x4b   : > { %s12336_s1 = smov 128   ;;  %s12338_s20 = smov 8  }
  0x4c   : > { %7607 = dma.hbm_to_vmem [thread:$0]  (!%p9054_p10), %s9050_s26, 4096, %s9058_s19, %s9069_s23, %s12336_s1, %s12336_s1, %s12338_s20  }
  0x4d   : > { %s7555_s21 = smul.u32 192, %s9061_s18  ;;  %s12439_s2 = sld [smem:[#allocation78_spill]] }
  0x4e   : > { %s7556_s13 = smul.u32 3072, %s8830_s30  ;;  %p9114_p10 = pneg %p9065_p11 }
  0x4f   : > { %s545_s27 = scalar_lea.vmem [#allocation10], %s7555_s21  ;;  %s7557_s29 = smul.u32 3, %s9061_s18 }
  0x50   : > { %s552_s11 = sshll.u32 %s545_s27, 4  ;;  %s9107_s11 = int_to_ptr.vmem [resolvable:$true] %s552_s11 }
  0x53   : > { %s9105_s24 = scalar_lea.hbm %s12439_s2, %s7556_s13  ;;  %s8293_s22 = scalar_lea.hbm %s12439_s2, 6144 }
  0x54   : > { %s8288_s0 = scalar_lea.hbm %s9105_s24, 3072  ;;  %p8294_p6 = scmp.lt.u32.totalorder %s9105_s24, %s12439_s2 }
  0x55   : > { %p8289_p1 = scmp.ne.s32.totalorder %s9105_s24, %s8288_s0  ;;  %p8295_p7 = scmp.lt.u32.totalorder %s8293_s22, %s8288_s0 }
  0x56   : > { %p8297_p9 = scmp.lt.u32.totalorder %s8288_s0, %s9105_s24 }
  0x57   : > { %p8291_p13 = pnand %p9114_p10, %p8289_p1  ;;  %p8296_p8 = por %p8295_p7, %p8294_p6 }
  0x59   : > { %p8292_p2 = pneg %p8291_p13  ;;  %p8298_p12 = por %p8297_p9, %p8296_p8 }
  0x5b   : > { %p8299_p0 = pnand %p8298_p12, %p8292_p2 }
  0x5d   : > { %8302 = shalt.err (!%p8299_p0)
}
  0x5e   : > { %s8303_s27 = scalar_lea.vmem %s9107_s11, 3072  ;;  %s8843_s19 = smov [#allocation10]  }
  0x5f   : > { %p8304_p3 = scmp.ne.s32.totalorder %s9107_s11, %s8303_s27  ;;  %s8308_s13 = sshll.u32 %s8843_s19, 4  ;;  %s8309_s13 = int_to_ptr.vmem [resolvable:$false] %s8308_s13 }
  0x60   : > { %s8310_s21 = scalar_lea.vmem %s8309_s13, 6144  ;;  %p8311_p1 = scmp.lt.s32.totalorder %s9107_s11, %s8309_s13 }
  0x61   : > { %p8306_p4 = pnand %p8304_p3, %p9114_p10  ;;  %p8312_p13 = scmp.lt.s32.totalorder %s8310_s21, %s8303_s27 }
  0x63   : > { %p8307_p5 = pneg %p8306_p4  ;;  %p8313_p6 = por %p8312_p13, %p8311_p1 }
  0x65   : > { %p8314_p7 = pnand %p8313_p6, %p8307_p5 }
  0x67   : > { %8317 = shalt.err (!%p8314_p7)
}
  0x68   : > { %s8844_s0 = smov 192   ;;  %s8845_s22 = smov 12  }
  0x69   : > { %7610 = dma.hbm_to_vmem [thread:$0]  (!%p9065_p11), %s9105_s24, 3072, %s9107_s11, %s9069_s23, %s8844_s0, %s8844_s0, %s8845_s22  }
  0x6a   : > { %s7558_s16 = smul.u32 48, %s8830_s30  ;;  %s566_s19 = scalar_lea.vmem [#allocation11], %s7557_s29 }
  0x6b   : > { %s574_s13 = sshll.u32 %s566_s19, 4  ;;  %s6588_s27 = sshll.u32 %s9061_s18, 6  ;;  %s575_s13 = int_to_ptr.vmem [resolvable:$true] %s574_s13 }
  0x6c   : > { %s12441_s3 = sld [smem:[#allocation79_spill]] }
  0x72   : > { %s572_s20 = scalar_lea.hbm %s12441_s3, %s7558_s16  ;;  %s8323_s25 = scalar_lea.hbm %s12441_s3, 96 }
  0x73   : > { %s8318_s2 = scalar_lea.hbm %s572_s20, 48  ;;  %p8324_p12 = scmp.lt.u32.totalorder %s572_s20, %s12441_s3 }
  0x74   : > { %p8319_p2 = scmp.ne.s32.totalorder %s572_s20, %s8318_s2  ;;  %p8325_p0 = scmp.lt.u32.totalorder %s8323_s25, %s8318_s2 }
  0x75   : > { %p8327_p4 = scmp.lt.u32.totalorder %s8318_s2, %s572_s20 }
  0x76   : > { %p8321_p8 = pnand %p8319_p2, %p9114_p10  ;;  %p8326_p3 = por %p8325_p0, %p8324_p12 }
  0x78   : > { %p8322_p9 = pneg %p8321_p8  ;;  %p8328_p5 = por %p8327_p4, %p8326_p3 }
  0x7a   : > { %p8329_p1 = pnand %p8328_p5, %p8322_p9 }
  0x7c   : > { %8332 = shalt.err (!%p8329_p1)
}
  0x7d   : > { %s8333_s1 = scalar_lea.vmem %s575_s13, 48  ;;  %s8846_s29 = smov [#allocation11]  }
  0x7e   : > { %p8334_p13 = scmp.ne.s32.totalorder %s575_s13, %s8333_s1  ;;  %s8338_s0 = sshll.u32 %s8846_s29, 4  ;;  %s8339_s0 = int_to_ptr.vmem [resolvable:$false] %s8338_s0 }
  0x7f   : > { %s8340_s14 = scalar_lea.vmem %s8339_s0, 96  ;;  %p8341_p2 = scmp.lt.s32.totalorder %s575_s13, %s8339_s0 }
  0x80   : > { %p8336_p6 = pnand %p8334_p13, %p9114_p10  ;;  %p8342_p8 = scmp.lt.s32.totalorder %s8340_s14, %s8333_s1 }
  0x82   : > { %p8337_p7 = pneg %p8336_p6  ;;  %p8343_p11 = por %p8342_p8, %p8341_p2 }
  0x84   : > { %p8344_p0 = pnand %p8343_p11, %p8337_p7 }
  0x86   : > { %8347 = shalt.err (!%p8344_p0)
}
  0x87   : > { %p12442_p12 = scmp.ne.s32.totalorder %s12438_s12, 0  ;;  %s6759_s2 = sshll.u32 %s8830_s30, 10 }
  0x88   : > { %s12443_s4 = sld [smem:[#allocation80_spill]]  ;;  %s585_s16 = scalar_lea.vmem [#allocation12], %s6588_s27 }
  0x89   : > { %7613 = dma.hbm_to_vmem [thread:$0]  (!%p12442_p12), %s572_s20, 48, %s575_s13, %s9069_s23  }
  0x8a   : > { %s592_s19 = sshll.u32 %s585_s16, 4  ;;  %s9166_s19 = int_to_ptr.vmem [resolvable:$true] %s592_s19 }
  0x8e   : > { %s9162_s22 = scalar_lea.hbm %s12443_s4, %s6759_s2  ;;  %s8353_s11 = scalar_lea.hbm %s12443_s4, 2048 }
  0x8f   : > { %s8348_s21 = scalar_lea.hbm %s9162_s22, 1024  ;;  %p8354_p4 = scmp.lt.u32.totalorder %s9162_s22, %s12443_s4 }
  0x90   : > { %p8349_p11 = scmp.ne.s32.totalorder %s9162_s22, %s8348_s21  ;;  %p8355_p5 = scmp.lt.u32.totalorder %s8353_s11, %s8348_s21 }
  0x91   : > { %p8357_p13 = scmp.lt.u32.totalorder %s8348_s21, %s9162_s22 }
  0x92   : > { %p8351_p9 = pnand %p8349_p11, %p9114_p10  ;;  %p8356_p1 = por %p8355_p5, %p8354_p4 }
  0x94   : > { %p8352_p3 = pneg %p8351_p9  ;;  %p8358_p6 = por %p8357_p13, %p8356_p1 }
  0x96   : > { %p8359_p7 = pnand %p8358_p6, %p8352_p3 }
  0x98   : > { %8362 = shalt.err (!%p8359_p7)
}
  0x99   : > { %s8363_s27 = scalar_lea.vmem %s9166_s19, 1024  ;;  %s8847_s29 = smov [#allocation12]  }
  0x9a   : > { %p8364_p2 = scmp.ne.s32.totalorder %s9166_s19, %s8363_s27  ;;  %s8368_s0 = sshll.u32 %s8847_s29, 4  ;;  %s8369_s0 = int_to_ptr.vmem [resolvable:$false] %s8368_s0 }
  0x9b   : > { %s8370_s14 = scalar_lea.vmem %s8369_s0, 2048  ;;  %p8371_p11 = scmp.lt.s32.totalorder %s9166_s19, %s8369_s0 }
  0x9c   : > { %p8366_p8 = pnand %p8364_p2, %p9114_p10  ;;  %p8372_p9 = scmp.lt.s32.totalorder %s8370_s14, %s8363_s27 }
  0x9e   : > { %p8367_p0 = pneg %p8366_p8  ;;  %p8373_p4 = por %p8372_p9, %p8371_p11 }
  0xa0   : > { %p8374_p5 = pnand %p8373_p4, %p8367_p0 }
  0xa2   : > { %8377 = shalt.err (!%p8374_p5)
}
  0xa3   : > { %s12344_s2 = smov 64   ;;  %s12345_s25 = smov 4  }
  0xa4   : > { %7616 = dma.hbm_to_vmem [thread:$0]  (!%p12442_p12), %s9162_s22, 1024, %s9166_s19, %s9069_s23, %s12344_s2, %s12344_s2, %s12345_s25  }
  0xa5   : > { %s9194_s15 = sshll.u32 %s8830_s30, 4  ;;  %s605_s16 = scalar_lea.vmem [#allocation13], %s9061_s18 }
  0xa6   : > { %s612_s21 = sshll.u32 %s605_s16, 4  ;;  %s12444_s5 = sld [smem:[#allocation81_spill]]  ;;  %s613_s21 = int_to_ptr.vmem [resolvable:$true] %s612_s21 }
  0xac   : > { %s610_s11 = scalar_lea.hbm %s12444_s5, %s9194_s15  ;;  %s8383_s29 = scalar_lea.hbm %s12444_s5, 32 }
  0xad   : > { %s8378_s24 = scalar_lea.hbm %s610_s11, 16  ;;  %p8384_p6 = scmp.lt.u32.totalorder %s610_s11, %s12444_s5 }
  0xae   : > { %p8379_p3 = scmp.ne.s32.totalorder %s610_s11, %s8378_s24  ;;  %p8385_p7 = scmp.lt.u32.totalorder %s8383_s29, %s8378_s24 }
  0xaf   : > { %p8387_p8 = scmp.lt.u32.totalorder %s8378_s24, %s610_s11 }
  0xb0   : > { %p8381_p1 = pnand %p8379_p3, %p9114_p10  ;;  %p8386_p2 = por %p8385_p7, %p8384_p6 }
  0xb2   : > { %p8382_p13 = pneg %p8381_p1  ;;  %p8388_p0 = por %p8387_p8, %p8386_p2 }
  0xb4   : > { %p8389_p11 = pnand %p8388_p0, %p8382_p13 }
  0xb6   : > { %8392 = shalt.err (!%p8389_p11)
}
  0xb7   : > { %s8393_s0 = scalar_lea.vmem %s613_s21, 16  ;;  %s8850_s14 = smov [#allocation13]  }
  0xb8   : > { %p8394_p9 = scmp.ne.s32.totalorder %s613_s21, %s8393_s0  ;;  %s8398_s16 = sshll.u32 %s8850_s14, 4  ;;  %s8399_s16 = int_to_ptr.vmem [resolvable:$false] %s8398_s16 }
  0xb9   : > { %s8400_s20 = scalar_lea.vmem %s8399_s16, 32  ;;  %p8401_p3 = scmp.lt.s32.totalorder %s613_s21, %s8399_s16 }
  0xba   : > { %p8396_p4 = pnand %p8394_p9, %p9114_p10  ;;  %p8402_p1 = scmp.lt.s32.totalorder %s8400_s20, %s8393_s0 }
  0xbc   : > { %p8397_p5 = pneg %p8396_p4  ;;  %p8403_p12 = por %p8402_p1, %p8401_p3 }
  0xbe   : > { %p8404_p6 = pnand %p8403_p12, %p8397_p5 }
  0xc0   : > { %8407 = shalt.err (!%p8404_p6)
}
  0xc1   : > { %p12445_p7 = scmp.ne.s32.totalorder %s12438_s12, 0  ;;  %s12446_s6 = sld [smem:[#allocation82_spill]] }
  0xc2   : > { %s622_s27 = scalar_lea.vmem [#allocation14], %s9061_s18  ;;  %s12447_s7 = sld [smem:[#allocation83_spill]] }
  0xc3   : > { %7619 = dma.hbm_to_vmem [thread:$0]  (!%p12445_p7), %s610_s11, 16, %s613_s21, %s9069_s23  }
  0xc4   : > { %s629_s29 = sshll.u32 %s622_s27, 4  ;;  %s630_s29 = int_to_ptr.vmem [resolvable:$true] %s629_s29 }
  0xc7   : > { %s9218_s1 = scalar_lea.hbm %s12446_s6, %s9194_s15  ;;  %s8413_s16 = scalar_lea.hbm %s12446_s6, 32 }
  0xc8   : > { %s9225_s0 = scalar_lea.hbm %s12447_s7, %s9194_s15  ;;  %s8408_s14 = scalar_lea.hbm %s9218_s1, 16 }
  0xc9   : > { %p8409_p12 = scmp.ne.s32.totalorder %s9218_s1, %s8408_s14  ;;  %p8414_p8 = scmp.lt.u32.totalorder %s9218_s1, %s12446_s6 }
  0xca   : > { %p8415_p0 = scmp.lt.u32.totalorder %s8413_s16, %s8408_s14  ;;  %p8417_p9 = scmp.lt.u32.totalorder %s8408_s14, %s9218_s1 }
  0xcb   : > { %p8411_p13 = pnand %p8409_p12, %p9114_p10 }
  0xcc   : > { %p8416_p11 = por %p8415_p0, %p8414_p8 }
  0xcd   : > { %p8412_p2 = pneg %p8411_p13 }
  0xce   : > { %p8418_p4 = por %p8417_p9, %p8416_p11 }
  0xd0   : > { %p8419_p5 = pnand %p8418_p4, %p8412_p2 }
  0xd2   : > { %8422 = shalt.err (!%p8419_p5)
}
  0xd3   : > { %s8423_s24 = scalar_lea.vmem %s630_s29, 16  ;;  %s8851_s27 = smov [#allocation14]  }
  0xd4   : > { %p8424_p3 = scmp.ne.s32.totalorder %s630_s29, %s8423_s24  ;;  %s8428_s22 = sshll.u32 %s8851_s27, 4  ;;  %s8429_s22 = int_to_ptr.vmem [resolvable:$false] %s8428_s22 }
  0xd5   : > { %s8430_s19 = scalar_lea.vmem %s8429_s22, 32  ;;  %p8431_p12 = scmp.lt.s32.totalorder %s630_s29, %s8429_s22 }
  0xd6   : > { %p8426_p1 = pnand %p8424_p3, %p9114_p10  ;;  %p8432_p13 = scmp.lt.s32.totalorder %s8430_s19, %s8423_s24 }
  0xd8   : > { %p8427_p6 = pneg %p8426_p1  ;;  %p8433_p7 = por %p8432_p13, %p8431_p12 }
  0xda   : > { %p8434_p0 = pnand %p8433_p7, %p8427_p6 }
  0xdc   : > { %8437 = shalt.err (!%p8434_p0)
}
  0xdd   : > { %p12448_p8 = scmp.ne.s32.totalorder %s12438_s12, 0  ;;  %s639_s14 = scalar_lea.vmem [#allocation15], %s9061_s18 }
  0xde   : > { %s646_s21 = sshll.u32 %s639_s14, 4  ;;  %s12346_s11 = sshll.u32 %s9061_s18, 7  ;;  %s647_s21 = int_to_ptr.vmem [resolvable:$true] %s646_s21 }
  0xdf   : > { %7622 = dma.hbm_to_vmem [thread:$0]  (!%p12448_p8), %s9218_s1, 16, %s630_s29, %s9069_s23  }
  0xe0   : > { %s8438_s16 = scalar_lea.hbm %s9225_s0, 16  ;;  %s8443_s24 = scalar_lea.hbm %s12447_s7, 32 }
  0xe1   : > { %p8439_p2 = scmp.ne.s32.totalorder %s9225_s0, %s8438_s16  ;;  %p8444_p9 = scmp.lt.u32.totalorder %s9225_s0, %s12447_s7 }
  0xe2   : > { %p8445_p4 = scmp.lt.u32.totalorder %s8443_s24, %s8438_s16  ;;  %p8447_p3 = scmp.lt.u32.totalorder %s8438_s16, %s9225_s0 }
  0xe3   : > { %p8441_p7 = pnand %p8439_p2, %p9114_p10 }
  0xe4   : > { %p8446_p5 = por %p8445_p4, %p8444_p9 }
  0xe5   : > { %p8442_p11 = pneg %p8441_p7 }
  0xe6   : > { %p8448_p1 = por %p8447_p3, %p8446_p5 }
  0xe8   : > { %p8449_p6 = pnand %p8448_p1, %p8442_p11 }
  0xea   : > { %8452 = shalt.err (!%p8449_p6)
}
  0xeb   : > { %s8453_s1 = scalar_lea.vmem %s647_s21, 16  ;;  %s8852_s29 = smov [#allocation15]  }
  0xec   : > { %p8454_p12 = scmp.ne.s32.totalorder %s647_s21, %s8453_s1  ;;  %s8458_s19 = sshll.u32 %s8852_s29, 4  ;;  %s8459_s19 = int_to_ptr.vmem [resolvable:$false] %s8458_s19 }
  0xed   : > { %s8460_s14 = scalar_lea.vmem %s8459_s19, 32  ;;  %p8461_p2 = scmp.lt.s32.totalorder %s647_s21, %s8459_s19 }
  0xee   : > { %p8456_p13 = pnand %p8454_p12, %p9114_p10  ;;  %p8462_p7 = scmp.lt.s32.totalorder %s8460_s14, %s8453_s1 }
  0xf0   : > { %p8457_p0 = pneg %p8456_p13  ;;  %p8463_p8 = por %p8462_p7, %p8461_p2 }
  0xf2   : > { %p8464_p4 = pnand %p8463_p8, %p8457_p0 }
  0xf4   : > { %8467 = shalt.err (!%p8464_p4)
}
  0xf5   : > { %p12449_p9 = scmp.ne.s32.totalorder %s12438_s12, 0  ;;  %s6760_s16 = sshll.u32 %s8830_s30, 11 }
  0xf6   : > { %s657_s20 = scalar_lea.vmem [#allocation16], %s12346_s11  ;;  %s12450_s8 = sld [smem:[#allocation84_spill]] }
  0xf7   : > { %7625 = dma.hbm_to_vmem [thread:$0]  (!%p12449_p9), %s9225_s0, 16, %s647_s21, %s9069_s23  }
  0xf8   : > { %s664_s13 = sshll.u32 %s657_s20, 4  ;;  %s9275_s13 = int_to_ptr.vmem [resolvable:$true] %s664_s13 }
  0xfc   : > { %s9273_s22 = scalar_lea.hbm %s12450_s8, %s6760_s16  ;;  %s8473_s29 = scalar_lea.hbm %s12450_s8, 4096 }
  0xfd   : > { %s8468_s1 = scalar_lea.hbm %s9273_s22, 2048  ;;  %p8474_p3 = scmp.lt.u32.totalorder %s9273_s22, %s12450_s8 }
  0xfe   : > { %p8469_p8 = scmp.ne.s32.totalorder %s9273_s22, %s8468_s1  ;;  %p8475_p1 = scmp.lt.u32.totalorder %s8473_s29, %s8468_s1 }
  0xff   : > { %p8477_p12 = scmp.lt.u32.totalorder %s8468_s1, %s9273_s22 }
 0x100   : > { %p8471_p11 = pnand %p8469_p8, %p9114_p10  ;;  %p8476_p6 = por %p8475_p1, %p8474_p3 }
 0x102   : > { %p8472_p5 = pneg %p8471_p11  ;;  %p8478_p13 = por %p8477_p12, %p8476_p6 }
 0x104   : > { %p8479_p0 = pnand %p8478_p13, %p8472_p5 }
 0x106   : > { %8482 = shalt.err (!%p8479_p0)
}
 0x107   : > { %s8483_s20 = scalar_lea.vmem %s9275_s13, 2048  ;;  %s8853_s24 = smov [#allocation16]  }
 0x108   : > { %p8484_p2 = scmp.ne.s32.totalorder %s9275_s13, %s8483_s20  ;;  %s8488_s27 = sshll.u32 %s8853_s24, 4  ;;  %s8489_s27 = int_to_ptr.vmem [resolvable:$false] %s8488_s27 }
 0x109   : > { %s8490_s0 = scalar_lea.vmem %s8489_s27, 4096  ;;  %p8491_p8 = scmp.lt.s32.totalorder %s9275_s13, %s8489_s27 }
 0x10a   : > { %p8486_p7 = pnand %p8484_p2, %p9114_p10  ;;  %p8492_p11 = scmp.lt.s32.totalorder %s8490_s0, %s8483_s20 }
 0x10c   : > { %p8487_p4 = pneg %p8486_p7  ;;  %p8493_p3 = por %p8492_p11, %p8491_p8 }
 0x10e   : > { %p8494_p1 = pnand %p8493_p3, %p8487_p4 }
 0x110   : > { %8497 = shalt.err (!%p8494_p1)
}
 0x111   : > { %s12451_s1 = smov 8   ;;  %s12452_s21 = smov 128  }
 0x112   : > { %7628 = dma.hbm_to_vmem [thread:$0]  (!%p12449_p9), %s9273_s22, 2048, %s9275_s13, %s9069_s23, %s12452_s21, %s12452_s21, %s12451_s1  }
 0x113   : > { %s6597_s29 = sshll.u32 %s9061_s18, 1  ;;  %s6761_s19 = sshll.u32 %s8830_s30, 5 }
 0x114   : > { %s12453_s9 = sld [smem:[#allocation85_spill]]  ;;  %s678_s27 = scalar_lea.vmem [#allocation17], %s6597_s29 }
 0x115   : > { %s686_s0 = sshll.u32 %s678_s27, 4  ;;  %s12454_s10 = sld [smem:[#allocation86_spill]]  ;;  %s687_s0 = int_to_ptr.vmem [resolvable:$true] %s686_s0 }
 0x11a   : > { %s9307_s24 = scalar_lea.hbm %s12453_s9, %s6761_s19  ;;  %s8503_s14 = scalar_lea.hbm %s12453_s9, 64 }
 0x11b   : > { %s9314_s11 = scalar_lea.hbm %s12454_s10, %s6760_s16  ;;  %s8498_s13 = scalar_lea.hbm %s9307_s24, 32 }
 0x11c   : > { %p8499_p5 = scmp.ne.s32.totalorder %s9307_s24, %s8498_s13  ;;  %p8504_p13 = scmp.lt.u32.totalorder %s9307_s24, %s12453_s9 }
 0x11d   : > { %p8505_p0 = scmp.lt.u32.totalorder %s8503_s14, %s8498_s13  ;;  %p8507_p7 = scmp.lt.u32.totalorder %s8498_s13, %s9307_s24 }
 0x11e   : > { %p8501_p6 = pnand %p8499_p5, %p9114_p10 }
 0x11f   : > { %p8506_p2 = por %p8505_p0, %p8504_p13 }
 0x120   : > { %p8502_p12 = pneg %p8501_p6 }
 0x121   : > { %p8508_p4 = por %p8507_p7, %p8506_p2 }
 0x123   : > { %p8509_p8 = pnand %p8508_p4, %p8502_p12 }
 0x125   : > { %8512 = shalt.err (!%p8509_p8)
}
 0x126   : > { %s8513_s2 = scalar_lea.vmem %s687_s0, 32  ;;  %s8854_s25 = smov [#allocation17]  }
 0x127   : > { %p8514_p11 = scmp.ne.s32.totalorder %s687_s0, %s8513_s2  ;;  %s8518_s16 = sshll.u32 %s8854_s25, 4  ;;  %s8519_s16 = int_to_ptr.vmem [resolvable:$false] %s8518_s16 }
 0x128   : > { %s8520_s29 = scalar_lea.vmem %s8519_s16, 64  ;;  %p8521_p5 = scmp.lt.s32.totalorder %s687_s0, %s8519_s16 }
 0x129   : > { %p8516_p3 = pnand %p8514_p11, %p9114_p10  ;;  %p8522_p6 = scmp.lt.s32.totalorder %s8520_s29, %s8513_s2 }
 0x12b   : > { %p8517_p1 = pneg %p8516_p3  ;;  %p8523_p9 = por %p8522_p6, %p8521_p5 }
 0x12d   : > { %p8524_p0 = pnand %p8523_p9, %p8517_p1 }
 0x12f   : > { %8527 = shalt.err (!%p8524_p0)
}
 0x130   : > { %p12455_p13 = scmp.ne.s32.totalorder %s12438_s12, 0  ;;  %s12456_s3 = sshll.u32 %s9061_s18, 7 }
 0x131   : > { %s697_s27 = scalar_lea.vmem [#allocation18], %s12456_s3  ;;  %s12457_s14 = sld [smem:[#allocation87_spill]] }
 0x132   : > { %7631 = dma.hbm_to_vmem [thread:$0]  (!%p12455_p13), %s9307_s24, 32, %s687_s0, %s9069_s23  }
 0x133   : > { %s704_s13 = sshll.u32 %s697_s27, 4  ;;  %s8528_s2 = scalar_lea.hbm %s9314_s11, 2048  ;;  %s9336_s13 = int_to_ptr.vmem [resolvable:$true] %s704_s13 }
 0x134   : > { %p8529_p9 = scmp.ne.s32.totalorder %s9314_s11, %s8528_s2  ;;  %s8533_s29 = scalar_lea.hbm %s12454_s10, 4096 }
 0x135   : > { %p8534_p7 = scmp.lt.u32.totalorder %s9314_s11, %s12454_s10  ;;  %p8535_p4 = scmp.lt.u32.totalorder %s8533_s29, %s8528_s2 }
 0x136   : > { %p8531_p12 = pnand %p8529_p9, %p9114_p10  ;;  %p8537_p11 = scmp.lt.u32.totalorder %s8528_s2, %s9314_s11 }
 0x137   : > { %s9342_s20 = scalar_lea.hbm %s12457_s14, %s9194_s15  ;;  %p8536_p8 = por %p8535_p4, %p8534_p7 }
 0x138   : > { %p8532_p2 = pneg %p8531_p12 }
 0x139   : > { %p8538_p3 = por %p8537_p11, %p8536_p8 }
 0x13b   : > { %p8539_p1 = pnand %p8538_p3, %p8532_p2 }
 0x13d   : > { %8542 = shalt.err (!%p8539_p1)
}
 0x13e   : > { %s8543_s3 = scalar_lea.vmem %s9336_s13, 2048  ;;  %s8855_s27 = smov [#allocation18]  }
 0x13f   : > { %p8544_p5 = scmp.ne.s32.totalorder %s9336_s13, %s8543_s3  ;;  %s8548_s22 = sshll.u32 %s8855_s27, 4  ;;  %s8549_s22 = int_to_ptr.vmem [resolvable:$false] %s8548_s22 }
 0x140   : > { %s8550_s19 = scalar_lea.vmem %s8549_s22, 4096  ;;  %p8551_p9 = scmp.lt.s32.totalorder %s9336_s13, %s8549_s22 }
 0x141   : > { %p8546_p6 = pnand %p8544_p5, %p9114_p10  ;;  %p8552_p12 = scmp.lt.s32.totalorder %s8550_s19, %s8543_s3 }
 0x143   : > { %p8547_p0 = pneg %p8546_p6  ;;  %p8553_p7 = por %p8552_p12, %p8551_p9 }
 0x145   : > { %p8554_p4 = pnand %p8553_p7, %p8547_p0 }
 0x147   : > { %8557 = shalt.err (!%p8554_p4)
}
 0x148   : > { %s12458_s2 = smov 4   ;;  %s12459_s25 = smov 64  }
 0x149   : > { %7634 = dma.hbm_to_vmem [thread:$0]  (!%p12455_p13), %s9314_s11, 2048, %s9336_s13, %s9069_s23, %s12459_s25, %s12459_s25, %s12458_s2  }
 0x14a   : > { %s717_s16 = scalar_lea.vmem [#allocation19], %s9061_s18  ;;  %s8558_s24 = scalar_lea.hbm %s9342_s20, 16 }
 0x14b   : > { %s724_s29 = sshll.u32 %s717_s16, 4  ;;  %p8559_p2 = scmp.ne.s32.totalorder %s9342_s20, %s8558_s24  ;;  %s725_s29 = int_to_ptr.vmem [resolvable:$true] %s724_s29 }
 0x14c   : > { %s8563_s27 = scalar_lea.hbm %s12457_s14, 32  ;;  %p8564_p3 = scmp.lt.u32.totalorder %s9342_s20, %s12457_s14 }
 0x14d   : > { %p8561_p8 = pnand %p8559_p2, %p9114_p10  ;;  %p8565_p1 = scmp.lt.u32.totalorder %s8563_s27, %s8558_s24 }
 0x14e   : > { %p8567_p6 = scmp.lt.u32.totalorder %s8558_s24, %s9342_s20 }
 0x14f   : > { %p8562_p11 = pneg %p8561_p8  ;;  %p8566_p5 = por %p8565_p1, %p8564_p3 }
 0x151   : > { %p8568_p0 = por %p8567_p6, %p8566_p5 }
 0x153   : > { %p8569_p9 = pnand %p8568_p0, %p8562_p11 }
 0x155   : > { %8572 = shalt.err (!%p8569_p9)
}
 0x156   : > { %s8573_s11 = scalar_lea.vmem %s725_s29, 16  ;;  %s8856_s13 = smov [#allocation19]  }
 0x157   : > { %p8574_p12 = scmp.ne.s32.totalorder %s725_s29, %s8573_s11  ;;  %s8578_s2 = sshll.u32 %s8856_s13, 4  ;;  %s8579_s2 = int_to_ptr.vmem [resolvable:$false] %s8578_s2 }
 0x158   : > { %s8580_s25 = scalar_lea.vmem %s8579_s2, 32  ;;  %p8581_p2 = scmp.lt.s32.totalorder %s725_s29, %s8579_s2 }
 0x159   : > { %p8576_p7 = pnand %p8574_p12, %p9114_p10  ;;  %p8582_p8 = scmp.lt.s32.totalorder %s8580_s25, %s8573_s11 }
 0x15b   : > { %p8577_p4 = pneg %p8576_p7  ;;  %p8583_p13 = por %p8582_p8, %p8581_p2 }
 0x15d   : > { %p8584_p1 = pnand %p8583_p13, %p8577_p4 }
 0x15f   : > { %8587 = shalt.err (!%p8584_p1)
}
 0x160   : > { %p12460_p3 = scmp.ne.s32.totalorder %s12438_s12, 0  ;;  %s12461_s16 = sld [smem:[#allocation32_spill]] }
 0x161   : > { %s12462_s24 = sld [smem:[#allocation33_spill]]  ;;  %s12463_s0 = sld [smem:[#allocation29_spill]] }
 0x162   : > { %s12464_s3 = sld [smem:[#allocation30_spill]]  ;;  %s9389_s27 = sadd.s32 4294967295, %s8838_s17  }
 0x163   : > { %7637 = dma.hbm_to_vmem [thread:$0]  (!%p12460_p3), %s9342_s20, 16, %s725_s29, %s9069_s23  }
 0x164   : > { %s6577_s22 = sadd.s32 4294967294, %s8838_s17   ;;  %p12350_p11 = scmp.eq.s32.totalorder %s9389_s27, 0 }
 0x165   : > { %p466_p6 = scmp.eq.s32.totalorder %s9389_s27, 3  ;;  %p472_p9 = scmp.eq.s32.totalorder %s6577_s22, 3 }
 0x166   : > { %p6578_p8 = scmp.ge.s32.totalorder %s8838_s17, 1  ;;  %p479_p1 = scmp.lt.s32.totalorder %s8838_s17, 5 }
 0x167   : > { %p67_p13 = scmp.ne.s32.totalorder %s12462_s24, %s12461_s16  ;;  %p12467_p7 = scmp.ne.s32.totalorder %s8818_s28, %s12462_s24 }
 0x168   : > { %p114_p5 = scmp.ne.s32.totalorder %s12464_s3, %s12463_s0  ;;  %s8857_s2 = smov [#allocation8]  }
 0x169   : > { %p9400_p0 = por %p12350_p11, %p67_p13  ;;  %p9413_p4 = por %p466_p6, %p12467_p7 }
 0x16a   : > { %p9406_p12 = por %p114_p5, %p12350_p11  ;;  %p9417_p2 = por %p472_p9, %p67_p13 }
 0x16b   : > { %s12465_s19 = scalar_select %p9400_p0, 1, 0 }
 0x16c   : > { %s12466_s20 = scalar_select %p9406_p12, 1, 0 }
 0x16d   : > { %s12468_s29 = scalar_select %p9413_p4, 1, 0 }
 0x16e   : > { %s12469_s11 = scalar_select %p9417_p2, 1, 0 }
 0x16f   : > { %p9423_p0 = pnand %p6578_p8, %p479_p1  ;;  %s491_s25 = sshll.u32 %s8857_s2, 4  ;;  %s9427_s25 = int_to_ptr.vmem [resolvable:$true] %s491_s25 }
 0x170   : > { %s12471_s0 = sld [smem:[#allocation88_spill]]  ;;  %s734_s4 = scalar_lea.vmem [#allocation20], %s9061_s18 }
 0x171   : > { %s12470_s13 = scalar_select %p9423_p0, 1, 0 }
 0x172   : > { %p7597_p13 = pneg %p9423_p0  ;;  %s741_s5 = sshll.u32 %s734_s4, 4  ;;  %s9438_s5 = int_to_ptr.vmem [resolvable:$true] %s741_s5 }
 0x173   : > { %s8858_s6 = smov [#allocation22]  }
 0x174   : > { %p9442_p5 = pnand %p7597_p13, %p12350_p11  ;;  %s505_s7 = sshll.u32 %s8858_s6, 4  ;;  %s9468_s7 = int_to_ptr.vmem [resolvable:$true] %s505_s7 }
 0x176   : > { %s12472_s3 = smov %s12471_s0  ;;  %s9433_s22 = scalar_lea.hbm %s12471_s0, %s9194_s15 }
 0x177   : > { %s12473_s2 = scalar_select %p9442_p5, 1, 0 }
 0x178   : > { %s8588_s16 = scalar_lea.hbm %s9433_s22, 16  ;;  %s8593_s8 = scalar_lea.hbm %s12472_s3, 32 }
 0x179   : > { %p8589_p6 = scmp.ne.s32.totalorder %s9433_s22, %s8588_s16  ;;  %p8594_p8 = scmp.lt.u32.totalorder %s9433_s22, %s12472_s3 }
 0x17a   : > { %p8595_p1 = scmp.lt.u32.totalorder %s8593_s8, %s8588_s16  ;;  %p8597_p11 = scmp.lt.u32.totalorder %s8588_s16, %s9433_s22 }
 0x17b   : > { %p8591_p9 = pnand %p8589_p6, %p9114_p10 }
 0x17c   : > { %p8596_p13 = por %p8595_p1, %p8594_p8 }
 0x17d   : > { %p8592_p7 = pneg %p8591_p9 }
 0x17e   : > { %p8598_p2 = por %p8597_p11, %p8596_p13 }
 0x180   : > { %p8599_p4 = pnand %p8598_p2, %p8592_p7 }
 0x182   : > { %8602 = shalt.err (!%p8599_p4)
}
 0x183   : > { %s8603_s6 = scalar_lea.vmem %s9438_s5, 16  ;;  %s8859_s24 = smov [#allocation20]  }
 0x184   : > { %p8604_p6 = scmp.ne.s32.totalorder %s9438_s5, %s8603_s6  ;;  %s8608_s0 = sshll.u32 %s8859_s24, 4  ;;  %s8609_s0 = int_to_ptr.vmem [resolvable:$false] %s8608_s0 }
 0x185   : > { %s8610_s9 = scalar_lea.vmem %s8609_s0, 32  ;;  %p8611_p0 = scmp.lt.s32.totalorder %s9438_s5, %s8609_s0 }
 0x186   : > { %p8606_p9 = pnand %p8604_p6, %p9114_p10  ;;  %p8612_p5 = scmp.lt.s32.totalorder %s8610_s9, %s8603_s6 }
 0x188   : > { %p8607_p12 = pneg %p8606_p9  ;;  %p8613_p8 = por %p8612_p5, %p8611_p0 }
 0x18a   : > { %p8614_p1 = pnand %p8613_p8, %p8607_p12 }
 0x18c   : > { %8617 = shalt.err (!%p8614_p1)
}
 0x18d   : > { %7640 = dma.hbm_to_vmem [thread:$0]  (!%p12460_p3), %s9433_s22, 16, %s9438_s5, %s9069_s23  }
 0x18e   : > { %s12474_s4 = sld [smem:[#allocation77_spill]]  ;;  %p12475_p0 = scmp.ne.s32.totalorder %s12473_s2, 0 }
 0x190   : > { %p8620_p12 = pneg %p12475_p0 }
 0x194   : > { %s8618_s24 = scalar_lea.hbm %s12474_s4, 2048 }
 0x195   : > { %p8619_p11 = scmp.ne.s32.totalorder %s12474_s4, %s8618_s24  ;;  %p8625_p5 = scmp.lt.u32.totalorder %s8618_s24, %s12474_s4 }
 0x197   : > { %p8621_p4 = pnand %p8620_p12, %p8619_p11 }
 0x199   : > { %p8622_p2 = pneg %p8621_p4 }
 0x19b   : > { %p8627_p7 = pnand %p8625_p5, %p8622_p2 }
 0x19d   : > { %8630 = shalt.err (!%p8627_p7)
}
 0x19e   : > { %s8631_s5 = scalar_lea.vmem %s9427_s25, 2048  ;;  %p8639_p8 = scmp.lt.s32.totalorder %s9427_s25, %s9427_s25 }
 0x19f   : > { %p8632_p13 = scmp.ne.s32.totalorder %s9427_s25, %s8631_s5  ;;  %p8640_p1 = scmp.lt.s32.totalorder %s8631_s5, %s8631_s5 }
 0x1a1   : > { %p8634_p6 = pnand %p8632_p13, %p8620_p12  ;;  %p8641_p11 = por %p8640_p1, %p8639_p8 }
 0x1a3   : > { %p8635_p9 = pneg %p8634_p6 }
 0x1a5   : > { %p8642_p4 = pnand %p8641_p11, %p8635_p9 }
 0x1a7   : > { %8645 = shalt.err (!%p8642_p4)
}
 0x1a8   : > { %7600 = dma.hbm_to_vmem [thread:$0]  (!%p12475_p0), %s12474_s4, 2048, %s9427_s25, [#allocation9], %s12452_s21, %s12452_s21, %s12451_s1  }
 0x1a9   : > { %s12476_s24 = sld [smem:[#allocation90_spill]] }
 0x1af   : > { %s12477_s6 = smov %s12476_s24  ;;  %s8646_s0 = scalar_lea.hbm %s12476_s24, 16 }
 0x1b0   : > { %p8647_p2 = scmp.ne.s32.totalorder %s12477_s6, %s8646_s0  ;;  %p8653_p13 = scmp.lt.u32.totalorder %s8646_s0, %s12477_s6 }
 0x1b2   : > { %p8649_p5 = pnand %p8647_p2, %p8620_p12 }
 0x1b4   : > { %p8650_p7 = pneg %p8649_p5 }
 0x1b6   : > { %p8655_p6 = pnand %p8653_p13, %p8650_p7 }
 0x1b8   : > { %8658 = shalt.err (!%p8655_p6)
}
 0x1b9   : > { %s8659_s1 = scalar_lea.vmem %s9468_s7, 16  ;;  %s8666_s21 = scalar_lea.vmem %s9468_s7, 32 }
 0x1ba   : > { %p8660_p9 = scmp.ne.s32.totalorder %s9468_s7, %s8659_s1  ;;  %p8667_p11 = scmp.lt.s32.totalorder %s9468_s7, %s9468_s7 }
 0x1bb   : > { %p8668_p4 = scmp.lt.s32.totalorder %s8666_s21, %s8659_s1 }
 0x1bc   : > { %p8662_p8 = pnand %p8660_p9, %p8620_p12 }
 0x1bd   : > { %p8669_p2 = por %p8668_p4, %p8667_p11 }
 0x1be   : > { %p8663_p1 = pneg %p8662_p8 }
 0x1c0   : > { %p8670_p5 = pnand %p8669_p2, %p8663_p1 }
 0x1c2   : > { %8673 = shalt.err (!%p8670_p5)
}
 0x1c3   : > { %7603 = dma.hbm_to_vmem [thread:$0]  (!%p12475_p0), %s12477_s6, 16, %s9468_s7, [#allocation9]  }
 0x1c4   : > { %s12478_s22 = sld [smem:[#allocation89_spill]]  ;;  %s751_s16 = scalar_lea.vmem [#allocation21], %s9061_s18 }
 0x1c5   : > { %s758_s24 = sshll.u32 %s751_s16, 4  ;;  %s759_s24 = int_to_ptr.vmem [resolvable:$true] %s758_s24 }
 0x1ca   : > { %s9530_s8 = scalar_lea.hbm %s12478_s22, %s9194_s15  ;;  %s8679_s7 = scalar_lea.hbm %s12478_s22, 32 }
 0x1cb   : > { %s8674_s2 = scalar_lea.hbm %s9530_s8, 16  ;;  %p8680_p0 = scmp.lt.u32.totalorder %s9530_s8, %s12478_s22 }
 0x1cc   : > { %p8675_p12 = scmp.ne.s32.totalorder %s9530_s8, %s8674_s2  ;;  %p8681_p6 = scmp.lt.u32.totalorder %s8679_s7, %s8674_s2 }
 0x1cd   : > { %p8683_p8 = scmp.lt.u32.totalorder %s8674_s2, %s9530_s8 }
 0x1ce   : > { %p8677_p7 = pnand %p8675_p12, %p9114_p10  ;;  %p8682_p9 = por %p8681_p6, %p8680_p0 }
 0x1d0   : > { %p8678_p13 = pneg %p8677_p7  ;;  %p8684_p1 = por %p8683_p8, %p8682_p9 }
 0x1d2   : > { %p8685_p11 = pnand %p8684_p1, %p8678_p13 }
 0x1d4   : > { %8688 = shalt.err (!%p8685_p11)
}
 0x1d5   : > { %s8689_s18 = scalar_lea.vmem %s759_s24, 16  ;;  %s8860_s15 = smov [#allocation21]  }
 0x1d6   : > { %p8690_p4 = scmp.ne.s32.totalorder %s759_s24, %s8689_s18  ;;  %s8694_s21 = sshll.u32 %s8860_s15, 4  ;;  %s8695_s21 = int_to_ptr.vmem [resolvable:$false] %s8694_s21 }
 0x1d7   : > { %s8696_s10 = scalar_lea.vmem %s8695_s21, 32  ;;  %p8697_p12 = scmp.lt.s32.totalorder %s759_s24, %s8695_s21 }
 0x1d8   : > { %p8692_p2 = pnand %p8690_p4, %p9114_p10  ;;  %p8698_p7 = scmp.lt.s32.totalorder %s8696_s10, %s8689_s18 }
 0x1da   : > { %p8693_p5 = pneg %p8692_p2  ;;  %p8699_p3 = por %p8698_p7, %p8697_p12 }
 0x1dc   : > { %p8700_p0 = pnand %p8699_p3, %p8693_p5 }
 0x1de   : > { %8703 = shalt.err (!%p8700_p0)
}
 0x1df   : > { %p12479_p6 = scmp.ne.s32.totalorder %s12438_s12, 0  ;;  %p12480_p13 = scmp.ne.s32.totalorder %s12470_s13, 0 }
 0x1e1   : > { %7643 = dma.hbm_to_vmem [thread:$0]  (!%p12479_p6), %s9530_s8, 16, %s759_s24, %s9069_s23  }
 0x1e2   : > { %767 = sbr.rel (%p12480_p13) target bundleno = 3664 (0xe50), region = 84 }
 0x1e9   : > { %s12481_s26 = sld [smem:[#allocation33_spill]]  ;;  %s769_s14 = sand.u32 1, %s9389_s27  }
 0x1ea   : > { %s770_s16 = scalar_lea.sflag [#allocation6], %s769_s14  ;;  %p12482_p10 = scmp.ne.s32.totalorder %s12465_s19, 0 }
 0x1ef   : > { %s9555_s25 = sand.u32 1, %s12481_s26  }
 0x1f0   : > { %s6607_s3 = sshll.u32 %s9555_s25, 8 }
 0x1f1   : > { %s9558_s2 = scalar_lea.vmem [#allocation5], %s6607_s3 }
 0x1f2   : > { %8777 = dma.done.wait (%p12482_p10), %s770_s16, 4096  }
 0x1f3   : > { %8779 = vsyncadd (%p12482_p10), %s770_s16, 4294963200  ;;  %p12483_p3 = scmp.eq.s32.totalorder %s9389_s27, 0 }
 0x1f5   : > { %8781 = dma.done.wait (%p12483_p3), [#allocation9], 2048   ;;  %p12484_p9 = pmov %p12483_p3 }
 0x1f6   : > { %s12485_s12 = sld [smem:[#allocation30_spill]]  ;;  %p12486_p8 = scmp.ne.s32.totalorder %s12466_s20, 0 }
 0x1f7   : > { %8783 = vsyncadd (%p12484_p9), [#allocation9], 4294965248 }
 0x1fc   : > { %s9569_s23 = sand.u32 1, %s12485_s12  }
 0x1fd   : > { %s7559_s13 = smul.u32 192, %s9569_s23 }
 0x1ff   : > { %s9572_s8 = scalar_lea.vmem [#allocation10], %s7559_s13 }
 0x200   : > { %8785 = dma.done.wait (%p12486_p8), %s770_s16, 8368  }
 0x201   : > { %8787 = vsyncadd (%p12486_p8), %s770_s16, 4294958928  ;;  %s7560_s19 = smul.u32 3, %s9569_s23  ;;  %s6609_s24 = sshll.u32 %s9569_s23, 6 }
 0x202   : > { %s6610_s0 = sshll.u32 %s9569_s23, 7  ;;  %s6611_s9 = sshll.u32 %s9569_s23, 1 }
 0x203   : > { %s9582_s7 = scalar_lea.vmem [#allocation11], %s7560_s19  ;;  %s9584_s5 = scalar_lea.vmem [#allocation12], %s6609_s24 }
 0x204   : > { %s812_s20 = scalar_lea.vmem [#allocation13], %s9569_s23  ;;  %s820_s1 = scalar_lea.vmem [#allocation14], %s9569_s23 }
 0x205   : > { %s828_s18 = scalar_lea.vmem [#allocation15], %s9569_s23  ;;  %s9589_s15 = scalar_lea.vmem [#allocation16], %s6610_s0 }
 0x206   : > { %s9591_s21 = scalar_lea.vmem [#allocation17], %s6611_s9  ;;  %s9593_s10 = scalar_lea.vmem [#allocation18], %s6610_s0 }
 0x207   : > { %s863_s26 = scalar_lea.vmem [#allocation19], %s9569_s23  ;;  %s871_s14 = scalar_lea.vmem [#allocation20], %s9569_s23 }
 0x208   : > { %s879_s3 = scalar_lea.vmem [#allocation21], %s9569_s23  ;;  %p12487_p1 = pmov %p12483_p3 }
 0x20a   : > { %8789 = dma.done.wait (%p12487_p1), [#allocation9], 16   ;;  %p12488_p11 = pmov %p12487_p1 }
 0x20b   : > { %s6614_s16 = sshll.u32 %s9555_s25, 1  ;;  %s12489_s13 = sld [smem:[#allocation34_spill]] }
 0x20c   : > { %8791 = vsyncadd (%p12488_p11), [#allocation9], 4294967280  ;;  %s9603_s12 = scalar_lea.vmem [#allocation23], %s6614_s16 }
 0x211   : > { %p6615_p4 = scmp.ne.s32.totalorder %s12489_s13, 0 }
 0x212   : > { %v992_v1 = vld [vmem:[%s9558_s2] sm:$0xff] (!%p6615_p4)  ;;  %v993_v3 = vld [vmem:[%s9558_s2 + $0x8] sm:$0xff] (!%p6615_p4)  ;;  %v994_v6 = vld [vmem:[%s9558_s2 + $0x10] sm:$0xff] (!%p6615_p4) }
 0x213   : > { %991 = sbr.rel (%p6615_p4) target bundleno = 554 (0x22a), region = 148  ;;  %v1024_v2 = vld [vmem:[#allocation8] sm:$0xff] (!%p6615_p4)  ;;  %v9608_v5 = vld [vmem:[#allocation8 + $0x8] sm:$0xff] (!%p6615_p4)  ;;  %v9611_v7 = vld [vmem:[#allocation8 + $0x10] sm:$0xff] (!%p6615_p4) }
 0x214   : > { %v1040_v4 = vadd.f32 (!%p6615_p4), %v1024_v2, %v992_v1  ;;  %v1041_v8 = vadd.f32 (!%p6615_p4), %v9608_v5, %v993_v3  ;;  %v1042_v9 = vadd.f32 (!%p6615_p4), %v9611_v7, %v994_v6  ;;  %v995_v10 = vld [vmem:[%s9558_s2 + $0x18] sm:$0xff] (!%p6615_p4)  ;;  %v996_v12 = vld [vmem:[%s9558_s2 + $0x20] sm:$0xff] (!%p6615_p4)  ;;  %v997_v15 = vld [vmem:[%s9558_s2 + $0x28] sm:$0xff] (!%p6615_p4) }
 0x215   : > { %v1027_v11 = vld [vmem:[#allocation8 + $0x18] sm:$0xff] (!%p6615_p4)  ;;  %v1028_v14 = vld [vmem:[#allocation8 + $0x20] sm:$0xff] (!%p6615_p4)  ;;  %v1029_v16 = vld [vmem:[#allocation8 + $0x28] sm:$0xff] (!%p6615_p4) }
 0x216   : > { %1072 = vst [vmem:[#allocation2] sm:$0xff] (!%p6615_p4), %v1040_v4  ;;  %v1043_v13 = vadd.f32 (!%p6615_p4), %v1027_v11, %v995_v10  ;;  %1073 = vst [vmem:[#allocation2 + $0x8] sm:$0xff] (!%p6615_p4), %v1041_v8  ;;  %v1044_v17 = vadd.f32 (!%p6615_p4), %v1028_v14, %v996_v12  ;;  %v1045_v18 = vadd.f32 (!%p6615_p4), %v1029_v16, %v997_v15  ;;  %v998_v19 = vld [vmem:[%s9558_s2 + $0x30] sm:$0xff] (!%p6615_p4)  ;;  %v999_v21 = vld [vmem:[%s9558_s2 + $0x38] sm:$0xff] (!%p6615_p4) }
 0x217   : > { %1074 = vst [vmem:[#allocation2 + $0x10] sm:$0xff] (!%p6615_p4), %v1042_v9  ;;  %v1030_v20 = vld [vmem:[#allocation8 + $0x30] sm:$0xff] (!%p6615_p4)  ;;  %v1031_v23 = vld [vmem:[#allocation8 + $0x38] sm:$0xff] (!%p6615_p4)  ;;  %v1000_v24 = vld [vmem:[%s9558_s2 + $0x40] sm:$0xff] (!%p6615_p4) }
 0x218   : > { %1075 = vst [vmem:[#allocation2 + $0x18] sm:$0xff] (!%p6615_p4), %v1043_v13  ;;  %v1046_v22 = vadd.f32 (!%p6615_p4), %v1030_v20, %v998_v19  ;;  %v1032_v25 = vld [vmem:[#allocation8 + $0x40] sm:$0xff] (!%p6615_p4)  ;;  %1076 = vst [vmem:[#allocation2 + $0x20] sm:$0xff] (!%p6615_p4), %v1044_v17  ;;  %v1047_v26 = vadd.f32 (!%p6615_p4), %v1031_v23, %v999_v21  ;;  %v1001_v28 = vld [vmem:[%s9558_s2 + $0x48] sm:$0xff] (!%p6615_p4) }
 0x219   : > { %1077 = vst [vmem:[#allocation2 + $0x28] sm:$0xff] (!%p6615_p4), %v1045_v18  ;;  %v1048_v27 = vadd.f32 (!%p6615_p4), %v1032_v25, %v1000_v24  ;;  %v1033_v29 = vld [vmem:[#allocation8 + $0x48] sm:$0xff] (!%p6615_p4)  ;;  %v1002_v30 = vld [vmem:[%s9558_s2 + $0x50] sm:$0xff] (!%p6615_p4)  ;;  %v1003_v33 = vld [vmem:[%s9558_s2 + $0x58] sm:$0xff] (!%p6615_p4) }
 0x21a   : > { %1078 = vst [vmem:[#allocation2 + $0x30] sm:$0xff] %v1046_v22  ;;  %v1049_v31 = vadd.f32 %v1033_v29, %v1001_v28  ;;  %v1034_v32 = vld [vmem:[#allocation8 + $0x50] sm:$0xff]  ;;  %v1035_v34 = vld [vmem:[#allocation8 + $0x58] sm:$0xff]  ;;  %1079 = vst [vmem:[#allocation2 + $0x38] sm:$0xff] %v1047_v26 }
 0x21b   : > { %1080 = vst [vmem:[#allocation2 + $0x40] sm:$0xff] %v1048_v27  ;;  %v1050_v35 = vadd.f32 %v1034_v32, %v1002_v30  ;;  %v1051_v36 = vadd.f32 %v1035_v34, %v1003_v33  ;;  %v1004_v37 = vld [vmem:[%s9558_s2 + $0x60] sm:$0xff]  ;;  %v1005_v39 = vld [vmem:[%s9558_s2 + $0x68] sm:$0xff]  ;;  %v1006_v42 = vld [vmem:[%s9558_s2 + $0x70] sm:$0xff] }
 0x21c   : > { %v1036_v38 = vld [vmem:[#allocation8 + $0x60] sm:$0xff]  ;;  %1081 = vst [vmem:[#allocation2 + $0x48] sm:$0xff] %v1049_v31  ;;  %v1037_v41 = vld [vmem:[#allocation8 + $0x68] sm:$0xff]  ;;  %v1038_v43 = vld [vmem:[#allocation8 + $0x70] sm:$0xff] }
 0x21d   : > { %v1052_v40 = vadd.f32 %v1036_v38, %v1004_v37  ;;  %1082 = vst [vmem:[#allocation2 + $0x50] sm:$0xff] %v1050_v35  ;;  %1083 = vst [vmem:[#allocation2 + $0x58] sm:$0xff] %v1051_v36  ;;  %v1053_v44 = vadd.f32 %v1037_v41, %v1005_v39  ;;  %v1054_v45 = vadd.f32 %v1038_v43, %v1006_v42  ;;  %v1007_v46 = vld [vmem:[%s9558_s2 + $0x78] sm:$0xff]  ;;  %v1008_v48 = vld [vmem:[%s9558_s2 + $0x80] sm:$0xff] }
 0x21e   : > { %v1039_v47 = vld [vmem:[#allocation8 + $0x78] sm:$0xff]  ;;  %v1056_v50 = vadd.f32 %v1024_v2, %v1008_v48  ;;  %v1009_v51 = vld [vmem:[%s9558_s2 + $0x88] sm:$0xff]  ;;  %v1010_v52 = vld [vmem:[%s9558_s2 + $0x90] sm:$0xff] }
 0x21f   : > { %1084 = vst [vmem:[#allocation2 + $0x60] sm:$0xff] %v1052_v40  ;;  %v1055_v49 = vadd.f32 %v1039_v47, %v1007_v46  ;;  %v1011_v53 = vld [vmem:[%s9558_s2 + $0x98] sm:$0xff]  ;;  %1085 = vst [vmem:[#allocation2 + $0x68] sm:$0xff] %v1053_v44  ;;  %v1057_v54 = vadd.f32 %v9608_v5, %v1009_v51  ;;  %v1058_v55 = vadd.f32 %v9611_v7, %v1010_v52  ;;  %v1012_v57 = vld [vmem:[%s9558_s2 + $0xa0] sm:$0xff] }
 0x220   : > { %1086 = vst [vmem:[#allocation2 + $0x70] sm:$0xff] %v1054_v45  ;;  %v1059_v56 = vadd.f32 %v1027_v11, %v1011_v53  ;;  %v1013_v58 = vld [vmem:[%s9558_s2 + $0xa8] sm:$0xff]  ;;  %v1014_v59 = vld [vmem:[%s9558_s2 + $0xb0] sm:$0xff]  ;;  %1088 = vst [vmem:[#allocation2 + $0x80] sm:$0xff] %v1056_v50  ;;  %v1060_v60 = vadd.f32 %v1028_v14, %v1012_v57 }
 0x221   : > { %1087 = vst [vmem:[#allocation2 + $0x78] sm:$0xff] %v1055_v49  ;;  %v1061_v61 = vadd.f32 %v1029_v16, %v1013_v58  ;;  %v1062_v62 = vadd.f32 %v1030_v20, %v1014_v59  ;;  %v1015_v63 = vld [vmem:[%s9558_s2 + $0xb8] sm:$0xff]  ;;  %v1016_v0 = vld [vmem:[%s9558_s2 + $0xc0] sm:$0xff]  ;;  %v1017_v1 = vld [vmem:[%s9558_s2 + $0xc8] sm:$0xff] }
 0x222   : > { %1089 = vst [vmem:[#allocation2 + $0x88] sm:$0xff] %v1057_v54  ;;  %1090 = vst [vmem:[#allocation2 + $0x90] sm:$0xff] %v1058_v55  ;;  %v1063_v2 = vadd.f32 %v1031_v23, %v1015_v63  ;;  %v1064_v3 = vadd.f32 %v1032_v25, %v1016_v0  ;;  %v1065_v4 = vadd.f32 %v1033_v29, %v1017_v1  ;;  %v1018_v5 = vld [vmem:[%s9558_s2 + $0xd0] sm:$0xff]  ;;  %v1019_v6 = vld [vmem:[%s9558_s2 + $0xd8] sm:$0xff] }
 0x223   : > { %1091 = vst [vmem:[#allocation2 + $0x98] sm:$0xff] %v1059_v56  ;;  %v1020_v7 = vld [vmem:[%s9558_s2 + $0xe0] sm:$0xff]  ;;  %1092 = vst [vmem:[#allocation2 + $0xa0] sm:$0xff] %v1060_v60  ;;  %v1066_v8 = vadd.f32 %v1034_v32, %v1018_v5  ;;  %v1067_v9 = vadd.f32 %v1035_v34, %v1019_v6  ;;  %v1021_v11 = vld [vmem:[%s9558_s2 + $0xe8] sm:$0xff] }
 0x224   : > { %1093 = vst [vmem:[#allocation2 + $0xa8] sm:$0xff] %v1061_v61  ;;  %1094 = vst [vmem:[#allocation2 + $0xb0] sm:$0xff] %v1062_v62  ;;  %v1068_v10 = vadd.f32 %v1036_v38, %v1020_v7  ;;  %v1022_v12 = vld [vmem:[%s9558_s2 + $0xf0] sm:$0xff]  ;;  %v1023_v13 = vld [vmem:[%s9558_s2 + $0xf8] sm:$0xff]  ;;  %v1069_v14 = vadd.f32 %v1037_v41, %v1021_v11 }
 0x225   : > { %1095 = vst [vmem:[#allocation2 + $0xb8] sm:$0xff] %v1063_v2  ;;  %1096 = vst [vmem:[#allocation2 + $0xc0] sm:$0xff] %v1064_v3  ;;  %v1070_v15 = vadd.f32 %v1038_v43, %v1022_v12  ;;  %v1071_v16 = vadd.f32 %v1039_v47, %v1023_v13 }
 0x226   : > { %1097 = vst [vmem:[#allocation2 + $0xc8] sm:$0xff] %v1065_v4  ;;  %1098 = vst [vmem:[#allocation2 + $0xd0] sm:$0xff] %v1066_v8 }
 0x227   : > { %1099 = vst [vmem:[#allocation2 + $0xd8] sm:$0xff] %v1067_v9  ;;  %1100 = vst [vmem:[#allocation2 + $0xe0] sm:$0xff] %v1068_v10 }
 0x228   : > { %1101 = vst [vmem:[#allocation2 + $0xe8] sm:$0xff] %v1069_v14  ;;  %1102 = vst [vmem:[#allocation2 + $0xf0] sm:$0xff] %v1070_v15 }
 0x229   : > { %1103 = vst [vmem:[#allocation2 + $0xf8] sm:$0xff] %v1071_v16 }
 0x22a PF: > { %v7753_v17 = vld [vmem:[%s9572_s8 + $0x4] ss:$12 sps:$4 sm:$0xff]   ;;  %v7755_v18 = vld [vmem:[%s9572_s8] ss:$12 sps:$4 sm:$0xff]   ;;  %v12361_v19 = vmov 0   ;;  %v1115_v6 = vld [vmem:[#allocation2 + $0x58] sm:$0xff] }
 0x22b   : > { %1361 = vmatprep.mubr.bf16.mxu0 %v12361_v19  ;;  %1481 = vmatprep.mubr.bf16.mxu1 %v12361_v19  ;;  %v7756_v20 = vld [vmem:[%s9572_s8 + $0x1c] ss:$12 sps:$4 sm:$0xff]   ;;  %v7758_v21 = vld [vmem:[%s9572_s8 + $0x18] ss:$12 sps:$4 sm:$0xff]   ;;  %v7759_v22 = vld [vmem:[%s9572_s8 + $0x34] ss:$12 sps:$4 sm:$0xff]  }
 0x22c   : > { %1329 = vmatprep.subr.bf16.mxu0 %v7753_v17  ;;  %7475 = vmatprep.subr.bf16.mxu1 %v7753_v17  ;;  %v7761_v23 = vld [vmem:[%s9572_s8 + $0x30] ss:$12 sps:$4 sm:$0xff]   ;;  %v7762_v24 = vld [vmem:[%s9572_s8 + $0x4c] ss:$12 sps:$4 sm:$0xff]   ;;  %v7764_v25 = vld [vmem:[%s9572_s8 + $0x48] ss:$12 sps:$4 sm:$0xff]  }
 0x22d   : > { %1330 = vmatpush1.bf16.msra.mxu0 %v7755_v18  ;;  %7483 = vmatpush1.bf16.msra.mxu1 %v7755_v18  ;;  %v7765_v26 = vld [vmem:[%s9572_s8 + $0x64] ss:$12 sps:$4 sm:$0xff]   ;;  %v7767_v27 = vld [vmem:[%s9572_s8 + $0x60] ss:$12 sps:$4 sm:$0xff]   ;;  %v7768_v28 = vld [vmem:[%s9572_s8 + $0x7c] ss:$12 sps:$4 sm:$0xff]  }
 0x22e   : > { %1331 = vmatprep.subr.bf16.mxu0 %v7756_v20  ;;  %7476 = vmatprep.subr.bf16.mxu1 %v7756_v20  ;;  %v7770_v29 = vld [vmem:[%s9572_s8 + $0x78] ss:$12 sps:$4 sm:$0xff]   ;;  %v7771_v30 = vld [vmem:[%s9572_s8 + $0x94] ss:$12 sps:$4 sm:$0xff]   ;;  %v7773_v31 = vld [vmem:[%s9572_s8 + $0x90] ss:$12 sps:$4 sm:$0xff]  }
 0x22f   : > { %v7774_v32 = vld [vmem:[%s9572_s8 + $0xac] ss:$12 sps:$4 sm:$0xff]   ;;  %v7776_v33 = vld [vmem:[%s9572_s8 + $0xa8] ss:$12 sps:$4 sm:$0xff]   ;;  %v1104_v34 = vld [vmem:[#allocation2] sm:$0xff]  ;;  %vm1739_vm0 = vcmask 523264  }
 0x230   : > { %v1105_v35 = vld [vmem:[#allocation2 + $0x8] sm:$0xff]  ;;  %v1128_v36 = vld [vmem:[#allocation2 + $0xc0] sm:$0xff]  ;;  %v1106_v42 = vld [vmem:[#allocation2 + $0x10] sm:$0xff]  ;;  %s8862_s27 = smov 64   ;;  %s12580_s2 = sld [smem:[#allocation34_spill]] }
 0x231   : > { %1332 = vmatpush1.bf16.msra.mxu0 %v7758_v21  ;;  %7484 = vmatpush1.bf16.msra.mxu1 %v7758_v21  ;;  %v1129_v37 = vld [vmem:[#allocation2 + $0xc8] sm:$0xff]  ;;  %v1136_v39 = vpack.c.bf16 %v1105_v35, %v1104_v34  ;;  %v1107_v43 = vld [vmem:[#allocation2 + $0x18] sm:$0xff]  ;;  %v1130_v44 = vld [vmem:[#allocation2 + $0xd0] sm:$0xff] }
 0x232   : > { %1333 = vmatprep.subr.bf16.mxu0 %v7759_v22  ;;  %7477 = vmatprep.subr.bf16.mxu1 %v7759_v22  ;;  %v7777_v38 = vld [vmem:[%s9572_s8 + $0x8] ss:$12 sps:$4 sm:$0xff]   ;;  %v9665_v40 = vpack.c.bf16 %v1129_v37, %v1128_v36  ;;  %v7778_v41 = vld [vmem:[%s9572_s8 + $0x20] ss:$12 sps:$4 sm:$0xff]   ;;  %v7779_v46 = vld [vmem:[%s9572_s8 + $0x38] ss:$12 sps:$4 sm:$0xff]   ;;  %v1137_v47 = vpack.c.bf16 %v1107_v43, %v1106_v42 }
 0x233   : > { %v1131_v45 = vld [vmem:[#allocation2 + $0xd8] sm:$0xff]  ;;  %v1108_v50 = vld [vmem:[#allocation2 + $0x20] sm:$0xff]  ;;  %v1109_v51 = vld [vmem:[#allocation2 + $0x28] sm:$0xff] }
 0x234   : > { %v9672_v48 = vpack.c.bf16 %v1131_v45, %v1130_v44  ;;  %v7780_v49 = vld [vmem:[%s9572_s8 + $0x50] ss:$12 sps:$4 sm:$0xff]   ;;  %v1133_v53 = vld [vmem:[#allocation2 + $0xe8] sm:$0xff]  ;;  %v1138_v55 = vpack.c.bf16 %v1109_v51, %v1108_v50 }
 0x235   : > { %1334 = vmatpush1.bf16.msra.mxu0 %v7761_v23  ;;  %7485 = vmatpush1.bf16.msra.mxu1 %v7761_v23  ;;  %v1132_v52 = vld [vmem:[#allocation2 + $0xe0] sm:$0xff]  ;;  %v7781_v54 = vld [vmem:[%s9572_s8 + $0x68] ss:$12 sps:$4 sm:$0xff]  }
 0x236   : > { %1335 = vmatprep.subr.bf16.mxu0 %v7762_v24  ;;  %7478 = vmatprep.subr.bf16.mxu1 %v7762_v24  ;;  %v9679_v56 = vpack.c.bf16 %v1133_v53, %v1132_v52  ;;  %v7782_v57 = vld [vmem:[%s9572_s8 + $0x80] ss:$12 sps:$4 sm:$0xff]   ;;  %v1111_v59 = vld [vmem:[#allocation2 + $0x38] sm:$0xff]  ;;  %p6750_p2 = scmp.ne.s32.totalorder %s12580_s2, 1 }
 0x237   : > { %v1110_v58 = vld [vmem:[#allocation2 + $0x30] sm:$0xff]  ;;  %v1135_v61 = vld [vmem:[#allocation2 + $0xf8] sm:$0xff]  ;;  %v1112_v2 = vld [vmem:[#allocation2 + $0x40] sm:$0xff]  ;;  %vm6057_vm1 = vcmask (!%p6750_p2), 130112   ;;  %vm6064_vm2 = vcmask (!%p6750_p2), 195712   ;;  %vm6071_vm3 = vcmask (!%p6750_p2), 261312  }
 0x238   : > { %v1134_v60 = vld [vmem:[#allocation2 + $0xf0] sm:$0xff]  ;;  %v7783_v62 = vld [vmem:[%s9572_s8 + $0x98] ss:$12 sps:$4 sm:$0xff]   ;;  %v1139_v63 = vpack.c.bf16 %v1111_v59, %v1110_v58  ;;  %vm6078_vm4 = vcmask (!%p6750_p2), 326912   ;;  %vm6085_vm5 = vcmask (!%p6750_p2), 392512   ;;  %vm6092_vm6 = vcmask (!%p6750_p2), 458112  }
 0x239   : > { %1336 = vmatpush1.bf16.msra.mxu0 %v7764_v25  ;;  %7486 = vmatpush1.bf16.msra.mxu1 %v7764_v25  ;;  %v1151_v0 = vpack.c.bf16 %v1135_v61, %v1134_v60  ;;  %v7784_v1 = vld [vmem:[%s9572_s8 + $0xb0] ss:$12 sps:$4 sm:$0xff]   ;;  %v1113_v3 = vld [vmem:[#allocation2 + $0x48] sm:$0xff]  ;;  %vm6099_vm7 = vcmask (!%p6750_p2), 523712   ;;  %vm6106_vm8 = vcmask (!%p6750_p2), 589312   ;;  %vm6113_vm9 = vcmask (!%p6750_p2), 654912  }
 0x23a   : > { %1337 = vmatprep.subr.bf16.mxu0 %v7765_v26  ;;  %7479 = vmatprep.subr.bf16.mxu1 %v7765_v26  ;;  %v1140_v4 = vpack.c.bf16 %v1113_v3, %v1112_v2  ;;  %v1114_v5 = vld [vmem:[#allocation2 + $0x50] sm:$0xff]  ;;  %v1116_v8 = vld [vmem:[#allocation2 + $0x60] sm:$0xff]  ;;  %v1117_v9 = vld [vmem:[#allocation2 + $0x68] sm:$0xff]  ;;  %vm6120_vm10 = vcmask (!%p6750_p2), 720512   ;;  %vm6127_vm11 = vcmask (!%p6750_p2), 786112   ;;  %vm6134_vm12 = vcmask (!%p6750_p2), 851712  }
 0x23b   : > { %v1141_v7 = vpack.c.bf16 %v1115_v6, %v1114_v5  ;;  %v1142_v10 = vpack.c.bf16 %v1117_v9, %v1116_v8  ;;  %v1118_v11 = vld [vmem:[#allocation2 + $0x70] sm:$0xff]  ;;  %v1119_v12 = vld [vmem:[#allocation2 + $0x78] sm:$0xff]  ;;  %v1120_v14 = vld [vmem:[#allocation2 + $0x80] sm:$0xff]  ;;  %vm6141_vm13 = vcmask (!%p6750_p2), 917312   ;;  %vm6148_vm14 = vcmask (!%p6750_p2), 982912  }
 0x23c   : > { %v1143_v13 = vpack.c.bf16 %v1119_v12, %v1118_v11  ;;  %v1121_v15 = vld [vmem:[#allocation2 + $0x88] sm:$0xff]  ;;  %v1122_v17 = vld [vmem:[#allocation2 + $0x90] sm:$0xff]  ;;  %v1123_v18 = vld [vmem:[#allocation2 + $0x98] sm:$0xff]  ;;  %vm6155_vm15 = vcmask (!%p6750_p2), 1048512  }
 0x23d   : > { %1338 = vmatpush1.bf16.msra.mxu0 %v7767_v27  ;;  %7487 = vmatpush1.bf16.msra.mxu1 %v7767_v27  ;;  %v1144_v16 = vpack.c.bf16 %v1121_v15, %v1120_v14  ;;  %v1124_v20 = vld [vmem:[#allocation2 + $0xa0] sm:$0xff]  ;;  %v1125_v21 = vld [vmem:[#allocation2 + $0xa8] sm:$0xff]  ;;  %v1145_v22 = vpack.c.bf16 %v1123_v18, %v1122_v17  ;;  %v1126_v24 = vld [vmem:[#allocation2 + $0xb0] sm:$0xff]  ;;  %v12358_v27 = vlaneseq }
 0x23e   : > { %1339 = vmatprep.subr.bf16.mxu0 %v7768_v28  ;;  %7480 = vmatprep.subr.bf16.mxu1 %v7768_v28  ;;  %v1146_v23 = vpack.c.bf16 %v1125_v21, %v1124_v20  ;;  %v1127_v25 = vld [vmem:[#allocation2 + $0xb8] sm:$0xff] }
 0x23f   : > { %v1147_v26 = vpack.c.bf16 %v1127_v25, %v1126_v24  ;;  %v9699_v28 = vshrl.u32 %v12358_v27, 7 }
 0x241   : > { %1340 = vmatpush1.bf16.msra.mxu0 %v7770_v29  ;;  %7488 = vmatpush1.bf16.msra.mxu1 %v7770_v29  ;;  %12490 = vst [vmem:[#allocation41_spill] sm:$0xff] %v9699_v28  ;;  %v12360_v29 = vsub.s32 0, %v9699_v28 }
 0x242   : > { %1341 = vmatprep.subr.bf16.mxu0 %v7771_v30  ;;  %7481 = vmatprep.subr.bf16.mxu1 %v7771_v30  ;;  %v9703_v30 = vld [vmem:[%s9582_s7] sm:$0x7] }
 0x245   : > { %1342 = vmatpush1.bf16.msra.mxu0 %v7773_v31  ;;  %7489 = vmatpush1.bf16.msra.mxu1 %v7773_v31  ;;  %v12359_v31 = vsub.s32 1, %v9699_v28 }
 0x246   : > { %1343 = vmatprep.subr.bf16.mxu0 %v7774_v32  ;;  %7482 = vmatprep.subr.bf16.mxu1 %v7774_v32  ;;  %v9709_v32 = vrot.slane %v9703_v30, %v12360_v29 }
 0x247   : > { %v9714_v34 = vrot.slane %v9703_v30, %v12359_v31 }
 0x249   : > { %1344 = vmatpush1.bf16.msra.mxu0 %v7776_v33  ;;  %7490 = vmatpush1.bf16.msra.mxu1 %v7776_v33 }
 0x24a   : > { %7075 = vmatprep.subr.bf16.mxu1 %v7777_v38 }
 0x24c   : > { %1362 = vmatmul.mubr.bf16.vlgmr.msra.gmra.mrb[0].mxu0 %v1136_v39  ;;  %1482 = vmatmul.mubr.bf16.vlgmr.msra.gmra.mrb[0].mxu1 %v9665_v40 }
 0x24d   : > { %1371 = vmatprep.mubr.bf16.mxu0 %v12361_v19  ;;  %7076 = vmatpush3.bf16.msra.mxu1 %v7777_v38 }
 0x24e   : > { %7077 = vmatprep.subr.bf16.mxu1 %v7778_v41  ;;  %1491 = vmatprep.mubr.bf16.mxu1 %v12361_v19 }
 0x251   : > { %7078 = vmatpush3.bf16.msra.mxu1 %v7778_v41 }
 0x252   : > { %7079 = vmatprep.subr.bf16.mxu1 %v7779_v46 }
 0x254   : > { %1372 = vmatmul.mubr.bf16.gmra.mrb[4].mxu0 %v1137_v47  ;;  %1492 = vmatmul.mubr.bf16.gmra.mrb[4].mxu1 %v9672_v48 }
 0x255   : > { %1381 = vmatprep.mubr.bf16.mxu0 %v12361_v19  ;;  %7080 = vmatpush3.bf16.msra.mxu1 %v7779_v46 }
 0x256   : > { %7081 = vmatprep.subr.bf16.mxu1 %v7780_v49  ;;  %1501 = vmatprep.mubr.bf16.mxu1 %v12361_v19 }
 0x259   : > { %7082 = vmatpush3.bf16.msra.mxu1 %v7780_v49 }
 0x25a   : > { %7083 = vmatprep.subr.bf16.mxu1 %v7781_v54 }
 0x25c   : > { %1382 = vmatmul.mubr.bf16.gmra.mrb[8].mxu0 %v1138_v55  ;;  %1502 = vmatmul.mubr.bf16.gmra.mrb[8].mxu1 %v9679_v56 }
 0x25d   : > { %1391 = vmatprep.mubr.bf16.mxu0 %v12361_v19  ;;  %7084 = vmatpush3.bf16.msra.mxu1 %v7781_v54 }
 0x25e   : > { %7085 = vmatprep.subr.bf16.mxu1 %v7782_v57  ;;  %1511 = vmatprep.mubr.bf16.mxu1 %v12361_v19 }
 0x261   : > { %7086 = vmatpush3.bf16.msra.mxu1 %v7782_v57 }
 0x262   : > { %7087 = vmatprep.subr.bf16.mxu1 %v7783_v62 }
 0x264   : > { %1392 = vmatmul.mubr.bf16.gmra.mrb[12].mxu0 %v1139_v63  ;;  %1512 = vmatmul.mubr.bf16.gmra.mrb[12].mxu1 %v1151_v0 }
 0x265   : > { %1401 = vmatprep.mubr.bf16.mxu0 %v12361_v19  ;;  %7088 = vmatpush3.bf16.msra.mxu1 %v7783_v62 }
 0x266   : > { %7089 = vmatprep.subr.bf16.mxu1 %v7784_v1  ;;  %7091 = vmatprep.mubr.bf16.mxu1 %v1136_v39 }
 0x269   : > { %7090 = vmatpush3.bf16.msra.mxu1 %v7784_v1 }
 0x26c   : > { %1402 = vmatmul.mubr.bf16.gmra.mrb[16].mxu0 %v1140_v4  ;;  %7092 = vmatmul.mubr.bf16.vlgmr.msra.gmra.mrb[16].mxu1 %v1137_v47 }
 0x26d   : > { %1411 = vmatprep.mubr.bf16.mxu0 %v12361_v19  ;;  %7095 = vmatprep.mubr.bf16.mxu1 %v1138_v55 }
 0x274   : > { %1412 = vmatmul.mubr.bf16.gmra.mrb[20].mxu0 %v1141_v7  ;;  %7096 = vmatmul.mubr.bf16.gmra.mrb[20].mxu1 %v1139_v63 }
 0x275   : > { %1421 = vmatprep.mubr.bf16.mxu0 %v12361_v19  ;;  %7099 = vmatprep.mubr.bf16.mxu1 %v1140_v4 }
 0x27c   : > { %1422 = vmatmul.mubr.bf16.gmra.mrb[24].mxu0 %v1142_v10  ;;  %7100 = vmatmul.mubr.bf16.gmra.mrb[24].mxu1 %v1141_v7 }
 0x27d   : > { %1431 = vmatprep.mubr.bf16.mxu0 %v12361_v19  ;;  %7103 = vmatprep.mubr.bf16.mxu1 %v1142_v10 }
 0x284   : > { %1432 = vmatmul.mubr.bf16.gmra.mrb[28].mxu0 %v1143_v13  ;;  %7104 = vmatmul.mubr.bf16.gmra.mrb[28].mxu1 %v1143_v13 }
 0x285   : > { %7107 = vmatprep.mubr.bf16.mxu1 %v1144_v16  ;;  %1441 = vmatprep.mubr.bf16.mxu0 %v12361_v19 }
 0x28c   : > { %7108 = vmatmul.mubr.bf16.gmra.mrb[32].mxu1 %v1145_v22  ;;  %1442 = vmatmul.mubr.bf16.gmra.mrb[32].mxu0 %v1144_v16 }
 0x28d   : > { %7111 = vmatprep.mubr.bf16.mxu1 %v1146_v23  ;;  %1451 = vmatprep.mubr.bf16.mxu0 %v12361_v19 }
 0x294   : > { %7112 = vmatmul.mubr.bf16.gmra.mrb[36].mxu1 %v1147_v26  ;;  %1452 = vmatmul.mubr.bf16.gmra.mrb[36].mxu0 %v1145_v22 }
 0x295   : > { %7115 = vmatprep.mubr.bf16.mxu1 %v9665_v40  ;;  %1461 = vmatprep.mubr.bf16.mxu0 %v12361_v19 }
 0x29c   : > { %7116 = vmatmul.mubr.bf16.gmra.mrb[40].mxu1 %v9672_v48  ;;  %1462 = vmatmul.mubr.bf16.gmra.mrb[40].mxu0 %v1146_v23 }
 0x29d   : > { %7119 = vmatprep.mubr.bf16.mxu1 %v9679_v56  ;;  %1471 = vmatprep.mubr.bf16.mxu0 %v12361_v19 }
 0x2a4   : > { %7120 = vmatmul.mubr.bf16.gmra.mrb[44].mxu1 %v1151_v0  ;;  %1472 = vmatmul.mubr.bf16.gmra.mrb[44].mxu0 %v1147_v26 }
 0x31f   : > { %v1363_v33 = vpop.f32.mrb[0].mxu0  ;;  %v1483_v35 = vpop.f32.mrb[0].mxu1 }
 0x320   : > { %v1364_v36 = vadd.f32 %v1363_v33, %v9709_v32  ;;  %v1365_v37 = vpop.f32.mrb[1].mxu0  ;;  %v1484_v38 = vadd.f32 %v1483_v35, %v9709_v32  ;;  %v1485_v39 = vpop.f32.mrb[1].mxu1 }
 0x321   : > { %v1367_v40 = vpop.f32.mrb[2].mxu0  ;;  %v1486_v41 = vadd.f32 %v1485_v39, %v9714_v34  ;;  %v1487_v42 = vpop.f32.mrb[2].mxu1  ;;  %v1366_v48 = vadd.f32 %v1365_v37, %v9714_v34 }
 0x322   : > { %v1368_v43 = vadd.f32 %v1367_v40, %v9709_v32  ;;  %v1369_v44 = vpop.f32.mrb[3].mxu0  ;;  %v2930_v45 = vmul.f32 0.125, %v1484_v38  ;;  %v1488_v46 = vadd.f32 %v1487_v42, %v9709_v32  ;;  %v1489_v47 = vpop.f32.mrb[3].mxu1  ;;  %v1699_v51 = vmul.f32 0.125, %v1364_v36 }
 0x323   : > { %v1370_v49 = vadd.f32 %v1369_v44, %v9714_v34  ;;  %v1490_v50 = vadd.f32 %v1489_v47, %v9714_v34 }
 0x324   : > { %v1700_v52 = vmul.f32 0.125, %v1368_v43  ;;  %v2931_v53 = vmul.f32 0.125, %v1488_v46 }
 0x325   : > { %v1723_v54 = vpack.c.bf16 %v1370_v49, %v1366_v48  ;;  %v9724_v55 = vpack.c.bf16 %v1490_v50, %v1486_v41 }
 0x326   : > { %v9726_v56 = vpack.c.bf16 %v1700_v52, %v1699_v51  ;;  %v9728_v57 = vpack.c.bf16 %v2931_v53, %v2930_v45 }
 0x327   : > { %v1373_v58 = vpop.f32.mrb[4].mxu0  ;;  %2222 = vrot.lane.b32.xlu0 %v1723_v54, %s8862_s27  ;;  %7523 = vmatprep.subr.msk.bf16.mxu1 %vm1739_vm0, %v1723_v54  ;;  %v1765_v59 = vsel %vm1739_vm0, %v1723_v54, 0  ;;  %v1493_v60 = vpop.f32.mrb[4].mxu1 }
 0x328   : > { %v1374_v61 = vadd.f32 %v1373_v58, %v9709_v32  ;;  %v1375_v62 = vpop.f32.mrb[5].mxu0  ;;  %7124 = vmatpush3.bf16.xpose.msra.mxu1 %v1765_v59  ;;  %7139 = vmatprep.mubr.msk.bf16.mxu1 %vm1739_vm0, %v9726_v56  ;;  %v1494_v63 = vadd.f32 %v1493_v60, %v9709_v32  ;;  %v1495_v0 = vpop.f32.mrb[5].mxu1 }
 0x329   : > { %v1377_v1 = vpop.f32.mrb[6].mxu0  ;;  %v1496_v2 = vadd.f32 %v1495_v0, %v9714_v34  ;;  %v1497_v3 = vpop.f32.mrb[6].mxu1  ;;  %v1376_v9 = vadd.f32 %v1375_v62, %v9714_v34  ;;  %v1196_v62 = vsub.s32 2, %v9699_v28 }
 0x32a   : > { %v1378_v4 = vadd.f32 %v1377_v1, %v9709_v32  ;;  %v1379_v5 = vpop.f32.mrb[7].mxu0  ;;  %v2932_v6 = vmul.f32 0.125, %v1494_v63  ;;  %v1498_v7 = vadd.f32 %v1497_v3, %v9709_v32  ;;  %v1499_v8 = vpop.f32.mrb[7].mxu1  ;;  %v1701_v12 = vmul.f32 0.125, %v1374_v61 }
 0x32b   : > { %v1380_v10 = vadd.f32 %v1379_v5, %v9714_v34  ;;  %v1500_v11 = vadd.f32 %v1499_v8, %v9714_v34 }
 0x32c   : > { %v1702_v13 = vmul.f32 0.125, %v1378_v4  ;;  %v2933_v14 = vmul.f32 0.125, %v1498_v7 }
 0x32d   : > { %v1724_v15 = vpack.c.bf16 %v1380_v10, %v1376_v9  ;;  %v9743_v16 = vpack.c.bf16 %v1500_v11, %v1496_v2 }
 0x32e   : > { %v9745_v17 = vpack.c.bf16 %v1702_v13, %v1701_v12  ;;  %v9747_v18 = vpack.c.bf16 %v2933_v14, %v2932_v6  ;;  %v9779_v13 = vrot.slane %v9703_v30, %v1196_v62 }
 0x32f   : > { %v1383_v20 = vpop.f32.mrb[8].mxu0  ;;  %2224 = vrot.lane.b32.xlu0 %v1724_v15, %s8862_s27  ;;  %7524 = vmatprep.subr.msk.bf16.mxu1 %vm1739_vm0, %v1724_v15  ;;  %v1768_v21 = vsel %vm1739_vm0, %v1724_v15, 0  ;;  %v1503_v22 = vpop.f32.mrb[8].mxu1 }
 0x330   : > { %v1384_v23 = vadd.f32 %v1383_v20, %v9709_v32  ;;  %v1385_v24 = vpop.f32.mrb[9].mxu0  ;;  %7126 = vmatpush3.bf16.xpose.msra.mxu1 %v1768_v21  ;;  %v1504_v25 = vadd.f32 %v1503_v22, %v9709_v32  ;;  %v1505_v26 = vpop.f32.mrb[9].mxu1 }
 0x331   : > { %v1387_v33 = vpop.f32.mrb[10].mxu0  ;;  %v1506_v35 = vadd.f32 %v1505_v26, %v9714_v34  ;;  %v1507_v36 = vpop.f32.mrb[10].mxu1  ;;  %v1386_v42 = vadd.f32 %v1385_v24, %v9714_v34 }
 0x332   : > { %v1388_v37 = vadd.f32 %v1387_v33, %v9709_v32  ;;  %v1389_v38 = vpop.f32.mrb[11].mxu0  ;;  %v2934_v39 = vmul.f32 0.125, %v1504_v25  ;;  %v1508_v40 = vadd.f32 %v1507_v36, %v9709_v32  ;;  %v1509_v41 = vpop.f32.mrb[11].mxu1  ;;  %v1703_v45 = vmul.f32 0.125, %v1384_v23 }
 0x333   : > { %v1390_v43 = vadd.f32 %v1389_v38, %v9714_v34  ;;  %v1510_v44 = vadd.f32 %v1509_v41, %v9714_v34 }
 0x334   : > { %v1704_v46 = vmul.f32 0.125, %v1388_v37  ;;  %v2935_v47 = vmul.f32 0.125, %v1508_v40 }
 0x335   : > { %v1725_v48 = vpack.c.bf16 %v1390_v43, %v1386_v42  ;;  %v9760_v49 = vpack.c.bf16 %v1510_v44, %v1506_v35 }
 0x336   : > { %v9762_v50 = vpack.c.bf16 %v1704_v46, %v1703_v45  ;;  %v9764_v51 = vpack.c.bf16 %v2935_v47, %v2934_v39 }
 0x337   : > { %v1393_v52 = vpop.f32.mrb[12].mxu0  ;;  %2226 = vrot.lane.b32.xlu1 %v1725_v48, %s8862_s27  ;;  %7525 = vmatprep.subr.msk.bf16.mxu1 %vm1739_vm0, %v1725_v48  ;;  %v1771_v53 = vsel %vm1739_vm0, %v1725_v48, 0  ;;  %v1513_v54 = vpop.f32.mrb[12].mxu1 }
 0x338   : > { %v1394_v58 = vadd.f32 %v1393_v52, %v9709_v32  ;;  %v1395_v59 = vpop.f32.mrb[13].mxu0  ;;  %7128 = vmatpush3.bf16.xpose.msra.mxu1 %v1771_v53  ;;  %v1514_v60 = vadd.f32 %v1513_v54, %v9709_v32  ;;  %v1515_v61 = vpop.f32.mrb[13].mxu1 }
 0x339   : > { %v1397_v63 = vpop.f32.mrb[14].mxu0  ;;  %v1516_v0 = vadd.f32 %v1515_v61, %v9714_v34  ;;  %v1517_v1 = vpop.f32.mrb[14].mxu1  ;;  %v1396_v7 = vadd.f32 %v1395_v59, %v9714_v34 }
 0x33a   : > { %v1398_v2 = vadd.f32 %v1397_v63, %v9709_v32  ;;  %v1399_v3 = vpop.f32.mrb[15].mxu0  ;;  %v2936_v4 = vmul.f32 0.125, %v1514_v60  ;;  %v1518_v5 = vadd.f32 %v1517_v1, %v9709_v32  ;;  %v1519_v6 = vpop.f32.mrb[15].mxu1  ;;  %v1705_v10 = vmul.f32 0.125, %v1394_v58 }
 0x33b   : > { %v1400_v8 = vadd.f32 %v1399_v3, %v9714_v34  ;;  %v1520_v9 = vadd.f32 %v1519_v6, %v9714_v34 }
 0x33c   : > { %v1706_v11 = vmul.f32 0.125, %v1398_v2  ;;  %v2937_v12 = vmul.f32 0.125, %v1518_v5 }
 0x33d   : > { %v1726_v14 = vpack.c.bf16 %v1400_v8, %v1396_v7  ;;  %v9781_v15 = vpack.c.bf16 %v1520_v9, %v1516_v0 }
 0x33e   : > { %v9783_v20 = vpack.c.bf16 %v1706_v11, %v1705_v10  ;;  %v9785_v21 = vpack.c.bf16 %v2937_v12, %v2936_v4 }
 0x33f   : > { %v1403_v22 = vpop.f32.mrb[16].mxu0  ;;  %2228 = vrot.lane.b32.xlu1 %v1726_v14, %s8862_s27  ;;  %7526 = vmatprep.subr.msk.bf16.mxu1 %vm1739_vm0, %v1726_v14  ;;  %v1774_v23 = vsel %vm1739_vm0, %v1726_v14, 0  ;;  %v7093_v24 = vpop.f32.mrb[16].mxu1 }
 0x340   : > { %v1404_v25 = vadd.f32 %v1403_v22, %v9709_v32  ;;  %v1405_v26 = vpop.f32.mrb[17].mxu0  ;;  %7130 = vmatpush3.bf16.xpose.msra.mxu1 %v1774_v23  ;;  %v1565_v30 = vadd.f32 %v7093_v24, %v9779_v13  ;;  %v1556_v33 = vpop.f32.mrb[17].mxu1 }
 0x341   : > { %v1407_v35 = vpop.f32.mrb[18].mxu0  ;;  %v1557_v36 = vadd.f32 %v1556_v33, %v9779_v13  ;;  %v7094_v37 = vpop.f32.mrb[18].mxu1  ;;  %v1406_v42 = vadd.f32 %v1405_v26, %v9714_v34 }
 0x342   : > { %v1408_v38 = vadd.f32 %v1407_v35, %v9709_v32  ;;  %v1409_v39 = vpop.f32.mrb[19].mxu0  ;;  %v1568_v40 = vadd.f32 %v7094_v37, %v9779_v13  ;;  %v1559_v41 = vpop.f32.mrb[19].mxu1  ;;  %v1707_v45 = vmul.f32 0.125, %v1404_v25 }
 0x343   : > { %v1410_v43 = vadd.f32 %v1409_v39, %v9714_v34  ;;  %v1560_v44 = vadd.f32 %v1559_v41, %v9779_v13 }
 0x344   : > { %v1708_v46 = vmul.f32 0.125, %v1408_v38  ;;  %v9798_v47 = vpack.c.bf16 %v1568_v40, %v1565_v30 }
 0x345   : > { %v1727_v48 = vpack.c.bf16 %v1410_v43, %v1406_v42  ;;  %v9800_v52 = vpack.c.bf16 %v1560_v44, %v1557_v36 }
 0x346   : > { %v9802_v53 = vpack.c.bf16 %v1708_v46, %v1707_v45 }
 0x347   : > { %v1413_v54 = vpop.f32.mrb[20].mxu0  ;;  %2230 = vrot.lane.b32.xlu0 %v1727_v48, %s8862_s27  ;;  %7527 = vmatprep.subr.msk.bf16.mxu1 %vm1739_vm0, %v1727_v48  ;;  %v1777_v58 = vsel %vm1739_vm0, %v1727_v48, 0  ;;  %v7097_v59 = vpop.f32.mrb[20].mxu1 }
 0x348   : > { %v1414_v60 = vadd.f32 %v1413_v54, %v9709_v32  ;;  %v1415_v61 = vpop.f32.mrb[21].mxu0  ;;  %7132 = vmatpush3.bf16.xpose.msra.mxu1 %v1777_v58  ;;  %v1581_v62 = vadd.f32 %v7097_v59, %v9779_v13  ;;  %v1572_v63 = vpop.f32.mrb[21].mxu1 }
 0x349   : > { %v1417_v0 = vpop.f32.mrb[22].mxu0  ;;  %v1573_v1 = vadd.f32 %v1572_v63, %v9779_v13  ;;  %v7098_v2 = vpop.f32.mrb[22].mxu1  ;;  %v1416_v7 = vadd.f32 %v1415_v61, %v9714_v34 }
 0x34a   : > { %v1418_v3 = vadd.f32 %v1417_v0, %v9709_v32  ;;  %v1419_v4 = vpop.f32.mrb[23].mxu0  ;;  %v1584_v5 = vadd.f32 %v7098_v2, %v9779_v13  ;;  %v1575_v6 = vpop.f32.mrb[23].mxu1  ;;  %v1709_v10 = vmul.f32 0.125, %v1414_v60 }
 0x34b   : > { %v1420_v8 = vadd.f32 %v1419_v4, %v9714_v34  ;;  %v1576_v9 = vadd.f32 %v1575_v6, %v9779_v13 }
 0x34c   : > { %v1710_v11 = vmul.f32 0.125, %v1418_v3  ;;  %v9815_v12 = vpack.c.bf16 %v1584_v5, %v1581_v62 }
 0x34d   : > { %v1728_v14 = vpack.c.bf16 %v1420_v8, %v1416_v7  ;;  %v9817_v22 = vpack.c.bf16 %v1576_v9, %v1573_v1 }
 0x34e   : > { %v9819_v23 = vpack.c.bf16 %v1710_v11, %v1709_v10 }
 0x34f   : > { %v1423_v24 = vpop.f32.mrb[24].mxu0  ;;  %2232 = vrot.lane.b32.xlu1 %v1728_v14, %s8862_s27  ;;  %7528 = vmatprep.subr.msk.bf16.mxu1 %vm1739_vm0, %v1728_v14  ;;  %v1780_v25 = vsel %vm1739_vm0, %v1728_v14, 0  ;;  %v7101_v26 = vpop.f32.mrb[24].mxu1 }
 0x350   : > { %v1424_v30 = vadd.f32 %v1423_v24, %v9709_v32  ;;  %v1425_v33 = vpop.f32.mrb[25].mxu0  ;;  %7134 = vmatpush3.bf16.xpose.msra.mxu1 %v1780_v25  ;;  %v1597_v35 = vadd.f32 %v7101_v26, %v9779_v13  ;;  %v1588_v36 = vpop.f32.mrb[25].mxu1 }
 0x351   : > { %v1427_v37 = vpop.f32.mrb[26].mxu0  ;;  %v1589_v38 = vadd.f32 %v1588_v36, %v9779_v13  ;;  %v7102_v39 = vpop.f32.mrb[26].mxu1  ;;  %v1426_v44 = vadd.f32 %v1425_v33, %v9714_v34 }
 0x352   : > { %v1428_v40 = vadd.f32 %v1427_v37, %v9709_v32  ;;  %v1429_v41 = vpop.f32.mrb[27].mxu0  ;;  %v1600_v42 = vadd.f32 %v7102_v39, %v9779_v13  ;;  %v1591_v43 = vpop.f32.mrb[27].mxu1  ;;  %v1711_v48 = vmul.f32 0.125, %v1424_v30  ;;  %v7785_v37 = vld [vmem:[%s9584_s5] sm:$0xff]  }
 0x353   : > { %v1430_v45 = vadd.f32 %v1429_v41, %v9714_v34  ;;  %v1592_v46 = vadd.f32 %v1591_v43, %v9779_v13 }
 0x354   : > { %v1712_v54 = vmul.f32 0.125, %v1428_v40  ;;  %v9832_v58 = vpack.c.bf16 %v1600_v42, %v1597_v35 }
 0x355   : > { %v1729_v59 = vpack.c.bf16 %v1430_v45, %v1426_v44  ;;  %v9834_v60 = vpack.c.bf16 %v1592_v46, %v1589_v38 }
 0x356   : > { %v9836_v61 = vpack.c.bf16 %v1712_v54, %v1711_v48 }
 0x357   : > { %v1433_v62 = vpop.f32.mrb[28].mxu0  ;;  %2234 = vrot.lane.b32.xlu0 %v1729_v59, %s8862_s27  ;;  %7529 = vmatprep.subr.msk.bf16.mxu1 %vm1739_vm0, %v1729_v59  ;;  %v1783_v63 = vsel %vm1739_vm0, %v1729_v59, 0  ;;  %v7105_v0 = vpop.f32.mrb[28].mxu1 }
 0x358   : > { %v1434_v1 = vadd.f32 %v1433_v62, %v9709_v32  ;;  %v1435_v2 = vpop.f32.mrb[29].mxu0  ;;  %7136 = vmatpush3.bf16.xpose.msra.mxu1 %v1783_v63  ;;  %v1613_v3 = vadd.f32 %v7105_v0, %v9779_v13  ;;  %v1604_v4 = vpop.f32.mrb[29].mxu1  ;;  %v7786_v62 = vld [vmem:[%s9584_s5 + $0x8] sm:$0xff]  }
 0x359   : > { %v1437_v5 = vpop.f32.mrb[30].mxu0  ;;  %v1605_v6 = vadd.f32 %v1604_v4, %v9779_v13  ;;  %v7106_v7 = vpop.f32.mrb[30].mxu1  ;;  %v1436_v14 = vadd.f32 %v1435_v2, %v9714_v34  ;;  %v7787_v4 = vld [vmem:[%s9584_s5 + $0x10] sm:$0xff]  }
 0x35a   : > { %v1438_v8 = vadd.f32 %v1437_v5, %v9709_v32  ;;  %v1439_v9 = vpop.f32.mrb[31].mxu0  ;;  %v1616_v10 = vadd.f32 %v7106_v7, %v9779_v13  ;;  %v1607_v11 = vpop.f32.mrb[31].mxu1  ;;  %v1713_v26 = vmul.f32 0.125, %v1434_v1 }
 0x35b   : > { %v1440_v24 = vadd.f32 %v1439_v9, %v9714_v34  ;;  %2198 = vrot.lane.b32.xlu0 %v9726_v56, %s8862_s27  ;;  %v1608_v25 = vadd.f32 %v1607_v11, %v9779_v13 }
 0x35c   : > { %v1714_v30 = vmul.f32 0.125, %v1438_v8  ;;  %v9851_v33 = vpack.c.bf16 %v1616_v10, %v1613_v3  ;;  %v7788_v8 = vld [vmem:[%s9584_s5 + $0x18] sm:$0xff]  }
 0x35d   : > { %v1730_v35 = vpack.c.bf16 %v1440_v24, %v1436_v14  ;;  %v9853_v36 = vpack.c.bf16 %v1608_v25, %v1605_v6 }
 0x35e   : > { %v9856_v38 = vpack.c.bf16 %v1714_v30, %v1713_v26  ;;  %v7789_v30 = vld [vmem:[%s9584_s5 + $0x20] sm:$0xff]  }
 0x35f   : > { %2236 = vrot.lane.b32.xlu1 %v1730_v35, %s8862_s27  ;;  %7530 = vmatprep.subr.msk.bf16.mxu1 %vm1739_vm0, %v1730_v35  ;;  %v1786_v39 = vsel %vm1739_vm0, %v1730_v35, 0  ;;  %v1443_v40 = vpop.f32.mrb[32].mxu0 }
 0x360   : > { %2202 = vrot.lane.b32.xlu0 %v9762_v50, %s8862_s27  ;;  %7138 = vmatpush3.bf16.xpose.msra.mxu1 %v1786_v39  ;;  %v1444_v56 = vadd.f32 %v1443_v40, %v9709_v32  ;;  %v1445_v41 = vpop.f32.mrb[33].mxu0 }
 0x361   : > { %7155 = vmatprep.subr.bf16.mxu1 %v7785_v37  ;;  %v1446_v42 = vadd.f32 %v1445_v41, %v9714_v34  ;;  %v1447_v43 = vpop.f32.mrb[34].mxu0 }
 0x362   : > { %v2922_v44 = vmul.f32 0.125, %v1444_v56  ;;  %v1448_v45 = vadd.f32 %v1447_v43, %v9709_v32  ;;  %v1449_v46 = vpop.f32.mrb[35].mxu0 }
 0x363   : > { %2200 = vrot.lane.b32.xlu1 %v9745_v17, %s8862_s27  ;;  %v1450_v48 = vadd.f32 %v1449_v46, %v9714_v34 }
 0x364   : > { %2206 = vrot.lane.b32.xlu0 %v9802_v53, %s8862_s27  ;;  %v2923_v54 = vmul.f32 0.125, %v1448_v45 }
 0x365   : > { %v9871_v59 = vpack.c.bf16 %v1450_v48, %v1446_v42 }
 0x366   : > { %v9874_v63 = vpack.c.bf16 %v2923_v54, %v2922_v44 }
 0x367   : > { %2204 = vrot.lane.b32.xlu1 %v9783_v20, %s8862_s27  ;;  %7140 = vmatmul.mubr.msk.bf16.vlgmr.msra.gmra.mrb[48].mxu1 %vm1739_vm0, %v9745_v17  ;;  %v1453_v0 = vpop.f32.mrb[36].mxu0 }
 0x368   : > { %7143 = vmatprep.mubr.msk.bf16.mxu1 %vm1739_vm0, %v9762_v50  ;;  %2210 = vrot.lane.b32.xlu0 %v9836_v61, %s8862_s27  ;;  %v1455_v1 = vpop.f32.mrb[37].mxu0  ;;  %v1454_v50 = vadd.f32 %v1453_v0, %v9709_v32 }
 0x369   : > { %7156 = vmatpush3.bf16.msra.mxu1 %v7785_v37  ;;  %v1456_v2 = vadd.f32 %v1455_v1, %v9714_v34  ;;  %v1457_v3 = vpop.f32.mrb[38].mxu0 }
 0x36a   : > { %7157 = vmatprep.subr.bf16.mxu1 %v7786_v62  ;;  %v1459_v5 = vpop.f32.mrb[39].mxu0  ;;  %v1458_v6 = vadd.f32 %v1457_v3, %v9709_v32  ;;  %v2924_v9 = vmul.f32 0.125, %v1454_v50 }
 0x36b   : > { %2208 = vrot.lane.b32.xlu1 %v9819_v23, %s8862_s27  ;;  %v1460_v17 = vadd.f32 %v1459_v5, %v9714_v34 }
 0x36c   : > { %2535 = vrot.lane.b32.xlu0 %v9800_v52, %s8862_s27  ;;  %v2925_v10 = vmul.f32 0.125, %v1458_v6 }
 0x36d   : > { %7158 = vmatpush3.bf16.msra.mxu1 %v7786_v62  ;;  %v9893_v7 = vpack.c.bf16 %v1460_v17, %v1456_v2 }
 0x36e   : > { %7159 = vmatprep.subr.bf16.mxu1 %v7787_v4  ;;  %v9904_v14 = vpack.c.bf16 %v2925_v10, %v2924_v9 }
 0x36f   : > { %7144 = vmatmul.mubr.msk.bf16.gmra.mrb[52].mxu1 %vm1739_vm0, %v9783_v20  ;;  %2212 = vrot.lane.b32.xlu1 %v9856_v38, %s8862_s27  ;;  %v1463_v11 = vpop.f32.mrb[40].mxu0 }
 0x370   : > { %7147 = vmatprep.mubr.msk.bf16.mxu1 %vm1739_vm0, %v9802_v53  ;;  %2539 = vrot.lane.b32.xlu0 %v9817_v22, %s8862_s27  ;;  %v1465_v24 = vpop.f32.mrb[41].mxu0  ;;  %v1464_v20 = vadd.f32 %v1463_v11, %v9709_v32 }
 0x371   : > { %7160 = vmatpush3.bf16.msra.mxu1 %v7787_v4  ;;  %v1466_v25 = vadd.f32 %v1465_v24, %v9714_v34  ;;  %v1467_v26 = vpop.f32.mrb[42].mxu0 }
 0x372   : > { %7161 = vmatprep.subr.bf16.mxu1 %v7788_v8  ;;  %v1468_v35 = vadd.f32 %v1467_v26, %v9709_v32  ;;  %v1469_v37 = vpop.f32.mrb[43].mxu0  ;;  %v2926_v39 = vmul.f32 0.125, %v1464_v20 }
 0x373   : > { %2537 = vrot.lane.b32.xlu1 %v9798_v47, %s8862_s27  ;;  %v1470_v53 = vadd.f32 %v1469_v37, %v9714_v34 }
 0x374   : > { %2543 = vrot.lane.b32.xlu0 %v9834_v60, %s8862_s27  ;;  %v2927_v40 = vmul.f32 0.125, %v1468_v35 }
 0x375   : > { %7162 = vmatpush3.bf16.msra.mxu1 %v7788_v8  ;;  %v9915_v56 = vpack.c.bf16 %v1470_v53, %v1466_v25 }
 0x376   : > { %7211 = vmatprep.subr.bf16.mxu1 %v7789_v30  ;;  %v9917_v41 = vpack.c.bf16 %v2927_v40, %v2926_v39 }
 0x377   : > { %7148 = vmatmul.mubr.msk.bf16.gmra.mrb[56].mxu1 %vm1739_vm0, %v9819_v23  ;;  %2541 = vrot.lane.b32.xlu1 %v9815_v12, %s8862_s27  ;;  %v1473_v42 = vpop.f32.mrb[44].mxu0 }
 0x378   : > { %7151 = vmatprep.mubr.msk.bf16.mxu1 %vm1739_vm0, %v9836_v61  ;;  %2547 = vrot.lane.b32.xlu0 %v9853_v36, %s8862_s27  ;;  %v1474_v43 = vadd.f32 %v1473_v42, %v9709_v32  ;;  %v1475_v44 = vpop.f32.mrb[45].mxu0 }
 0x379   : > { %v1476_v45 = vadd.f32 %v1475_v44, %v9714_v34  ;;  %v1477_v46 = vpop.f32.mrb[46].mxu0 }
 0x37a   : > { %v2928_v48 = vmul.f32 0.125, %v1474_v43  ;;  %v1478_v23 = vadd.f32 %v1477_v46, %v9709_v32  ;;  %v1479_v54 = vpop.f32.mrb[47].mxu0  ;;  %v7790_v32 = vld [vmem:[%s9584_s5 + $0x28] sm:$0xff]  }
 0x37b   : > { %2545 = vrot.lane.b32.xlu1 %v9832_v58, %s8862_s27  ;;  %v1480_v62 = vadd.f32 %v1479_v54, %v9714_v34  ;;  %v7791_v34 = vld [vmem:[%s9584_s5 + $0x30] sm:$0xff]  }
 0x37c   : > { %3428 = vrot.lane.b32.xlu0 %v9724_v55, %s8862_s27  ;;  %v2929_v61 = vmul.f32 0.125, %v1478_v23 }
 0x37d   : > { %v9935_v0 = vpack.c.bf16 %v1480_v62, %v1476_v45 }
 0x37e   : > { %v9937_v1 = vpack.c.bf16 %v2929_v61, %v2928_v48 }
 0x37f   : > { %7152 = vmatmul.mubr.msk.bf16.gmra.mrb[60].mxu1 %vm1739_vm0, %v9856_v38  ;;  %2549 = vrot.lane.b32.xlu1 %v9851_v33, %s8862_s27 }
 0x380   : > { %7163 = vmatprep.mubr.msk.bf16.mxu1 %vm1739_vm0, %v9800_v52  ;;  %3432 = vrot.lane.b32.xlu0 %v9760_v49, %s8862_s27  ;;  %v7792_v52 = vld [vmem:[%s9584_s5 + $0x38] sm:$0xff]  }
 0x383   : > { %3430 = vrot.lane.b32.xlu1 %v9743_v16, %s8862_s27 }
 0x384   : > { %3424 = vrot.lane.b32.xlu0 %v9915_v56, %s8862_s27 }
 0x387   : > { %7164 = vmatmul.mubr.msk.bf16.vlgmr.msra.gmra.mrb[64].mxu1 %vm1739_vm0, %v9798_v47  ;;  %3434 = vrot.lane.b32.xlu1 %v9781_v15, %s8862_s27  ;;  %v7109_v47 = vpop.f32.mrb[32].mxu1 }
 0x388   : > { %7167 = vmatprep.mubr.msk.bf16.mxu1 %vm1739_vm0, %v9817_v22  ;;  %7212 = vmatpush3.bf16.msra.mxu1 %v7789_v30  ;;  %v1629_v22 = vadd.f32 %v7109_v47, %v9779_v13  ;;  %v1620_v38 = vpop.f32.mrb[33].mxu1 }
 0x389   : > { %7213 = vmatprep.subr.bf16.mxu1 %v7790_v32  ;;  %3400 = vrot.lane.b32.xlu0 %v9917_v41, %s8862_s27  ;;  %v1621_v2 = vadd.f32 %v1620_v38, %v9779_v13  ;;  %v7110_v3 = vpop.f32.mrb[34].mxu1 }
 0x38a   : > { %v1632_v4 = vadd.f32 %v7110_v3, %v9779_v13  ;;  %v1623_v5 = vpop.f32.mrb[35].mxu1 }
 0x38b   : > { %3404 = vrot.lane.b32.xlu1 %v9728_v57, %s8862_s27  ;;  %v7113_v50 = vpop.f32.mrb[36].mxu1 }
 0x38c   : > { %7214 = vmatpush3.bf16.msra.mxu1 %v7790_v32  ;;  %v9976_v17 = vpack.c.bf16 %v1632_v4, %v1629_v22  ;;  %v1645_v6 = vadd.f32 %v7113_v50, %v9779_v13  ;;  %v1636_v8 = vpop.f32.mrb[37].mxu1 }
 0x38d   : > { %7215 = vmatprep.subr.bf16.mxu1 %v7791_v34  ;;  %v1637_v10 = vadd.f32 %v1636_v8, %v9779_v13  ;;  %v7114_v11 = vpop.f32.mrb[38].mxu1 }
 0x38e   : > { %12491 = vst [vmem:[#allocation42_spill] sm:$0xff] %v9976_v17  ;;  %v1639_v25 = vpop.f32.mrb[39].mxu1 }
 0x38f   : > { %7168 = vmatmul.mubr.msk.bf16.gmra.mrb[68].mxu1 %vm1739_vm0, %v9815_v12  ;;  %3420 = vrot.lane.b32.xlu1 %v9871_v59, %s8862_s27  ;;  %v1624_v12 = vadd.f32 %v1623_v5, %v9779_v13  ;;  %v7117_v26 = vpop.f32.mrb[40].mxu1 }
 0x390   : > { %7171 = vmatprep.mubr.msk.bf16.mxu1 %vm1739_vm0, %v9834_v60  ;;  %7216 = vmatpush3.bf16.msra.mxu1 %v7791_v34  ;;  %v1661_v20 = vadd.f32 %v7117_v26, %v9779_v13  ;;  %v1652_v35 = vpop.f32.mrb[41].mxu1 }
 0x391   : > { %7217 = vmatprep.subr.bf16.mxu1 %v7792_v52  ;;  %v9980_v60 = vpack.c.bf16 %v1624_v12, %v1621_v2  ;;  %v1653_v53 = vadd.f32 %v1652_v35, %v9779_v13  ;;  %v7118_v39 = vpop.f32.mrb[42].mxu1 }
 0x392   : > { %v1664_v40 = vadd.f32 %v7118_v39, %v9779_v13  ;;  %v1655_v42 = vpop.f32.mrb[43].mxu1  ;;  %v2987_v39 = vsel %vm1739_vm0, %v9871_v59, 0 }
 0x393   : > { %3396 = vrot.lane.b32.xlu1 %v9874_v63, %s8862_s27  ;;  %v1656_v43 = vadd.f32 %v1655_v42, %v9779_v13  ;;  %v7121_v44 = vpop.f32.mrb[44].mxu1 }
 0x394   : > { %7218 = vmatpush3.bf16.msra.mxu1 %v7792_v52  ;;  %v10008_v45 = vpack.c.bf16 %v1664_v40, %v1661_v20  ;;  %v1677_v46 = vadd.f32 %v7121_v44, %v9779_v13  ;;  %v1668_v48 = vpop.f32.mrb[45].mxu1  ;;  %v2990_v44 = vsel %vm1739_vm0, %v9893_v7, 0 }
 0x395   : > { %7539 = vmatprep.subr.msk.bf16.mxu1 %vm1739_vm0, %v9871_v59  ;;  %v10011_v54 = vpack.c.bf16 %v1656_v43, %v1653_v53  ;;  %v1669_v62 = vadd.f32 %v1668_v48, %v9779_v13  ;;  %v7122_v61 = vpop.f32.mrb[46].mxu1  ;;  %v2993_v48 = vsel %vm1739_vm0, %v9915_v56, 0 }
 0x396   : > { %12493 = vst [vmem:[#allocation44_spill] sm:$0xff] %v10008_v45  ;;  %v1680_v32 = vadd.f32 %v7122_v61, %v9779_v13  ;;  %v1671_v34 = vpop.f32.mrb[47].mxu1 }
 0x397   : > { %7172 = vmatmul.mubr.msk.bf16.gmra.mrb[72].mxu1 %vm1739_vm0, %v9832_v58  ;;  %3422 = vrot.lane.b32.xlu1 %v9893_v7, %s8862_s27  ;;  %v1648_v58 = vadd.f32 %v7114_v11, %v9779_v13  ;;  %12494 = vst [vmem:[#allocation45_spill] sm:$0xff] %v10011_v54  ;;  %v1672_v52 = vadd.f32 %v1671_v34, %v9779_v13  ;;  %v3008_v34 = vsel %vm1739_vm0, %v9781_v15, 0 }
 0x398   : > { %7175 = vmatprep.mubr.msk.bf16.mxu1 %vm1739_vm0, %v9853_v36  ;;  %v1640_v36 = vadd.f32 %v1639_v25, %v9779_v13  ;;  %v10020_v47 = vpack.c.bf16 %v1680_v32, %v1677_v46 }
 0x399   : > { %v2223_v9 = vpop.permute.xlu0 %2222  ;;  %v9996_v30 = vpack.c.bf16 %v1648_v58, %v1645_v6  ;;  %v10022_v22 = vpack.c.bf16 %v1672_v52, %v1669_v62  ;;  %v2996_v62 = vsel %vm1739_vm0, %v9935_v0, 0 }
 0x39a   : > { %7531 = vmatprep.subr.msk.bf16.mxu0 %vm1739_vm0, %v2223_v9  ;;  %v2263_v24 = vsel %vm1739_vm0, %v2223_v9, 0  ;;  %v9999_v37 = vpack.c.bf16 %v1640_v36, %v1637_v10  ;;  %12495 = vst [vmem:[#allocation46_spill] sm:$0xff] %v10020_v47 }
 0x39b   : > { %7180 = vmatpush3.bf16.xpose.msra.mxu0 %v2263_v24  ;;  %3398 = vrot.lane.b32.xlu1 %v9904_v14, %s8862_s27  ;;  %12496 = vst [vmem:[#allocation47_spill] sm:$0xff] %v10022_v22 }
 0x39c   : > { %12492 = vst [vmem:[#allocation43_spill] sm:$0xff] %v9999_v37 }
 0x39f   : > { %7176 = vmatmul.mubr.msk.bf16.gmra.mrb[76].mxu1 %vm1739_vm0, %v9851_v33  ;;  %3426 = vrot.lane.b32.xlu1 %v9935_v0, %s8862_s27 }
 0x3a1   : > { %v2225_v23 = vpop.permute.xlu0 %2224 }
 0x3a2   : > { %7532 = vmatprep.subr.msk.bf16.mxu0 %vm1739_vm0, %v2225_v23  ;;  %v2266_v33 = vsel %vm1739_vm0, %v2225_v23, 0 }
 0x3a3   : > { %7182 = vmatpush3.bf16.xpose.msra.mxu0 %v2266_v33  ;;  %3402 = vrot.lane.b32.xlu1 %v9937_v1, %s8862_s27 }
 0x3a9   : > { %v2227_v38 = vpop.permute.xlu1 %2226 }
 0x3aa   : > { %7533 = vmatprep.subr.msk.bf16.mxu0 %vm1739_vm0, %v2227_v38  ;;  %v2269_v2 = vsel %vm1739_vm0, %v2227_v38, 0 }
 0x3ab   : > { %7184 = vmatpush3.bf16.xpose.msra.mxu0 %v2269_v2 }
 0x3b1   : > { %v2229_v3 = vpop.permute.xlu1 %2228 }
 0x3b2   : > { %7534 = vmatprep.subr.msk.bf16.mxu0 %vm1739_vm0, %v2229_v3  ;;  %v2272_v4 = vsel %vm1739_vm0, %v2229_v3, 0 }
 0x3b3   : > { %7186 = vmatpush3.bf16.xpose.msra.mxu0 %v2272_v4 }
 0x3b9   : > { %v2231_v5 = vpop.permute.xlu0 %2230 }
 0x3ba   : > { %7535 = vmatprep.subr.msk.bf16.mxu0 %vm1739_vm0, %v2231_v5  ;;  %v2275_v13 = vsel %vm1739_vm0, %v2231_v5, 0 }
 0x3bb   : > { %7188 = vmatpush3.bf16.xpose.msra.mxu0 %v2275_v13 }
 0x3c1   : > { %v2233_v12 = vpop.permute.xlu1 %2232 }
 0x3c2   : > { %7536 = vmatprep.subr.msk.bf16.mxu0 %vm1739_vm0, %v2233_v12  ;;  %v2278_v50 = vsel %vm1739_vm0, %v2233_v12, 0 }
 0x3c3   : > { %7190 = vmatpush3.bf16.xpose.msra.mxu0 %v2278_v50 }
 0x3c9   : > { %v2235_v6 = vpop.permute.xlu0 %2234 }
 0x3ca   : > { %7537 = vmatprep.subr.msk.bf16.mxu0 %vm1739_vm0, %v2235_v6  ;;  %v2281_v8 = vsel %vm1739_vm0, %v2235_v6, 0 }
 0x3cb   : > { %7192 = vmatpush3.bf16.xpose.msra.mxu0 %v2281_v8 }
 0x3cd   : > { %v2199_v9 = vpop.permute.xlu0 %2198 }
 0x3ce   : > { %7195 = vmatprep.mubr.msk.bf16.mxu0 %vm1739_vm0, %v2199_v9 }
 0x3d1   : > { %v2237_v10 = vpop.permute.xlu1 %2236 }
 0x3d2   : > { %v2203_v11 = vpop.permute.xlu0 %2202  ;;  %7538 = vmatprep.subr.msk.bf16.mxu0 %vm1739_vm0, %v2237_v10  ;;  %v2284_v24 = vsel %vm1739_vm0, %v2237_v10, 0 }
 0x3d3   : > { %7194 = vmatpush3.bf16.xpose.msra.mxu0 %v2284_v24 }
 0x3d5   : > { %v2201_v58 = vpop.permute.xlu1 %2200 }
 0x3d6   : > { %v2207_v25 = vpop.permute.xlu0 %2206 }
 0x3d9   : > { %v2205_v36 = vpop.permute.xlu1 %2204 }
 0x3da   : > { %7196 = vmatmul.mubr.msk.bf16.vlgmr.msra.gmra.mrb[48].mxu0 %vm1739_vm0, %v2201_v58  ;;  %v2211_v26 = vpop.permute.xlu0 %2210 }
 0x3db   : > { %7199 = vmatprep.mubr.msk.bf16.mxu0 %vm1739_vm0, %v2203_v11 }
 0x3dd   : > { %v2209_v20 = vpop.permute.xlu1 %2208 }
 0x3de   : > { %v2536_v35 = vpop.permute.xlu0 %2535 }
 0x3df   : > { %7219 = vmatprep.mubr.msk.bf16.mxu1 %vm1739_vm0, %v2536_v35 }
 0x3e1   : > { %v2213_v53 = vpop.permute.xlu1 %2212 }
 0x3e2   : > { %7200 = vmatmul.mubr.msk.bf16.gmra.mrb[52].mxu0 %vm1739_vm0, %v2205_v36  ;;  %v2540_v40 = vpop.permute.xlu0 %2539 }
 0x3e3   : > { %7203 = vmatprep.mubr.msk.bf16.mxu0 %vm1739_vm0, %v2207_v25 }
 0x3e5   : > { %v2538_v42 = vpop.permute.xlu1 %2537 }
 0x3e6   : > { %7220 = vmatmul.mubr.msk.bf16.vlgmr.msra.gmra.mrb[80].mxu1 %vm1739_vm0, %v2538_v42  ;;  %v2544_v46 = vpop.permute.xlu0 %2543 }
 0x3e7   : > { %7300 = vmatpush3.bf16.xpose.msra.mxu1 %v2987_v39  ;;  %7223 = vmatprep.mubr.msk.bf16.mxu1 %vm1739_vm0, %v2540_v40 }
 0x3e8   : > { %7540 = vmatprep.subr.msk.bf16.mxu1 %vm1739_vm0, %v9893_v7 }
 0x3e9   : > { %v2542_v43 = vpop.permute.xlu1 %2541 }
 0x3ea   : > { %7204 = vmatmul.mubr.msk.bf16.gmra.mrb[56].mxu0 %vm1739_vm0, %v2209_v20  ;;  %v2548_v23 = vpop.permute.xlu0 %2547 }
 0x3eb   : > { %7207 = vmatprep.mubr.msk.bf16.mxu0 %vm1739_vm0, %v2211_v26 }
 0x3ed   : > { %v2546_v59 = vpop.permute.xlu1 %2545 }
 0x3ee   : > { %7224 = vmatmul.mubr.msk.bf16.gmra.mrb[84].mxu1 %vm1739_vm0, %v2542_v43  ;;  %v3429_v52 = vpop.permute.xlu0 %3428 }
 0x3ef   : > { %7302 = vmatpush3.bf16.xpose.msra.mxu1 %v2990_v44  ;;  %7227 = vmatprep.mubr.msk.bf16.mxu1 %vm1739_vm0, %v2544_v46  ;;  %v3473_v9 = vsel %vm1739_vm0, %v3429_v52, 0 }
 0x3f0   : > { %7541 = vmatprep.subr.msk.bf16.mxu1 %vm1739_vm0, %v9915_v56  ;;  %v2999_v56 = vsel %vm1739_vm0, %v9724_v55, 0 }
 0x3f1   : > { %v2550_v7 = vpop.permute.xlu1 %2549 }
 0x3f2   : > { %7208 = vmatmul.mubr.msk.bf16.gmra.mrb[60].mxu0 %vm1739_vm0, %v2213_v53 }
 0x3f5   : > { %v10072_v61 = vpop.permute.xlu1 %3430 }
 0x3f6   : > { %7228 = vmatmul.mubr.msk.bf16.gmra.mrb[88].mxu1 %vm1739_vm0, %v2546_v59  ;;  %v3476_v25 = vsel %vm1739_vm0, %v10072_v61, 0 }
 0x3f7   : > { %7304 = vmatpush3.bf16.xpose.msra.mxu1 %v2993_v48  ;;  %7231 = vmatprep.mubr.msk.bf16.mxu1 %vm1739_vm0, %v2548_v23 }
 0x3f8   : > { %7542 = vmatprep.subr.msk.bf16.mxu1 %vm1739_vm0, %v9935_v0  ;;  %v3002_v0 = vsel %vm1739_vm0, %v9743_v16, 0 }
 0x3f9   : > { %v10078_v33 = vpop.permute.xlu1 %3434 }
 0x3fa   : > { %v3482_v40 = vsel %vm1739_vm0, %v10078_v33, 0 }
 0x3fe   : > { %7232 = vmatmul.mubr.msk.bf16.gmra.mrb[92].mxu1 %vm1739_vm0, %v2550_v7 }
 0x3ff   : > { %7306 = vmatpush3.bf16.xpose.msra.mxu1 %v2996_v62  ;;  %7315 = vmatprep.mubr.msk.bf16.mxu1 %vm1739_vm0, %v9874_v63  ;;  %v10082_v63 = vpop.permute.xlu1 %3404 }
 0x400   : > { %7543 = vmatprep.subr.msk.bf16.mxu1 %vm1739_vm0, %v9724_v55  ;;  %v3005_v55 = vsel %vm1739_vm0, %v9760_v49, 0 }
 0x403   : > { %v3421_v32 = vpop.permute.xlu1 %3420 }
 0x404   : > { %v3461_v38 = vsel %vm1739_vm0, %v3421_v32, 0 }
 0x407   : > { %7308 = vmatpush3.bf16.xpose.msra.mxu1 %v2999_v56 }
 0x408   : > { %7544 = vmatprep.subr.msk.bf16.mxu1 %vm1739_vm0, %v9743_v16  ;;  %v3397_v16 = vpop.permute.xlu1 %3396 }
 0x40c   : > { %v3423_v2 = vpop.permute.xlu1 %3422 }
 0x40f   : > { %7310 = vmatpush3.bf16.xpose.msra.mxu1 %v3002_v0 }
 0x410   : > { %7545 = vmatprep.subr.msk.bf16.mxu1 %vm1739_vm0, %v9760_v49  ;;  %v3433_v49 = vpop.permute.xlu0 %3432  ;;  %v3399_v4 = vpop.permute.xlu1 %3398 }
 0x411   : > { %v3479_v53 = vsel %vm1739_vm0, %v3433_v49, 0 }
 0x414   : > { %v3425_v3 = vpop.permute.xlu0 %3424 }
 0x417   : > { %7312 = vmatpush3.bf16.xpose.msra.mxu1 %v3005_v55 }
 0x418   : > { %7546 = vmatprep.subr.msk.bf16.mxu1 %vm1739_vm0, %v9781_v15  ;;  %v3464_v15 = vsel %vm1739_vm0, %v3423_v2, 0  ;;  %v3401_v46 = vpop.permute.xlu0 %3400 }
 0x41f   : > { %7314 = vmatpush3.bf16.xpose.msra.mxu1 %v3008_v34 }
 0x420   : > { %7547 = vmatprep.subr.msk.bf16.mxu1 %vm1739_vm0, %v3421_v32 }
 0x426   : > { %7316 = vmatmul.mubr.msk.bf16.vlgmr.msra.gmra.mrb[96].mxu1 %vm1739_vm0, %v9904_v14  ;;  %v3467_v14 = vsel %vm1739_vm0, %v3425_v3, 0 }
 0x427   : > { %7319 = vmatprep.mubr.msk.bf16.mxu1 %vm1739_vm0, %v9917_v41  ;;  %7356 = vmatpush3.bf16.xpose.msra.mxu1 %v3461_v38  ;;  %v3427_v41 = vpop.permute.xlu1 %3426 }
 0x428   : > { %7548 = vmatprep.subr.msk.bf16.mxu1 %vm1739_vm0, %v3423_v2  ;;  %v3470_v13 = vsel %vm1739_vm0, %v3427_v41, 0 }
 0x42e   : > { %7320 = vmatmul.mubr.msk.bf16.gmra.mrb[100].mxu1 %vm1739_vm0, %v9937_v1 }
 0x42f   : > { %7323 = vmatprep.mubr.msk.bf16.mxu1 %vm1739_vm0, %v9728_v57  ;;  %7358 = vmatpush3.bf16.xpose.msra.mxu1 %v3464_v15 }
 0x430   : > { %7549 = vmatprep.subr.msk.bf16.mxu1 %vm1739_vm0, %v3425_v3 }
 0x436   : > { %7324 = vmatmul.mubr.msk.bf16.gmra.mrb[104].mxu1 %vm1739_vm0, %v9747_v18 }
 0x437   : > { %7327 = vmatprep.mubr.msk.bf16.mxu1 %vm1739_vm0, %v9764_v51  ;;  %7360 = vmatpush3.bf16.xpose.msra.mxu1 %v3467_v14 }
 0x438   : > { %7550 = vmatprep.subr.msk.bf16.mxu1 %vm1739_vm0, %v3427_v41 }
 0x43a   : > { %v10109_v1 = vpop.f32.mrb[48].mxu1 }
 0x43b   : > { %1889 = vmax.xlane.f32.xlu0 %v10109_v1  ;;  %v10112_v57 = vpop.f32.mrb[49].mxu1 }
 0x43c   : > { %1885 = vmax.xlane.f32.xlu1 %v10112_v57  ;;  %v10115_v5 = vpop.f32.mrb[50].mxu1 }
 0x43d   : > { %v10118_v12 = vpop.f32.mrb[51].mxu1 }
 0x43e   : > { %7328 = vmatmul.mubr.msk.bf16.gmra.mrb[108].mxu1 %vm1739_vm0, %v9785_v21 }
 0x43f   : > { %7362 = vmatpush3.bf16.xpose.msra.mxu1 %v3470_v13  ;;  %7371 = vmatprep.mubr.msk.bf16.mxu1 %vm1739_vm0, %v3397_v16 }
 0x440   : > { %1891 = vmax.xlane.f32.xlu1 %v10115_v5  ;;  %7551 = vmatprep.subr.msk.bf16.mxu1 %vm1739_vm0, %v3429_v52 }
 0x442   : > { %v10125_v50 = vpop.f32.mrb[52].mxu1 }
 0x443   : > { %1897 = vmax.xlane.f32.xlu0 %v10125_v50  ;;  %v10128_v6 = vpop.f32.mrb[53].mxu1 }
 0x444   : > { %1887 = vmax.xlane.f32.xlu1 %v10118_v12  ;;  %v10131_v8 = vpop.f32.mrb[54].mxu1 }
 0x445   : > { %v10134_v10 = vpop.f32.mrb[55].mxu1 }
 0x447   : > { %1893 = vmax.xlane.f32.xlu0 %v10128_v6  ;;  %7364 = vmatpush3.bf16.xpose.msra.mxu1 %v3473_v9 }
 0x448   : > { %1899 = vmax.xlane.f32.xlu1 %v10131_v8  ;;  %7552 = vmatprep.subr.msk.bf16.mxu1 %vm1739_vm0, %v10072_v61  ;;  %v3403_v61 = vpop.permute.xlu1 %3402 }
 0x44a   : > { %v10140_v11 = vpop.f32.mrb[56].mxu1 }
 0x44b   : > { %1895 = vmax.xlane.f32.xlu0 %v10134_v10  ;;  %v10143_v24 = vpop.f32.mrb[57].mxu1 }
 0x44c   : > { %1901 = vmax.xlane.f32.xlu1 %v10143_v24  ;;  %v10146_v58 = vpop.f32.mrb[58].mxu1 }
 0x44d   : > { %v10150_v36 = vpop.f32.mrb[59].mxu1 }
 0x44f   : > { %1905 = vmax.xlane.f32.xlu0 %v10140_v11  ;;  %7366 = vmatpush3.bf16.xpose.msra.mxu1 %v3476_v25 }
 0x450   : > { %1907 = vmax.xlane.f32.xlu1 %v10146_v58  ;;  %7553 = vmatprep.subr.msk.bf16.mxu1 %vm1739_vm0, %v3433_v49 }
 0x452   : > { %v10155_v26 = vpop.f32.mrb[60].mxu1 }
 0x453   : > { %1913 = vmax.xlane.f32.xlu0 %v10155_v26  ;;  %v10158_v20 = vpop.f32.mrb[61].mxu1 }
 0x454   : > { %1903 = vmax.xlane.f32.xlu1 %v10150_v36  ;;  %v10161_v35 = vpop.f32.mrb[62].mxu1 }
 0x455   : > { %v10164_v39 = vpop.f32.mrb[63].mxu1 }
 0x457   : > { %1909 = vmax.xlane.f32.xlu0 %v10158_v20  ;;  %7368 = vmatpush3.bf16.xpose.msra.mxu1 %v3479_v53 }
 0x458   : > { %1915 = vmax.xlane.f32.xlu1 %v10161_v35  ;;  %7554 = vmatprep.subr.msk.bf16.mxu1 %vm1739_vm0, %v10078_v33 }
 0x45a   : > { %v7165_v42 = vpop.f32.mrb[64].mxu1 }
 0x45b   : > { %1911 = vmax.xlane.f32.xlu0 %v10164_v39  ;;  %v2111_v43 = vpop.f32.mrb[65].mxu1 }
 0x45c   : > { %v7166_v44 = vpop.f32.mrb[66].mxu1 }
 0x45d   : > { %v2114_v59 = vpop.f32.mrb[67].mxu1  ;;  %v10178_v33 = vpack.c.bf16 %v7166_v44, %v7165_v42 }
 0x45e   : > { %v10180_v34 = vpack.c.bf16 %v2114_v59, %v2111_v43 }
 0x45f   : > { %7370 = vmatpush3.bf16.xpose.msra.mxu1 %v3482_v40  ;;  %12497 = vst [vmem:[#allocation48_spill] sm:$0xff] %v10178_v33 }
 0x460   : > { %12498 = vst [vmem:[#allocation49_spill] sm:$0xff] %v10180_v34 }
 0x462   : > { %v7169_v48 = vpop.f32.mrb[68].mxu1 }
 0x463   : > { %v2127_v23 = vpop.f32.mrb[69].mxu1 }
 0x464   : > { %v7170_v7 = vpop.f32.mrb[70].mxu1 }
 0x465   : > { %v2130_v62 = vpop.f32.mrb[71].mxu1  ;;  %v10182_v16 = vpack.c.bf16 %v7170_v7, %v7169_v48 }
 0x466   : > { %7372 = vmatmul.mubr.msk.bf16.vlgmr.msra.gmra.mrb[112].mxu1 %vm1739_vm0, %v3399_v4  ;;  %v10184_v52 = vpack.c.bf16 %v2130_v62, %v2127_v23 }
 0x467   : > { %7375 = vmatprep.mubr.msk.bf16.mxu1 %vm1739_vm0, %v3401_v46  ;;  %12499 = vst [vmem:[#allocation50_spill] sm:$0xff] %v10182_v16 }
 0x468   : > { %12500 = vst [vmem:[#allocation51_spill] sm:$0xff] %v10184_v52 }
 0x46a   : > { %v7173_v56 = vpop.f32.mrb[72].mxu1 }
 0x46b   : > { %v2143_v0 = vpop.f32.mrb[73].mxu1 }
 0x46c   : > { %v7174_v55 = vpop.f32.mrb[74].mxu1 }
 0x46d   : > { %v2146_v32 = vpop.f32.mrb[75].mxu1  ;;  %v10186_v38 = vpack.c.bf16 %v7174_v55, %v7173_v56 }
 0x46e   : > { %7376 = vmatmul.mubr.msk.bf16.gmra.mrb[116].mxu1 %vm1739_vm0, %v3403_v61  ;;  %v10188_v2 = vpack.c.bf16 %v2146_v32, %v2143_v0 }
 0x46f   : > { %7379 = vmatprep.mubr.msk.bf16.mxu1 %vm1739_vm0, %v10082_v63  ;;  %12501 = vst [vmem:[#allocation52_spill] sm:$0xff] %v10186_v38 }
 0x470   : > { %12502 = vst [vmem:[#allocation53_spill] sm:$0xff] %v10188_v2 }
 0x472   : > { %v7177_v49 = vpop.f32.mrb[76].mxu1 }
 0x473   : > { %v2159_v15 = vpop.f32.mrb[77].mxu1 }
 0x474   : > { %v7178_v3 = vpop.f32.mrb[78].mxu1 }
 0x475   : > { %v10190_v4 = vpack.c.bf16 %v7178_v3, %v7177_v49  ;;  %v2162_v14 = vpop.f32.mrb[79].mxu1 }
 0x476   : > { %v10192_v41 = vpack.c.bf16 %v2162_v14, %v2159_v15 }
 0x477   : > { %12503 = vst [vmem:[#allocation54_spill] sm:$0xff] %v10190_v4 }
 0x478   : > { %12504 = vst [vmem:[#allocation55_spill] sm:$0xff] %v10192_v41 }
 0x4ad   : > { %v10194_v63 = vpop.f32.mrb[48].mxu0 }
 0x4ae   : > { %v10196_v13 = vpop.f32.mrb[49].mxu0  ;;  %2387 = vmax.xlane.f32.xlu0 %v10194_v63 }
 0x4af   : > { %v10199_v9 = vpop.f32.mrb[50].mxu0 }
 0x4b0   : > { %v10201_v25 = vpop.f32.mrb[51].mxu0 }
 0x4b1   : > { %2385 = vmax.xlane.f32.xlu1 %v10201_v25 }
 0x4b2   : > { %2383 = vmax.xlane.f32.xlu0 %v10196_v13 }
 0x4b5   : > { %v10205_v53 = vpop.f32.mrb[52].mxu0 }
 0x4b6   : > { %v10207_v40 = vpop.f32.mrb[53].mxu0  ;;  %2389 = vmax.xlane.f32.xlu0 %v10199_v9 }
 0x4b7   : > { %v10210_v42 = vpop.f32.mrb[54].mxu0  ;;  %2391 = vmax.xlane.f32.xlu1 %v10207_v40 }
 0x4b8   : > { %v10213_v43 = vpop.f32.mrb[55].mxu0 }
 0x4b9   : > { %v7221_v44 = vpop.f32.mrb[80].mxu1 }
 0x4ba   : > { %2395 = vmax.xlane.f32.xlu0 %v10205_v53  ;;  %v2633_v46 = vpop.f32.mrb[81].mxu1 }
 0x4bb   : > { %v7222_v59 = vpop.f32.mrb[82].mxu1 }
 0x4bc   : > { %v2705_v48 = vpack.c.bf16 %v7222_v59, %v7221_v44  ;;  %v2636_v23 = vpop.f32.mrb[83].mxu1 }
 0x4bd   : > { %v10216_v7 = vpop.f32.mrb[56].mxu0  ;;  %v2704_v62 = vpack.c.bf16 %v2636_v23, %v2633_v46 }
 0x4be   : > { %v10218_v56 = vpop.f32.mrb[57].mxu0  ;;  %2397 = vmax.xlane.f32.xlu0 %v10210_v42 }
 0x4bf   : > { %v10221_v61 = vpop.f32.mrb[58].mxu0  ;;  %7235 = vmatprep.subr.bf16.mxu0 %v2704_v62 }
 0x4c0   : > { %v10223_v0 = vpop.f32.mrb[59].mxu0  ;;  %2405 = vmax.xlane.f32.xlu1 %v10221_v61  ;;  %7236 = vmatpush3.bf16.msra.mxu0 %v2704_v62 }
 0x4c1   : > { %v7225_v55 = vpop.f32.mrb[84].mxu1  ;;  %7237 = vmatprep.subr.bf16.mxu0 %v2705_v48 }
 0x4c2   : > { %2393 = vmax.xlane.f32.xlu0 %v10213_v43  ;;  %v2649_v32 = vpop.f32.mrb[85].mxu1 }
 0x4c3   : > { %v7226_v49 = vpop.f32.mrb[86].mxu1 }
 0x4c4   : > { %v2707_v15 = vpack.c.bf16 %v7226_v49, %v7225_v55  ;;  %v2652_v3 = vpop.f32.mrb[87].mxu1  ;;  %7238 = vmatpush3.bf16.msra.mxu0 %v2705_v48 }
 0x4c5   : > { %v10227_v14 = vpop.f32.mrb[60].mxu0  ;;  %v2706_v44 = vpack.c.bf16 %v2652_v3, %v2649_v32 }
 0x4c6   : > { %v10229_v46 = vpop.f32.mrb[61].mxu0  ;;  %2403 = vmax.xlane.f32.xlu0 %v10216_v7 }
 0x4c7   : > { %v10232_v59 = vpop.f32.mrb[62].mxu0  ;;  %7239 = vmatprep.subr.bf16.mxu0 %v2706_v44 }
 0x4c8   : > { %v10234_v23 = vpop.f32.mrb[63].mxu0  ;;  %2413 = vmax.xlane.f32.xlu1 %v10232_v59  ;;  %7240 = vmatpush3.bf16.msra.mxu0 %v2706_v44 }
 0x4c9   : > { %v7229_v62 = vpop.f32.mrb[88].mxu1  ;;  %7241 = vmatprep.subr.bf16.mxu0 %v2707_v15 }
 0x4ca   : > { %2399 = vmax.xlane.f32.xlu0 %v10218_v56  ;;  %v2665_v48 = vpop.f32.mrb[89].mxu1 }
 0x4cb   : > { %v7230_v55 = vpop.f32.mrb[90].mxu1 }
 0x4cc   : > { %v2709_v49 = vpack.c.bf16 %v7230_v55, %v7229_v62  ;;  %v2668_v32 = vpop.f32.mrb[91].mxu1  ;;  %7242 = vmatpush3.bf16.msra.mxu0 %v2707_v15 }
 0x4cd   : > { %v2708_v3 = vpack.c.bf16 %v2668_v32, %v2665_v48  ;;  %v10271_v32 = vpop.xlane.xlu0 %1889 }
 0x4ce   : > { %2401 = vmax.xlane.f32.xlu0 %v10223_v0 }
 0x4cf   : > { %7243 = vmatprep.subr.bf16.mxu0 %v2708_v3 }
 0x4d0   : > { %7244 = vmatpush3.bf16.msra.mxu0 %v2708_v3 }
 0x4d1   : > { %v7233_v27 = vpop.f32.mrb[92].mxu1  ;;  %7245 = vmatprep.subr.bf16.mxu0 %v2709_v49 }
 0x4d2   : > { %2411 = vmax.xlane.f32.xlu0 %v10227_v14  ;;  %v2681_v31 = vpop.f32.mrb[93].mxu1 }
 0x4d3   : > { %v7234_v44 = vpop.f32.mrb[94].mxu1 }
 0x4d4   : > { %v2711_v29 = vpack.c.bf16 %v7234_v44, %v7233_v27  ;;  %v2684_v19 = vpop.f32.mrb[95].mxu1  ;;  %7246 = vmatpush3.bf16.msra.mxu0 %v2709_v49  ;;  %v10275_v44 = vpop.xlane.xlu1 %1885 }
 0x4d5   : > { %v2710_v28 = vpack.c.bf16 %v2684_v19, %v2681_v31 }
 0x4d6   : > { %2407 = vmax.xlane.f32.xlu0 %v10229_v46 }
 0x4d7   : > { %7247 = vmatprep.subr.bf16.mxu0 %v2710_v28 }
 0x4d8   : > { %7248 = vmatpush3.bf16.msra.mxu0 %v2710_v28 }
 0x4d9   : > { %3406 = vrot.lane.b32.xlu1 %v9747_v18, %s8862_s27  ;;  %7249 = vmatprep.subr.bf16.mxu0 %v2711_v29 }
 0x4da   : > { %2409 = vmax.xlane.f32.xlu0 %v10234_v23 }
 0x4dc   : > { %7250 = vmatpush3.bf16.msra.mxu0 %v2711_v29 }
 0x4dd   : > { %7267 = vmatprep.subr.bf16.mxu0 %v10180_v34 }
 0x4f0   : > { %3408 = vrot.lane.b32.xlu0 %v9764_v51, %s8862_s27 }
 0x4f9   : > { %v10247_v27 = vpop.f32.mrb[96].mxu1 }
 0x4fa   : > { %12505 = vst [vmem:[#allocation56_spill] sm:$0xff] %v10247_v27  ;;  %v10249_v15 = vpop.f32.mrb[97].mxu1 }
 0x4fb   : > { %12506 = vst [vmem:[#allocation57_spill] sm:$0xff] %v10249_v15  ;;  %v10251_v19 = vpop.f32.mrb[98].mxu1 }
 0x4fc   : > { %12507 = vst [vmem:[#allocation58_spill] sm:$0xff] %v10251_v19  ;;  %v10253_v31 = vpop.f32.mrb[99].mxu1 }
 0x4fd   : > { %12508 = vst [vmem:[#allocation59_spill] sm:$0xff] %v10253_v31 }
 0x501   : > { %v10255_v28 = vpop.f32.mrb[100].mxu1 }
 0x502   : > { %12509 = vst [vmem:[#allocation60_spill] sm:$0xff] %v10255_v28  ;;  %v10257_v18 = vpop.f32.mrb[101].mxu1 }
 0x503   : > { %12510 = vst [vmem:[#allocation61_spill] sm:$0xff] %v10257_v18  ;;  %v10259_v62 = vpop.f32.mrb[102].mxu1  ;;  %v10279_v18 = vpop.xlane.xlu0 %1897 }
 0x504   : > { %12511 = vst [vmem:[#allocation62_spill] sm:$0xff] %v10259_v62  ;;  %v10261_v29 = vpop.f32.mrb[103].mxu1 }
 0x505   : > { %12512 = vst [vmem:[#allocation63_spill] sm:$0xff] %v10261_v29 }
 0x509   : > { %v10263_v48 = vpop.f32.mrb[104].mxu1 }
 0x50a   : > { %12513 = vst [vmem:[#allocation64_spill] sm:$0xff] %v10263_v48  ;;  %v10265_v55 = vpop.f32.mrb[105].mxu1  ;;  %v10285_v48 = vpop.xlane.xlu1 %1891 }
 0x50b   : > { %12514 = vst [vmem:[#allocation65_spill] sm:$0xff] %v10265_v55  ;;  %v10267_v51 = vpop.f32.mrb[106].mxu1  ;;  %v10287_v55 = vpop.xlane.xlu0 %1893 }
 0x50c   : > { %12515 = vst [vmem:[#allocation66_spill] sm:$0xff] %v10267_v51  ;;  %v10269_v49 = vpop.f32.mrb[107].mxu1 }
 0x50d   : > { %12516 = vst [vmem:[#allocation67_spill] sm:$0xff] %v10269_v49 }
 0x50e   : > { %v10289_v51 = vpop.xlane.xlu1 %1887 }
 0x50f   : > { %v10291_v49 = vpop.xlane.xlu0 %1895 }
 0x511   : > { %v10273_v3 = vpop.f32.mrb[108].mxu1 }
 0x512   : > { %12517 = vst [vmem:[#allocation68_spill] sm:$0xff] %v10273_v3  ;;  %v10277_v28 = vpop.f32.mrb[109].mxu1  ;;  %v10293_v19 = vpop.xlane.xlu1 %1899 }
 0x513   : > { %12518 = vst [vmem:[#allocation69_spill] sm:$0xff] %v10277_v28  ;;  %v10281_v62 = vpop.f32.mrb[110].mxu1  ;;  %v10295_v3 = vpop.xlane.xlu0 %1905 }
 0x514   : > { %12519 = vst [vmem:[#allocation70_spill] sm:$0xff] %v10281_v62  ;;  %v10283_v29 = vpop.f32.mrb[111].mxu1 }
 0x515   : > { %12520 = vst [vmem:[#allocation71_spill] sm:$0xff] %v10283_v29 }
 0x516   : > { %v10297_v27 = vpop.xlane.xlu1 %1901 }
 0x517   : > { %v10299_v28 = vpop.xlane.xlu0 %1913 }
 0x51a   : > { %v10301_v31 = vpop.xlane.xlu1 %1907 }
 0x51b   : > { %v10303_v62 = vpop.xlane.xlu0 %1909 }
 0x51e   : > { %v10305_v29 = vpop.xlane.xlu1 %1903 }
 0x51f   : > { %v10307_v15 = vpop.xlane.xlu0 %1911 }
 0x522   : > { %v10318_v33 = vpop.xlane.xlu1 %1915 }
 0x539   : > { %v10309_v4 = vpop.f32.mrb[112].mxu1 }
 0x53a   : > { %12521 = vst [vmem:[#allocation72_spill] sm:$0xff] %v10309_v4  ;;  %v10311_v41 = vpop.f32.mrb[113].mxu1 }
 0x53b   : > { %12522 = vst [vmem:[#allocation73_spill] sm:$0xff] %v10311_v41  ;;  %v2388_v38 = vpop.xlane.xlu0 %2387  ;;  %v10313_v2 = vpop.f32.mrb[114].mxu1 }
 0x53c   : > { %12523 = vst [vmem:[#allocation74_spill] sm:$0xff] %v10313_v2  ;;  %v2417_v16 = vsub.f32 %v10194_v63, %v2388_v38  ;;  %v10316_v52 = vpop.f32.mrb[115].mxu1 }
 0x53d   : > { %12524 = vst [vmem:[#allocation75_spill] sm:$0xff] %v10316_v52 }
 0x53e   : > { %v2435_v34 = vmul.f32 1.442695, %v2417_v16  ;;  %v2386_v47 = vpop.xlane.xlu1 %2385 }
 0x53f   : > { %v2384_v22 = vpop.xlane.xlu0 %2383  ;;  %v2416_v4 = vsub.f32 %v10201_v25, %v2386_v47 }
 0x540   : > { %7833 = vpow2.f32 %v2435_v34  ;;  %v2415_v54 = vsub.f32 %v10196_v13, %v2384_v22 }
 0x541   : > { %v2433_v38 = vmul.f32 1.442695, %v2416_v4 }
 0x542   : > { %v2431_v37 = vmul.f32 1.442695, %v2415_v54 }
 0x543   : > { %v2390_v45 = vpop.xlane.xlu0 %2389 }
 0x544   : > { %7835 = vpow2.f32 %v2431_v37  ;;  %v2418_v41 = vsub.f32 %v10199_v9, %v2390_v45  ;;  %v2392_v63 = vpop.xlane.xlu1 %2391 }
 0x545   : > { %v2419_v34 = vsub.f32 %v10207_v40, %v2392_v63 }
 0x546   : > { %v2437_v2 = vmul.f32 1.442695, %v2418_v41 }
 0x547   : > { %v2396_v17 = vpop.xlane.xlu0 %2395  ;;  %v2439_v41 = vmul.f32 1.442695, %v2419_v34 }
 0x548   : > { %7837 = vpow2.f32 %v2437_v2  ;;  %v2421_v52 = vsub.f32 %v10205_v53, %v2396_v17 }
 0x549   : > { %7839 = vpow2.f32 %v2433_v38 }
 0x54a   : > { %v10324_v16 = vpop.eup %7833  ;;  %v2443_v22 = vmul.f32 1.442695, %v2421_v52 }
 0x54b   : > { %2467 = vadd.xlane.f32.xlu0 %v10324_v16  ;;  %v2398_v54 = vpop.xlane.xlu0 %2397 }
 0x54c   : > { %v2422_v37 = vsub.f32 %v10210_v42, %v2398_v54  ;;  %7841 = vpow2.f32 %v2443_v22 }
 0x54d   : > { %v2406_v4 = vpop.xlane.xlu1 %2405 }
 0x54e   : > { %v10329_v47 = vpop.eup %7835  ;;  %v2445_v45 = vmul.f32 1.442695, %v2422_v37  ;;  %v2426_v37 = vsub.f32 %v10221_v61, %v2406_v4 }
 0x54f   : > { %2463 = vadd.xlane.f32.xlu1 %v10329_v47  ;;  %v2394_v2 = vpop.xlane.xlu0 %2393 }
 0x550   : > { %7843 = vpow2.f32 %v2445_v45  ;;  %v2420_v17 = vsub.f32 %v10213_v43, %v2394_v2  ;;  %v2453_v2 = vmul.f32 1.442695, %v2426_v37 }
 0x551   : > { %7845 = vpow2.f32 %v2439_v41 }
 0x552   : > { %v10333_v13 = vpop.eup %7837  ;;  %v2441_v52 = vmul.f32 1.442695, %v2420_v17 }
 0x553   : > { %2469 = vadd.xlane.f32.xlu0 %v10333_v13  ;;  %v2404_v9 = vpop.xlane.xlu0 %2403  ;;  %v10336_v53 = vpop.eup %7839 }
 0x554   : > { %7847 = vpow2.f32 %v2441_v52  ;;  %v2425_v42 = vsub.f32 %v10216_v7, %v2404_v9 }
 0x555   : > { %v2414_v25 = vpop.xlane.xlu1 %2413 }
 0x556   : > { %v10341_v43 = vpop.eup %7841  ;;  %v2451_v45 = vmul.f32 1.442695, %v2425_v42  ;;  %v2430_v42 = vsub.f32 %v10232_v59, %v2414_v25  ;;  %v1917_v59 = vsub.f32 %v10112_v57, %v10275_v44 }
 0x557   : > { %2465 = vadd.xlane.f32.xlu0 %v10336_v53  ;;  %v2400_v40 = vpop.xlane.xlu0 %2399 }
 0x558   : > { %v2423_v38 = vsub.f32 %v10218_v56, %v2400_v40  ;;  %v2461_v37 = vmul.f32 1.442695, %v2430_v42  ;;  %v1921_v42 = vsub.f32 %v10128_v6, %v10287_v55  ;;  %v1925_v6 = vsub.f32 %v10143_v24, %v10297_v27 }
 0x559   : > { %v3407_v63 = vpop.permute.xlu1 %3406  ;;  %v1920_v55 = vsub.f32 %v10115_v5, %v10285_v48  ;;  %v1929_v24 = vsub.f32 %v10158_v20, %v10303_v62  ;;  %v1924_v27 = vsub.f32 %v10131_v8, %v10293_v19 }
 0x55a   : > { %v10343_v34 = vpop.eup %7843  ;;  %v2447_v22 = vmul.f32 1.442695, %v2423_v38  ;;  %7380 = vmatmul.mubr.msk.bf16.gmra.mrb[120].mxu1 %vm1739_vm0, %v3407_v63 }
 0x55b   : > { %2475 = vadd.xlane.f32.xlu0 %v10341_v43  ;;  %2477 = vadd.xlane.f32.xlu1 %v10343_v34  ;;  %v10348_v54 = vpop.xlane.xlu0 %2401  ;;  %v10351_v7 = vpop.eup %7845 }
 0x55c   : > { %7849 = vpow2.f32 %v2447_v22 }
 0x55d   : > { %7851 = vpow2.f32 %v2451_v45 }
 0x55e   : > { %v10353_v56 = vpop.eup %7847  ;;  %7853 = vpow2.f32 %v2453_v2 }
 0x55f   : > { %2471 = vadd.xlane.f32.xlu0 %v10351_v7  ;;  %2473 = vadd.xlane.f32.xlu1 %v10353_v56  ;;  %v2412_v41 = vpop.xlane.xlu0 %2411 }
 0x560   : > { %v2429_v17 = vsub.f32 %v10227_v14, %v2412_v41  ;;  %v10366_v14 = vpop.f32.mrb[116].mxu1 }
 0x561   : > { %v10370_v45 = vpop.f32.mrb[117].mxu1 }
 0x562   : > { %v2459_v9 = vmul.f32 1.442695, %v2429_v17  ;;  %v10381_v17 = vpop.f32.mrb[118].mxu1 }
 0x563   : > { %v2408_v52 = vpop.xlane.xlu0 %2407 }
 0x564   : > { %v2427_v61 = vsub.f32 %v10229_v46, %v2408_v52  ;;  %7855 = vpow2.f32 %v2459_v9  ;;  %v1933_v52 = vmul.f32 1.442695, %v1917_v59  ;;  %v1918_v9 = vsub.f32 %v10118_v12, %v10289_v51 }
 0x565   : > { %v1923_v51 = vsub.f32 %v10125_v50, %v10279_v18  ;;  %v1949_v50 = vmul.f32 1.442695, %v1925_v6  ;;  %v1939_v18 = vmul.f32 1.442695, %v1920_v55  ;;  %v12528_v6 = vld [vmem:[#allocation46_spill] sm:$0xff]  ;;  %v12529_v55 = vld [vmem:[#allocation45_spill] sm:$0xff] }
 0x566   : > { %v10359_v4 = vpop.eup %7849  ;;  %v2455_v38 = vmul.f32 1.442695, %v2427_v61  ;;  %v1935_v57 = vmul.f32 1.442695, %v1918_v9 }
 0x567   : > { %2479 = vadd.xlane.f32.xlu0 %v10359_v4  ;;  %v2410_v40 = vpop.xlane.xlu0 %2409  ;;  %v10363_v63 = vpop.eup %7851 }
 0x568   : > { %7857 = vpow2.f32 %v2455_v38  ;;  %v2428_v46 = vsub.f32 %v10234_v23, %v2410_v40  ;;  %v10372_v41 = vpop.eup %7853  ;;  %v10384_v23 = vpop.f32.mrb[119].mxu1 }
 0x569   : > { %7859 = vpow2.f32 %v2461_v37 }
 0x56a   : > { %v2457_v25 = vmul.f32 1.442695, %v2428_v46 }
 0x56b   : > { %2483 = vadd.xlane.f32.xlu0 %v10363_v63  ;;  %v3409_v22 = vpop.permute.xlu0 %3408 }
 0x56c   : > { %7383 = vmatprep.mubr.msk.bf16.mxu1 %vm1739_vm0, %v3409_v22  ;;  %7861 = vpow2.f32 %v2457_v25  ;;  %v1945_v22 = vmul.f32 1.442695, %v1923_v51  ;;  %v1926_v25 = vsub.f32 %v10150_v36, %v10305_v29  ;;  %v1930_v29 = vsub.f32 %v10164_v39, %v10307_v15 }
 0x56d   : > { %7863 = vpow2.f32 %v1933_v52 }
 0x56e   : > { %v10379_v2 = vpop.eup %7855  ;;  %7865 = vpow2.f32 %v1935_v57  ;;  %v1951_v19 = vmul.f32 1.442695, %v1926_v25 }
 0x56f   : > { %2485 = vadd.xlane.f32.xlu0 %v10372_v41 }
 0x570   : > { %3410 = vrot.lane.b32.xlu1 %v9785_v21, %s8862_s27  ;;  %v1919_v21 = vsub.f32 %v10109_v1, %v10271_v32  ;;  %v1941_v1 = vmul.f32 1.442695, %v1921_v42  ;;  %v2424_v32 = vsub.f32 %v10223_v0, %v10348_v54  ;;  %v1927_v0 = vsub.f32 %v10140_v11, %v10295_v3 }
 0x571   : > { %v1922_v54 = vsub.f32 %v10134_v10, %v10291_v49  ;;  %v1931_v10 = vsub.f32 %v10155_v26, %v10299_v28  ;;  %v1957_v49 = vmul.f32 1.442695, %v1929_v24  ;;  %v1947_v3 = vmul.f32 1.442695, %v1924_v27 }
 0x572   : > { %v10388_v61 = vpop.eup %7857  ;;  %v1937_v40 = vmul.f32 1.442695, %v1919_v21  ;;  %v2449_v37 = vmul.f32 1.442695, %v2424_v32  ;;  %v1953_v5 = vmul.f32 1.442695, %v1927_v0  ;;  %v1928_v26 = vsub.f32 %v10146_v58, %v10301_v31 }
 0x573   : > { %2491 = vadd.xlane.f32.xlu0 %v10379_v2  ;;  %v10393_v44 = vpop.eup %7859  ;;  %v1943_v48 = vmul.f32 1.442695, %v1922_v54  ;;  %v1961_v8 = vmul.f32 1.442695, %v1931_v10  ;;  %v1932_v58 = vsub.f32 %v10161_v35, %v10318_v33  ;;  %v1959_v31 = vmul.f32 1.442695, %v1930_v29 }
 0x574   : > { %7867 = vpow2.f32 %v1937_v40  ;;  %v1955_v36 = vmul.f32 1.442695, %v1928_v26  ;;  %v12526_v32 = vld [vmem:[#allocation44_spill] sm:$0xff] }
 0x575   : > { %7869 = vpow2.f32 %v1941_v1  ;;  %v1963_v39 = vmul.f32 1.442695, %v1932_v58  ;;  %v12525_v1 = vld [vmem:[#allocation42_spill] sm:$0xff] }
 0x576   : > { %v10398_v12 = vpop.eup %7861  ;;  %7871 = vpow2.f32 %v1945_v22  ;;  %v12527_v22 = vld [vmem:[#allocation43_spill] sm:$0xff] }
 0x577   : > { %2487 = vadd.xlane.f32.xlu0 %v10388_v61  ;;  %v10405_v38 = vpop.eup %7863  ;;  %7873 = vpow2.f32 %v2449_v37  ;;  %v12530_v37 = vld [vmem:[#allocation47_spill] sm:$0xff] }
 0x578   : > { %v10412_v46 = vpop.eup %7865  ;;  %7875 = vpow2.f32 %v1949_v50 }
 0x579   : > { %7877 = vpow2.f32 %v1939_v18 }
 0x57a   : > { %7879 = vpow2.f32 %v1953_v5  ;;  %v12531_v5 = vld [vmem:[#allocation75_spill] sm:$0xff] }
 0x57b   : > { %2493 = vadd.xlane.f32.xlu0 %v10393_v44  ;;  %7881 = vpow2.f32 %v1943_v48  ;;  %v12532_v48 = vld [vmem:[#allocation72_spill] sm:$0xff] }
 0x57c   : > { %7883 = vpow2.f32 %v1957_v49 }
 0x57d   : > { %7885 = vpow2.f32 %v1947_v3 }
 0x57e   : > { %v10419_v59 = vpop.eup %7867  ;;  %7887 = vpow2.f32 %v1961_v8 }
 0x57f   : > { %2489 = vadd.xlane.f32.xlu0 %v10398_v12  ;;  %v10426_v11 = vpop.eup %7869  ;;  %7889 = vpow2.f32 %v1951_v19 }
 0x580   : > { %v10433_v20 = vpop.eup %7871  ;;  %7891 = vpow2.f32 %v1955_v36 }
 0x581   : > { %v10435_v62 = vpop.eup %7873  ;;  %7893 = vpow2.f32 %v1959_v31 }
 0x582   : > { %v10441_v28 = vpop.eup %7875  ;;  %7895 = vpow2.f32 %v1963_v39  ;;  %v12533_v39 = vld [vmem:[#allocation73_spill] sm:$0xff] }
 0x583   : > { %1965 = vadd.xlane.f32.xlu0 %v10405_v38  ;;  %v10443_v52 = vpop.eup %7877 }
 0x584   : > { %v10449_v9 = vpop.eup %7879 }
 0x585   : > { %v10451_v21 = vpop.eup %7881 }
 0x586   : > { %v10457_v57 = vpop.eup %7883 }
 0x587   : > { %1967 = vadd.xlane.f32.xlu0 %v10412_v46  ;;  %v10459_v40 = vpop.eup %7885 }
 0x588   : > { %v10463_v15 = vpop.eup %7887 }
 0x589   : > { %v10465_v42 = vpop.eup %7889 }
 0x58a   : > { %v10469_v35 = vpop.eup %7891 }
 0x58b   : > { %1969 = vadd.xlane.f32.xlu0 %v10419_v59  ;;  %v10472_v33 = vpop.eup %7893 }
 0x58c   : > { %v10475_v51 = vpop.eup %7895 }
 0x58f   : > { %1973 = vadd.xlane.f32.xlu0 %v10426_v11 }
 0x593   : > { %1977 = vadd.xlane.f32.xlu0 %v10433_v20 }
 0x594   : > { %2481 = vadd.xlane.f32.xlu1 %v10435_v62 }
 0x597   : > { %1981 = vadd.xlane.f32.xlu0 %v10441_v28 }
 0x598   : > { %1971 = vadd.xlane.f32.xlu1 %v10443_v52 }
 0x59b   : > { %1985 = vadd.xlane.f32.xlu0 %v10449_v9 }
 0x59c   : > { %1975 = vadd.xlane.f32.xlu1 %v10451_v21 }
 0x59f   : > { %1989 = vadd.xlane.f32.xlu0 %v10457_v57 }
 0x5a0   : > { %1979 = vadd.xlane.f32.xlu1 %v10459_v40 }
 0x5a3   : > { %1993 = vadd.xlane.f32.xlu0 %v10463_v15 }
 0x5a4   : > { %1983 = vadd.xlane.f32.xlu1 %v10465_v42 }
 0x5a8   : > { %1987 = vadd.xlane.f32.xlu1 %v10469_v35 }
 0x5ac   : > { %1991 = vadd.xlane.f32.xlu1 %v10472_v33 }
 0x5b0   : > { %1995 = vadd.xlane.f32.xlu1 %v10475_v51 }
 0x5b9   : > { %3733 = vrot.lane.b32.xlu0 %v9980_v60, %s8862_s27 }
 0x5bd   : > { %3739 = vrot.lane.b32.xlu0 %v9996_v30, %s8862_s27 }
 0x5c1   : > { %3735 = vrot.lane.b32.xlu1 %v12525_v1, %s8862_s27  ;;  %3743 = vrot.lane.b32.xlu0 %v12526_v32, %s8862_s27 }
 0x5c5   : > { %3737 = vrot.lane.b32.xlu1 %v12527_v22, %s8862_s27  ;;  %3747 = vrot.lane.b32.xlu0 %v12528_v6, %s8862_s27 }
 0x5c9   : > { %3741 = vrot.lane.b32.xlu1 %v12529_v55, %s8862_s27 }
 0x5cd   : > { %3745 = vrot.lane.b32.xlu1 %v12530_v37, %s8862_s27 }
 0x5d8   : > { %v2468_v50 = vpop.xlane.xlu0 %2467 }
 0x5dc   : > { %v2464_v0 = vpop.xlane.xlu1 %2463 }
 0x5e0   : > { %v2470_v18 = vpop.xlane.xlu0 %2469 }
 0x5e1   : > { %7897 = vrcp.f32 %v2470_v18 }
 0x5e2   : > { %7899 = vrcp.f32 %v2464_v0  ;;  %v12534_v0 = vmov 0  }
 0x5e3   : > { %7901 = vrcp.f32 %v2468_v50 }
 0x5e4   : > { %v2466_v54 = vpop.xlane.xlu0 %2465  ;;  %3583 = vmax.xlane.f32.xlu0 %v12531_v5 }
 0x5e5   : > { %7903 = vrcp.f32 %v2466_v54 }
 0x5e8   : > { %v2478_v24 = vpop.xlane.xlu1 %2477  ;;  %v2476_v27 = vpop.xlane.xlu0 %2475  ;;  %3585 = vmax.xlane.f32.xlu0 %v12532_v48 }
 0x5e9   : > { %7905 = vrcp.f32 %v2478_v24 }
 0x5ea   : > { %7907 = vrcp.f32 %v2476_v27  ;;  %v12535_v27 = vld [vmem:[#allocation74_spill] sm:$0xff] }
 0x5eb   : > { %v7898_v10 = vpop.eup %7897 }
 0x5ec   : > { %v2474_v49 = vpop.xlane.xlu1 %2473  ;;  %v2472_v3 = vpop.xlane.xlu0 %2471  ;;  %3589 = vmax.xlane.f32.xlu0 %v10370_v45  ;;  %v2514_v19 = vmul.f32 %v7898_v10, %v10333_v13  ;;  %v12537_v10 = vld [vmem:[#allocation48_spill] sm:$0xff] }
 0x5ed   : > { %v7900_v25 = vpop.eup %7899  ;;  %7909 = vrcp.f32 %v2474_v49 }
 0x5ee   : > { %v7902_v8 = vpop.eup %7901  ;;  %7911 = vrcp.f32 %v2472_v3  ;;  %v2511_v29 = vmul.f32 %v7900_v25, %v10329_v47  ;;  %v12536_v47 = vld [vmem:[#allocation49_spill] sm:$0xff] }
 0x5ef   : > { %v7904_v26 = vpop.eup %7903  ;;  %v2513_v31 = vmul.f32 %v7902_v8, %v10324_v16 }
 0x5f0   : > { %v3411_v36 = vpop.permute.xlu1 %3410  ;;  %3593 = vmax.xlane.f32.xlu0 %v10366_v14  ;;  %v2512_v58 = vmul.f32 %v7904_v26, %v10336_v53 }
 0x5f1   : > { %7384 = vmatmul.mubr.msk.bf16.gmra.mrb[124].mxu1 %vm1739_vm0, %v3411_v36  ;;  %3581 = vmax.xlane.f32.xlu1 %v12533_v39  ;;  %v2697_v18 = vpack.c.bf16 %v2514_v19, %v2513_v31  ;;  %v12538_v19 = vld [vmem:[#allocation51_spill] sm:$0xff]  ;;  %v12541_v31 = vld [vmem:[#allocation52_spill] sm:$0xff] }
 0x5f2   : > { %v2696_v50 = vpack.c.bf16 %v2512_v58, %v2511_v29  ;;  %4786 = vmatprep.mubr.bf16.mxu1 %v12534_v0 }
 0x5f3   : > { %v7906_v54 = vpop.eup %7905 }
 0x5f4   : > { %7251 = vmatprep.mubr.bf16.mxu0 %v2696_v50  ;;  %v2480_v13 = vpop.xlane.xlu0 %2479  ;;  %v7908_v24 = vpop.eup %7907  ;;  %v2518_v8 = vmul.f32 %v7906_v54, %v10343_v34 }
 0x5f5   : > { %3587 = vmax.xlane.f32.xlu1 %v12535_v27  ;;  %7252 = vmatmul.mubr.bf16.vlgmr.msra.gmra.mrb[64].mxu0 %v2697_v18  ;;  %v2517_v25 = vmul.f32 %v7908_v24, %v10341_v43  ;;  %v12539_v43 = vld [vmem:[#allocation50_spill] sm:$0xff]  ;;  %v12542_v18 = vld [vmem:[#allocation55_spill] sm:$0xff]  ;;  %7913 = vrcp.f32 %v2480_v13 }
 0x5f6   : > { %7268 = vmatpush3.bf16.msra.mxu0 %v12536_v47  ;;  %v12543_v24 = vld [vmem:[#allocation54_spill] sm:$0xff] }
 0x5f7   : > { %v7910_v53 = vpop.eup %7909  ;;  %7269 = vmatprep.subr.bf16.mxu0 %v12537_v10  ;;  %v2699_v58 = vpack.c.bf16 %v2518_v8, %v2517_v25 }
 0x5f8   : > { %v7912_v16 = vpop.eup %7911  ;;  %v2484_v49 = vpop.xlane.xlu0 %2483  ;;  %v2516_v3 = vmul.f32 %v7910_v53, %v10353_v56  ;;  %v10528_v53 = vld [vmem:[%s9584_s5] sm:$0xff]  }
 0x5f9   : > { %3591 = vmax.xlane.f32.xlu1 %v10384_v23  ;;  %v2515_v26 = vmul.f32 %v7912_v16, %v10351_v7  ;;  %v12540_v7 = vld [vmem:[#allocation53_spill] sm:$0xff]  ;;  %7915 = vrcp.f32 %v2484_v49 }
 0x5fa   : > { %7270 = vmatpush3.bf16.msra.mxu0 %v12537_v10 }
 0x5fb   : > { %7271 = vmatprep.subr.bf16.mxu0 %v12538_v19  ;;  %v2698_v36 = vpack.c.bf16 %v2516_v3, %v2515_v26 }
 0x5fc   : > { %v2486_v29 = vpop.xlane.xlu0 %2485 }
 0x5fd   : > { %7255 = vmatprep.mubr.bf16.mxu0 %v2698_v36  ;;  %3595 = vmax.xlane.f32.xlu1 %v10381_v17  ;;  %7917 = vrcp.f32 %v2486_v29 }
 0x5fe   : > { %7256 = vmatmul.mubr.bf16.gmra.mrb[68].mxu0 %v2699_v58 }
 0x5ff   : > { %7272 = vmatpush3.bf16.msra.mxu0 %v12538_v19  ;;  %v7914_v26 = vpop.eup %7913 }
 0x600   : > { %7273 = vmatprep.subr.bf16.mxu0 %v12539_v43  ;;  %v2492_v34 = vpop.xlane.xlu0 %2491 }
 0x603   : > { %7274 = vmatpush3.bf16.msra.mxu0 %v12539_v43  ;;  %v7916_v19 = vpop.eup %7915 }
 0x604   : > { %7275 = vmatprep.subr.bf16.mxu0 %v12540_v7  ;;  %v2488_v56 = vpop.xlane.xlu0 %2487 }
 0x607   : > { %7276 = vmatpush3.bf16.msra.mxu0 %v12540_v7  ;;  %v7918_v36 = vpop.eup %7917 }
 0x608   : > { %7277 = vmatprep.subr.bf16.mxu0 %v12541_v31  ;;  %v2494_v50 = vpop.xlane.xlu0 %2493  ;;  %v2522_v29 = vmul.f32 %v7918_v36, %v10372_v41 }
 0x60b   : > { %7278 = vmatpush3.bf16.msra.mxu0 %v12541_v31 }
 0x60c   : > { %7279 = vmatprep.subr.bf16.mxu0 %v12542_v18  ;;  %v2490_v54 = vpop.xlane.xlu0 %2489 }
 0x60d   : > { %7919 = vrcp.f32 %v2490_v54 }
 0x60e   : > { %7921 = vrcp.f32 %v2488_v56 }
 0x60f   : > { %7280 = vmatpush3.bf16.msra.mxu0 %v12542_v18  ;;  %v2519_v18 = vmul.f32 %v7914_v26, %v10359_v4 }
 0x610   : > { %7281 = vmatprep.subr.bf16.mxu0 %v12543_v24  ;;  %v1966_v47 = vpop.xlane.xlu0 %1965 }
 0x613   : > { %7282 = vmatpush3.bf16.msra.mxu0 %v12543_v24 }
 0x614   : > { %7331 = vmatprep.subr.bf16.mxu0 %v10528_v53  ;;  %v1968_v10 = vpop.xlane.xlu0 %1967 }
 0x617   : > { %v7920_v43 = vpop.eup %7919 }
 0x618   : > { %v1970_v16 = vpop.xlane.xlu0 %1969  ;;  %v7922_v7 = vpop.eup %7921 }
 0x619   : > { %v2523_v41 = vmul.f32 %v7922_v7, %v10388_v61 }
 0x61c   : > { %v1974_v8 = vpop.xlane.xlu0 %1973 }
 0x620   : > { %v1978_v49 = vpop.xlane.xlu0 %1977 }
 0x621   : > { %v2482_v3 = vpop.xlane.xlu1 %2481 }
 0x622   : > { %7923 = vrcp.f32 %v2482_v3 }
 0x623   : > { %7925 = vrcp.f32 %v2494_v50  ;;  %v2524_v50 = vmul.f32 %v7920_v43, %v10398_v12 }
 0x624   : > { %7927 = vrcp.f32 %v1968_v10 }
 0x625   : > { %v1972_v25 = vpop.xlane.xlu1 %1971  ;;  %7929 = vrcp.f32 %v2492_v34  ;;  %v2521_v34 = vmul.f32 %v7916_v19, %v10363_v63  ;;  %v2702_v12 = vpack.c.bf16 %v2524_v50, %v2523_v41  ;;  %v1982_v19 = vpop.xlane.xlu0 %1981 }
 0x626   : > { %7931 = vrcp.f32 %v1966_v47 }
 0x627   : > { %7933 = vrcp.f32 %v1972_v25  ;;  %v2701_v4 = vpack.c.bf16 %v2522_v29, %v2521_v34 }
 0x629   : > { %v1976_v58 = vpop.xlane.xlu1 %1975  ;;  %v1986_v29 = vpop.xlane.xlu0 %1985 }
 0x62a   : > { %7935 = vrcp.f32 %v1976_v58 }
 0x62b   : > { %7937 = vrcp.f32 %v1970_v16 }
 0x62c   : > { %v7924_v13 = vpop.eup %7923  ;;  %7939 = vrcp.f32 %v1974_v8 }
 0x62d   : > { %v1980_v31 = vpop.xlane.xlu1 %1979  ;;  %v10532_v56 = vpop.f32.mrb[120].mxu1  ;;  %v2520_v54 = vmul.f32 %v7924_v13, %v10435_v62 }
 0x62e   : > { %v10537_v24 = vpop.f32.mrb[121].mxu1  ;;  %v7926_v26 = vpop.eup %7925  ;;  %7941 = vrcp.f32 %v1980_v31 }
 0x62f   : > { %3597 = vmax.xlane.f32.xlu0 %v10537_v24  ;;  %v10541_v47 = vpop.f32.mrb[122].mxu1  ;;  %v2700_v10 = vpack.c.bf16 %v2520_v54, %v2519_v18  ;;  %v7928_v63 = vpop.eup %7927  ;;  %v2526_v36 = vmul.f32 %v7926_v26, %v10393_v44 }
 0x630   : > { %v10544_v3 = vpop.f32.mrb[123].mxu1  ;;  %v7930_v25 = vpop.eup %7929  ;;  %v2014_v16 = vmul.f32 %v7928_v63, %v10412_v46 }
 0x631   : > { %v1984_v62 = vpop.xlane.xlu1 %1983  ;;  %3599 = vmax.xlane.f32.xlu1 %v10544_v3  ;;  %7259 = vmatprep.mubr.bf16.mxu0 %v2700_v10  ;;  %v7932_v61 = vpop.eup %7931  ;;  %v2525_v58 = vmul.f32 %v7930_v25, %v10379_v2 }
 0x632   : > { %7260 = vmatmul.mubr.bf16.gmra.mrb[72].mxu0 %v2701_v4  ;;  %v2013_v7 = vmul.f32 %v7932_v61, %v10405_v38  ;;  %7943 = vrcp.f32 %v1984_v62  ;;  %v7934_v13 = vpop.eup %7933  ;;  %v1990_v38 = vpop.xlane.xlu0 %1989 }
 0x633   : > { %3601 = vmax.xlane.f32.xlu0 %v10532_v56  ;;  %7263 = vmatprep.mubr.bf16.mxu0 %v2702_v12  ;;  %v2703_v8 = vpack.c.bf16 %v2526_v36, %v2525_v58  ;;  %7945 = vrcp.f32 %v1978_v49  ;;  %v2016_v46 = vmul.f32 %v7934_v13, %v10443_v52  ;;  %v8218_v12 = vld [vmem:[%s9584_s5 + $0x8] sm:$0xff]   ;;  %v8219_v36 = vld [vmem:[%s9584_s5 + $0x10] sm:$0xff]  }
 0x634   : > { %v2174_v18 = vpack.c.bf16 %v2014_v16, %v2013_v7  ;;  %v7936_v54 = vpop.eup %7935  ;;  %7947 = vrcp.f32 %v1982_v19 }
 0x635   : > { %3603 = vmax.xlane.f32.xlu1 %v10541_v47  ;;  %v1988_v43 = vpop.xlane.xlu1 %1987  ;;  %v7938_v44 = vpop.eup %7937  ;;  %v2018_v2 = vmul.f32 %v7936_v54, %v10451_v21 }
 0x636   : > { %v7940_v50 = vpop.eup %7939  ;;  %v2015_v31 = vmul.f32 %v7938_v44, %v10419_v59  ;;  %7949 = vrcp.f32 %v1988_v43  ;;  %v1994_v63 = vpop.xlane.xlu0 %1993  ;;  %v8220_v43 = vld [vmem:[%s9584_s5 + $0x18] sm:$0xff]  }
 0x637   : > { %v2017_v49 = vmul.f32 %v7940_v50, %v10426_v11 }
 0x638   : > { %v2175_v10 = vpack.c.bf16 %v2016_v46, %v2015_v31  ;;  %v7942_v41 = vpop.eup %7941  ;;  %v12544_v31 = vld [vmem:[#allocation57_spill] sm:$0xff] }
 0x639   : > { %v1992_v34 = vpop.xlane.xlu1 %1991  ;;  %v2176_v4 = vpack.c.bf16 %v2018_v2, %v2017_v49  ;;  %v2020_v62 = vmul.f32 %v7942_v41, %v10459_v40  ;;  %v12545_v49 = vld [vmem:[#allocation59_spill] sm:$0xff]  ;;  %v12546_v41 = vld [vmem:[#allocation56_spill] sm:$0xff] }
 0x63a   : > { %7264 = vmatmul.mubr.bf16.gmra.mrb[76].mxu0 %v2703_v8  ;;  %7951 = vrcp.f32 %v1992_v34 }
 0x63b   : > { %7283 = vmatprep.mubr.bf16.mxu0 %v2174_v18  ;;  %7953 = vrcp.f32 %v1986_v29  ;;  %v8221_v29 = vld [vmem:[%s9584_s5 + $0x20] sm:$0xff]  }
 0x63c   : > { %v7944_v26 = vpop.eup %7943  ;;  %7955 = vrcp.f32 %v1990_v38 }
 0x63d   : > { %v7946_v52 = vpop.eup %7945  ;;  %v1996_v59 = vpop.xlane.xlu1 %1995  ;;  %v2022_v11 = vmul.f32 %v7944_v26, %v10465_v42 }
 0x63e   : > { %v7948_v21 = vpop.eup %7947  ;;  %v2019_v25 = vmul.f32 %v7946_v52, %v10433_v20  ;;  %7957 = vrcp.f32 %v1996_v59  ;;  %v12548_v52 = vld [vmem:[#allocation61_spill] sm:$0xff]  ;;  %v12549_v59 = vld [vmem:[#allocation63_spill] sm:$0xff] }
 0x63f   : > { %v2021_v19 = vmul.f32 %v7948_v21, %v10441_v28  ;;  %7959 = vrcp.f32 %v1994_v63  ;;  %v12551_v63 = vld [vmem:[#allocation62_spill] sm:$0xff] }
 0x640   : > { %v2177_v61 = vpack.c.bf16 %v2020_v62, %v2019_v25  ;;  %v12550_v62 = vld [vmem:[#allocation60_spill] sm:$0xff] }
 0x641   : > { %v2178_v16 = vpack.c.bf16 %v2022_v11, %v2021_v19 }
 0x642   : > { %7284 = vmatmul.mubr.bf16.vlgmr.msra.gmra.mrb[64].mxu0 %v2175_v10 }
 0x643   : > { %7287 = vmatprep.mubr.bf16.mxu0 %v2176_v4  ;;  %7332 = vmatpush3.bf16.msra.mxu0 %v10528_v53  ;;  %v7950_v53 = vpop.eup %7949  ;;  %v12547_v4 = vld [vmem:[#allocation58_spill] sm:$0xff] }
 0x644   : > { %7333 = vmatprep.subr.bf16.mxu0 %v8218_v12  ;;  %v7952_v40 = vpop.eup %7951  ;;  %v2024_v20 = vmul.f32 %v7950_v53, %v10469_v35 }
 0x645   : > { %v7954_v58 = vpop.eup %7953  ;;  %v2026_v28 = vmul.f32 %v7952_v40, %v10472_v33 }
 0x646   : > { %v7956_v42 = vpop.eup %7955  ;;  %v2023_v7 = vmul.f32 %v7954_v58, %v10449_v9  ;;  %v8222_v9 = vld [vmem:[%s9584_s5 + $0x28] sm:$0xff]  }
 0x647   : > { %7334 = vmatpush3.bf16.msra.mxu0 %v8218_v12  ;;  %v2025_v8 = vmul.f32 %v7956_v42, %v10457_v57  ;;  %v8223_v57 = vld [vmem:[%s9584_s5 + $0x30] sm:$0xff]  }
 0x648   : > { %7335 = vmatprep.subr.bf16.mxu0 %v8219_v36  ;;  %v2179_v13 = vpack.c.bf16 %v2024_v20, %v2023_v7  ;;  %v7958_v18 = vpop.eup %7957  ;;  %v12554_v20 = vld [vmem:[#allocation64_spill] sm:$0xff] }
 0x649   : > { %v2180_v54 = vpack.c.bf16 %v2026_v28, %v2025_v8  ;;  %v7960_v44 = vpop.eup %7959  ;;  %v2028_v35 = vmul.f32 %v7958_v18, %v10475_v51 }
 0x64a   : > { %7288 = vmatmul.mubr.bf16.gmra.mrb[68].mxu0 %v2177_v61  ;;  %v2027_v33 = vmul.f32 %v7960_v44, %v10463_v15  ;;  %v3734_v15 = vpop.permute.xlu0 %3733  ;;  %v12552_v61 = vld [vmem:[#allocation65_spill] sm:$0xff] }
 0x64b   : > { %7291 = vmatprep.mubr.bf16.mxu0 %v2178_v16  ;;  %7336 = vmatpush3.bf16.msra.mxu0 %v8219_v36  ;;  %v12553_v16 = vld [vmem:[#allocation67_spill] sm:$0xff] }
 0x64c   : > { %7337 = vmatprep.subr.bf16.mxu0 %v8220_v43  ;;  %v2181_v50 = vpack.c.bf16 %v2028_v35, %v2027_v33  ;;  %v12558_v35 = vld [vmem:[#allocation68_spill] sm:$0xff] }
 0x64f   : > { %7338 = vmatpush3.bf16.msra.mxu0 %v8220_v43 }
 0x650   : > { %7387 = vmatprep.subr.bf16.mxu0 %v8221_v29 }
 0x652   : > { %7292 = vmatmul.mubr.bf16.gmra.mrb[72].mxu0 %v2179_v13  ;;  %v12556_v13 = vld [vmem:[#allocation69_spill] sm:$0xff] }
 0x653   : > { %7295 = vmatprep.mubr.bf16.mxu0 %v2180_v54  ;;  %v12557_v54 = vld [vmem:[#allocation71_spill] sm:$0xff] }
 0x65a   : > { %7296 = vmatmul.mubr.bf16.gmra.mrb[76].mxu0 %v2181_v50 }
 0x65b   : > { %7339 = vmatprep.mubr.msk.bf16.mxu0 %vm1739_vm0, %v9980_v60  ;;  %v8224_v60 = vld [vmem:[%s9584_s5 + $0x38] sm:$0xff]  }
 0x662   : > { %7340 = vmatmul.mubr.msk.bf16.vlgmr.msra.gmra.mrb[80].mxu0 %vm1739_vm0, %v12525_v1  ;;  %v3740_v1 = vpop.permute.xlu0 %3739 }
 0x663   : > { %7343 = vmatprep.mubr.msk.bf16.mxu0 %vm1739_vm0, %v12527_v22  ;;  %7388 = vmatpush3.bf16.msra.mxu0 %v8221_v29 }
 0x664   : > { %7389 = vmatprep.subr.bf16.mxu0 %v8222_v9 }
 0x667   : > { %7390 = vmatpush3.bf16.msra.mxu0 %v8222_v9  ;;  %v12559_v9 = vld [vmem:[#allocation70_spill] sm:$0xff] }
 0x668   : > { %7391 = vmatprep.subr.bf16.mxu0 %v8223_v57 }
 0x66a   : > { %7344 = vmatmul.mubr.msk.bf16.gmra.mrb[84].mxu0 %vm1739_vm0, %v9996_v30  ;;  %v3736_v30 = vpop.permute.xlu1 %3735 }
 0x66b   : > { %7347 = vmatprep.mubr.msk.bf16.mxu0 %vm1739_vm0, %v12529_v55  ;;  %7392 = vmatpush3.bf16.msra.mxu0 %v8223_v57 }
 0x66c   : > { %7393 = vmatprep.subr.bf16.mxu0 %v8224_v60 }
 0x66e   : > { %v3738_v51 = vpop.permute.xlu1 %3737 }
 0x66f   : > { %7394 = vmatpush3.bf16.msra.mxu0 %v8224_v60 }
 0x672   : > { %7348 = vmatmul.mubr.msk.bf16.gmra.mrb[88].mxu0 %vm1739_vm0, %v12526_v32  ;;  %v3742_v22 = vpop.permute.xlu1 %3741  ;;  %v3744_v32 = vpop.permute.xlu0 %3743 }
 0x673   : > { %7351 = vmatprep.mubr.msk.bf16.mxu0 %vm1739_vm0, %v12530_v37 }
 0x676   : > { %v3746_v55 = vpop.permute.xlu1 %3745 }
 0x67a   : > { %7352 = vmatmul.mubr.msk.bf16.gmra.mrb[92].mxu0 %vm1739_vm0, %v12528_v6  ;;  %v3748_v6 = vpop.permute.xlu0 %3747 }
 0x67b   : > { %7395 = vmatprep.mubr.msk.bf16.mxu0 %vm1739_vm0, %v3734_v15 }
 0x67e   : > { %v3584_v38 = vpop.xlane.xlu0 %3583  ;;  %v3582_v10 = vpop.xlane.xlu1 %3581 }
 0x67f   : > { %v3613_v12 = vsub.f32 %v12533_v39, %v3582_v10  ;;  %v3614_v25 = vsub.f32 %v12531_v5, %v3584_v38  ;;  %v12555_v5 = vld [vmem:[#allocation66_spill] sm:$0xff] }
 0x681   : > { %v3629_v53 = vmul.f32 1.442695, %v3613_v12  ;;  %v3631_v40 = vmul.f32 1.442695, %v3614_v25 }
 0x682   : > { %7396 = vmatmul.mubr.msk.bf16.vlgmr.msra.gmra.mrb[96].mxu0 %vm1739_vm0, %v3736_v30  ;;  %v3586_v26 = vpop.xlane.xlu0 %3585  ;;  %v3588_v21 = vpop.xlane.xlu1 %3587 }
 0x683   : > { %7399 = vmatprep.mubr.msk.bf16.mxu0 %vm1739_vm0, %v3738_v51  ;;  %v3615_v36 = vsub.f32 %v12532_v48, %v3586_v26  ;;  %v3616_v58 = vsub.f32 %v12535_v27, %v3588_v21  ;;  %7961 = vpow2.f32 %v3629_v53 }
 0x684   : > { %7963 = vpow2.f32 %v3631_v40 }
 0x685   : > { %v3633_v39 = vmul.f32 1.442695, %v3615_v36  ;;  %v3635_v7 = vmul.f32 1.442695, %v3616_v58 }
 0x686   : > { %v3590_v11 = vpop.xlane.xlu0 %3589  ;;  %v3592_v19 = vpop.xlane.xlu1 %3591 }
 0x687   : > { %v3617_v43 = vsub.f32 %v10370_v45, %v3590_v11  ;;  %v3618_v48 = vsub.f32 %v10384_v23, %v3592_v19  ;;  %7965 = vpow2.f32 %v3633_v39 }
 0x688   : > { %7967 = vpow2.f32 %v3635_v7 }
 0x689   : > { %v3637_v29 = vmul.f32 1.442695, %v3617_v43  ;;  %v3639_v45 = vmul.f32 1.442695, %v3618_v48 }
 0x68a   : > { %7400 = vmatmul.mubr.msk.bf16.gmra.mrb[100].mxu0 %vm1739_vm0, %v3740_v1  ;;  %v3594_v42 = vpop.xlane.xlu0 %3593  ;;  %v3596_v28 = vpop.xlane.xlu1 %3595 }
 0x68b   : > { %7403 = vmatprep.mubr.msk.bf16.mxu0 %vm1739_vm0, %v3742_v22  ;;  %v3619_v27 = vsub.f32 %v10366_v14, %v3594_v42  ;;  %v3620_v44 = vsub.f32 %v10381_v17, %v3596_v28  ;;  %7969 = vpow2.f32 %v3637_v29 }
 0x68c   : > { %7971 = vpow2.f32 %v3639_v45 }
 0x68d   : > { %v3641_v33 = vmul.f32 1.442695, %v3619_v27  ;;  %v10636_v57 = vpop.eup %7961  ;;  %v3643_v14 = vmul.f32 1.442695, %v3620_v44 }
 0x68e   : > { %v10640_v30 = vpop.eup %7963 }
 0x68f   : > { %7973 = vpow2.f32 %v3641_v33 }
 0x690   : > { %7975 = vpow2.f32 %v3643_v14 }
 0x692   : > { %7404 = vmatmul.mubr.msk.bf16.gmra.mrb[104].mxu0 %vm1739_vm0, %v3744_v32 }
 0x693   : > { %7407 = vmatprep.mubr.msk.bf16.mxu0 %vm1739_vm0, %v3746_v55 }
 0x69a   : > { %7408 = vmatmul.mubr.msk.bf16.gmra.mrb[108].mxu0 %vm1739_vm0, %v3748_v6  ;;  %vm6236_vm0 = vcmask (!%p6750_p2), 1041409  }
 0x6bc   : > { %v3598_v8 = vpop.xlane.xlu0 %3597 }
 0x6bd   : > { %v3621_v23 = vsub.f32 %v10537_v24, %v3598_v8  ;;  %v10644_v24 = vpop.eup %7965 }
 0x6be   : > { %v3600_v18 = vpop.xlane.xlu1 %3599 }
 0x6bf   : > { %v3622_v60 = vsub.f32 %v10544_v3, %v3600_v18  ;;  %v3645_v17 = vmul.f32 1.442695, %v3621_v23  ;;  %v10648_v3 = vpop.eup %7967 }
 0x6c0   : > { %v3602_v50 = vpop.xlane.xlu0 %3601  ;;  %v10651_v55 = vpop.eup %7969 }
 0x6c1   : > { %v3623_v51 = vsub.f32 %v10532_v56, %v3602_v50  ;;  %v3647_v1 = vmul.f32 1.442695, %v3622_v60  ;;  %7977 = vpow2.f32 %v3645_v17  ;;  %v10654_v6 = vpop.eup %7971 }
 0x6c2   : > { %v3604_v15 = vpop.xlane.xlu1 %3603 }
 0x6c3   : > { %v3624_v22 = vsub.f32 %v10541_v47, %v3604_v15  ;;  %v3649_v32 = vmul.f32 1.442695, %v3623_v51  ;;  %7979 = vpow2.f32 %v3647_v1  ;;  %v10657_v47 = vpop.eup %7973 }
 0x6c4   : > { %v10599_v37 = vpop.f32.mrb[124].mxu1  ;;  %v10660_v38 = vpop.eup %7975 }
 0x6c5   : > { %v10601_v46 = vpop.f32.mrb[125].mxu1  ;;  %v3651_v56 = vmul.f32 1.442695, %v3624_v22  ;;  %7981 = vpow2.f32 %v3649_v32 }
 0x6c6   : > { %3605 = vmax.xlane.f32.xlu0 %v10601_v46  ;;  %v10604_v34 = vpop.f32.mrb[126].mxu1 }
 0x6c7   : > { %v10606_v2 = vpop.f32.mrb[127].mxu1  ;;  %7983 = vpow2.f32 %v3651_v56 }
 0x6c8   : > { %3607 = vmax.xlane.f32.xlu1 %v10606_v2 }
 0x6ca   : > { %3609 = vmax.xlane.f32.xlu0 %v10599_v37 }
 0x6cb   : > { %v10663_v10 = vpop.eup %7977 }
 0x6cc   : > { %3611 = vmax.xlane.f32.xlu1 %v10604_v34 }
 0x6cd   : > { %v10666_v26 = vpop.eup %7979 }
 0x6ce   : > { %3107 = vmax.xlane.f32.xlu0 %v12544_v31 }
 0x6cf   : > { %v10669_v21 = vpop.eup %7981 }
 0x6d0   : > { %3109 = vmax.xlane.f32.xlu1 %v12545_v49  ;;  %12560 = vst [vmem:[#allocation42_spill] sm:$0xff] %v10669_v21 }
 0x6d1   : > { %v10672_v12 = vpop.eup %7983 }
 0x6d2   : > { %3111 = vmax.xlane.f32.xlu0 %v12546_v41  ;;  %12561 = vst [vmem:[#allocation44_spill] sm:$0xff] %v10672_v12 }
 0x6d4   : > { %3113 = vmax.xlane.f32.xlu1 %v12547_v4 }
 0x6d6   : > { %3115 = vmax.xlane.f32.xlu0 %v12548_v52 }
 0x6d8   : > { %3117 = vmax.xlane.f32.xlu1 %v12549_v59 }
 0x6da   : > { %3119 = vmax.xlane.f32.xlu0 %v12550_v62 }
 0x6dc   : > { %3121 = vmax.xlane.f32.xlu1 %v12551_v63 }
 0x6de   : > { %3123 = vmax.xlane.f32.xlu0 %v12552_v61 }
 0x6e0   : > { %3125 = vmax.xlane.f32.xlu1 %v12553_v16 }
 0x6e2   : > { %3127 = vmax.xlane.f32.xlu0 %v12554_v20 }
 0x6e4   : > { %3129 = vmax.xlane.f32.xlu1 %v12555_v5 }
 0x6e6   : > { %3131 = vmax.xlane.f32.xlu0 %v12556_v13 }
 0x6e8   : > { %3133 = vmax.xlane.f32.xlu1 %v12557_v54 }
 0x6ea   : > { %3135 = vmax.xlane.f32.xlu0 %v12558_v35 }
 0x6ec   : > { %3137 = vmax.xlane.f32.xlu1 %v12559_v9 }
 0x6ee   : > { %3661 = vadd.xlane.f32.xlu0 %v10636_v57 }
 0x6f0   : > { %3663 = vadd.xlane.f32.xlu1 %v10640_v30 }
 0x6f2   : > { %3665 = vadd.xlane.f32.xlu0 %v10644_v24 }
 0x6f4   : > { %3667 = vadd.xlane.f32.xlu1 %v10648_v3 }
 0x6f6   : > { %3669 = vadd.xlane.f32.xlu0 %v10651_v55 }
 0x6f8   : > { %3671 = vadd.xlane.f32.xlu1 %v10654_v6 }
 0x6fa   : > { %3673 = vadd.xlane.f32.xlu0 %v10657_v47 }
 0x6fc   : > { %3675 = vadd.xlane.f32.xlu1 %v10660_v38 }
 0x6fe   : > { %3677 = vadd.xlane.f32.xlu0 %v10663_v10 }
 0x700   : > { %3679 = vadd.xlane.f32.xlu1 %v10666_v26 }
 0x702   : > { %3681 = vadd.xlane.f32.xlu0 %v10669_v21 }
 0x704   : > { %3683 = vadd.xlane.f32.xlu1 %v10672_v12 }
 0x715   : > { %v10675_v11 = vpop.f32.mrb[64].mxu0 }
 0x716   : > { %v10677_v25 = vpop.f32.mrb[65].mxu0 }
 0x717   : > { %v10679_v19 = vpop.f32.mrb[66].mxu0 }
 0x718   : > { %v10681_v36 = vpop.f32.mrb[67].mxu0 }
 0x71d   : > { %v10683_v53 = vpop.f32.mrb[68].mxu0 }
 0x71e   : > { %v10685_v40 = vpop.f32.mrb[69].mxu0 }
 0x71f   : > { %v10687_v58 = vpop.f32.mrb[70].mxu0 }
 0x720   : > { %v10689_v42 = vpop.f32.mrb[71].mxu0 }
 0x725   : > { %v10691_v39 = vpop.f32.mrb[72].mxu0 }
 0x726   : > { %v10693_v43 = vpop.f32.mrb[73].mxu0 }
 0x727   : > { %v10695_v28 = vpop.f32.mrb[74].mxu0 }
 0x728   : > { %v10697_v7 = vpop.f32.mrb[75].mxu0 }
 0x72d   : > { %v10699_v48 = vpop.f32.mrb[76].mxu0 }
 0x72e   : > { %12562 = vst [vmem:[#allocation43_spill] sm:$0xff] %v10699_v48  ;;  %v10701_v8 = vpop.f32.mrb[77].mxu0 }
 0x72f   : > { %v10703_v29 = vpop.f32.mrb[78].mxu0 }
 0x730   : > { %12563 = vst [vmem:[#allocation46_spill] sm:$0xff] %v10703_v29  ;;  %v10705_v27 = vpop.f32.mrb[79].mxu0 }
 0x731   : > { %12564 = vst [vmem:[#allocation45_spill] sm:$0xff] %v10705_v27 }
 0x735   : > { %v7341_v18 = vpop.f32.mrb[80].mxu0 }
 0x736   : > { %v3309_v45 = vpop.f32.mrb[81].mxu0 }
 0x737   : > { %v7342_v44 = vpop.f32.mrb[82].mxu0 }
 0x738   : > { %v10707_v33 = vpack.c.bf16 %v7342_v44, %v7341_v18  ;;  %v3312_v23 = vpop.f32.mrb[83].mxu0 }
 0x739   : > { %v10709_v50 = vpack.c.bf16 %v3312_v23, %v3309_v45 }
 0x73d   : > { %v7345_v14 = vpop.f32.mrb[84].mxu0 }
 0x73e   : > { %v3325_v60 = vpop.f32.mrb[85].mxu0 }
 0x73f   : > { %v7346_v15 = vpop.f32.mrb[86].mxu0 }
 0x740   : > { %v10711_v17 = vpack.c.bf16 %v7346_v15, %v7345_v14  ;;  %v3328_v51 = vpop.f32.mrb[87].mxu0 }
 0x741   : > { %v10713_v1 = vpack.c.bf16 %v3328_v51, %v3325_v60 }
 0x745   : > { %v7349_v22 = vpop.f32.mrb[88].mxu0 }
 0x746   : > { %v3341_v32 = vpop.f32.mrb[89].mxu0 }
 0x747   : > { %v7350_v56 = vpop.f32.mrb[90].mxu0 }
 0x748   : > { %v10715_v0 = vpack.c.bf16 %v7350_v56, %v7349_v22  ;;  %v3344_v29 = vpop.f32.mrb[91].mxu0 }
 0x749   : > { %v10717_v48 = vpack.c.bf16 %v3344_v29, %v3341_v32 }
 0x74a   : > { %12565 = vst [vmem:[#allocation47_spill] sm:$0xff] %v10715_v0 }
 0x74b   : > { %12566 = vst [vmem:[#allocation75_spill] sm:$0xff] %v10717_v48 }
 0x74d   : > { %v7353_v18 = vpop.f32.mrb[92].mxu0 }
 0x74e   : > { %v3357_v44 = vpop.f32.mrb[93].mxu0 }
 0x74f   : > { %v7354_v45 = vpop.f32.mrb[94].mxu0 }
 0x750   : > { %v10719_v23 = vpack.c.bf16 %v7354_v45, %v7353_v18  ;;  %v3360_v27 = vpop.f32.mrb[95].mxu0 }
 0x751   : > { %v10721_v12 = vpack.c.bf16 %v3360_v27, %v3357_v44 }
 0x752   : > { %12567 = vst [vmem:[#allocation72_spill] sm:$0xff] %v10719_v23 }
 0x753   : > { %v3606_v14 = vpop.xlane.xlu0 %3605 }
 0x754   : > { %v3625_v60 = vsub.f32 %v10601_v46, %v3606_v14 }
 0x755   : > { %v3608_v15 = vpop.xlane.xlu1 %3607  ;;  %v7397_v51 = vpop.f32.mrb[96].mxu0 }
 0x756   : > { %v3653_v21 = vmul.f32 1.442695, %v3625_v60  ;;  %v3626_v22 = vsub.f32 %v10606_v2, %v3608_v15  ;;  %v3807_v56 = vpop.f32.mrb[97].mxu0 }
 0x757   : > { %v3610_v0 = vpop.xlane.xlu0 %3609  ;;  %v7398_v29 = vpop.f32.mrb[98].mxu0 }
 0x758   : > { %7985 = vpow2.f32 %v3653_v21  ;;  %v3655_v32 = vmul.f32 1.442695, %v3626_v22  ;;  %v3627_v48 = vsub.f32 %v10599_v37, %v3610_v0  ;;  %v3879_v18 = vpack.c.bf16 %v7398_v29, %v7397_v51  ;;  %v3810_v45 = vpop.f32.mrb[99].mxu0 }
 0x759   : > { %v3878_v23 = vpack.c.bf16 %v3810_v45, %v3807_v56  ;;  %v3612_v27 = vpop.xlane.xlu1 %3611 }
 0x75a   : > { %7987 = vpow2.f32 %v3655_v32  ;;  %v3657_v44 = vmul.f32 1.442695, %v3627_v48  ;;  %v3628_v46 = vsub.f32 %v10604_v34, %v3612_v27 }
 0x75b   : > { %v3108_v14 = vpop.xlane.xlu0 %3107  ;;  %7411 = vmatprep.subr.bf16.mxu0 %v3878_v23 }
 0x75c   : > { %7989 = vpow2.f32 %v3657_v44  ;;  %v3659_v60 = vmul.f32 1.442695, %v3628_v46  ;;  %v3139_v2 = vsub.f32 %v12544_v31, %v3108_v14  ;;  %7412 = vmatpush3.bf16.msra.mxu0 %v3878_v23 }
 0x75d   : > { %v3110_v15 = vpop.xlane.xlu1 %3109  ;;  %v7401_v21 = vpop.f32.mrb[100].mxu0  ;;  %7413 = vmatprep.subr.bf16.mxu0 %v3879_v18 }
 0x75e   : > { %7991 = vpow2.f32 %v3659_v60  ;;  %v3155_v0 = vmul.f32 1.442695, %v3139_v2  ;;  %v3140_v37 = vsub.f32 %v12545_v49, %v3110_v15  ;;  %v3823_v51 = vpop.f32.mrb[101].mxu0 }
 0x75f   : > { %v3112_v22 = vpop.xlane.xlu0 %3111  ;;  %v7402_v56 = vpop.f32.mrb[102].mxu0 }
 0x760   : > { %7993 = vpow2.f32 %v3155_v0  ;;  %v3157_v48 = vmul.f32 1.442695, %v3140_v37  ;;  %v3141_v34 = vsub.f32 %v12546_v41, %v3112_v22  ;;  %v3881_v29 = vpack.c.bf16 %v7402_v56, %v7401_v21  ;;  %v3826_v32 = vpop.f32.mrb[103].mxu0  ;;  %7414 = vmatpush3.bf16.msra.mxu0 %v3879_v18 }
 0x761   : > { %v3880_v45 = vpack.c.bf16 %v3826_v32, %v3823_v51  ;;  %v3114_v31 = vpop.xlane.xlu1 %3113 }
 0x762   : > { %v10730_v23 = vpop.eup %7985  ;;  %7995 = vpow2.f32 %v3157_v48  ;;  %v3159_v27 = vmul.f32 1.442695, %v3141_v34  ;;  %v3142_v44 = vsub.f32 %v12547_v4, %v3114_v31 }
 0x763   : > { %3685 = vadd.xlane.f32.xlu0 %v10730_v23  ;;  %v3116_v49 = vpop.xlane.xlu0 %3115  ;;  %7415 = vmatprep.subr.bf16.mxu0 %v3880_v45 }
 0x764   : > { %v10734_v46 = vpop.eup %7987  ;;  %7997 = vpow2.f32 %v3159_v27  ;;  %v3161_v14 = vmul.f32 1.442695, %v3142_v44  ;;  %v3143_v41 = vsub.f32 %v12548_v52, %v3116_v49  ;;  %7416 = vmatpush3.bf16.msra.mxu0 %v3880_v45 }
 0x765   : > { %3687 = vadd.xlane.f32.xlu1 %v10734_v46  ;;  %v3118_v18 = vpop.xlane.xlu1 %3117  ;;  %v7405_v60 = vpop.f32.mrb[104].mxu0  ;;  %7417 = vmatprep.subr.bf16.mxu0 %v3881_v29 }
 0x766   : > { %v10738_v2 = vpop.eup %7989  ;;  %7999 = vpow2.f32 %v3161_v14  ;;  %v3163_v4 = vmul.f32 1.442695, %v3143_v41  ;;  %v3144_v15 = vsub.f32 %v12549_v59, %v3118_v18  ;;  %v3839_v21 = vpop.f32.mrb[105].mxu0 }
 0x767   : > { %3689 = vadd.xlane.f32.xlu0 %v10738_v2  ;;  %v3120_v0 = vpop.xlane.xlu0 %3119  ;;  %v7406_v37 = vpop.f32.mrb[106].mxu0 }
 0x768   : > { %v10742_v51 = vpop.eup %7991  ;;  %8001 = vpow2.f32 %v3163_v4  ;;  %v3165_v52 = vmul.f32 1.442695, %v3144_v15  ;;  %v3145_v22 = vsub.f32 %v12550_v62, %v3120_v0  ;;  %v3883_v56 = vpack.c.bf16 %v7406_v37, %v7405_v60  ;;  %v3842_v48 = vpop.f32.mrb[107].mxu0  ;;  %7418 = vmatpush3.bf16.msra.mxu0 %v3881_v29 }
 0x769   : > { %v3882_v34 = vpack.c.bf16 %v3842_v48, %v3839_v21  ;;  %3691 = vadd.xlane.f32.xlu1 %v10742_v51  ;;  %v3122_v32 = vpop.xlane.xlu1 %3121 }
 0x76a   : > { %v10746_v45 = vpop.eup %7993  ;;  %8003 = vpow2.f32 %v3165_v52  ;;  %v3167_v59 = vmul.f32 1.442695, %v3145_v22  ;;  %v3146_v31 = vsub.f32 %v12551_v63, %v3122_v32 }
 0x76b   : > { %3187 = vadd.xlane.f32.xlu0 %v10746_v45  ;;  %v3124_v27 = vpop.xlane.xlu0 %3123  ;;  %7419 = vmatprep.subr.bf16.mxu0 %v3882_v34 }
 0x76c   : > { %v10750_v44 = vpop.eup %7995  ;;  %8005 = vpow2.f32 %v3167_v59  ;;  %v3169_v62 = vmul.f32 1.442695, %v3146_v31  ;;  %v3147_v29 = vsub.f32 %v12552_v61, %v3124_v27  ;;  %7420 = vmatpush3.bf16.msra.mxu0 %v3882_v34 }
 0x76d   : > { %3189 = vadd.xlane.f32.xlu1 %v10750_v44  ;;  %v3126_v49 = vpop.xlane.xlu1 %3125  ;;  %v7409_v14 = vpop.f32.mrb[108].mxu0  ;;  %7421 = vmatprep.subr.bf16.mxu0 %v3883_v56 }
 0x76e   : > { %v10754_v41 = vpop.eup %7997  ;;  %8007 = vpow2.f32 %v3169_v62  ;;  %v3171_v63 = vmul.f32 1.442695, %v3147_v29  ;;  %v3148_v18 = vsub.f32 %v12553_v16, %v3126_v49  ;;  %v3855_v60 = vpop.f32.mrb[109].mxu0 }
 0x76f   : > { %3191 = vadd.xlane.f32.xlu0 %v10754_v41  ;;  %v3128_v4 = vpop.xlane.xlu0 %3127  ;;  %v7410_v15 = vpop.f32.mrb[110].mxu0 }
 0x770   : > { %v10758_v21 = vpop.eup %7999  ;;  %8009 = vpow2.f32 %v3171_v63  ;;  %v3173_v61 = vmul.f32 1.442695, %v3148_v18  ;;  %v3149_v0 = vsub.f32 %v12554_v20, %v3128_v4  ;;  %v3885_v37 = vpack.c.bf16 %v7410_v15, %v7409_v14  ;;  %v3858_v52 = vpop.f32.mrb[111].mxu0  ;;  %7422 = vmatpush3.bf16.msra.mxu0 %v3883_v56 }
 0x771   : > { %v3884_v22 = vpack.c.bf16 %v3858_v52, %v3855_v60  ;;  %3193 = vadd.xlane.f32.xlu1 %v10758_v21  ;;  %v3130_v48 = vpop.xlane.xlu1 %3129 }
 0x772   : > { %v10762_v34 = vpop.eup %8001  ;;  %8011 = vpow2.f32 %v3173_v61  ;;  %v3175_v16 = vmul.f32 1.442695, %v3149_v0  ;;  %v3150_v32 = vsub.f32 %v12555_v5, %v3130_v48 }
 0x773   : > { %3195 = vadd.xlane.f32.xlu0 %v10762_v34  ;;  %v3132_v59 = vpop.xlane.xlu0 %3131  ;;  %7423 = vmatprep.subr.bf16.mxu0 %v3884_v22 }
 0x774   : > { %v10766_v31 = vpop.eup %8003  ;;  %8013 = vpow2.f32 %v3175_v16  ;;  %v3177_v20 = vmul.f32 1.442695, %v3150_v32  ;;  %v3151_v56 = vsub.f32 %v12556_v13, %v3132_v59  ;;  %7424 = vmatpush3.bf16.msra.mxu0 %v3884_v22  ;;  %v10796_v16 = vld [vmem:[%s812_s20] ss:$0 sm:$0xff] }
 0x775   : > { %3197 = vadd.xlane.f32.xlu1 %v10766_v31  ;;  %v3134_v27 = vpop.xlane.xlu1 %3133  ;;  %7425 = vmatprep.subr.bf16.mxu0 %v3885_v37 }
 0x776   : > { %v10770_v62 = vpop.eup %8005  ;;  %8015 = vpow2.f32 %v3177_v20  ;;  %v3179_v29 = vmul.f32 1.442695, %v3151_v56  ;;  %v3152_v5 = vsub.f32 %v12557_v54, %v3134_v27  ;;  %v4135_v20 = vadd.f32 %v10796_v16, %v10677_v25 }
 0x777   : > { %3199 = vadd.xlane.f32.xlu0 %v10770_v62  ;;  %v3136_v49 = vpop.xlane.xlu0 %3135  ;;  %v4137_v25 = vadd.f32 %v10675_v11, %v10796_v16 }
 0x778   : > { %v10774_v14 = vpop.eup %8007  ;;  %8017 = vpow2.f32 %v3179_v29  ;;  %v3181_v63 = vmul.f32 1.442695, %v3152_v5  ;;  %v3153_v13 = vsub.f32 %v12558_v35, %v3136_v49  ;;  %7426 = vmatpush3.bf16.msra.mxu0 %v3885_v37  ;;  %v4136_v5 = vadd.f32 %v10796_v16, %v10681_v36 }
 0x779   : > { %3201 = vadd.xlane.f32.xlu1 %v10774_v14  ;;  %v3138_v18 = vpop.xlane.xlu1 %3137  ;;  %7443 = vmatprep.subr.bf16.mxu0 %v10709_v50 }
 0x77a   : > { %v10779_v60 = vpop.eup %8009  ;;  %8019 = vpow2.f32 %v3181_v63  ;;  %v3183_v4 = vmul.f32 1.442695, %v3153_v13  ;;  %v3154_v54 = vsub.f32 %v12559_v9, %v3138_v18  ;;  %v8225_v18 = vld [vmem:[#allocation2] sm:$0xff] }
 0x77b   : > { %3203 = vadd.xlane.f32.xlu0 %v10779_v60  ;;  %v3662_v15 = vpop.xlane.xlu0 %3661 }
 0x77c   : > { %v10783_v61 = vpop.eup %8011  ;;  %8021 = vpow2.f32 %v3183_v4  ;;  %v3185_v35 = vmul.f32 1.442695, %v3154_v54  ;;  %v10813_v4 = vadd.f32 %v8225_v18, %v4135_v20 }
 0x77d   : > { %8023 = vrcp.f32 %v3662_v15  ;;  %3205 = vadd.xlane.f32.xlu1 %v10783_v61  ;;  %v3664_v0 = vpop.xlane.xlu1 %3663 }
 0x77e   : > { %v10786_v37 = vpop.eup %8013  ;;  %8025 = vpow2.f32 %v3185_v35 }
 0x77f   : > { %8027 = vrcp.f32 %v3664_v0  ;;  %3207 = vadd.xlane.f32.xlu0 %v10786_v37  ;;  %v3666_v52 = vpop.xlane.xlu0 %3665  ;;  %v4138_v0 = vadd.f32 %v10679_v19, %v10796_v16 }
 0x780   : > { %v10789_v9 = vpop.eup %8015  ;;  %8029 = vrcp.f32 %v3666_v52  ;;  %v8226_v52 = vld [vmem:[#allocation2 + $0x8] sm:$0xff] }
 0x781   : > { %3209 = vadd.xlane.f32.xlu1 %v10789_v9  ;;  %v3668_v22 = vpop.xlane.xlu1 %3667 }
 0x782   : > { %v10792_v48 = vpop.eup %8017  ;;  %8031 = vrcp.f32 %v3668_v22  ;;  %v10820_v22 = vadd.f32 %v8226_v52, %v4136_v5 }
 0x783   : > { %3211 = vadd.xlane.f32.xlu0 %v10792_v48  ;;  %v3670_v32 = vpop.xlane.xlu0 %3669 }
 0x784   : > { %v10799_v59 = vpop.eup %8019  ;;  %8033 = vrcp.f32 %v3670_v32 }
 0x785   : > { %3213 = vadd.xlane.f32.xlu1 %v10799_v59  ;;  %v3672_v56 = vpop.xlane.xlu1 %3671 }
 0x786   : > { %v10804_v27 = vpop.eup %8021  ;;  %8035 = vrcp.f32 %v3672_v56  ;;  %v8227_v56 = vld [vmem:[#allocation2 + $0x10] sm:$0xff] }
 0x787   : > { %v8024_v29 = vpop.eup %8023  ;;  %3215 = vadd.xlane.f32.xlu0 %v10804_v27  ;;  %v3674_v49 = vpop.xlane.xlu0 %3673 }
 0x788   : > { %v10809_v63 = vpop.eup %8025  ;;  %8037 = vrcp.f32 %v3674_v49  ;;  %v3709_v36 = vmul.f32 %v8024_v29, %v10636_v57  ;;  %v10823_v49 = vadd.f32 %v8227_v56, %v4137_v25  ;;  %v4139_v57 = vadd.f32 %v10796_v16, %v10685_v40 }
 0x789   : > { %v8028_v13 = vpop.eup %8027  ;;  %3217 = vadd.xlane.f32.xlu1 %v10809_v63  ;;  %v3676_v54 = vpop.xlane.xlu1 %3675  ;;  %v4140_v25 = vadd.f32 %v10796_v16, %v10689_v42 }
 0x78a   : > { %v8030_v15 = vpop.eup %8029  ;;  %8039 = vrcp.f32 %v3676_v54  ;;  %v3710_v35 = vmul.f32 %v8028_v13, %v10640_v30  ;;  %v8228_v13 = vld [vmem:[#allocation2 + $0x18] sm:$0xff] }
 0x78b   : > { %v3678_v32 = vpop.xlane.xlu0 %3677  ;;  %4201 = vadd.xlane.f32.xlu0 %v10813_v4  ;;  %v3711_v30 = vmul.f32 %v8030_v15, %v10644_v24  ;;  %v10830_v18 = vadd.f32 %v8228_v13, %v4138_v0  ;;  %v4141_v24 = vadd.f32 %v10683_v53, %v10796_v16  ;;  %v8230_v53 = vld [vmem:[#allocation2 + $0x28] sm:$0xff] }
 0x78c   : > { %v8032_v11 = vpop.eup %8031  ;;  %8041 = vrcp.f32 %v3678_v32  ;;  %v3870_v20 = vpack.c.bf16 %v3710_v35, %v3709_v36  ;;  %v4142_v32 = vadd.f32 %v10687_v58, %v10796_v16 }
 0x78d   : > { %v3712_v29 = vmul.f32 %v8032_v11, %v10648_v3  ;;  %v3680_v19 = vpop.xlane.xlu1 %3679  ;;  %4203 = vadd.xlane.f32.xlu1 %v10820_v22  ;;  %v8229_v3 = vld [vmem:[#allocation2 + $0x20] sm:$0xff]  ;;  %v10845_v11 = vadd.f32 %v8230_v53, %v4140_v25 }
 0x78e   : > { %v8034_v5 = vpop.eup %8033  ;;  %8043 = vrcp.f32 %v3680_v19  ;;  %7427 = vmatprep.mubr.bf16.mxu0 %v3870_v20  ;;  %v10837_v15 = vadd.f32 %v8229_v3, %v4139_v57  ;;  %v8231_v57 = vld [vmem:[#allocation2 + $0x30] sm:$0xff]  ;;  %v8233_v25 = vld [vmem:[#allocation2 + $0x40] sm:$0xff] }
 0x78f   : > { %v3682_v54 = vpop.xlane.xlu0 %3681  ;;  %4205 = vadd.xlane.f32.xlu0 %v10823_v49  ;;  %v3871_v40 = vpack.c.bf16 %v3712_v29, %v3711_v30  ;;  %v3713_v0 = vmul.f32 %v8034_v5, %v10651_v55  ;;  %v10849_v55 = vadd.f32 %v8231_v57, %v4141_v24  ;;  %v8232_v29 = vld [vmem:[#allocation2 + $0x38] sm:$0xff]  ;;  %v4144_v5 = vadd.f32 %v10796_v16, %v10697_v7  ;;  %v12572_v57 = vld [vmem:[#allocation43_spill] sm:$0xff] }
 0x790   : > { %v8036_v36 = vpop.eup %8035  ;;  %8045 = vrcp.f32 %v3682_v54  ;;  %v10857_v19 = vadd.f32 %v8232_v29, %v4142_v32  ;;  %v12570_v53 = vld [vmem:[#allocation45_spill] sm:$0xff]  ;;  %v8238_v29 = vld [vmem:[#allocation2 + $0x68] sm:$0xff] }
 0x791   : > { %v3684_v35 = vpop.xlane.xlu1 %3683  ;;  %4207 = vadd.xlane.f32.xlu1 %v10830_v18  ;;  %7428 = vmatmul.mubr.bf16.vlgmr.msra.gmra.mrb[112].mxu0 %v3871_v40  ;;  %v3714_v42 = vmul.f32 %v8036_v36, %v10654_v6  ;;  %v4143_v6 = vadd.f32 %v10796_v16, %v10693_v43  ;;  %v4146_v40 = vadd.f32 %v10695_v28, %v10796_v16  ;;  %v8234_v36 = vld [vmem:[#allocation2 + $0x48] sm:$0xff] }
 0x792   : > { %v8038_v52 = vpop.eup %8037  ;;  %8047 = vrcp.f32 %v3684_v35  ;;  %7444 = vmatpush3.bf16.msra.mxu0 %v10709_v50  ;;  %v10873_v24 = vadd.f32 %v8234_v36, %v4144_v5  ;;  %v8235_v35 = vld [vmem:[#allocation2 + $0x50] sm:$0xff] }
 0x793   : > { %7445 = vmatprep.subr.bf16.mxu0 %v10707_v33  ;;  %4209 = vadd.xlane.f32.xlu0 %v10837_v15  ;;  %v3872_v20 = vpack.c.bf16 %v3714_v42, %v3713_v0  ;;  %v3715_v58 = vmul.f32 %v8038_v52, %v10657_v47  ;;  %v4145_v47 = vadd.f32 %v10691_v39, %v10796_v16  ;;  %v8236_v52 = vld [vmem:[#allocation2 + $0x58] sm:$0xff] }
 0x794   : > { %v8040_v56 = vpop.eup %8039  ;;  %v10885_v32 = vadd.f32 %v8236_v52, %v4146_v40 }
 0x795   : > { %4211 = vadd.xlane.f32.xlu1 %v10845_v11  ;;  %7431 = vmatprep.mubr.bf16.mxu0 %v3872_v20  ;;  %v3716_v50 = vmul.f32 %v8040_v56, %v10660_v38  ;;  %v10865_v38 = vadd.f32 %v8233_v25, %v4143_v6  ;;  %v10877_v0 = vadd.f32 %v8235_v35, %v4145_v47  ;;  %v12571_v56 = vld [vmem:[#allocation75_spill] sm:$0xff]  ;;  %v8240_v25 = vld [vmem:[#allocation2 + $0x78] sm:$0xff] }
 0x796   : > { %v8042_v30 = vpop.eup %8041  ;;  %7446 = vmatpush3.bf16.msra.mxu0 %v10707_v33  ;;  %v4148_v20 = vadd.f32 %v10796_v16, %v12570_v53  ;;  %v4149_v6 = vadd.f32 %v12572_v57, %v10796_v16 }
 0x797   : > { %7447 = vmatprep.subr.bf16.mxu0 %v10713_v1  ;;  %4213 = vadd.xlane.f32.xlu0 %v10849_v55  ;;  %v3873_v43 = vpack.c.bf16 %v3716_v50, %v3715_v58  ;;  %v3717_v33 = vmul.f32 %v8042_v30, %v10663_v10  ;;  %v4147_v10 = vadd.f32 %v10796_v16, %v10701_v8  ;;  %v8237_v58 = vld [vmem:[#allocation2 + $0x60] sm:$0xff] }
 0x798   : > { %v8044_v13 = vpop.eup %8043  ;;  %v10899_v5 = vadd.f32 %v8238_v29, %v4148_v20 }
 0x799   : > { %4215 = vadd.xlane.f32.xlu1 %v10857_v19  ;;  %7432 = vmatmul.mubr.bf16.gmra.mrb[116].mxu0 %v3873_v43  ;;  %v3718_v54 = vmul.f32 %v8044_v13, %v10666_v26  ;;  %v12568_v26 = vld [vmem:[#allocation42_spill] sm:$0xff]  ;;  %v10893_v50 = vadd.f32 %v8237_v58, %v4147_v10  ;;  %v12574_v43 = vld [vmem:[#allocation47_spill] sm:$0xff] }
 0x79a   : > { %v8046_v7 = vpop.eup %8045  ;;  %7448 = vmatpush3.bf16.msra.mxu0 %v10713_v1  ;;  %v12569_v1 = vld [vmem:[#allocation44_spill] sm:$0xff] }
 0x79b   : > { %7449 = vmatprep.subr.bf16.mxu0 %v10711_v17  ;;  %4217 = vadd.xlane.f32.xlu0 %v10865_v38  ;;  %v3874_v39 = vpack.c.bf16 %v3718_v54, %v3717_v33  ;;  %v3719_v28 = vmul.f32 %v8046_v7, %v12568_v26  ;;  %v8239_v13 = vld [vmem:[#allocation2 + $0x70] sm:$0xff] }
 0x79c   : > { %v8048_v3 = vpop.eup %8047  ;;  %v10903_v47 = vadd.f32 %v8239_v13, %v4149_v6  ;;  %v12575_v54 = vld [vmem:[#allocation72_spill] sm:$0xff] }
 0x79d   : > { %4219 = vadd.xlane.f32.xlu1 %v10873_v24  ;;  %7435 = vmatprep.mubr.bf16.mxu0 %v3874_v39  ;;  %v3720_v42 = vmul.f32 %v8048_v3, %v12569_v1 }
 0x79e   : > { %7450 = vmatpush3.bf16.msra.mxu0 %v10711_v17  ;;  %v12573_v17 = vld [vmem:[#allocation46_spill] sm:$0xff] }
 0x79f   : > { %7451 = vmatprep.subr.bf16.mxu0 %v12571_v56  ;;  %4221 = vadd.xlane.f32.xlu0 %v10877_v0  ;;  %v3875_v8 = vpack.c.bf16 %v3720_v42, %v3719_v28  ;;  %v4150_v30 = vadd.f32 %v12573_v17, %v10796_v16 }
 0x7a1   : > { %4223 = vadd.xlane.f32.xlu1 %v10885_v32  ;;  %7436 = vmatmul.mubr.bf16.gmra.mrb[120].mxu0 %v3875_v8  ;;  %v10907_v33 = vadd.f32 %v8240_v25, %v4150_v30 }
 0x7a2   : > { %7452 = vmatpush3.bf16.msra.mxu0 %v12571_v56 }
 0x7a3   : > { %7453 = vmatprep.subr.bf16.mxu0 %v12574_v43  ;;  %4225 = vadd.xlane.f32.xlu0 %v10893_v50 }
 0x7a5   : > { %4227 = vadd.xlane.f32.xlu1 %v10899_v5 }
 0x7a6   : > { %7454 = vmatpush3.bf16.msra.mxu0 %v12574_v43 }
 0x7a7   : > { %7455 = vmatprep.subr.bf16.mxu0 %v10721_v12  ;;  %4229 = vadd.xlane.f32.xlu0 %v10903_v47 }
 0x7a9   : > { %4231 = vadd.xlane.f32.xlu1 %v10907_v33 }
 0x7aa   : > { %7456 = vmatpush3.bf16.msra.mxu0 %v10721_v12 }
 0x7ab   : > { %7457 = vmatprep.subr.bf16.mxu0 %v12575_v54 }
 0x7ae   : > { %7458 = vmatpush3.bf16.msra.mxu0 %v12575_v54 }
 0x7f0   : > { %v3686_v7 = vpop.xlane.xlu0 %3685 }
 0x7f1   : > { %8049 = vrcp.f32 %v3686_v7 }
 0x7f2   : > { %v3688_v40 = vpop.xlane.xlu1 %3687 }
 0x7f3   : > { %8051 = vrcp.f32 %v3688_v40 }
 0x7f4   : > { %v3690_v36 = vpop.xlane.xlu0 %3689 }
 0x7f5   : > { %8053 = vrcp.f32 %v3690_v36 }
 0x7f6   : > { %v3692_v39 = vpop.xlane.xlu1 %3691 }
 0x7f7   : > { %8055 = vrcp.f32 %v3692_v39 }
 0x7f8   : > { %v3188_v3 = vpop.xlane.xlu0 %3187 }
 0x7f9   : > { %8057 = vrcp.f32 %v3188_v3 }
 0x7fa   : > { %v3190_v35 = vpop.xlane.xlu1 %3189 }
 0x7fb   : > { %v8050_v10 = vpop.eup %8049  ;;  %8059 = vrcp.f32 %v3190_v35 }
 0x7fc   : > { %v3192_v26 = vpop.xlane.xlu0 %3191  ;;  %v3721_v1 = vmul.f32 %v8050_v10, %v10730_v23 }
 0x7fd   : > { %v8052_v28 = vpop.eup %8051  ;;  %8061 = vrcp.f32 %v3192_v26 }
 0x7fe   : > { %v3194_v12 = vpop.xlane.xlu1 %3193  ;;  %v3722_v42 = vmul.f32 %v8052_v28, %v10734_v46 }
 0x7ff   : > { %v8054_v52 = vpop.eup %8053  ;;  %8063 = vrcp.f32 %v3194_v12 }
 0x800   : > { %v3196_v53 = vpop.xlane.xlu0 %3195  ;;  %v3876_v20 = vpack.c.bf16 %v3722_v42, %v3721_v1  ;;  %v3723_v57 = vmul.f32 %v8054_v52, %v10738_v2 }
 0x801   : > { %v8056_v56 = vpop.eup %8055  ;;  %8065 = vrcp.f32 %v3196_v53 }
 0x802   : > { %v3198_v8 = vpop.xlane.xlu1 %3197  ;;  %7439 = vmatprep.mubr.bf16.mxu0 %v3876_v20  ;;  %v3724_v6 = vmul.f32 %v8056_v56, %v10742_v51 }
 0x803   : > { %v8058_v58 = vpop.eup %8057  ;;  %8067 = vrcp.f32 %v3198_v8 }
 0x804   : > { %v3200_v17 = vpop.xlane.xlu0 %3199  ;;  %v3877_v30 = vpack.c.bf16 %v3724_v6, %v3723_v57  ;;  %v3235_v46 = vmul.f32 %v8058_v58, %v10746_v45 }
 0x805   : > { %v8060_v29 = vpop.eup %8059  ;;  %8069 = vrcp.f32 %v3200_v17 }
 0x806   : > { %v3202_v23 = vpop.xlane.xlu1 %3201  ;;  %7440 = vmatmul.mubr.bf16.gmra.mrb[124].mxu0 %v3877_v30  ;;  %v3236_v43 = vmul.f32 %v8060_v29, %v10750_v44 }
 0x807   : > { %v8062_v13 = vpop.eup %8061  ;;  %8071 = vrcp.f32 %v3202_v23 }
 0x808   : > { %v3204_v25 = vpop.xlane.xlu0 %3203  ;;  %v3372_v54 = vpack.c.bf16 %v3236_v43, %v3235_v46  ;;  %v3237_v2 = vmul.f32 %v8062_v13, %v10754_v41 }
 0x809   : > { %v8064_v7 = vpop.eup %8063  ;;  %8073 = vrcp.f32 %v3204_v25 }
 0x80a   : > { %v3238_v51 = vmul.f32 %v8064_v7, %v10758_v21  ;;  %v3206_v40 = vpop.xlane.xlu1 %3205  ;;  %7459 = vmatprep.mubr.bf16.mxu0 %v3372_v54 }
 0x80b   : > { %v8066_v36 = vpop.eup %8065  ;;  %8075 = vrcp.f32 %v3206_v40 }
 0x80c   : > { %v3208_v39 = vpop.xlane.xlu0 %3207  ;;  %v3373_v3 = vpack.c.bf16 %v3238_v51, %v3237_v2  ;;  %v3239_v44 = vmul.f32 %v8066_v36, %v10762_v34 }
 0x80d   : > { %v8068_v35 = vpop.eup %8067  ;;  %8077 = vrcp.f32 %v3208_v39  ;;  %v8241_v39 = vld [vmem:[#allocation2 + $0x80] sm:$0xff] }
 0x80e   : > { %v3210_v45 = vpop.xlane.xlu1 %3209  ;;  %7460 = vmatmul.mubr.bf16.vlgmr.msra.gmra.mrb[112].mxu0 %v3373_v3  ;;  %v3240_v10 = vmul.f32 %v8068_v35, %v10766_v31 }
 0x80f   : > { %v8070_v26 = vpop.eup %8069  ;;  %8079 = vrcp.f32 %v3210_v45  ;;  %v8242_v45 = vld [vmem:[#allocation2 + $0x88] sm:$0xff] }
 0x810   : > { %v3212_v28 = vpop.xlane.xlu0 %3211  ;;  %v3374_v41 = vpack.c.bf16 %v3240_v10, %v3239_v44  ;;  %v3241_v1 = vmul.f32 %v8070_v26, %v10770_v62  ;;  %v8243_v26 = vld [vmem:[#allocation2 + $0x90] sm:$0xff] }
 0x811   : > { %v8072_v12 = vpop.eup %8071  ;;  %8081 = vrcp.f32 %v3212_v28 }
 0x812   : > { %v3214_v21 = vpop.xlane.xlu1 %3213  ;;  %7463 = vmatprep.mubr.bf16.mxu0 %v3374_v41  ;;  %v3242_v42 = vmul.f32 %v8072_v12, %v10774_v14 }
 0x813   : > { %v8074_v52 = vpop.eup %8073  ;;  %8083 = vrcp.f32 %v3214_v21 }
 0x814   : > { %v3216_v53 = vpop.xlane.xlu0 %3215  ;;  %v3375_v20 = vpack.c.bf16 %v3242_v42, %v3241_v1  ;;  %v3243_v31 = vmul.f32 %v8074_v52, %v10779_v60  ;;  %v8244_v42 = vld [vmem:[#allocation2 + $0x98] sm:$0xff] }
 0x815   : > { %v8076_v56 = vpop.eup %8075  ;;  %8085 = vrcp.f32 %v3216_v53 }
 0x816   : > { %v3218_v34 = vpop.xlane.xlu1 %3217  ;;  %7464 = vmatmul.mubr.bf16.gmra.mrb[116].mxu0 %v3375_v20  ;;  %v3244_v8 = vmul.f32 %v8076_v56, %v10783_v61 }
 0x817   : > { %v8078_v57 = vpop.eup %8077  ;;  %8087 = vrcp.f32 %v3218_v34 }
 0x818   : > { %v3376_v6 = vpack.c.bf16 %v3244_v8, %v3243_v31  ;;  %v3245_v62 = vmul.f32 %v8078_v57, %v10786_v37 }
 0x819   : > { %v8080_v58 = vpop.eup %8079 }
 0x81a   : > { %7467 = vmatprep.mubr.bf16.mxu0 %v3376_v6  ;;  %v3246_v14 = vmul.f32 %v8080_v58, %v10789_v9  ;;  %v4202_v9 = vpop.xlane.xlu0 %4201  ;;  %v4204_v40 = vpop.xlane.xlu1 %4203  ;;  %v8245_v58 = vld [vmem:[#allocation2 + $0xa0] sm:$0xff] }
 0x81b   : > { %v8082_v17 = vpop.eup %8081  ;;  %v4266_v36 = vmul.f32 0.0078125, %v4202_v9  ;;  %v4267_v35 = vmul.f32 0.0078125, %v4204_v40 }
 0x81c   : > { %v3377_v30 = vpack.c.bf16 %v3246_v14, %v3245_v62  ;;  %v3247_v23 = vmul.f32 %v8082_v17, %v10792_v48 }
 0x81d   : > { %v8084_v29 = vpop.eup %8083  ;;  %v10945_v10 = vsub.f32 %v10813_v4, %v4266_v36  ;;  %v10951_v1 = vsub.f32 %v10820_v22, %v4267_v35  ;;  %v8248_v35 = vld [vmem:[#allocation2 + $0xb8] sm:$0xff] }
 0x81e   : > { %7468 = vmatmul.mubr.bf16.gmra.mrb[120].mxu0 %v3377_v30  ;;  %v3248_v46 = vmul.f32 %v8084_v29, %v10799_v59  ;;  %v4206_v12 = vpop.xlane.xlu0 %4205  ;;  %v4208_v20 = vpop.xlane.xlu1 %4207 }
 0x81f   : > { %v8086_v60 = vpop.eup %8085  ;;  %v4268_v56 = vmul.f32 0.0078125, %v4206_v12  ;;  %v4330_v31 = vmul.f32 %v10945_v10, %v10945_v10  ;;  %v4269_v8 = vmul.f32 0.0078125, %v4208_v20  ;;  %v4331_v57 = vmul.f32 %v10951_v1, %v10951_v1 }
 0x820   : > { %v3378_v43 = vpack.c.bf16 %v3248_v46, %v3247_v23  ;;  %v3249_v13 = vmul.f32 %v8086_v60, %v10804_v27  ;;  %v8246_v23 = vld [vmem:[#allocation2 + $0xa8] sm:$0xff] }
 0x821   : > { %v8088_v61 = vpop.eup %8087  ;;  %v10964_v6 = vsub.f32 %v10823_v49, %v4268_v56  ;;  %v10971_v29 = vsub.f32 %v10830_v18, %v4269_v8  ;;  %v7795_v18 = vld [vmem:[%s9589_s15 + $0x4] ss:$8 sps:$4 sm:$0xff]   ;;  %v7799_v56 = vld [vmem:[%s9589_s15 + $0x20] ss:$8 sps:$4 sm:$0xff]  }
 0x822   : > { %7471 = vmatprep.mubr.bf16.mxu0 %v3378_v43  ;;  %v3250_v25 = vmul.f32 %v8088_v61, %v10809_v63  ;;  %v4210_v17 = vpop.xlane.xlu0 %4209  ;;  %v4212_v60 = vpop.xlane.xlu1 %4211  ;;  %4754 = vmatprep.subr.bf16.mxu1 %v7795_v18 }
 0x823   : > { %v4270_v61 = vmul.f32 0.0078125, %v4210_v17  ;;  %v4333_v9 = vmul.f32 %v10971_v29, %v10971_v29  ;;  %v8250_v17 = vld [vmem:[#allocation2 + $0xc8] sm:$0xff] }
 0x824   : > { %v3379_v54 = vpack.c.bf16 %v3250_v25, %v3249_v13  ;;  %v4332_v25 = vmul.f32 %v10964_v6, %v10964_v6 }
 0x826   : > { %7472 = vmatmul.mubr.bf16.gmra.mrb[124].mxu0 %v3379_v54  ;;  %v4271_v54 = vmul.f32 0.0078125, %v4212_v60  ;;  %v4214_v36 = vpop.xlane.xlu0 %4213 }
 0x827   : > { %v4272_v12 = vmul.f32 0.0078125, %v4214_v36  ;;  %v8252_v36 = vld [vmem:[#allocation2 + $0xd8] sm:$0xff] }
 0x8e1   : > { %v7461_v37 = vpop.f32.mrb[112].mxu0 }
 0x8e2   : > { %v4017_v7 = vpop.f32.mrb[113].mxu0  ;;  %v4153_v59 = vadd.f32 %v7461_v37, %v10796_v16 }
 0x8e3   : > { %v4151_v2 = vadd.f32 %v10796_v16, %v4017_v7  ;;  %v7462_v51 = vpop.f32.mrb[114].mxu0  ;;  %v7793_v7 = vld [vmem:[%s9589_s15] ss:$8 sps:$4 sm:$0xff]  }
 0x8e4   : > { %v4020_v48 = vpop.f32.mrb[115].mxu0  ;;  %v4154_v63 = vadd.f32 %v7462_v51, %v10796_v16  ;;  %v10947_v28 = vadd.f32 %v8243_v26, %v4153_v59  ;;  %v8247_v51 = vld [vmem:[#allocation2 + $0xb0] sm:$0xff]  ;;  %4755 = vmatpush1.bf16.msra.mxu1 %v7793_v7  ;;  %v4216_v26 = vpop.xlane.xlu1 %4215 }
 0x8e5   : > { %v10937_v3 = vadd.f32 %v8241_v39, %v4151_v2  ;;  %v4152_v27 = vadd.f32 %v10796_v16, %v4020_v48  ;;  %v10988_v2 = vsub.f32 %v10837_v15, %v4270_v61  ;;  %v7798_v39 = vld [vmem:[%s9589_s15 + $0x14] ss:$8 sps:$4 sm:$0xff]   ;;  %v7807_v61 = vld [vmem:[%s9589_s15 + $0x44] ss:$8 sps:$4 sm:$0xff]  }
 0x8e6   : > { %v10953_v52 = vadd.f32 %v8244_v42, %v4154_v63  ;;  %4756 = vmatprep.subr.bf16.mxu1 %v7798_v39  ;;  %v7801_v42 = vld [vmem:[%s9589_s15 + $0x24] ss:$8 sps:$4 sm:$0xff]  }
 0x8e7   : > { %v10941_v44 = vadd.f32 %v8242_v45, %v4152_v27  ;;  %4233 = vadd.xlane.f32.xlu0 %v10937_v3  ;;  %v10998_v27 = vsub.f32 %v10845_v11, %v4271_v54  ;;  %v7796_v45 = vld [vmem:[%s9589_s15 + $0x10] ss:$8 sps:$4 sm:$0xff]   ;;  %v4334_v11 = vmul.f32 %v10988_v2, %v10988_v2  ;;  %v7805_v54 = vld [vmem:[%s9589_s15 + $0x40] ss:$8 sps:$4 sm:$0xff]  }
 0x8e8   : > { %4757 = vmatpush1.bf16.msra.mxu1 %v7796_v45 }
 0x8e9   : > { %4235 = vadd.xlane.f32.xlu1 %v10941_v44  ;;  %v7465_v41 = vpop.f32.mrb[116].mxu0  ;;  %4758 = vmatprep.subr.bf16.mxu1 %v7801_v42 }
 0x8ea   : > { %v4033_v21 = vpop.f32.mrb[117].mxu0  ;;  %v4157_v13 = vadd.f32 %v7465_v41, %v10796_v16 }
 0x8eb   : > { %4237 = vadd.xlane.f32.xlu0 %v10947_v28  ;;  %v7466_v53 = vpop.f32.mrb[118].mxu0  ;;  %v4155_v34 = vadd.f32 %v10796_v16, %v4033_v21 }
 0x8ec   : > { %v4036_v4 = vpop.f32.mrb[119].mxu0  ;;  %v4158_v37 = vadd.f32 %v7466_v53, %v10796_v16  ;;  %v10990_v40 = vadd.f32 %v8247_v51, %v4157_v13  ;;  %v4273_v53 = vmul.f32 0.0078125, %v4216_v26  ;;  %4759 = vmatpush1.bf16.msra.mxu1 %v7799_v56  ;;  %v7810_v51 = vld [vmem:[%s9589_s15 + $0x54] ss:$8 sps:$4 sm:$0xff]  }
 0x8ed   : > { %4239 = vadd.xlane.f32.xlu1 %v10953_v52  ;;  %v4156_v22 = vadd.f32 %v10796_v16, %v4036_v4  ;;  %v10966_v62 = vadd.f32 %v8245_v58, %v4155_v34  ;;  %v4335_v4 = vmul.f32 %v10998_v27, %v10998_v27  ;;  %v11016_v34 = vsub.f32 %v10849_v55, %v4272_v12  ;;  %v4220_v55 = vpop.xlane.xlu1 %4219 }
 0x8ee   : > { %v11000_v63 = vadd.f32 %v8248_v35, %v4158_v37  ;;  %v11022_v58 = vsub.f32 %v10857_v19, %v4273_v53  ;;  %v4275_v13 = vmul.f32 0.0078125, %v4220_v55  ;;  %v8251_v37 = vld [vmem:[#allocation2 + $0xd0] sm:$0xff]  ;;  %v7808_v35 = vld [vmem:[%s9589_s15 + $0x50] ss:$8 sps:$4 sm:$0xff]  }
 0x8ef   : > { %4362 = vadd.xlane.f32.xlu0 %v4330_v31  ;;  %v10973_v46 = vadd.f32 %v8246_v23, %v4156_v22  ;;  %v8249_v31 = vld [vmem:[#allocation2 + $0xc0] sm:$0xff]  ;;  %v4218_v22 = vpop.xlane.xlu0 %4217  ;;  %v4336_v19 = vmul.f32 %v11016_v34, %v11016_v34  ;;  %v7811_v53 = vld [vmem:[%s9589_s15 + $0x60] ss:$8 sps:$4 sm:$0xff]  }
 0x8f0   : > { %v7802_v23 = vld [vmem:[%s9589_s15 + $0x30] ss:$8 sps:$4 sm:$0xff]   ;;  %v4274_v60 = vmul.f32 0.0078125, %v4218_v22  ;;  %v4337_v18 = vmul.f32 %v11022_v58, %v11022_v58  ;;  %v7816_v22 = vld [vmem:[%s9589_s15 + $0x74] ss:$8 sps:$4 sm:$0xff]  }
 0x8f1   : > { %4364 = vadd.xlane.f32.xlu1 %v4331_v57  ;;  %v10968_v14 = vpop.f32.mrb[120].mxu0  ;;  %v7804_v57 = vld [vmem:[%s9589_s15 + $0x34] ss:$8 sps:$4 sm:$0xff]  }
 0x8f2   : > { %v4049_v30 = vpop.f32.mrb[121].mxu0  ;;  %4760 = vmatprep.subr.bf16.mxu1 %v7804_v57  ;;  %v8254_v57 = vld [vmem:[#allocation2 + $0xe8] sm:$0xff] }
 0x8f3   : > { %4241 = vadd.xlane.f32.xlu0 %v10966_v62  ;;  %v10976_v49 = vpop.f32.mrb[122].mxu0  ;;  %v4159_v21 = vadd.f32 %v10796_v16, %v4049_v30  ;;  %4761 = vmatpush1.bf16.msra.mxu1 %v7802_v23  ;;  %v4222_v7 = vpop.xlane.xlu0 %4221  ;;  %v7814_v23 = vld [vmem:[%s9589_s15 + $0x70] ss:$8 sps:$4 sm:$0xff]  }
 0x8f4   : > { %v4052_v43 = vpop.f32.mrb[123].mxu0  ;;  %4762 = vmatprep.subr.bf16.mxu1 %v7807_v61  ;;  %v4276_v45 = vmul.f32 0.0078125, %v4222_v7 }
 0x8f5   : > { %4243 = vadd.xlane.f32.xlu1 %v10973_v46  ;;  %v4160_v20 = vadd.f32 %v10796_v16, %v4052_v43  ;;  %v11018_v8 = vadd.f32 %v8249_v31, %v4159_v21  ;;  %v4161_v43 = vadd.f32 %v10968_v14, %v10796_v16  ;;  %v11040_v14 = vsub.f32 %v10865_v38, %v4274_v60  ;;  %v4224_v38 = vpop.xlane.xlu1 %4223 }
 0x8f6   : > { %v4277_v21 = vmul.f32 0.0078125, %v4224_v38 }
 0x8f7   : > { %4366 = vadd.xlane.f32.xlu0 %v4332_v25  ;;  %v11024_v30 = vadd.f32 %v8250_v17, %v4160_v20  ;;  %v4162_v25 = vadd.f32 %v10976_v49, %v10796_v16  ;;  %4763 = vmatpush1.bf16.msra.mxu1 %v7805_v54  ;;  %v11046_v49 = vsub.f32 %v10873_v24, %v4275_v13  ;;  %v7813_v24 = vld [vmem:[%s9589_s15 + $0x64] ss:$8 sps:$4 sm:$0xff]   ;;  %v4226_v20 = vpop.xlane.xlu0 %4225 }
 0x8f8   : > { %4764 = vmatprep.subr.bf16.mxu1 %v7810_v51  ;;  %v4338_v12 = vmul.f32 %v11040_v14, %v11040_v14  ;;  %v4278_v55 = vmul.f32 0.0078125, %v4226_v20  ;;  %v8256_v51 = vld [vmem:[#allocation2 + $0xf8] sm:$0xff] }
 0x8f9   : > { %4368 = vadd.xlane.f32.xlu1 %v4333_v9  ;;  %v10992_v48 = vpop.f32.mrb[124].mxu0  ;;  %v11042_v9 = vadd.f32 %v8251_v37, %v4161_v43  ;;  %v11048_v39 = vadd.f32 %v8252_v36, %v4162_v25  ;;  %v4339_v42 = vmul.f32 %v11046_v49, %v11046_v49  ;;  %v4228_v31 = vpop.xlane.xlu1 %4227 }
 0x8fa   : > { %v10994_v59 = vpop.f32.mrb[125].mxu0  ;;  %v11085_v25 = vsub.f32 %v10893_v50, %v4278_v55 }
 0x8fb   : > { %4245 = vadd.xlane.f32.xlu0 %v10990_v40  ;;  %v11003_v15 = vpop.f32.mrb[126].mxu0  ;;  %v4163_v26 = vadd.f32 %v10796_v16, %v10994_v59  ;;  %4765 = vmatpush1.bf16.msra.mxu1 %v7808_v35  ;;  %v11063_v59 = vsub.f32 %v10877_v0, %v4276_v45  ;;  %v4165_v0 = vadd.f32 %v10992_v48, %v10796_v16  ;;  %v4230_v43 = vpop.xlane.xlu0 %4229 }
 0x8fc   : > { %v4068_v41 = vpop.f32.mrb[127].mxu0  ;;  %4766 = vmatprep.subr.bf16.mxu1 %v7813_v24  ;;  %v4280_v48 = vmul.f32 0.0078125, %v4230_v43  ;;  %v4342_v50 = vmul.f32 %v11085_v25, %v11085_v25 }
 0x8fd   : > { %4247 = vadd.xlane.f32.xlu1 %v11000_v63  ;;  %v4340_v60 = vmul.f32 %v11063_v59, %v11063_v59  ;;  %v4232_v13 = vpop.xlane.xlu1 %4231 }
 0x8fe   : > { %v4281_v7 = vmul.f32 0.0078125, %v4232_v13 }
 0x8ff   : > { %4370 = vadd.xlane.f32.xlu0 %v4334_v11  ;;  %v4164_v11 = vadd.f32 %v10796_v16, %v4068_v41  ;;  %4767 = vmatpush1.bf16.msra.mxu1 %v7811_v53  ;;  %v11069_v41 = vsub.f32 %v10885_v32, %v4277_v21  ;;  %v4279_v32 = vmul.f32 0.0078125, %v4228_v31 }
 0x900   : > { %4768 = vmatprep.subr.bf16.mxu1 %v7816_v22 }
 0x901   : > { %4372 = vadd.xlane.f32.xlu1 %v4335_v4  ;;  %v8253_v4 = vld [vmem:[#allocation2 + $0xe0] sm:$0xff]  ;;  %v11071_v17 = vadd.f32 %v8254_v57, %v4164_v11  ;;  %v4341_v61 = vmul.f32 %v11069_v41, %v11069_v41  ;;  %v11090_v37 = vsub.f32 %v10899_v5, %v4279_v32 }
 0x902   : > { %v11065_v56 = vadd.f32 %v8253_v4, %v4163_v26 }
 0x903   : > { %4249 = vadd.xlane.f32.xlu0 %v11018_v8  ;;  %4769 = vmatpush1.bf16.msra.mxu1 %v7814_v23  ;;  %v4343_v5 = vmul.f32 %v11090_v37, %v11090_v37 }
 0x905   : > { %4251 = vadd.xlane.f32.xlu1 %v11024_v30 }
 0x907   : > { %4374 = vadd.xlane.f32.xlu0 %v4336_v19  ;;  %v4166_v19 = vadd.f32 %v11003_v15, %v10796_v16  ;;  %v11096_v16 = vsub.f32 %v10903_v47, %v4280_v48  ;;  %v11102_v15 = vsub.f32 %v10907_v33, %v4281_v7 }
 0x909   : > { %4376 = vadd.xlane.f32.xlu1 %v4337_v18  ;;  %v8255_v18 = vld [vmem:[#allocation2 + $0xf0] sm:$0xff]  ;;  %v11092_v36 = vadd.f32 %v8256_v51, %v4166_v19  ;;  %v4344_v35 = vmul.f32 %v11096_v16, %v11096_v16  ;;  %v4345_v47 = vmul.f32 %v11102_v15, %v11102_v15 }
 0x90a   : > { %v11087_v54 = vadd.f32 %v8255_v18, %v4165_v0 }
 0x90b   : > { %4253 = vadd.xlane.f32.xlu0 %v11042_v9 }
 0x90d   : > { %4255 = vadd.xlane.f32.xlu1 %v11048_v39 }
 0x90f   : > { %4378 = vadd.xlane.f32.xlu0 %v4338_v12 }
 0x911   : > { %4380 = vadd.xlane.f32.xlu1 %v4339_v42 }
 0x913   : > { %4257 = vadd.xlane.f32.xlu0 %v11065_v56 }
 0x915   : > { %4259 = vadd.xlane.f32.xlu1 %v11071_v17 }
 0x917   : > { %4382 = vadd.xlane.f32.xlu0 %v4340_v60 }
 0x919   : > { %4384 = vadd.xlane.f32.xlu1 %v4341_v61 }
 0x91b   : > { %4261 = vadd.xlane.f32.xlu0 %v11087_v54 }
 0x91d   : > { %4263 = vadd.xlane.f32.xlu1 %v11092_v36 }
 0x91f   : > { %4386 = vadd.xlane.f32.xlu0 %v4342_v50 }
 0x921   : > { %4388 = vadd.xlane.f32.xlu1 %v4343_v5 }
 0x923   : > { %4390 = vadd.xlane.f32.xlu0 %v4344_v35 }
 0x925   : > { %4392 = vadd.xlane.f32.xlu1 %v4345_v47 }
 0x974   : > { %v4234_v38 = vpop.xlane.xlu0 %4233 }
 0x975   : > { %v4282_v45 = vmul.f32 0.0078125, %v4234_v38 }
 0x976   : > { %v4236_v26 = vpop.xlane.xlu1 %4235 }
 0x977   : > { %v11111_v12 = vsub.f32 %v10937_v3, %v4282_v45  ;;  %v4283_v33 = vmul.f32 0.0078125, %v4236_v26 }
 0x978   : > { %v4238_v24 = vpop.xlane.xlu0 %4237 }
 0x979   : > { %v11114_v21 = vsub.f32 %v10941_v44, %v4283_v33  ;;  %v4284_v11 = vmul.f32 0.0078125, %v4238_v24  ;;  %v4346_v42 = vmul.f32 %v11111_v12, %v11111_v12 }
 0x97a   : > { %v4240_v53 = vpop.xlane.xlu1 %4239 }
 0x97b   : > { %v11119_v20 = vsub.f32 %v10947_v28, %v4284_v11  ;;  %v4285_v4 = vmul.f32 0.0078125, %v4240_v53  ;;  %4394 = vadd.xlane.f32.xlu0 %v4346_v42  ;;  %v4347_v31 = vmul.f32 %v11114_v21, %v11114_v21 }
 0x97c   : > { %v4363_v3 = vpop.xlane.xlu0 %4362 }
 0x97d   : > { %v11124_v22 = vsub.f32 %v10953_v52, %v4285_v4  ;;  %v4426_v57 = vmul.f32 0.0078125, %v4363_v3  ;;  %4396 = vadd.xlane.f32.xlu1 %v4347_v31  ;;  %v4348_v44 = vmul.f32 %v11119_v20, %v11119_v20 }
 0x97e   : > { %v4365_v23 = vpop.xlane.xlu1 %4364 }
 0x97f   : > { %v4458_v55 = vadd.f32 1e-05, %v4426_v57  ;;  %v4427_v0 = vmul.f32 0.0078125, %v4365_v23  ;;  %4398 = vadd.xlane.f32.xlu0 %v4348_v44  ;;  %v4349_v28 = vmul.f32 %v11124_v22, %v11124_v22 }
 0x980   : > { %v4242_v60 = vpop.xlane.xlu0 %4241 }
 0x981   : > { %8089 = vrsqrt.f32 %v4458_v55  ;;  %v4459_v43 = vadd.f32 1e-05, %v4427_v0  ;;  %v4286_v32 = vmul.f32 0.0078125, %v4242_v60  ;;  %4400 = vadd.xlane.f32.xlu1 %v4349_v28  ;;  %v11159_v0 = vld [vmem:[%s828_s18] ss:$0 sm:$0xff] }
 0x982   : > { %v4244_v19 = vpop.xlane.xlu1 %4243 }
 0x983   : > { %8091 = vrsqrt.f32 %v4459_v43  ;;  %v11131_v52 = vsub.f32 %v10966_v62, %v4286_v32  ;;  %v4287_v61 = vmul.f32 0.0078125, %v4244_v19 }
 0x984   : > { %v4367_v13 = vpop.xlane.xlu0 %4366 }
 0x985   : > { %v11134_v48 = vsub.f32 %v10973_v46, %v4287_v61  ;;  %v4428_v18 = vmul.f32 0.0078125, %v4367_v13  ;;  %v4350_v7 = vmul.f32 %v11131_v52, %v11131_v52  ;;  %v11142_v46 = vld [vmem:[%s820_s1] ss:$0 sm:$0xff] }
 0x986   : > { %v4369_v51 = vpop.xlane.xlu1 %4368 }
 0x987   : > { %v4460_v50 = vadd.f32 1e-05, %v4428_v18  ;;  %v4429_v5 = vmul.f32 0.0078125, %v4369_v51  ;;  %4402 = vadd.xlane.f32.xlu0 %v4350_v7  ;;  %v4351_v35 = vmul.f32 %v11134_v48, %v11134_v48 }
 0x988   : > { %v4246_v47 = vpop.xlane.xlu0 %4245 }
 0x989   : > { %8093 = vrsqrt.f32 %v4460_v50  ;;  %v4461_v62 = vadd.f32 1e-05, %v4429_v5  ;;  %v4288_v38 = vmul.f32 0.0078125, %v4246_v47  ;;  %4404 = vadd.xlane.f32.xlu1 %v4351_v35 }
 0x98a   : > { %v4248_v45 = vpop.xlane.xlu1 %4247 }
 0x98b   : > { %v8090_v26 = vpop.eup %8089  ;;  %8095 = vrsqrt.f32 %v4461_v62  ;;  %v11145_v33 = vsub.f32 %v10990_v40, %v4288_v38  ;;  %v4289_v24 = vmul.f32 0.0078125, %v4248_v45 }
 0x98c   : > { %v4522_v11 = vmul.f32 %v8090_v26, %v10945_v10  ;;  %v4371_v42 = vpop.xlane.xlu0 %4370 }
 0x98d   : > { %v8092_v53 = vpop.eup %8091  ;;  %v11149_v4 = vsub.f32 %v11000_v63, %v4289_v24  ;;  %v4430_v31 = vmul.f32 0.0078125, %v4371_v42  ;;  %v4352_v3 = vmul.f32 %v11145_v33, %v11145_v33 }
 0x98e   : > { %v4560_v57 = vmul.f32 %v11142_v46, %v4522_v11  ;;  %v4523_v44 = vmul.f32 %v8092_v53, %v10951_v1  ;;  %v4373_v23 = vpop.xlane.xlu1 %4372  ;;  %v12576_v11 = vmov 0  }
 0x98f   : > { %v4462_v55 = vadd.f32 1e-05, %v4430_v31  ;;  %v4431_v40 = vmul.f32 0.0078125, %v4373_v23  ;;  %4406 = vadd.xlane.f32.xlu0 %v4352_v3  ;;  %v4353_v10 = vmul.f32 %v11149_v4, %v11149_v4 }
 0x990   : > { %v4561_v63 = vmul.f32 %v11142_v46, %v4523_v44  ;;  %v4250_v28 = vpop.xlane.xlu0 %4249  ;;  %v11163_v1 = vadd.f32 %v11159_v0, %v4560_v57 }
 0x991   : > { %8097 = vrsqrt.f32 %v4462_v55  ;;  %v4463_v60 = vadd.f32 1e-05, %v4431_v40  ;;  %v4290_v43 = vmul.f32 0.0078125, %v4250_v28  ;;  %4408 = vadd.xlane.f32.xlu1 %v4353_v10 }
 0x992   : > { %v4252_v32 = vpop.xlane.xlu1 %4251  ;;  %v11166_v19 = vadd.f32 %v11159_v0, %v4561_v63 }
 0x993   : > { %v8094_v61 = vpop.eup %8093  ;;  %8099 = vrsqrt.f32 %v4463_v60  ;;  %v11169_v13 = vsub.f32 %v11018_v8, %v4290_v43  ;;  %v4291_v18 = vmul.f32 0.0078125, %v4252_v32 }
 0x994   : > { %v4375_v7 = vpop.xlane.xlu0 %4374  ;;  %v4630_v51 = vpack.c.bf16 %v11166_v19, %v11163_v1  ;;  %v4524_v50 = vmul.f32 %v8094_v61, %v10964_v6 }
 0x995   : > { %v8096_v5 = vpop.eup %8095  ;;  %v11175_v35 = vsub.f32 %v11024_v30, %v4291_v18  ;;  %v4432_v47 = vmul.f32 0.0078125, %v4375_v7  ;;  %v4354_v62 = vmul.f32 %v11169_v13, %v11169_v13 }
 0x996   : > { %4787 = vmatmul.mubr.bf16.vlgmr.msra.gmra.mrb[128].mxu1 %v4630_v51  ;;  %v4377_v38 = vpop.xlane.xlu1 %4376  ;;  %v4525_v8 = vmul.f32 %v8096_v5, %v10971_v29  ;;  %v4562_v45 = vmul.f32 %v11142_v46, %v4524_v50 }
 0x997   : > { %v4464_v26 = vadd.f32 1e-05, %v4432_v47  ;;  %v4433_v24 = vmul.f32 0.0078125, %v4377_v38  ;;  %4410 = vadd.xlane.f32.xlu0 %v4354_v62  ;;  %v4355_v6 = vmul.f32 %v11175_v35, %v11175_v35  ;;  %4796 = vmatprep.mubr.bf16.mxu1 %v12576_v11 }
 0x998   : > { %v4254_v30 = vpop.xlane.xlu0 %4253  ;;  %v4563_v42 = vmul.f32 %v11142_v46, %v4525_v8  ;;  %v11186_v29 = vadd.f32 %v11159_v0, %v4562_v45 }
 0x999   : > { %8101 = vrsqrt.f32 %v4464_v26  ;;  %v4465_v53 = vadd.f32 1e-05, %v4433_v24  ;;  %v4292_v31 = vmul.f32 0.0078125, %v4254_v30  ;;  %4412 = vadd.xlane.f32.xlu1 %v4355_v6 }
 0x99a   : > { %v4256_v3 = vpop.xlane.xlu1 %4255  ;;  %v11189_v57 = vadd.f32 %v11159_v0, %v4563_v42 }
 0x99b   : > { %v8098_v44 = vpop.eup %8097  ;;  %8103 = vrsqrt.f32 %v4465_v53  ;;  %v11192_v23 = vsub.f32 %v11042_v9, %v4292_v31  ;;  %v4293_v55 = vmul.f32 0.0078125, %v4256_v3 }
 0x99c   : > { %v4379_v40 = vpop.xlane.xlu0 %4378  ;;  %v4631_v10 = vpack.c.bf16 %v11189_v57, %v11186_v29  ;;  %v4526_v63 = vmul.f32 %v8098_v44, %v10988_v2 }
 0x99d   : > { %v8100_v28 = vpop.eup %8099  ;;  %v11198_v60 = vsub.f32 %v11048_v39, %v4293_v55  ;;  %v4434_v43 = vmul.f32 0.0078125, %v4379_v40  ;;  %v4356_v32 = vmul.f32 %v11192_v23, %v11192_v23 }
 0x99e   : > { %4797 = vmatmul.mubr.bf16.gmra.mrb[132].mxu1 %v4631_v10  ;;  %v4381_v61 = vpop.xlane.xlu1 %4380  ;;  %v4527_v9 = vmul.f32 %v8100_v28, %v10998_v27  ;;  %v4564_v18 = vmul.f32 %v11142_v46, %v4526_v63 }
 0x99f   : > { %v4466_v7 = vadd.f32 1e-05, %v4434_v43  ;;  %v4435_v51 = vmul.f32 0.0078125, %v4381_v61  ;;  %4414 = vadd.xlane.f32.xlu0 %v4356_v32  ;;  %v4357_v2 = vmul.f32 %v11198_v60, %v11198_v60  ;;  %4806 = vmatprep.mubr.bf16.mxu1 %v12576_v11 }
 0x9a0   : > { %v4258_v39 = vpop.xlane.xlu0 %4257  ;;  %v4565_v50 = vmul.f32 %v11142_v46, %v4527_v9  ;;  %v11209_v27 = vadd.f32 %v11159_v0, %v4564_v18 }
 0x9a1   : > { %8105 = vrsqrt.f32 %v4466_v7  ;;  %v4467_v5 = vadd.f32 1e-05, %v4435_v51  ;;  %v4294_v47 = vmul.f32 0.0078125, %v4258_v39  ;;  %4416 = vadd.xlane.f32.xlu1 %v4357_v2 }
 0x9a2   : > { %v4260_v62 = vpop.xlane.xlu1 %4259  ;;  %v11212_v38 = vadd.f32 %v11159_v0, %v4565_v50 }
 0x9a3   : > { %v8102_v8 = vpop.eup %8101  ;;  %8107 = vrsqrt.f32 %v4467_v5  ;;  %v11215_v45 = vsub.f32 %v11065_v56, %v4294_v47  ;;  %v4295_v26 = vmul.f32 0.0078125, %v4260_v62 }
 0x9a4   : > { %v4383_v24 = vpop.xlane.xlu0 %4382  ;;  %v4632_v6 = vpack.c.bf16 %v11212_v38, %v11209_v27  ;;  %v4528_v30 = vmul.f32 %v8102_v8, %v11016_v34 }
 0x9a5   : > { %v8104_v42 = vpop.eup %8103  ;;  %v11221_v53 = vsub.f32 %v11071_v17, %v4295_v26  ;;  %v4436_v31 = vmul.f32 0.0078125, %v4383_v24  ;;  %v4358_v3 = vmul.f32 %v11215_v45, %v11215_v45 }
 0x9a6   : > { %4807 = vmatmul.mubr.bf16.gmra.mrb[136].mxu1 %v4632_v6  ;;  %v4385_v44 = vpop.xlane.xlu1 %4384  ;;  %v4529_v56 = vmul.f32 %v8104_v42, %v11022_v58  ;;  %v4566_v55 = vmul.f32 %v11142_v46, %v4528_v30 }
 0x9a7   : > { %v4468_v40 = vadd.f32 1e-05, %v4436_v31  ;;  %v4437_v10 = vmul.f32 0.0078125, %v4385_v44  ;;  %4418 = vadd.xlane.f32.xlu0 %v4358_v3  ;;  %v4359_v34 = vmul.f32 %v11221_v53, %v11221_v53  ;;  %4816 = vmatprep.mubr.bf16.mxu1 %v12576_v11 }
 0x9a8   : > { %v4262_v17 = vpop.xlane.xlu0 %4261  ;;  %v4567_v63 = vmul.f32 %v11142_v46, %v4529_v56  ;;  %v11232_v58 = vadd.f32 %v11159_v0, %v4566_v55 }
 0x9a9   : > { %8109 = vrsqrt.f32 %v4468_v40  ;;  %v4469_v28 = vadd.f32 1e-05, %v4437_v10  ;;  %v4296_v43 = vmul.f32 0.0078125, %v4262_v17  ;;  %4420 = vadd.xlane.f32.xlu1 %v4359_v34 }
 0x9aa   : > { %v4264_v32 = vpop.xlane.xlu1 %4263  ;;  %v11235_v61 = vadd.f32 %v11159_v0, %v4567_v63 }
 0x9ab   : > { %v8106_v9 = vpop.eup %8105  ;;  %8111 = vrsqrt.f32 %v4469_v28  ;;  %v11238_v18 = vsub.f32 %v11087_v54, %v4296_v43  ;;  %v4297_v7 = vmul.f32 0.0078125, %v4264_v32 }
 0x9ac   : > { %v4387_v51 = vpop.xlane.xlu0 %4386  ;;  %v4633_v2 = vpack.c.bf16 %v11235_v61, %v11232_v58  ;;  %v4530_v39 = vmul.f32 %v8106_v9, %v11040_v14 }
 0x9ad   : > { %v8108_v50 = vpop.eup %8107  ;;  %v11244_v5 = vsub.f32 %v11092_v36, %v4297_v7  ;;  %v4438_v47 = vmul.f32 0.0078125, %v4387_v51  ;;  %v4360_v62 = vmul.f32 %v11238_v18, %v11238_v18 }
 0x9ae   : > { %4817 = vmatmul.mubr.bf16.gmra.mrb[140].mxu1 %v4633_v2  ;;  %v4389_v8 = vpop.xlane.xlu1 %4388  ;;  %v4531_v54 = vmul.f32 %v8108_v50, %v11046_v49  ;;  %v4568_v26 = vmul.f32 %v11142_v46, %v4530_v39 }
 0x9af   : > { %v4470_v24 = vadd.f32 1e-05, %v4438_v47  ;;  %v4439_v6 = vmul.f32 0.0078125, %v4389_v8  ;;  %4422 = vadd.xlane.f32.xlu0 %v4360_v62  ;;  %v4361_v14 = vmul.f32 %v11244_v5, %v11244_v5  ;;  %4826 = vmatprep.mubr.bf16.mxu1 %v12576_v11 }
 0x9b0   : > { %v4391_v36 = vpop.xlane.xlu0 %4390  ;;  %v4569_v30 = vmul.f32 %v11142_v46, %v4531_v54  ;;  %v11255_v49 = vadd.f32 %v11159_v0, %v4568_v26 }
 0x9b1   : > { %8113 = vrsqrt.f32 %v4470_v24  ;;  %v4471_v42 = vadd.f32 1e-05, %v4439_v6  ;;  %v4440_v31 = vmul.f32 0.0078125, %v4391_v36  ;;  %4424 = vadd.xlane.f32.xlu1 %v4361_v14 }
 0x9b2   : > { %v4393_v3 = vpop.xlane.xlu1 %4392  ;;  %v11258_v44 = vadd.f32 %v11159_v0, %v4569_v30  ;;  %v7817_v30 = vld [vmem:[%s9593_s10 + $0x40] sm:$0xff]  }
 0x9b3   : > { %v8110_v56 = vpop.eup %8109  ;;  %8115 = vrsqrt.f32 %v4471_v42  ;;  %v4472_v55 = vadd.f32 1e-05, %v4440_v31  ;;  %v4441_v40 = vmul.f32 0.0078125, %v4393_v3  ;;  %v7818_v42 = vld [vmem:[%s9593_s10] sm:$0xff]   ;;  %v7819_v31 = vld [vmem:[%s9593_s10 + $0x48] sm:$0xff]   ;;  %6963 = vmatprep.subr.bf16.mxu0 %v7817_v30 }
 0x9b4   : > { %v4634_v10 = vpack.c.bf16 %v11258_v44, %v11255_v49  ;;  %v4532_v34 = vmul.f32 %v8110_v56, %v11063_v59  ;;  %6964 = vmatpush3.bf16.msra.mxu0 %v7818_v42  ;;  %v7820_v3 = vld [vmem:[%s9593_s10 + $0x8] sm:$0xff]   ;;  %v7821_v56 = vld [vmem:[%s9593_s10 + $0x50] sm:$0xff]  }
 0x9b5   : > { %v8112_v17 = vpop.eup %8111  ;;  %8117 = vrsqrt.f32 %v4472_v55  ;;  %v4473_v63 = vadd.f32 1e-05, %v4441_v40  ;;  %6965 = vmatprep.subr.bf16.mxu0 %v7819_v31  ;;  %v7822_v55 = vld [vmem:[%s9593_s10 + $0x10] sm:$0xff]   ;;  %v7823_v40 = vld [vmem:[%s9593_s10 + $0x58] sm:$0xff]  }
 0x9b6   : > { %4827 = vmatmul.mubr.bf16.gmra.mrb[144].mxu1 %v4634_v10  ;;  %v4533_v28 = vmul.f32 %v8112_v17, %v11069_v41  ;;  %v4570_v43 = vmul.f32 %v11142_v46, %v4532_v34  ;;  %v7824_v10 = vld [vmem:[%s9593_s10 + $0x18] sm:$0xff]   ;;  %v7825_v34 = vld [vmem:[%s9593_s10 + $0x60] sm:$0xff]  }
 0x9b7   : > { %8119 = vrsqrt.f32 %v4473_v63  ;;  %4836 = vmatprep.mubr.bf16.mxu1 %v12576_v11  ;;  %v7826_v17 = vld [vmem:[%s9593_s10 + $0x20] sm:$0xff]   ;;  %v7827_v63 = vld [vmem:[%s9593_s10 + $0x68] sm:$0xff]  }
 0x9b8   : > { %v4571_v32 = vmul.f32 %v11142_v46, %v4533_v28  ;;  %v11268_v9 = vadd.f32 %v11159_v0, %v4570_v43  ;;  %6966 = vmatpush3.bf16.msra.mxu0 %v7820_v3  ;;  %v7828_v28 = vld [vmem:[%s9593_s10 + $0x28] sm:$0xff]   ;;  %v7829_v43 = vld [vmem:[%s9593_s10 + $0x70] sm:$0xff]  }
 0x9b9   : > { %6967 = vmatprep.subr.bf16.mxu0 %v7821_v56 }
 0x9ba   : > { %v11271_v7 = vadd.f32 %v11159_v0, %v4571_v32  ;;  %v7830_v32 = vld [vmem:[%s9593_s10 + $0x30] sm:$0xff]  }
 0x9bb   : > { %v8114_v59 = vpop.eup %8113 }
 0x9bc   : > { %v4635_v51 = vpack.c.bf16 %v11271_v7, %v11268_v9  ;;  %v4534_v2 = vmul.f32 %v8114_v59, %v11085_v25  ;;  %6968 = vmatpush3.bf16.msra.mxu0 %v7822_v55  ;;  %v7831_v59 = vld [vmem:[%s9593_s10 + $0x78] sm:$0xff]  }
 0x9bd   : > { %v8116_v41 = vpop.eup %8115  ;;  %6969 = vmatprep.subr.bf16.mxu0 %v7823_v40 }
 0x9be   : > { %4837 = vmatmul.mubr.bf16.gmra.mrb[148].mxu1 %v4635_v51  ;;  %v4535_v39 = vmul.f32 %v8116_v41, %v11090_v37  ;;  %v4572_v50 = vmul.f32 %v11142_v46, %v4534_v2  ;;  %v7832_v51 = vld [vmem:[%s9593_s10 + $0x38] sm:$0xff]  }
 0x9bf   : > { %v8118_v47 = vpop.eup %8117  ;;  %4846 = vmatprep.mubr.bf16.mxu1 %v12576_v11 }
 0x9c0   : > { %v4573_v62 = vmul.f32 %v11142_v46, %v4535_v39  ;;  %v11281_v54 = vadd.f32 %v11159_v0, %v4572_v50  ;;  %v4536_v26 = vmul.f32 %v8118_v47, %v11096_v16  ;;  %6970 = vmatpush3.bf16.msra.mxu0 %v7824_v10 }
 0x9c1   : > { %v8120_v8 = vpop.eup %8119  ;;  %6971 = vmatprep.subr.bf16.mxu0 %v7825_v34 }
 0x9c2   : > { %v11284_v25 = vadd.f32 %v11159_v0, %v4573_v62  ;;  %v4537_v37 = vmul.f32 %v8120_v8, %v11102_v15  ;;  %v4574_v14 = vmul.f32 %v11142_v46, %v4536_v26 }
 0x9c4   : > { %v4636_v24 = vpack.c.bf16 %v11284_v25, %v11281_v54  ;;  %v4575_v6 = vmul.f32 %v11142_v46, %v4537_v37  ;;  %v11297_v16 = vadd.f32 %v11159_v0, %v4574_v14  ;;  %6972 = vmatpush3.bf16.msra.mxu0 %v7826_v17 }
 0x9c5   : > { %6973 = vmatprep.subr.bf16.mxu0 %v7827_v63 }
 0x9c6   : > { %4847 = vmatmul.mubr.bf16.gmra.mrb[152].mxu1 %v4636_v24  ;;  %v11294_v36 = vadd.f32 %v11159_v0, %v4575_v6 }
 0x9c7   : > { %4856 = vmatprep.mubr.bf16.mxu1 %v12576_v11 }
 0x9c8   : > { %v4637_v15 = vpack.c.bf16 %v11294_v36, %v11297_v16  ;;  %6974 = vmatpush3.bf16.msra.mxu0 %v7828_v28 }
 0x9c9   : > { %6975 = vmatprep.subr.bf16.mxu0 %v7829_v43 }
 0x9cc   : > { %6976 = vmatpush3.bf16.msra.mxu0 %v7830_v32 }
 0x9cd   : > { %6977 = vmatprep.subr.bf16.mxu0 %v7831_v59 }
 0x9ce   : > { %4857 = vmatmul.mubr.bf16.gmra.mrb[156].mxu1 %v4637_v15 }
 0x9cf   : > { %4866 = vmatprep.mubr.bf16.mxu1 %v12576_v11 }
 0x9d0   : > { %6978 = vmatpush3.bf16.msra.mxu0 %v7832_v51 }
 0xa08   : > { %v4395_v2 = vpop.xlane.xlu0 %4394 }
 0xa09   : > { %v4442_v41 = vmul.f32 0.0078125, %v4395_v2 }
 0xa0a   : > { %v4397_v39 = vpop.xlane.xlu1 %4396 }
 0xa0b   : > { %v4474_v50 = vadd.f32 1e-05, %v4442_v41  ;;  %v4443_v47 = vmul.f32 0.0078125, %v4397_v39 }
 0xa0c   : > { %v4399_v62 = vpop.xlane.xlu0 %4398 }
 0xa0d   : > { %8121 = vrsqrt.f32 %v4474_v50  ;;  %v4475_v8 = vadd.f32 1e-05, %v4443_v47  ;;  %v4444_v26 = vmul.f32 0.0078125, %v4399_v62 }
 0xa0e   : > { %v4401_v37 = vpop.xlane.xlu1 %4400 }
 0xa0f   : > { %8123 = vrsqrt.f32 %v4475_v8  ;;  %v4476_v24 = vadd.f32 1e-05, %v4444_v26  ;;  %v4445_v6 = vmul.f32 0.0078125, %v4401_v37 }
 0xa11   : > { %8125 = vrsqrt.f32 %v4476_v24  ;;  %v4477_v14 = vadd.f32 1e-05, %v4445_v6 }
 0xa13   : > { %8127 = vrsqrt.f32 %v4477_v14 }
 0xa14   : > { %v4403_v15 = vpop.xlane.xlu0 %4402 }
 0xa15   : > { %v4446_v30 = vmul.f32 0.0078125, %v4403_v15 }
 0xa16   : > { %v4405_v42 = vpop.xlane.xlu1 %4404 }
 0xa17   : > { %v8122_v31 = vpop.eup %8121  ;;  %v4478_v3 = vadd.f32 1e-05, %v4446_v30  ;;  %v4447_v56 = vmul.f32 0.0078125, %v4405_v42 }
 0xa18   : > { %v4538_v55 = vmul.f32 %v8122_v31, %v11111_v12 }
 0xa19   : > { %v8124_v40 = vpop.eup %8123  ;;  %8129 = vrsqrt.f32 %v4478_v3  ;;  %v4479_v10 = vadd.f32 1e-05, %v4447_v56 }
 0xa1a   : > { %v4539_v34 = vmul.f32 %v8124_v40, %v11114_v21  ;;  %v4576_v17 = vmul.f32 %v11142_v46, %v4538_v55 }
 0xa1b   : > { %v8126_v63 = vpop.eup %8125  ;;  %8131 = vrsqrt.f32 %v4479_v10 }
 0xa1c   : > { %v4407_v28 = vpop.xlane.xlu0 %4406  ;;  %v4577_v43 = vmul.f32 %v11142_v46, %v4539_v34  ;;  %v11323_v2 = vadd.f32 %v11159_v0, %v4576_v17  ;;  %v4540_v41 = vmul.f32 %v8126_v63, %v11119_v20 }
 0xa1d   : > { %v8128_v32 = vpop.eup %8127  ;;  %v4448_v59 = vmul.f32 0.0078125, %v4407_v28 }
 0xa1e   : > { %v4409_v51 = vpop.xlane.xlu1 %4408  ;;  %v11326_v12 = vadd.f32 %v11159_v0, %v4577_v43  ;;  %v4541_v21 = vmul.f32 %v8128_v32, %v11124_v22  ;;  %v4578_v26 = vmul.f32 %v11142_v46, %v4540_v41 }
 0xa1f   : > { %v4480_v39 = vadd.f32 1e-05, %v4448_v59  ;;  %v4449_v50 = vmul.f32 0.0078125, %v4409_v51 }
 0xa20   : > { %v4638_v47 = vpack.c.bf16 %v11326_v12, %v11323_v2  ;;  %v4579_v62 = vmul.f32 %v11142_v46, %v4541_v21  ;;  %v11339_v15 = vadd.f32 %v11159_v0, %v4578_v26 }
 0xa21   : > { %8133 = vrsqrt.f32 %v4480_v39  ;;  %v4481_v8 = vadd.f32 1e-05, %v4449_v50 }
 0xa22   : > { %4867 = vmatmul.mubr.bf16.gmra.mrb[160].mxu1 %v4638_v47  ;;  %v11336_v20 = vadd.f32 %v11159_v0, %v4579_v62 }
 0xa23   : > { %v8130_v37 = vpop.eup %8129  ;;  %8135 = vrsqrt.f32 %v4481_v8  ;;  %4876 = vmatprep.mubr.bf16.mxu1 %v12576_v11 }
 0xa24   : > { %v4411_v24 = vpop.xlane.xlu0 %4410  ;;  %v4542_v30 = vmul.f32 %v8130_v37, %v11131_v52  ;;  %v4639_v56 = vpack.c.bf16 %v11336_v20, %v11339_v15 }
 0xa25   : > { %v8132_v22 = vpop.eup %8131  ;;  %v4450_v6 = vmul.f32 0.0078125, %v4411_v24 }
 0xa26   : > { %v4413_v14 = vpop.xlane.xlu1 %4412  ;;  %v4543_v42 = vmul.f32 %v8132_v22, %v11134_v48  ;;  %v4580_v10 = vmul.f32 %v11142_v46, %v4542_v30 }
 0xa27   : > { %v4482_v31 = vadd.f32 1e-05, %v4450_v6  ;;  %v4451_v3 = vmul.f32 0.0078125, %v4413_v14 }
 0xa28   : > { %v4581_v55 = vmul.f32 %v11142_v46, %v4543_v42  ;;  %v11352_v43 = vadd.f32 %v11159_v0, %v4580_v10 }
 0xa29   : > { %8137 = vrsqrt.f32 %v4482_v31  ;;  %v4483_v40 = vadd.f32 1e-05, %v4451_v3 }
 0xa2a   : > { %4877 = vmatmul.mubr.bf16.gmra.mrb[164].mxu1 %v4639_v56  ;;  %v11349_v52 = vadd.f32 %v11159_v0, %v4581_v55 }
 0xa2b   : > { %v8134_v34 = vpop.eup %8133  ;;  %8139 = vrsqrt.f32 %v4483_v40  ;;  %4886 = vmatprep.mubr.bf16.mxu1 %v12576_v11 }
 0xa2c   : > { %v4415_v17 = vpop.xlane.xlu0 %4414  ;;  %v4544_v32 = vmul.f32 %v8134_v34, %v11145_v33  ;;  %v4640_v21 = vpack.c.bf16 %v11349_v52, %v11352_v43 }
 0xa2d   : > { %v8136_v48 = vpop.eup %8135  ;;  %v4452_v63 = vmul.f32 0.0078125, %v4415_v17 }
 0xa2e   : > { %v4417_v28 = vpop.xlane.xlu1 %4416  ;;  %v4545_v59 = vmul.f32 %v8136_v48, %v11149_v4  ;;  %v4582_v47 = vmul.f32 %v11142_v46, %v4544_v32 }
 0xa2f   : > { %v4484_v51 = vadd.f32 1e-05, %v4452_v63  ;;  %v4453_v41 = vmul.f32 0.0078125, %v4417_v28 }
 0xa30   : > { %v4583_v39 = vmul.f32 %v11142_v46, %v4545_v59  ;;  %v11365_v24 = vadd.f32 %v11159_v0, %v4582_v47 }
 0xa31   : > { %8141 = vrsqrt.f32 %v4484_v51  ;;  %v4485_v50 = vadd.f32 1e-05, %v4453_v41 }
 0xa32   : > { %4887 = vmatmul.mubr.bf16.gmra.mrb[168].mxu1 %v4640_v21  ;;  %v11362_v33 = vadd.f32 %v11159_v0, %v4583_v39 }
 0xa33   : > { %v8138_v62 = vpop.eup %8137  ;;  %8143 = vrsqrt.f32 %v4485_v50  ;;  %4896 = vmatprep.mubr.bf16.mxu1 %v12576_v11 }
 0xa34   : > { %v4419_v8 = vpop.xlane.xlu0 %4418  ;;  %v4546_v22 = vmul.f32 %v8138_v62, %v11169_v13  ;;  %v4641_v42 = vpack.c.bf16 %v11362_v33, %v11365_v24 }
 0xa35   : > { %v8140_v4 = vpop.eup %8139  ;;  %v4454_v26 = vmul.f32 0.0078125, %v4419_v8 }
 0xa36   : > { %v4421_v37 = vpop.xlane.xlu1 %4420  ;;  %v4547_v6 = vmul.f32 %v8140_v4, %v11175_v35  ;;  %v4584_v56 = vmul.f32 %v11142_v46, %v4546_v22 }
 0xa37   : > { %v4486_v14 = vadd.f32 1e-05, %v4454_v26  ;;  %v4455_v30 = vmul.f32 0.0078125, %v4421_v37 }
 0xa38   : > { %v4585_v31 = vmul.f32 %v11142_v46, %v4547_v6  ;;  %v11378_v17 = vadd.f32 %v11159_v0, %v4584_v56 }
 0xa39   : > { %8145 = vrsqrt.f32 %v4486_v14  ;;  %v4487_v3 = vadd.f32 1e-05, %v4455_v30 }
 0xa3a   : > { %4897 = vmatmul.mubr.bf16.gmra.mrb[172].mxu1 %v4641_v42  ;;  %v11375_v13 = vadd.f32 %v11159_v0, %v4585_v31 }
 0xa3b   : > { %v8142_v55 = vpop.eup %8141  ;;  %8147 = vrsqrt.f32 %v4487_v3  ;;  %4906 = vmatprep.mubr.bf16.mxu1 %v12576_v11 }
 0xa3c   : > { %v4423_v40 = vpop.xlane.xlu0 %4422  ;;  %v4548_v48 = vmul.f32 %v8142_v55, %v11192_v23  ;;  %v4642_v59 = vpack.c.bf16 %v11375_v13, %v11378_v17  ;;  %v12577_v55 = vld [vmem:[#allocation41_spill] sm:$0xff] }
 0xa3d   : > { %v8144_v35 = vpop.eup %8143  ;;  %v4456_v10 = vmul.f32 0.0078125, %v4423_v40  ;;  %v12578_v40 = vsub.s32 0, %v12577_v55 }
 0xa3e   : > { %v4425_v34 = vpop.xlane.xlu1 %4424  ;;  %v4549_v63 = vmul.f32 %v8144_v35, %v11198_v60  ;;  %v4586_v21 = vmul.f32 %v11142_v46, %v4548_v48 }
 0xa3f   : > { %v4488_v28 = vadd.f32 1e-05, %v4456_v10  ;;  %v4457_v32 = vmul.f32 0.0078125, %v4425_v34  ;;  %v12579_v10 = vsub.s32 1, %v12577_v55 }
 0xa40   : > { %v4587_v51 = vmul.f32 %v11142_v46, %v4549_v63  ;;  %v11391_v50 = vadd.f32 %v11159_v0, %v4586_v21 }
 0xa41   : > { %8149 = vrsqrt.f32 %v4488_v28  ;;  %v4489_v41 = vadd.f32 1e-05, %v4457_v32 }
 0xa42   : > { %4907 = vmatmul.mubr.bf16.gmra.mrb[176].mxu1 %v4642_v59  ;;  %v11388_v23 = vadd.f32 %v11159_v0, %v4587_v51 }
 0xa43   : > { %v8146_v39 = vpop.eup %8145  ;;  %8151 = vrsqrt.f32 %v4489_v41  ;;  %4916 = vmatprep.mubr.bf16.mxu1 %v12576_v11 }
 0xa44   : > { %v4550_v47 = vmul.f32 %v8146_v39, %v11215_v45  ;;  %v4643_v8 = vpack.c.bf16 %v11388_v23, %v11391_v50 }
 0xa45   : > { %v8148_v60 = vpop.eup %8147 }
 0xa46   : > { %v4551_v62 = vmul.f32 %v8148_v60, %v11221_v53  ;;  %v4588_v26 = vmul.f32 %v11142_v46, %v4550_v47 }
 0xa48   : > { %v4589_v4 = vmul.f32 %v11142_v46, %v4551_v62  ;;  %v11404_v45 = vadd.f32 %v11159_v0, %v4588_v26 }
 0xa4a   : > { %4917 = vmatmul.mubr.bf16.gmra.mrb[180].mxu1 %v4643_v8  ;;  %v11401_v22 = vadd.f32 %v11159_v0, %v4589_v4 }
 0xa4b   : > { %v8150_v37 = vpop.eup %8149  ;;  %4926 = vmatprep.mubr.bf16.mxu1 %v12576_v11 }
 0xa4c   : > { %v4552_v53 = vmul.f32 %v8150_v37, %v11238_v18  ;;  %v4644_v30 = vpack.c.bf16 %v11401_v22, %v11404_v45 }
 0xa4d   : > { %v8152_v6 = vpop.eup %8151 }
 0xa4e   : > { %v4553_v14 = vmul.f32 %v8152_v6, %v11244_v5  ;;  %v4590_v31 = vmul.f32 %v11142_v46, %v4552_v53  ;;  %v4662_v5 = vld [vmem:[%s9591_s21] sm:$0x3] }
 0xa4f   : > { %v11424_v35 = vrot.slane %v4662_v5, %v12578_v40 }
 0xa50   : > { %v4591_v42 = vmul.f32 %v11142_v46, %v4553_v14  ;;  %v11417_v56 = vadd.f32 %v11159_v0, %v4590_v31  ;;  %v11428_v46 = vrot.slane %v4662_v5, %v12579_v10 }
 0xa52   : > { %4927 = vmatmul.mubr.bf16.gmra.mrb[184].mxu1 %v4644_v30  ;;  %v11414_v3 = vadd.f32 %v11159_v0, %v4591_v42 }
 0xa53   : > { %4936 = vmatprep.mubr.bf16.mxu1 %v12576_v11 }
 0xa54   : > { %v4645_v18 = vpack.c.bf16 %v11414_v3, %v11417_v56 }
 0xa5a   : > { %4937 = vmatmul.mubr.bf16.gmra.mrb[188].mxu1 %v4645_v18 }
 0xa69   : > { %v4788_v11 = vpop.f32.mrb[128].mxu1 }
 0xa6a   : > { %v4789_v34 = vadd.f32 %v4788_v11, %v11424_v35  ;;  %v4790_v48 = vpop.f32.mrb[129].mxu1 }
 0xa6b   : > { %v4791_v0 = vadd.f32 %v4790_v48, %v11428_v46  ;;  %v4792_v63 = vpop.f32.mrb[130].mxu1 }
 0xa6c   : > { %v4793_v28 = vadd.f32 %v4792_v63, %v11424_v35  ;;  %v4794_v32 = vpop.f32.mrb[131].mxu1  ;;  %v4947_v51 = vmax.f32 %v4789_v34, 0.0 }
 0xa6d   : > { %v4795_v59 = vadd.f32 %v4794_v32, %v11428_v46  ;;  %v4948_v21 = vmax.f32 %v4791_v0, 0.0 }
 0xa6e   : > { %v4949_v41 = vmax.f32 %v4793_v28, 0.0 }
 0xa6f   : > { %v4950_v39 = vmax.f32 %v4795_v59, 0.0 }
 0xa70   : > { %v5011_v60 = vpack.c.bf16 %v4949_v41, %v4947_v51 }
 0xa71   : > { %v5012_v47 = vpack.c.bf16 %v4950_v39, %v4948_v21  ;;  %v4798_v62 = vpop.f32.mrb[132].mxu1 }
 0xa72   : > { %v4799_v8 = vadd.f32 %v4798_v62, %v11424_v35  ;;  %v4800_v4 = vpop.f32.mrb[133].mxu1 }
 0xa73   : > { %v4801_v26 = vadd.f32 %v4800_v4, %v11428_v46  ;;  %v4802_v37 = vpop.f32.mrb[134].mxu1  ;;  %5210 = vmatprep.mubr.bf16.mxu0 %v5012_v47 }
 0xa74   : > { %v4803_v6 = vadd.f32 %v4802_v37, %v11424_v35  ;;  %v4804_v53 = vpop.f32.mrb[135].mxu1  ;;  %5211 = vmatmul.mubr.bf16.vlgmr.msra.gmra.mrb[128].mxu0 %v5011_v60  ;;  %v4951_v30 = vmax.f32 %v4799_v8, 0.0 }
 0xa75   : > { %v4805_v14 = vadd.f32 %v4804_v53, %v11428_v46  ;;  %v4952_v31 = vmax.f32 %v4801_v26, 0.0 }
 0xa76   : > { %v4953_v42 = vmax.f32 %v4803_v6, 0.0 }
 0xa77   : > { %v4954_v18 = vmax.f32 %v4805_v14, 0.0 }
 0xa78   : > { %v5013_v5 = vpack.c.bf16 %v4953_v42, %v4951_v30 }
 0xa79   : > { %v5014_v55 = vpack.c.bf16 %v4954_v18, %v4952_v31  ;;  %v4808_v40 = vpop.f32.mrb[136].mxu1 }
 0xa7a   : > { %v4809_v10 = vadd.f32 %v4808_v40, %v11424_v35  ;;  %v4810_v11 = vpop.f32.mrb[137].mxu1 }
 0xa7b   : > { %v4811_v34 = vadd.f32 %v4810_v11, %v11428_v46  ;;  %v4812_v48 = vpop.f32.mrb[138].mxu1  ;;  %5218 = vmatprep.mubr.bf16.mxu0 %v5014_v55 }
 0xa7c   : > { %v4813_v0 = vadd.f32 %v4812_v48, %v11424_v35  ;;  %v4814_v63 = vpop.f32.mrb[139].mxu1  ;;  %5219 = vmatmul.mubr.bf16.gmra.mrb[132].mxu0 %v5013_v5  ;;  %v4955_v32 = vmax.f32 %v4809_v10, 0.0 }
 0xa7d   : > { %v4815_v28 = vadd.f32 %v4814_v63, %v11428_v46  ;;  %v4956_v51 = vmax.f32 %v4811_v34, 0.0 }
 0xa7e   : > { %v4957_v59 = vmax.f32 %v4813_v0, 0.0 }
 0xa7f   : > { %v4958_v41 = vmax.f32 %v4815_v28, 0.0 }
 0xa80   : > { %v5015_v21 = vpack.c.bf16 %v4957_v59, %v4955_v32 }
 0xa81   : > { %v5016_v39 = vpack.c.bf16 %v4958_v41, %v4956_v51  ;;  %v4818_v60 = vpop.f32.mrb[140].mxu1 }
 0xa82   : > { %v4819_v47 = vadd.f32 %v4818_v60, %v11424_v35  ;;  %v4820_v62 = vpop.f32.mrb[141].mxu1 }
 0xa83   : > { %v4821_v8 = vadd.f32 %v4820_v62, %v11428_v46  ;;  %v4822_v4 = vpop.f32.mrb[142].mxu1  ;;  %5226 = vmatprep.mubr.bf16.mxu0 %v5016_v39 }
 0xa84   : > { %v4823_v26 = vadd.f32 %v4822_v4, %v11424_v35  ;;  %v4824_v37 = vpop.f32.mrb[143].mxu1  ;;  %5227 = vmatmul.mubr.bf16.gmra.mrb[136].mxu0 %v5015_v21  ;;  %v4959_v53 = vmax.f32 %v4819_v47, 0.0 }
 0xa85   : > { %v4825_v6 = vadd.f32 %v4824_v37, %v11428_v46  ;;  %v4960_v30 = vmax.f32 %v4821_v8, 0.0 }
 0xa86   : > { %v4961_v14 = vmax.f32 %v4823_v26, 0.0 }
 0xa87   : > { %v4962_v42 = vmax.f32 %v4825_v6, 0.0 }
 0xa88   : > { %v5017_v31 = vpack.c.bf16 %v4961_v14, %v4959_v53 }
 0xa89   : > { %v5018_v18 = vpack.c.bf16 %v4962_v42, %v4960_v30  ;;  %v4828_v5 = vpop.f32.mrb[144].mxu1 }
 0xa8a   : > { %v4829_v55 = vadd.f32 %v4828_v5, %v11424_v35  ;;  %v4830_v40 = vpop.f32.mrb[145].mxu1 }
 0xa8b   : > { %v4831_v10 = vadd.f32 %v4830_v40, %v11428_v46  ;;  %v4832_v11 = vpop.f32.mrb[146].mxu1  ;;  %5234 = vmatprep.mubr.bf16.mxu0 %v5018_v18 }
 0xa8c   : > { %v4833_v34 = vadd.f32 %v4832_v11, %v11424_v35  ;;  %v4834_v48 = vpop.f32.mrb[147].mxu1  ;;  %5235 = vmatmul.mubr.bf16.gmra.mrb[140].mxu0 %v5017_v31  ;;  %v4963_v63 = vmax.f32 %v4829_v55, 0.0 }
 0xa8d   : > { %v4835_v0 = vadd.f32 %v4834_v48, %v11428_v46  ;;  %v4964_v32 = vmax.f32 %v4831_v10, 0.0 }
 0xa8e   : > { %v4965_v28 = vmax.f32 %v4833_v34, 0.0 }
 0xa8f   : > { %v4966_v59 = vmax.f32 %v4835_v0, 0.0 }
 0xa90   : > { %v5019_v51 = vpack.c.bf16 %v4965_v28, %v4963_v63 }
 0xa91   : > { %v5020_v41 = vpack.c.bf16 %v4966_v59, %v4964_v32  ;;  %v4838_v21 = vpop.f32.mrb[148].mxu1 }
 0xa92   : > { %v4839_v39 = vadd.f32 %v4838_v21, %v11424_v35  ;;  %v4840_v60 = vpop.f32.mrb[149].mxu1 }
 0xa93   : > { %v4841_v47 = vadd.f32 %v4840_v60, %v11428_v46  ;;  %v4842_v62 = vpop.f32.mrb[150].mxu1  ;;  %5242 = vmatprep.mubr.bf16.mxu0 %v5020_v41 }
 0xa94   : > { %v4843_v8 = vadd.f32 %v4842_v62, %v11424_v35  ;;  %v4844_v4 = vpop.f32.mrb[151].mxu1  ;;  %5243 = vmatmul.mubr.bf16.gmra.mrb[144].mxu0 %v5019_v51  ;;  %v4967_v37 = vmax.f32 %v4839_v39, 0.0 }
 0xa95   : > { %v4845_v26 = vadd.f32 %v4844_v4, %v11428_v46  ;;  %v4968_v53 = vmax.f32 %v4841_v47, 0.0 }
 0xa96   : > { %v4969_v6 = vmax.f32 %v4843_v8, 0.0 }
 0xa97   : > { %v4970_v14 = vmax.f32 %v4845_v26, 0.0 }
 0xa98   : > { %v5021_v30 = vpack.c.bf16 %v4969_v6, %v4967_v37 }
 0xa99   : > { %v5022_v42 = vpack.c.bf16 %v4970_v14, %v4968_v53  ;;  %v4848_v31 = vpop.f32.mrb[152].mxu1 }
 0xa9a   : > { %v4849_v18 = vadd.f32 %v4848_v31, %v11424_v35  ;;  %v4850_v5 = vpop.f32.mrb[153].mxu1 }
 0xa9b   : > { %v4851_v55 = vadd.f32 %v4850_v5, %v11428_v46  ;;  %v4852_v40 = vpop.f32.mrb[154].mxu1  ;;  %5250 = vmatprep.mubr.bf16.mxu0 %v5022_v42 }
 0xa9c   : > { %v4853_v10 = vadd.f32 %v4852_v40, %v11424_v35  ;;  %v4854_v11 = vpop.f32.mrb[155].mxu1  ;;  %5251 = vmatmul.mubr.bf16.gmra.mrb[148].mxu0 %v5021_v30  ;;  %v4971_v48 = vmax.f32 %v4849_v18, 0.0 }
 0xa9d   : > { %v4855_v34 = vadd.f32 %v4854_v11, %v11428_v46  ;;  %v4972_v63 = vmax.f32 %v4851_v55, 0.0 }
 0xa9e   : > { %v4973_v0 = vmax.f32 %v4853_v10, 0.0 }
 0xa9f   : > { %v4974_v28 = vmax.f32 %v4855_v34, 0.0 }
 0xaa0   : > { %v5023_v32 = vpack.c.bf16 %v4973_v0, %v4971_v48 }
 0xaa1   : > { %v5024_v59 = vpack.c.bf16 %v4974_v28, %v4972_v63  ;;  %v4858_v51 = vpop.f32.mrb[156].mxu1 }
 0xaa2   : > { %v4859_v41 = vadd.f32 %v4858_v51, %v11424_v35  ;;  %v4860_v21 = vpop.f32.mrb[157].mxu1 }
 0xaa3   : > { %v4861_v39 = vadd.f32 %v4860_v21, %v11428_v46  ;;  %v4862_v60 = vpop.f32.mrb[158].mxu1  ;;  %5258 = vmatprep.mubr.bf16.mxu0 %v5024_v59 }
 0xaa4   : > { %v4863_v47 = vadd.f32 %v4862_v60, %v11424_v35  ;;  %v4864_v62 = vpop.f32.mrb[159].mxu1  ;;  %5259 = vmatmul.mubr.bf16.gmra.mrb[152].mxu0 %v5023_v32  ;;  %v4975_v4 = vmax.f32 %v4859_v41, 0.0 }
 0xaa5   : > { %v4865_v8 = vadd.f32 %v4864_v62, %v11428_v46  ;;  %v4976_v37 = vmax.f32 %v4861_v39, 0.0 }
 0xaa6   : > { %v4977_v26 = vmax.f32 %v4863_v47, 0.0 }
 0xaa7   : > { %v4978_v6 = vmax.f32 %v4865_v8, 0.0 }
 0xaa8   : > { %v5025_v53 = vpack.c.bf16 %v4977_v26, %v4975_v4 }
 0xaa9   : > { %v5026_v14 = vpack.c.bf16 %v4978_v6, %v4976_v37 }
 0xaab   : > { %5266 = vmatprep.mubr.bf16.mxu0 %v5026_v14 }
 0xaac   : > { %5267 = vmatmul.mubr.bf16.gmra.mrb[156].mxu0 %v5025_v53 }
 0xaf5   : > { %v4868_v30 = vpop.f32.mrb[160].mxu1 }
 0xaf6   : > { %v4869_v42 = vadd.f32 %v4868_v30, %v11424_v35  ;;  %v4870_v31 = vpop.f32.mrb[161].mxu1 }
 0xaf7   : > { %v4871_v18 = vadd.f32 %v4870_v31, %v11428_v46  ;;  %v4872_v5 = vpop.f32.mrb[162].mxu1 }
 0xaf8   : > { %v4873_v55 = vadd.f32 %v4872_v5, %v11424_v35  ;;  %v4874_v40 = vpop.f32.mrb[163].mxu1  ;;  %v4979_v11 = vmax.f32 %v4869_v42, 0.0 }
 0xaf9   : > { %v4875_v10 = vadd.f32 %v4874_v40, %v11428_v46  ;;  %v4980_v48 = vmax.f32 %v4871_v18, 0.0 }
 0xafa   : > { %v4981_v34 = vmax.f32 %v4873_v55, 0.0 }
 0xafb   : > { %v4982_v0 = vmax.f32 %v4875_v10, 0.0 }
 0xafc   : > { %v5027_v63 = vpack.c.bf16 %v4981_v34, %v4979_v11 }
 0xafd   : > { %v5028_v28 = vpack.c.bf16 %v4982_v0, %v4980_v48  ;;  %v4878_v32 = vpop.f32.mrb[164].mxu1 }
 0xafe   : > { %v4879_v59 = vadd.f32 %v4878_v32, %v11424_v35  ;;  %v4880_v51 = vpop.f32.mrb[165].mxu1 }
 0xaff   : > { %v4881_v41 = vadd.f32 %v4880_v51, %v11428_v46  ;;  %v4882_v21 = vpop.f32.mrb[166].mxu1  ;;  %5274 = vmatprep.mubr.bf16.mxu0 %v5028_v28 }
 0xb00   : > { %v4883_v39 = vadd.f32 %v4882_v21, %v11424_v35  ;;  %v4884_v60 = vpop.f32.mrb[167].mxu1  ;;  %5275 = vmatmul.mubr.bf16.gmra.mrb[160].mxu0 %v5027_v63  ;;  %v4983_v62 = vmax.f32 %v4879_v59, 0.0 }
 0xb01   : > { %v4885_v47 = vadd.f32 %v4884_v60, %v11428_v46  ;;  %v4984_v4 = vmax.f32 %v4881_v41, 0.0 }
 0xb02   : > { %v4985_v8 = vmax.f32 %v4883_v39, 0.0 }
 0xb03   : > { %v4986_v26 = vmax.f32 %v4885_v47, 0.0 }
 0xb04   : > { %v5029_v37 = vpack.c.bf16 %v4985_v8, %v4983_v62 }
 0xb05   : > { %v5030_v6 = vpack.c.bf16 %v4986_v26, %v4984_v4  ;;  %v4888_v53 = vpop.f32.mrb[168].mxu1 }
 0xb06   : > { %v4889_v14 = vadd.f32 %v4888_v53, %v11424_v35  ;;  %v4890_v30 = vpop.f32.mrb[169].mxu1 }
 0xb07   : > { %v4891_v42 = vadd.f32 %v4890_v30, %v11428_v46  ;;  %v4892_v31 = vpop.f32.mrb[170].mxu1  ;;  %5282 = vmatprep.mubr.bf16.mxu0 %v5030_v6 }
 0xb08   : > { %v4893_v18 = vadd.f32 %v4892_v31, %v11424_v35  ;;  %v4894_v5 = vpop.f32.mrb[171].mxu1  ;;  %5283 = vmatmul.mubr.bf16.gmra.mrb[164].mxu0 %v5029_v37  ;;  %v4987_v40 = vmax.f32 %v4889_v14, 0.0 }
 0xb09   : > { %v4895_v55 = vadd.f32 %v4894_v5, %v11428_v46  ;;  %v4988_v11 = vmax.f32 %v4891_v42, 0.0 }
 0xb0a   : > { %v4989_v10 = vmax.f32 %v4893_v18, 0.0 }
 0xb0b   : > { %v4990_v34 = vmax.f32 %v4895_v55, 0.0 }
 0xb0c   : > { %v5031_v48 = vpack.c.bf16 %v4989_v10, %v4987_v40 }
 0xb0d   : > { %v5032_v0 = vpack.c.bf16 %v4990_v34, %v4988_v11  ;;  %v4898_v63 = vpop.f32.mrb[172].mxu1 }
 0xb0e   : > { %v4899_v28 = vadd.f32 %v4898_v63, %v11424_v35  ;;  %v4900_v32 = vpop.f32.mrb[173].mxu1 }
 0xb0f   : > { %v4901_v59 = vadd.f32 %v4900_v32, %v11428_v46  ;;  %v4902_v51 = vpop.f32.mrb[174].mxu1  ;;  %5290 = vmatprep.mubr.bf16.mxu0 %v5032_v0 }
 0xb10   : > { %v4903_v41 = vadd.f32 %v4902_v51, %v11424_v35  ;;  %v4904_v21 = vpop.f32.mrb[175].mxu1  ;;  %5291 = vmatmul.mubr.bf16.gmra.mrb[168].mxu0 %v5031_v48  ;;  %v4991_v60 = vmax.f32 %v4899_v28, 0.0 }
 0xb11   : > { %v4905_v39 = vadd.f32 %v4904_v21, %v11428_v46  ;;  %v4992_v62 = vmax.f32 %v4901_v59, 0.0 }
 0xb12   : > { %v4993_v47 = vmax.f32 %v4903_v41, 0.0 }
 0xb13   : > { %v4994_v8 = vmax.f32 %v4905_v39, 0.0 }
 0xb14   : > { %v5033_v4 = vpack.c.bf16 %v4993_v47, %v4991_v60 }
 0xb15   : > { %v5034_v26 = vpack.c.bf16 %v4994_v8, %v4992_v62  ;;  %v4908_v37 = vpop.f32.mrb[176].mxu1 }
 0xb16   : > { %v4909_v6 = vadd.f32 %v4908_v37, %v11424_v35  ;;  %v4910_v53 = vpop.f32.mrb[177].mxu1 }
 0xb17   : > { %v4911_v14 = vadd.f32 %v4910_v53, %v11428_v46  ;;  %v4912_v30 = vpop.f32.mrb[178].mxu1  ;;  %5298 = vmatprep.mubr.bf16.mxu0 %v5034_v26 }
 0xb18   : > { %v4913_v42 = vadd.f32 %v4912_v30, %v11424_v35  ;;  %v4914_v31 = vpop.f32.mrb[179].mxu1  ;;  %5299 = vmatmul.mubr.bf16.gmra.mrb[172].mxu0 %v5033_v4  ;;  %v4995_v5 = vmax.f32 %v4909_v6, 0.0 }
 0xb19   : > { %v4915_v18 = vadd.f32 %v4914_v31, %v11428_v46  ;;  %v4996_v40 = vmax.f32 %v4911_v14, 0.0 }
 0xb1a   : > { %v4997_v55 = vmax.f32 %v4913_v42, 0.0 }
 0xb1b   : > { %v4998_v10 = vmax.f32 %v4915_v18, 0.0 }
 0xb1c   : > { %v5035_v11 = vpack.c.bf16 %v4997_v55, %v4995_v5 }
 0xb1d   : > { %v5036_v34 = vpack.c.bf16 %v4998_v10, %v4996_v40  ;;  %v4918_v48 = vpop.f32.mrb[180].mxu1 }
 0xb1e   : > { %v4919_v0 = vadd.f32 %v4918_v48, %v11424_v35  ;;  %v4920_v63 = vpop.f32.mrb[181].mxu1 }
 0xb1f   : > { %v4921_v28 = vadd.f32 %v4920_v63, %v11428_v46  ;;  %v4922_v32 = vpop.f32.mrb[182].mxu1  ;;  %5306 = vmatprep.mubr.bf16.mxu0 %v5036_v34 }
 0xb20   : > { %v4923_v59 = vadd.f32 %v4922_v32, %v11424_v35  ;;  %v4924_v51 = vpop.f32.mrb[183].mxu1  ;;  %5307 = vmatmul.mubr.bf16.gmra.mrb[176].mxu0 %v5035_v11  ;;  %v4999_v21 = vmax.f32 %v4919_v0, 0.0 }
 0xb21   : > { %v4925_v41 = vadd.f32 %v4924_v51, %v11428_v46  ;;  %v5000_v60 = vmax.f32 %v4921_v28, 0.0 }
 0xb22   : > { %v5001_v39 = vmax.f32 %v4923_v59, 0.0 }
 0xb23   : > { %v5002_v47 = vmax.f32 %v4925_v41, 0.0 }
 0xb24   : > { %v5037_v62 = vpack.c.bf16 %v5001_v39, %v4999_v21 }
 0xb25   : > { %v5038_v8 = vpack.c.bf16 %v5002_v47, %v5000_v60  ;;  %v4928_v4 = vpop.f32.mrb[184].mxu1 }
 0xb26   : > { %v4929_v26 = vadd.f32 %v4928_v4, %v11424_v35  ;;  %v4930_v37 = vpop.f32.mrb[185].mxu1 }
 0xb27   : > { %v4931_v6 = vadd.f32 %v4930_v37, %v11428_v46  ;;  %v4932_v53 = vpop.f32.mrb[186].mxu1  ;;  %5314 = vmatprep.mubr.bf16.mxu0 %v5038_v8  ;;  %v11496_v8 = vld [vmem:[%s863_s26] ss:$0 sm:$0xff] }
 0xb28   : > { %v4933_v14 = vadd.f32 %v4932_v53, %v11424_v35  ;;  %v4934_v30 = vpop.f32.mrb[187].mxu1  ;;  %5315 = vmatmul.mubr.bf16.gmra.mrb[180].mxu0 %v5037_v62  ;;  %v5003_v31 = vmax.f32 %v4929_v26, 0.0 }
 0xb29   : > { %v4935_v42 = vadd.f32 %v4934_v30, %v11428_v46  ;;  %v5004_v5 = vmax.f32 %v4931_v6, 0.0 }
 0xb2a   : > { %v5005_v18 = vmax.f32 %v4933_v14, 0.0 }
 0xb2b   : > { %v5006_v55 = vmax.f32 %v4935_v42, 0.0 }
 0xb2c   : > { %v5039_v40 = vpack.c.bf16 %v5005_v18, %v5003_v31 }
 0xb2d   : > { %v5040_v10 = vpack.c.bf16 %v5006_v55, %v5004_v5  ;;  %v4938_v11 = vpop.f32.mrb[188].mxu1 }
 0xb2e   : > { %v4939_v34 = vadd.f32 %v4938_v11, %v11424_v35  ;;  %v4940_v48 = vpop.f32.mrb[189].mxu1 }
 0xb2f   : > { %v4941_v0 = vadd.f32 %v4940_v48, %v11428_v46  ;;  %v4942_v63 = vpop.f32.mrb[190].mxu1  ;;  %5322 = vmatprep.mubr.bf16.mxu0 %v5040_v10 }
 0xb30   : > { %v4943_v28 = vadd.f32 %v4942_v63, %v11424_v35  ;;  %v4944_v32 = vpop.f32.mrb[191].mxu1  ;;  %5323 = vmatmul.mubr.bf16.gmra.mrb[184].mxu0 %v5039_v40  ;;  %v5007_v51 = vmax.f32 %v4939_v34, 0.0 }
 0xb31   : > { %v4945_v59 = vadd.f32 %v4944_v32, %v11428_v46  ;;  %v5008_v21 = vmax.f32 %v4941_v0, 0.0 }
 0xb32   : > { %v5009_v41 = vmax.f32 %v4943_v28, 0.0 }
 0xb33   : > { %v5010_v39 = vmax.f32 %v4945_v59, 0.0 }
 0xb34   : > { %v5041_v60 = vpack.c.bf16 %v5009_v41, %v5007_v51 }
 0xb35   : > { %v5042_v47 = vpack.c.bf16 %v5010_v39, %v5008_v21 }
 0xb37   : > { %5330 = vmatprep.mubr.bf16.mxu0 %v5042_v47 }
 0xb38   : > { %5331 = vmatmul.mubr.bf16.gmra.mrb[188].mxu0 %v5041_v60 }
 0xb47   : > { %v6979_v62 = vpop.f32.mrb[128].mxu0 }
 0xb48   : > { %v6980_v4 = vpop.f32.mrb[129].mxu0 }
 0xb49   : > { %v6981_v26 = vadd.f32 %v6980_v4, %v6979_v62  ;;  %v6982_v37 = vpop.f32.mrb[130].mxu0 }
 0xb4a   : > { %v6983_v35 = vpop.f32.mrb[131].mxu0 }
 0xb4b   : > { %v5213_v6 = vadd.f32 %v6981_v26, %v11496_v8  ;;  %v6984_v53 = vadd.f32 %v6983_v35, %v6982_v37 }
 0xb4d   : > { %v5216_v46 = vadd.f32 %v6984_v53, %v11496_v8  ;;  %v11501_v14 = vadd.f32 %v5213_v6, %v11163_v1 }
 0xb4f   : > { %v6985_v30 = vpop.f32.mrb[132].mxu0  ;;  %5373 = vadd.xlane.f32.xlu0 %v11501_v14  ;;  %v11505_v42 = vadd.f32 %v5216_v46, %v11166_v19 }
 0xb50   : > { %v6986_v31 = vpop.f32.mrb[133].mxu0 }
 0xb51   : > { %v6987_v18 = vadd.f32 %v6986_v31, %v6985_v30  ;;  %v6988_v5 = vpop.f32.mrb[134].mxu0  ;;  %5375 = vadd.xlane.f32.xlu1 %v11505_v42 }
 0xb52   : > { %v6989_v55 = vpop.f32.mrb[135].mxu0 }
 0xb53   : > { %v5221_v40 = vadd.f32 %v6987_v18, %v11496_v8  ;;  %v6990_v10 = vadd.f32 %v6989_v55, %v6988_v5 }
 0xb55   : > { %v5224_v11 = vadd.f32 %v6990_v10, %v11496_v8  ;;  %v11511_v1 = vadd.f32 %v5221_v40, %v11186_v29 }
 0xb57   : > { %v6991_v34 = vpop.f32.mrb[136].mxu0  ;;  %5377 = vadd.xlane.f32.xlu0 %v11511_v1  ;;  %v11515_v19 = vadd.f32 %v5224_v11, %v11189_v57 }
 0xb58   : > { %v6992_v48 = vpop.f32.mrb[137].mxu0 }
 0xb59   : > { %v6993_v0 = vadd.f32 %v6992_v48, %v6991_v34  ;;  %v6994_v63 = vpop.f32.mrb[138].mxu0  ;;  %5379 = vadd.xlane.f32.xlu1 %v11515_v19 }
 0xb5a   : > { %v6995_v28 = vpop.f32.mrb[139].mxu0 }
 0xb5b   : > { %v5229_v32 = vadd.f32 %v6993_v0, %v11496_v8  ;;  %v6996_v59 = vadd.f32 %v6995_v28, %v6994_v63 }
 0xb5d   : > { %v5232_v51 = vadd.f32 %v6996_v59, %v11496_v8  ;;  %v11521_v29 = vadd.f32 %v5229_v32, %v11209_v27 }
 0xb5f   : > { %v6997_v41 = vpop.f32.mrb[140].mxu0  ;;  %5381 = vadd.xlane.f32.xlu0 %v11521_v29  ;;  %v11525_v57 = vadd.f32 %v5232_v51, %v11212_v38 }
 0xb60   : > { %v6998_v21 = vpop.f32.mrb[141].mxu0 }
 0xb61   : > { %v6999_v39 = vadd.f32 %v6998_v21, %v6997_v41  ;;  %v7000_v60 = vpop.f32.mrb[142].mxu0  ;;  %5383 = vadd.xlane.f32.xlu1 %v11525_v57 }
 0xb62   : > { %v7001_v47 = vpop.f32.mrb[143].mxu0 }
 0xb63   : > { %v5237_v62 = vadd.f32 %v6999_v39, %v11496_v8  ;;  %v7002_v4 = vadd.f32 %v7001_v47, %v7000_v60 }
 0xb65   : > { %v5240_v26 = vadd.f32 %v7002_v4, %v11496_v8  ;;  %v11531_v27 = vadd.f32 %v5237_v62, %v11232_v58 }
 0xb67   : > { %v7003_v37 = vpop.f32.mrb[144].mxu0  ;;  %5385 = vadd.xlane.f32.xlu0 %v11531_v27  ;;  %v11535_v38 = vadd.f32 %v5240_v26, %v11235_v61 }
 0xb68   : > { %v7004_v35 = vpop.f32.mrb[145].mxu0 }
 0xb69   : > { %v7005_v6 = vadd.f32 %v7004_v35, %v7003_v37  ;;  %v7006_v53 = vpop.f32.mrb[146].mxu0  ;;  %5387 = vadd.xlane.f32.xlu1 %v11535_v38 }
 0xb6a   : > { %v7007_v46 = vpop.f32.mrb[147].mxu0 }
 0xb6b   : > { %v5245_v30 = vadd.f32 %v7005_v6, %v11496_v8  ;;  %v7008_v31 = vadd.f32 %v7007_v46, %v7006_v53 }
 0xb6d   : > { %v5248_v18 = vadd.f32 %v7008_v31, %v11496_v8  ;;  %v11541_v58 = vadd.f32 %v5245_v30, %v11255_v49 }
 0xb6f   : > { %5389 = vadd.xlane.f32.xlu0 %v11541_v58  ;;  %v7009_v5 = vpop.f32.mrb[148].mxu0  ;;  %v11545_v61 = vadd.f32 %v5248_v18, %v11258_v44 }
 0xb70   : > { %v7010_v55 = vpop.f32.mrb[149].mxu0 }
 0xb71   : > { %v7011_v40 = vadd.f32 %v7010_v55, %v7009_v5  ;;  %v7012_v10 = vpop.f32.mrb[150].mxu0  ;;  %5391 = vadd.xlane.f32.xlu1 %v11545_v61 }
 0xb72   : > { %v7013_v11 = vpop.f32.mrb[151].mxu0 }
 0xb73   : > { %v5253_v34 = vadd.f32 %v7011_v40, %v11496_v8  ;;  %v7014_v48 = vadd.f32 %v7013_v11, %v7012_v10 }
 0xb75   : > { %v5256_v0 = vadd.f32 %v7014_v48, %v11496_v8  ;;  %v11551_v49 = vadd.f32 %v5253_v34, %v11268_v9 }
 0xb77   : > { %5393 = vadd.xlane.f32.xlu0 %v11551_v49  ;;  %v7015_v63 = vpop.f32.mrb[152].mxu0  ;;  %v11555_v44 = vadd.f32 %v5256_v0, %v11271_v7 }
 0xb78   : > { %v7016_v28 = vpop.f32.mrb[153].mxu0 }
 0xb79   : > { %v7017_v32 = vadd.f32 %v7016_v28, %v7015_v63  ;;  %5395 = vadd.xlane.f32.xlu1 %v11555_v44  ;;  %v7018_v59 = vpop.f32.mrb[154].mxu0 }
 0xb7a   : > { %v7019_v51 = vpop.f32.mrb[155].mxu0 }
 0xb7b   : > { %v5261_v41 = vadd.f32 %v7017_v32, %v11496_v8  ;;  %v7020_v21 = vadd.f32 %v7019_v51, %v7018_v59 }
 0xb7d   : > { %v5264_v39 = vadd.f32 %v7020_v21, %v11496_v8  ;;  %v11561_v9 = vadd.f32 %v5261_v41, %v11281_v54 }
 0xb7f   : > { %5397 = vadd.xlane.f32.xlu0 %v11561_v9  ;;  %v7021_v60 = vpop.f32.mrb[156].mxu0  ;;  %v11565_v7 = vadd.f32 %v5264_v39, %v11284_v25 }
 0xb80   : > { %v7022_v47 = vpop.f32.mrb[157].mxu0 }
 0xb81   : > { %v7023_v62 = vadd.f32 %v7022_v47, %v7021_v60  ;;  %5399 = vadd.xlane.f32.xlu1 %v11565_v7  ;;  %v7024_v4 = vpop.f32.mrb[158].mxu0 }
 0xb82   : > { %v7025_v26 = vpop.f32.mrb[159].mxu0 }
 0xb83   : > { %v5269_v37 = vadd.f32 %v7023_v62, %v11496_v8  ;;  %v7026_v35 = vadd.f32 %v7025_v26, %v7024_v4 }
 0xb85   : > { %v5272_v6 = vadd.f32 %v7026_v35, %v11496_v8  ;;  %v11571_v54 = vadd.f32 %v5269_v37, %v11297_v16 }
 0xb87   : > { %5401 = vadd.xlane.f32.xlu0 %v11571_v54  ;;  %v11575_v53 = vadd.f32 %v5272_v6, %v11294_v36 }
 0xb89   : > { %5403 = vadd.xlane.f32.xlu1 %v11575_v53 }
 0xbd3   : > { %v7027_v25 = vpop.f32.mrb[160].mxu0 }
 0xbd4   : > { %v7028_v46 = vpop.f32.mrb[161].mxu0 }
 0xbd5   : > { %v7029_v30 = vadd.f32 %v7028_v46, %v7027_v25  ;;  %v7030_v31 = vpop.f32.mrb[162].mxu0 }
 0xbd6   : > { %v7031_v18 = vpop.f32.mrb[163].mxu0 }
 0xbd7   : > { %v5277_v5 = vadd.f32 %v7029_v30, %v11496_v8  ;;  %v7032_v55 = vadd.f32 %v7031_v18, %v7030_v31 }
 0xbd9   : > { %v5280_v40 = vadd.f32 %v7032_v55, %v11496_v8  ;;  %v11581_v16 = vadd.f32 %v5277_v5, %v11323_v2 }
 0xbdb   : > { %5405 = vadd.xlane.f32.xlu0 %v11581_v16  ;;  %v7033_v10 = vpop.f32.mrb[164].mxu0  ;;  %v11585_v36 = vadd.f32 %v5280_v40, %v11326_v12 }
 0xbdc   : > { %v7034_v11 = vpop.f32.mrb[165].mxu0 }
 0xbdd   : > { %v7035_v34 = vadd.f32 %v7034_v11, %v7033_v10  ;;  %5407 = vadd.xlane.f32.xlu1 %v11585_v36  ;;  %v7036_v48 = vpop.f32.mrb[166].mxu0 }
 0xbde   : > { %v7037_v0 = vpop.f32.mrb[167].mxu0 }
 0xbdf   : > { %v5285_v63 = vadd.f32 %v7035_v34, %v11496_v8  ;;  %v7038_v28 = vadd.f32 %v7037_v0, %v7036_v48 }
 0xbe1   : > { %v5288_v32 = vadd.f32 %v7038_v28, %v11496_v8  ;;  %v11591_v2 = vadd.f32 %v5285_v63, %v11339_v15 }
 0xbe3   : > { %5409 = vadd.xlane.f32.xlu0 %v11591_v2  ;;  %v7039_v59 = vpop.f32.mrb[168].mxu0  ;;  %v11595_v12 = vadd.f32 %v5288_v32, %v11336_v20 }
 0xbe4   : > { %v7040_v51 = vpop.f32.mrb[169].mxu0 }
 0xbe5   : > { %v7041_v41 = vadd.f32 %v7040_v51, %v7039_v59  ;;  %5411 = vadd.xlane.f32.xlu1 %v11595_v12  ;;  %v7042_v21 = vpop.f32.mrb[170].mxu0 }
 0xbe6   : > { %v7043_v39 = vpop.f32.mrb[171].mxu0 }
 0xbe7   : > { %v5293_v60 = vadd.f32 %v7041_v41, %v11496_v8  ;;  %v7044_v47 = vadd.f32 %v7043_v39, %v7042_v21 }
 0xbe9   : > { %v5296_v62 = vadd.f32 %v7044_v47, %v11496_v8  ;;  %v11601_v15 = vadd.f32 %v5293_v60, %v11352_v43 }
 0xbeb   : > { %5413 = vadd.xlane.f32.xlu0 %v11601_v15  ;;  %v7045_v4 = vpop.f32.mrb[172].mxu0  ;;  %v11605_v20 = vadd.f32 %v5296_v62, %v11349_v52 }
 0xbec   : > { %v7046_v26 = vpop.f32.mrb[173].mxu0 }
 0xbed   : > { %v7047_v37 = vadd.f32 %v7046_v26, %v7045_v4  ;;  %5415 = vadd.xlane.f32.xlu1 %v11605_v20  ;;  %v7048_v35 = vpop.f32.mrb[174].mxu0 }
 0xbee   : > { %v7049_v6 = vpop.f32.mrb[175].mxu0 }
 0xbef   : > { %v5301_v25 = vadd.f32 %v7047_v37, %v11496_v8  ;;  %v7050_v46 = vadd.f32 %v7049_v6, %v7048_v35  ;;  %v5374_v35 = vpop.xlane.xlu0 %5373 }
 0xbf1   : > { %v5304_v30 = vadd.f32 %v7050_v46, %v11496_v8  ;;  %v11611_v43 = vadd.f32 %v5301_v25, %v11365_v24  ;;  %v5376_v25 = vpop.xlane.xlu1 %5375 }
 0xbf3   : > { %5417 = vadd.xlane.f32.xlu0 %v11611_v43  ;;  %v7051_v31 = vpop.f32.mrb[176].mxu0  ;;  %v11615_v52 = vadd.f32 %v5304_v30, %v11362_v33  ;;  %v5437_v30 = vmul.f32 0.0078125, %v5374_v35 }
 0xbf4   : > { %v7052_v18 = vpop.f32.mrb[177].mxu0 }
 0xbf5   : > { %v7053_v5 = vadd.f32 %v7052_v18, %v7051_v31  ;;  %5419 = vadd.xlane.f32.xlu1 %v11615_v52  ;;  %v7054_v55 = vpop.f32.mrb[178].mxu0 }
 0xbf6   : > { %v7055_v40 = vpop.f32.mrb[179].mxu0 }
 0xbf7   : > { %v5309_v10 = vadd.f32 %v7053_v5, %v11496_v8  ;;  %v7056_v11 = vadd.f32 %v7055_v40, %v7054_v55  ;;  %v5378_v5 = vpop.xlane.xlu0 %5377  ;;  %v5438_v40 = vmul.f32 0.0078125, %v5376_v25 }
 0xbf9   : > { %v5312_v34 = vadd.f32 %v7056_v11, %v11496_v8  ;;  %v11621_v24 = vadd.f32 %v5309_v10, %v11378_v17  ;;  %v5380_v11 = vpop.xlane.xlu1 %5379 }
 0xbfb   : > { %5421 = vadd.xlane.f32.xlu0 %v11621_v24  ;;  %v7057_v48 = vpop.f32.mrb[180].mxu0  ;;  %v11625_v33 = vadd.f32 %v5312_v34, %v11375_v13  ;;  %v11650_v34 = vsub.f32 %v11501_v14, %v5437_v30 }
 0xbfc   : > { %v7058_v0 = vpop.f32.mrb[181].mxu0 }
 0xbfd   : > { %v7059_v63 = vadd.f32 %v7058_v0, %v7057_v48  ;;  %5423 = vadd.xlane.f32.xlu1 %v11625_v33  ;;  %v7060_v28 = vpop.f32.mrb[182].mxu0  ;;  %v5439_v48 = vmul.f32 0.0078125, %v5378_v5 }
 0xbfe   : > { %v7061_v32 = vpop.f32.mrb[183].mxu0 }
 0xbff   : > { %v5317_v59 = vadd.f32 %v7059_v63, %v11496_v8  ;;  %v7062_v51 = vadd.f32 %v7061_v32, %v7060_v28  ;;  %v5382_v63 = vpop.xlane.xlu0 %5381  ;;  %v11657_v28 = vsub.f32 %v11505_v42, %v5438_v40  ;;  %v5440_v32 = vmul.f32 0.0078125, %v5380_v11 }
 0xc00   : > { %v11664_v14 = vsub.f32 %v11511_v1, %v5439_v48 }
 0xc01   : > { %v5320_v41 = vadd.f32 %v7062_v51, %v11496_v8  ;;  %v11631_v17 = vadd.f32 %v5317_v59, %v11391_v50  ;;  %v5384_v51 = vpop.xlane.xlu1 %5383  ;;  %v11670_v42 = vsub.f32 %v11515_v19, %v5440_v32 }
 0xc03   : > { %5425 = vadd.xlane.f32.xlu0 %v11631_v17  ;;  %v7063_v21 = vpop.f32.mrb[184].mxu0  ;;  %v11635_v13 = vadd.f32 %v5320_v41, %v11388_v23  ;;  %v5441_v41 = vmul.f32 0.0078125, %v5382_v63 }
 0xc04   : > { %v7064_v39 = vpop.f32.mrb[185].mxu0 }
 0xc05   : > { %v7065_v60 = vadd.f32 %v7064_v39, %v7063_v21  ;;  %5427 = vadd.xlane.f32.xlu1 %v11635_v13  ;;  %v7066_v47 = vpop.f32.mrb[186].mxu0  ;;  %v5442_v21 = vmul.f32 0.0078125, %v5384_v51  ;;  %v5388_v39 = vpop.xlane.xlu1 %5387 }
 0xc06   : > { %v7067_v62 = vpop.f32.mrb[187].mxu0  ;;  %v5444_v19 = vmul.f32 0.0078125, %v5388_v39 }
 0xc07   : > { %v5325_v4 = vadd.f32 %v7065_v60, %v11496_v8  ;;  %v7068_v26 = vadd.f32 %v7067_v62, %v7066_v47  ;;  %v11675_v60 = vsub.f32 %v11521_v29, %v5441_v41  ;;  %v5503_v47 = vmul.f32 %v11664_v14, %v11664_v14 }
 0xc09   : > { %v5328_v37 = vadd.f32 %v7068_v26, %v11496_v8  ;;  %v11641_v50 = vadd.f32 %v5325_v4, %v11404_v45  ;;  %v11680_v4 = vsub.f32 %v11525_v57, %v5442_v21  ;;  %v5504_v26 = vmul.f32 %v11670_v42, %v11670_v42 }
 0xc0b   : > { %5429 = vadd.xlane.f32.xlu0 %v11641_v50  ;;  %v7069_v6 = vpop.f32.mrb[188].mxu0  ;;  %v11645_v23 = vadd.f32 %v5328_v37, %v11401_v22  ;;  %v5392_v37 = vpop.xlane.xlu1 %5391  ;;  %v5506_v30 = vmul.f32 %v11680_v4, %v11680_v4 }
 0xc0c   : > { %v7070_v46 = vpop.f32.mrb[189].mxu0  ;;  %v5446_v57 = vmul.f32 0.0078125, %v5392_v37 }
 0xc0d   : > { %v7071_v31 = vadd.f32 %v7070_v46, %v7069_v6  ;;  %5431 = vadd.xlane.f32.xlu1 %v11645_v23  ;;  %v7072_v18 = vpop.f32.mrb[190].mxu0  ;;  %v5505_v6 = vmul.f32 %v11675_v60, %v11675_v60  ;;  %v11690_v46 = vsub.f32 %v11535_v38, %v5444_v19 }
 0xc0e   : > { %v7073_v55 = vpop.f32.mrb[191].mxu0  ;;  %v11700_v40 = vsub.f32 %v11545_v61, %v5446_v57 }
 0xc0f   : > { %v5333_v45 = vadd.f32 %v7071_v31, %v11496_v8  ;;  %v7074_v10 = vadd.f32 %v7073_v55, %v7072_v18  ;;  %v5396_v31 = vpop.xlane.xlu1 %5395 }
 0xc10   : > { %v5448_v38 = vmul.f32 0.0078125, %v5396_v31  ;;  %v5510_v32 = vmul.f32 %v11700_v40, %v11700_v40 }
 0xc11   : > { %v5336_v22 = vadd.f32 %v7074_v10, %v11496_v8  ;;  %v11654_v0 = vadd.f32 %v5333_v45, %v11417_v56  ;;  %v5501_v56 = vmul.f32 %v11650_v34, %v11650_v34  ;;  %v5386_v8 = vpop.xlane.xlu0 %5385  ;;  %v5508_v45 = vmul.f32 %v11690_v46, %v11690_v46 }
 0xc12   : > { %v5443_v1 = vmul.f32 0.0078125, %v5386_v8  ;;  %v11710_v63 = vsub.f32 %v11555_v44, %v5448_v38 }
 0xc13   : > { %5433 = vadd.xlane.f32.xlu0 %v11654_v0  ;;  %v11661_v59 = vadd.f32 %v5336_v22, %v11414_v3  ;;  %v5502_v3 = vmul.f32 %v11657_v28, %v11657_v28  ;;  %v5400_v10 = vpop.xlane.xlu1 %5399 }
 0xc14   : > { %v11685_v35 = vsub.f32 %v11531_v27, %v5443_v1  ;;  %v5450_v61 = vmul.f32 0.0078125, %v5400_v10  ;;  %v5512_v44 = vmul.f32 %v11710_v63, %v11710_v63 }
 0xc15   : > { %5435 = vadd.xlane.f32.xlu1 %v11661_v59  ;;  %v5390_v62 = vpop.xlane.xlu0 %5389 }
 0xc16   : > { %v5445_v29 = vmul.f32 0.0078125, %v5390_v62  ;;  %v5507_v5 = vmul.f32 %v11685_v35, %v11685_v35  ;;  %v11720_v8 = vsub.f32 %v11565_v7, %v5450_v61 }
 0xc17   : > { %5533 = vadd.xlane.f32.xlu0 %v5501_v56  ;;  %v5404_v51 = vpop.xlane.xlu1 %5403 }
 0xc18   : > { %v11695_v18 = vsub.f32 %v11541_v58, %v5445_v29  ;;  %v5452_v21 = vmul.f32 0.0078125, %v5404_v51  ;;  %v5514_v7 = vmul.f32 %v11720_v8, %v11720_v8 }
 0xc19   : > { %5535 = vadd.xlane.f32.xlu1 %v5502_v3  ;;  %v5394_v25 = vpop.xlane.xlu0 %5393 }
 0xc1a   : > { %v5447_v27 = vmul.f32 0.0078125, %v5394_v25  ;;  %v5509_v48 = vmul.f32 %v11695_v18, %v11695_v18  ;;  %v11730_v39 = vsub.f32 %v11575_v53, %v5452_v21 }
 0xc1b   : > { %5537 = vadd.xlane.f32.xlu0 %v5503_v47 }
 0xc1c   : > { %v11705_v11 = vsub.f32 %v11551_v49, %v5447_v27 }
 0xc1d   : > { %5539 = vadd.xlane.f32.xlu1 %v5504_v26  ;;  %v5398_v55 = vpop.xlane.xlu0 %5397 }
 0xc1e   : > { %v5449_v58 = vmul.f32 0.0078125, %v5398_v55  ;;  %v5511_v56 = vmul.f32 %v11705_v11, %v11705_v11 }
 0xc1f   : > { %5541 = vadd.xlane.f32.xlu0 %v5505_v6 }
 0xc20   : > { %v11715_v41 = vsub.f32 %v11561_v9, %v5449_v58 }
 0xc21   : > { %5543 = vadd.xlane.f32.xlu1 %v5506_v30  ;;  %v5402_v22 = vpop.xlane.xlu0 %5401 }
 0xc22   : > { %v5451_v49 = vmul.f32 0.0078125, %v5402_v22  ;;  %v5513_v9 = vmul.f32 %v11715_v41, %v11715_v41 }
 0xc23   : > { %5545 = vadd.xlane.f32.xlu0 %v5507_v5 }
 0xc24   : > { %v11725_v3 = vsub.f32 %v11571_v54, %v5451_v49  ;;  %v5516_v54 = vmul.f32 %v11730_v39, %v11730_v39 }
 0xc25   : > { %5547 = vadd.xlane.f32.xlu1 %v5508_v45 }
 0xc26   : > { %v5515_v1 = vmul.f32 %v11725_v3, %v11725_v3 }
 0xc27   : > { %5549 = vadd.xlane.f32.xlu0 %v5509_v48 }
 0xc29   : > { %5551 = vadd.xlane.f32.xlu1 %v5510_v32 }
 0xc2b   : > { %5553 = vadd.xlane.f32.xlu0 %v5511_v56 }
 0xc2d   : > { %5555 = vadd.xlane.f32.xlu1 %v5512_v44 }
 0xc2f   : > { %5557 = vadd.xlane.f32.xlu0 %v5513_v9 }
 0xc31   : > { %5559 = vadd.xlane.f32.xlu1 %v5514_v7 }
 0xc33   : > { %5561 = vadd.xlane.f32.xlu0 %v5515_v1 }
 0xc35   : > { %5563 = vadd.xlane.f32.xlu1 %v5516_v54 }
 0xc68   : > { %v5406_v47 = vpop.xlane.xlu0 %5405 }
 0xc69   : > { %v5453_v62 = vmul.f32 0.0078125, %v5406_v47 }
 0xc6a   : > { %v5408_v19 = vpop.xlane.xlu1 %5407 }
 0xc6b   : > { %v11739_v26 = vsub.f32 %v11581_v16, %v5453_v62  ;;  %v5454_v53 = vmul.f32 0.0078125, %v5408_v19 }
 0xc6d   : > { %v11742_v37 = vsub.f32 %v11585_v36, %v5454_v53  ;;  %v5517_v29 = vmul.f32 %v11739_v26, %v11739_v26 }
 0xc6f   : > { %5565 = vadd.xlane.f32.xlu0 %v5517_v29  ;;  %v5518_v6 = vmul.f32 %v11742_v37, %v11742_v37 }
 0xc70   : > { %v5410_v25 = vpop.xlane.xlu0 %5409 }
 0xc71   : > { %v5455_v57 = vmul.f32 0.0078125, %v5410_v25  ;;  %5567 = vadd.xlane.f32.xlu1 %v5518_v6 }
 0xc72   : > { %v5412_v30 = vpop.xlane.xlu1 %5411 }
 0xc73   : > { %v11749_v31 = vsub.f32 %v11591_v2, %v5455_v57  ;;  %v5456_v16 = vmul.f32 0.0078125, %v5412_v30 }
 0xc75   : > { %v11752_v27 = vsub.f32 %v11595_v12, %v5456_v16  ;;  %v5519_v36 = vmul.f32 %v11749_v31, %v11749_v31 }
 0xc77   : > { %5569 = vadd.xlane.f32.xlu0 %v5519_v36  ;;  %v5520_v5 = vmul.f32 %v11752_v27, %v11752_v27 }
 0xc78   : > { %v5414_v55 = vpop.xlane.xlu0 %5413 }
 0xc79   : > { %v5457_v38 = vmul.f32 0.0078125, %v5414_v55  ;;  %5571 = vadd.xlane.f32.xlu1 %v5520_v5 }
 0xc7a   : > { %v5416_v45 = vpop.xlane.xlu1 %5415 }
 0xc7b   : > { %v11759_v10 = vsub.f32 %v11601_v15, %v5457_v38  ;;  %v5458_v2 = vmul.f32 0.0078125, %v5416_v45 }
 0xc7d   : > { %v11762_v58 = vsub.f32 %v11605_v20, %v5458_v2  ;;  %v5521_v12 = vmul.f32 %v11759_v10, %v11759_v10 }
 0xc7f   : > { %5573 = vadd.xlane.f32.xlu0 %v5521_v12  ;;  %v5522_v48 = vmul.f32 %v11762_v58, %v11762_v58 }
 0xc80   : > { %v5418_v22 = vpop.xlane.xlu0 %5417 }
 0xc81   : > { %v5459_v61 = vmul.f32 0.0078125, %v5418_v22  ;;  %5575 = vadd.xlane.f32.xlu1 %v5522_v48 }
 0xc82   : > { %v5420_v32 = vpop.xlane.xlu1 %5419 }
 0xc83   : > { %v11769_v51 = vsub.f32 %v11611_v43, %v5459_v61  ;;  %v5460_v15 = vmul.f32 0.0078125, %v5420_v32 }
 0xc85   : > { %v11772_v49 = vsub.f32 %v11615_v52, %v5460_v15  ;;  %v5523_v20 = vmul.f32 %v11769_v51, %v11769_v51 }
 0xc87   : > { %5577 = vadd.xlane.f32.xlu0 %v5523_v20  ;;  %v5524_v56 = vmul.f32 %v11772_v49, %v11772_v49 }
 0xc88   : > { %v5422_v21 = vpop.xlane.xlu0 %5421 }
 0xc89   : > { %v5461_v44 = vmul.f32 0.0078125, %v5422_v21  ;;  %5579 = vadd.xlane.f32.xlu1 %v5524_v56 }
 0xc8a   : > { %v5424_v9 = vpop.xlane.xlu1 %5423 }
 0xc8b   : > { %v11779_v7 = vsub.f32 %v11621_v24, %v5461_v44  ;;  %v5462_v43 = vmul.f32 0.0078125, %v5424_v9 }
 0xc8d   : > { %v11782_v1 = vsub.f32 %v11625_v33, %v5462_v43  ;;  %v5525_v52 = vmul.f32 %v11779_v7, %v11779_v7 }
 0xc8f   : > { %5581 = vadd.xlane.f32.xlu0 %v5525_v52  ;;  %v5526_v54 = vmul.f32 %v11782_v1, %v11782_v1 }
 0xc90   : > { %v5426_v47 = vpop.xlane.xlu0 %5425 }
 0xc91   : > { %v5463_v62 = vmul.f32 0.0078125, %v5426_v47  ;;  %5583 = vadd.xlane.f32.xlu1 %v5526_v54 }
 0xc92   : > { %v5428_v19 = vpop.xlane.xlu1 %5427 }
 0xc93   : > { %v11789_v53 = vsub.f32 %v11631_v17, %v5463_v62  ;;  %v5464_v24 = vmul.f32 0.0078125, %v5428_v19 }
 0xc95   : > { %v11792_v29 = vsub.f32 %v11635_v13, %v5464_v24  ;;  %v5527_v33 = vmul.f32 %v11789_v53, %v11789_v53 }
 0xc97   : > { %5585 = vadd.xlane.f32.xlu0 %v5527_v33  ;;  %v5528_v6 = vmul.f32 %v11792_v29, %v11792_v29 }
 0xc98   : > { %v5430_v25 = vpop.xlane.xlu0 %5429 }
 0xc99   : > { %v5465_v57 = vmul.f32 0.0078125, %v5430_v25  ;;  %5587 = vadd.xlane.f32.xlu1 %v5528_v6 }
 0xc9a   : > { %v5432_v30 = vpop.xlane.xlu1 %5431 }
 0xc9b   : > { %v11799_v16 = vsub.f32 %v11641_v50, %v5465_v57  ;;  %v5466_v17 = vmul.f32 0.0078125, %v5432_v30  ;;  %v11820_v30 = vld [vmem:[%s871_s14] ss:$0 sm:$0xff] }
 0xc9d   : > { %v11802_v36 = vsub.f32 %v11645_v23, %v5466_v17  ;;  %v5529_v13 = vmul.f32 %v11799_v16, %v11799_v16 }
 0xc9f   : > { %5589 = vadd.xlane.f32.xlu0 %v5529_v13  ;;  %v5530_v5 = vmul.f32 %v11802_v36, %v11802_v36 }
 0xca0   : > { %v5434_v55 = vpop.xlane.xlu0 %5433 }
 0xca1   : > { %v5467_v38 = vmul.f32 0.0078125, %v5434_v55  ;;  %5591 = vadd.xlane.f32.xlu1 %v5530_v5 }
 0xca2   : > { %v5436_v45 = vpop.xlane.xlu1 %5435 }
 0xca3   : > { %v11809_v2 = vsub.f32 %v11654_v0, %v5467_v38  ;;  %v5468_v50 = vmul.f32 0.0078125, %v5436_v45  ;;  %v11825_v45 = vld [vmem:[%s879_s3] ss:$0 sm:$0xff] }
 0xca4   : > { %v5534_v12 = vpop.xlane.xlu0 %5533 }
 0xca5   : > { %v11812_v48 = vsub.f32 %v11661_v59, %v5468_v50  ;;  %v5597_v23 = vmul.f32 0.0078125, %v5534_v12  ;;  %v5531_v22 = vmul.f32 %v11809_v2, %v11809_v2 }
 0xca6   : > { %v5536_v61 = vpop.xlane.xlu1 %5535 }
 0xca7   : > { %v5629_v32 = vadd.f32 1e-05, %v5597_v23  ;;  %v5598_v15 = vmul.f32 0.0078125, %v5536_v61  ;;  %5593 = vadd.xlane.f32.xlu0 %v5531_v22  ;;  %v5532_v20 = vmul.f32 %v11812_v48, %v11812_v48 }
 0xca8   : > { %v5538_v56 = vpop.xlane.xlu0 %5537 }
 0xca9   : > { %8153 = vrsqrt.f32 %v5629_v32  ;;  %v5630_v0 = vadd.f32 1e-05, %v5598_v15  ;;  %v5599_v21 = vmul.f32 0.0078125, %v5538_v56  ;;  %5595 = vadd.xlane.f32.xlu1 %v5532_v20 }
 0xcaa   : > { %v5540_v44 = vpop.xlane.xlu1 %5539 }
 0xcab   : > { %8155 = vrsqrt.f32 %v5630_v0  ;;  %v5631_v59 = vadd.f32 1e-05, %v5599_v21  ;;  %v5600_v9 = vmul.f32 0.0078125, %v5540_v44 }
 0xcac   : > { %v5542_v43 = vpop.xlane.xlu0 %5541 }
 0xcad   : > { %8157 = vrsqrt.f32 %v5631_v59  ;;  %v5632_v52 = vadd.f32 1e-05, %v5600_v9  ;;  %v5601_v54 = vmul.f32 0.0078125, %v5542_v43 }
 0xcae   : > { %v5544_v47 = vpop.xlane.xlu1 %5543 }
 0xcaf   : > { %8159 = vrsqrt.f32 %v5632_v52  ;;  %v5633_v62 = vadd.f32 1e-05, %v5601_v54  ;;  %v5602_v19 = vmul.f32 0.0078125, %v5544_v47 }
 0xcb0   : > { %v5546_v24 = vpop.xlane.xlu0 %5545 }
 0xcb1   : > { %8161 = vrsqrt.f32 %v5633_v62  ;;  %v5634_v33 = vadd.f32 1e-05, %v5602_v19  ;;  %v5603_v6 = vmul.f32 0.0078125, %v5546_v24 }
 0xcb2   : > { %v5548_v25 = vpop.xlane.xlu1 %5547 }
 0xcb3   : > { %v8154_v57 = vpop.eup %8153  ;;  %8163 = vrsqrt.f32 %v5634_v33  ;;  %v5635_v17 = vadd.f32 1e-05, %v5603_v6  ;;  %v5604_v13 = vmul.f32 0.0078125, %v5548_v25 }
 0xcb4   : > { %v5693_v5 = vmul.f32 %v8154_v57, %v11650_v34  ;;  %v5550_v55 = vpop.xlane.xlu0 %5549 }
 0xcb5   : > { %v8156_v38 = vpop.eup %8155  ;;  %8165 = vrsqrt.f32 %v5635_v17  ;;  %v5636_v50 = vadd.f32 1e-05, %v5604_v13  ;;  %v5605_v12 = vmul.f32 0.0078125, %v5550_v55 }
 0xcb6   : > { %v5731_v23 = vmul.f32 %v11820_v30, %v5693_v5  ;;  %v5694_v22 = vmul.f32 %v8156_v38, %v11657_v28  ;;  %v5552_v61 = vpop.xlane.xlu1 %5551 }
 0xcb7   : > { %v8158_v32 = vpop.eup %8157  ;;  %8167 = vrsqrt.f32 %v5636_v50  ;;  %v5637_v15 = vadd.f32 1e-05, %v5605_v12  ;;  %v5606_v20 = vmul.f32 0.0078125, %v5552_v61 }
 0xcb8   : > { %v11830_v56 = vadd.f32 %v11825_v45, %v5731_v23  ;;  %v5732_v34 = vmul.f32 %v11820_v30, %v5694_v22  ;;  %v5695_v0 = vmul.f32 %v8158_v32, %v11664_v14  ;;  %v5554_v21 = vpop.xlane.xlu0 %5553 }
 0xcb9   : > { %v8160_v44 = vpop.eup %8159  ;;  %8169 = vrsqrt.f32 %v5637_v15  ;;  %v5638_v59 = vadd.f32 1e-05, %v5606_v20  ;;  %v5607_v9 = vmul.f32 0.0078125, %v5554_v21 }
 0xcba   : > { %5801 = vst [vmem:[#allocation2] sm:$0xff] %v11830_v56  ;;  %v11836_v28 = vadd.f32 %v11825_v45, %v5732_v34  ;;  %v5733_v43 = vmul.f32 %v11820_v30, %v5695_v0  ;;  %v5696_v52 = vmul.f32 %v8160_v44, %v11670_v42  ;;  %v5556_v54 = vpop.xlane.xlu1 %5555 }
 0xcbb   : > { %v8162_v47 = vpop.eup %8161  ;;  %8171 = vrsqrt.f32 %v5638_v59  ;;  %v5639_v62 = vadd.f32 1e-05, %v5607_v9  ;;  %v5608_v19 = vmul.f32 0.0078125, %v5556_v54 }
 0xcbc   : > { %5802 = vst [vmem:[#allocation2 + $0x8] sm:$0xff] %v11836_v28  ;;  %v11842_v14 = vadd.f32 %v11825_v45, %v5733_v43  ;;  %v5734_v24 = vmul.f32 %v11820_v30, %v5696_v52  ;;  %v5697_v33 = vmul.f32 %v8162_v47, %v11675_v60  ;;  %v5558_v6 = vpop.xlane.xlu0 %5557 }
 0xcbd   : > { %v8164_v25 = vpop.eup %8163  ;;  %8173 = vrsqrt.f32 %v5639_v62  ;;  %v5640_v57 = vadd.f32 1e-05, %v5608_v19  ;;  %v5609_v17 = vmul.f32 0.0078125, %v5558_v6 }
 0xcbe   : > { %5803 = vst [vmem:[#allocation2 + $0x10] sm:$0xff] %v11842_v14  ;;  %v11848_v42 = vadd.f32 %v11825_v45, %v5734_v24  ;;  %v5735_v13 = vmul.f32 %v11820_v30, %v5697_v33  ;;  %v5698_v5 = vmul.f32 %v8164_v25, %v11680_v4  ;;  %v5560_v55 = vpop.xlane.xlu1 %5559 }
 0xcbf   : > { %v8166_v38 = vpop.eup %8165  ;;  %8175 = vrsqrt.f32 %v5640_v57  ;;  %v5641_v50 = vadd.f32 1e-05, %v5609_v17  ;;  %v5610_v12 = vmul.f32 0.0078125, %v5560_v55 }
 0xcc0   : > { %5804 = vst [vmem:[#allocation2 + $0x18] sm:$0xff] %v11848_v42  ;;  %v11854_v60 = vadd.f32 %v11825_v45, %v5735_v13  ;;  %v5736_v23 = vmul.f32 %v11820_v30, %v5698_v5  ;;  %v5699_v22 = vmul.f32 %v8166_v38, %v11685_v35  ;;  %v5562_v61 = vpop.xlane.xlu0 %5561 }
 0xcc1   : > { %v8168_v32 = vpop.eup %8167  ;;  %8177 = vrsqrt.f32 %v5641_v50  ;;  %v5642_v15 = vadd.f32 1e-05, %v5610_v12  ;;  %v5611_v20 = vmul.f32 0.0078125, %v5562_v61 }
 0xcc2   : > { %5805 = vst [vmem:[#allocation2 + $0x20] sm:$0xff] %v11854_v60  ;;  %v11860_v4 = vadd.f32 %v11825_v45, %v5736_v23  ;;  %v5737_v34 = vmul.f32 %v11820_v30, %v5699_v22  ;;  %v5700_v0 = vmul.f32 %v8168_v32, %v11690_v46  ;;  %v5564_v21 = vpop.xlane.xlu1 %5563 }
 0xcc3   : > { %v8170_v44 = vpop.eup %8169  ;;  %8179 = vrsqrt.f32 %v5642_v15  ;;  %v5643_v59 = vadd.f32 1e-05, %v5611_v20  ;;  %v5612_v9 = vmul.f32 0.0078125, %v5564_v21 }
 0xcc4   : > { %5806 = vst [vmem:[#allocation2 + $0x28] sm:$0xff] %v11860_v4  ;;  %v11866_v35 = vadd.f32 %v11825_v45, %v5737_v34  ;;  %v5738_v43 = vmul.f32 %v11820_v30, %v5700_v0  ;;  %v5701_v52 = vmul.f32 %v8170_v44, %v11695_v18 }
 0xcc5   : > { %v8172_v54 = vpop.eup %8171  ;;  %8181 = vrsqrt.f32 %v5643_v59  ;;  %v5644_v47 = vadd.f32 1e-05, %v5612_v9 }
 0xcc6   : > { %5807 = vst [vmem:[#allocation2 + $0x30] sm:$0xff] %v11866_v35  ;;  %v11872_v46 = vadd.f32 %v11825_v45, %v5738_v43  ;;  %v5739_v62 = vmul.f32 %v11820_v30, %v5701_v52  ;;  %v5702_v19 = vmul.f32 %v8172_v54, %v11700_v40 }
 0xcc7   : > { %v8174_v24 = vpop.eup %8173  ;;  %8183 = vrsqrt.f32 %v5644_v47 }
 0xcc8   : > { %5808 = vst [vmem:[#allocation2 + $0x38] sm:$0xff] %v11872_v46  ;;  %v11878_v33 = vadd.f32 %v11825_v45, %v5739_v62  ;;  %v5740_v18 = vmul.f32 %v11820_v30, %v5702_v19  ;;  %v5703_v6 = vmul.f32 %v8174_v24, %v11705_v11 }
 0xcc9   : > { %v8176_v25 = vpop.eup %8175 }
 0xcca   : > { %5809 = vst [vmem:[#allocation2 + $0x40] sm:$0xff] %v11878_v33  ;;  %v11884_v57 = vadd.f32 %v11825_v45, %v5740_v18  ;;  %v5741_v17 = vmul.f32 %v11820_v30, %v5703_v6  ;;  %v5704_v40 = vmul.f32 %v8176_v25, %v11710_v63 }
 0xccb   : > { %v8178_v13 = vpop.eup %8177 }
 0xccc   : > { %5810 = vst [vmem:[#allocation2 + $0x48] sm:$0xff] %v11884_v57  ;;  %v11890_v5 = vadd.f32 %v11825_v45, %v5741_v17  ;;  %v5742_v55 = vmul.f32 %v11820_v30, %v5704_v40  ;;  %v5705_v11 = vmul.f32 %v8178_v13, %v11715_v41 }
 0xccd   : > { %v8180_v38 = vpop.eup %8179 }
 0xcce   : > { %5811 = vst [vmem:[#allocation2 + $0x50] sm:$0xff] %v11890_v5  ;;  %v11896_v50 = vadd.f32 %v11825_v45, %v5742_v55  ;;  %v5743_v12 = vmul.f32 %v11820_v30, %v5705_v11  ;;  %v5706_v63 = vmul.f32 %v8180_v38, %v11720_v8 }
 0xccf   : > { %v8182_v23 = vpop.eup %8181 }
 0xcd0   : > { %5812 = vst [vmem:[#allocation2 + $0x58] sm:$0xff] %v11896_v50  ;;  %v11902_v22 = vadd.f32 %v11825_v45, %v5743_v12  ;;  %v5744_v61 = vmul.f32 %v11820_v30, %v5706_v63  ;;  %v5707_v41 = vmul.f32 %v8182_v23, %v11725_v3 }
 0xcd1   : > { %v8184_v32 = vpop.eup %8183 }
 0xcd2   : > { %5813 = vst [vmem:[#allocation2 + $0x60] sm:$0xff] %v11902_v22  ;;  %v11908_v15 = vadd.f32 %v11825_v45, %v5744_v61  ;;  %v5745_v20 = vmul.f32 %v11820_v30, %v5707_v41  ;;  %v5708_v8 = vmul.f32 %v8184_v32, %v11730_v39 }
 0xcd4   : > { %5814 = vst [vmem:[#allocation2 + $0x68] sm:$0xff] %v11908_v15  ;;  %v11914_v34 = vadd.f32 %v11825_v45, %v5745_v20  ;;  %v5746_v0 = vmul.f32 %v11820_v30, %v5708_v8 }
 0xcd6   : > { %5815 = vst [vmem:[#allocation2 + $0x70] sm:$0xff] %v11914_v34  ;;  %v11919_v3 = vadd.f32 %v11825_v45, %v5746_v0 }
 0xcd8   : > { %5816 = vst [vmem:[#allocation2 + $0x78] sm:$0xff] %v11919_v3 }
 0xcfc   : > { %v5566_v21 = vpop.xlane.xlu0 %5565 }
 0xcfd   : > { %v5613_v44 = vmul.f32 0.0078125, %v5566_v21 }
 0xcfe   : > { %v5568_v59 = vpop.xlane.xlu1 %5567 }
 0xcff   : > { %v5645_v9 = vadd.f32 1e-05, %v5613_v44  ;;  %v5614_v43 = vmul.f32 0.0078125, %v5568_v59 }
 0xd01   : > { %8185 = vrsqrt.f32 %v5645_v9  ;;  %v5646_v39 = vadd.f32 1e-05, %v5614_v43 }
 0xd03   : > { %8187 = vrsqrt.f32 %v5646_v39 }
 0xd04   : > { %v5570_v52 = vpop.xlane.xlu0 %5569 }
 0xd05   : > { %v5615_v54 = vmul.f32 0.0078125, %v5570_v52 }
 0xd06   : > { %v5572_v47 = vpop.xlane.xlu1 %5571 }
 0xd07   : > { %v5647_v62 = vadd.f32 1e-05, %v5615_v54  ;;  %v5616_v19 = vmul.f32 0.0078125, %v5572_v47 }
 0xd09   : > { %8189 = vrsqrt.f32 %v5647_v62  ;;  %v5648_v24 = vadd.f32 1e-05, %v5616_v19 }
 0xd0b   : > { %v8186_v18 = vpop.eup %8185  ;;  %8191 = vrsqrt.f32 %v5648_v24 }
 0xd0c   : > { %v5709_v6 = vmul.f32 %v8186_v18, %v11739_v26  ;;  %v5574_v25 = vpop.xlane.xlu0 %5573 }
 0xd0d   : > { %v8188_v17 = vpop.eup %8187  ;;  %v5617_v40 = vmul.f32 0.0078125, %v5574_v25 }
 0xd0e   : > { %v5747_v13 = vmul.f32 %v11820_v30, %v5709_v6  ;;  %v5710_v55 = vmul.f32 %v8188_v17, %v11742_v37  ;;  %v5576_v11 = vpop.xlane.xlu1 %5575 }
 0xd0f   : > { %v5649_v38 = vadd.f32 1e-05, %v5617_v40  ;;  %v5618_v12 = vmul.f32 0.0078125, %v5576_v11 }
 0xd10   : > { %v11926_v63 = vadd.f32 %v11825_v45, %v5747_v13  ;;  %v5748_v23 = vmul.f32 %v11820_v30, %v5710_v55 }
 0xd11   : > { %8193 = vrsqrt.f32 %v5649_v38  ;;  %v5650_v61 = vadd.f32 1e-05, %v5618_v12 }
 0xd12   : > { %5817 = vst [vmem:[#allocation2 + $0x80] sm:$0xff] %v11926_v63  ;;  %v11931_v26 = vadd.f32 %v11825_v45, %v5748_v23 }
 0xd13   : > { %v8190_v41 = vpop.eup %8189  ;;  %8195 = vrsqrt.f32 %v5650_v61 }
 0xd14   : > { %5818 = vst [vmem:[#allocation2 + $0x88] sm:$0xff] %v11931_v26  ;;  %v5711_v37 = vmul.f32 %v8190_v41, %v11749_v31  ;;  %v5578_v32 = vpop.xlane.xlu0 %5577 }
 0xd15   : > { %v8192_v20 = vpop.eup %8191  ;;  %v5619_v8 = vmul.f32 0.0078125, %v5578_v32 }
 0xd16   : > { %v5749_v0 = vmul.f32 %v11820_v30, %v5711_v37  ;;  %v5712_v21 = vmul.f32 %v8192_v20, %v11752_v27  ;;  %v5580_v44 = vpop.xlane.xlu1 %5579 }
 0xd17   : > { %v5651_v59 = vadd.f32 1e-05, %v5619_v8  ;;  %v5620_v9 = vmul.f32 0.0078125, %v5580_v44 }
 0xd18   : > { %v11938_v43 = vadd.f32 %v11825_v45, %v5749_v0  ;;  %v5750_v39 = vmul.f32 %v11820_v30, %v5712_v21 }
 0xd19   : > { %8197 = vrsqrt.f32 %v5651_v59  ;;  %v5652_v52 = vadd.f32 1e-05, %v5620_v9 }
 0xd1a   : > { %5819 = vst [vmem:[#allocation2 + $0x90] sm:$0xff] %v11938_v43  ;;  %v11943_v31 = vadd.f32 %v11825_v45, %v5750_v39 }
 0xd1b   : > { %v8194_v54 = vpop.eup %8193  ;;  %8199 = vrsqrt.f32 %v5652_v52 }
 0xd1c   : > { %5820 = vst [vmem:[#allocation2 + $0x98] sm:$0xff] %v11943_v31  ;;  %v5713_v27 = vmul.f32 %v8194_v54, %v11759_v10  ;;  %v5582_v47 = vpop.xlane.xlu0 %5581 }
 0xd1d   : > { %v8196_v62 = vpop.eup %8195  ;;  %v5621_v19 = vmul.f32 0.0078125, %v5582_v47 }
 0xd1e   : > { %v5751_v24 = vmul.f32 %v11820_v30, %v5713_v27  ;;  %v5714_v18 = vmul.f32 %v8196_v62, %v11762_v58  ;;  %v5584_v6 = vpop.xlane.xlu1 %5583 }
 0xd1f   : > { %v5653_v25 = vadd.f32 1e-05, %v5621_v19  ;;  %v5622_v17 = vmul.f32 0.0078125, %v5584_v6 }
 0xd20   : > { %v11950_v40 = vadd.f32 %v11825_v45, %v5751_v24  ;;  %v5752_v13 = vmul.f32 %v11820_v30, %v5714_v18 }
 0xd21   : > { %8201 = vrsqrt.f32 %v5653_v25  ;;  %v5654_v55 = vadd.f32 1e-05, %v5622_v17 }
 0xd22   : > { %5821 = vst [vmem:[#allocation2 + $0xa0] sm:$0xff] %v11950_v40  ;;  %v11955_v10 = vadd.f32 %v11825_v45, %v5752_v13 }
 0xd23   : > { %v8198_v11 = vpop.eup %8197  ;;  %8203 = vrsqrt.f32 %v5654_v55 }
 0xd24   : > { %5822 = vst [vmem:[#allocation2 + $0xa8] sm:$0xff] %v11955_v10  ;;  %v5715_v58 = vmul.f32 %v8198_v11, %v11769_v51  ;;  %v5586_v38 = vpop.xlane.xlu0 %5585 }
 0xd25   : > { %v8200_v12 = vpop.eup %8199  ;;  %v5623_v23 = vmul.f32 0.0078125, %v5586_v38 }
 0xd26   : > { %v5753_v61 = vmul.f32 %v11820_v30, %v5715_v58  ;;  %v5716_v41 = vmul.f32 %v8200_v12, %v11772_v49  ;;  %v5588_v37 = vpop.xlane.xlu1 %5587 }
 0xd27   : > { %v5655_v32 = vadd.f32 1e-05, %v5623_v23  ;;  %v5624_v20 = vmul.f32 0.0078125, %v5588_v37 }
 0xd28   : > { %v11962_v8 = vadd.f32 %v11825_v45, %v5753_v61  ;;  %v5754_v0 = vmul.f32 %v11820_v30, %v5716_v41 }
 0xd29   : > { %8205 = vrsqrt.f32 %v5655_v32  ;;  %v5656_v21 = vadd.f32 1e-05, %v5624_v20 }
 0xd2a   : > { %5823 = vst [vmem:[#allocation2 + $0xb0] sm:$0xff] %v11962_v8  ;;  %v11967_v51 = vadd.f32 %v11825_v45, %v5754_v0 }
 0xd2b   : > { %v8202_v44 = vpop.eup %8201  ;;  %8207 = vrsqrt.f32 %v5656_v21 }
 0xd2c   : > { %5824 = vst [vmem:[#allocation2 + $0xb8] sm:$0xff] %v11967_v51  ;;  %v5717_v49 = vmul.f32 %v8202_v44, %v11779_v7  ;;  %v5590_v59 = vpop.xlane.xlu0 %5589 }
 0xd2d   : > { %v8204_v9 = vpop.eup %8203  ;;  %v5625_v39 = vmul.f32 0.0078125, %v5590_v59 }
 0xd2e   : > { %v5755_v52 = vmul.f32 %v11820_v30, %v5717_v49  ;;  %v5718_v54 = vmul.f32 %v8204_v9, %v11782_v1  ;;  %v5592_v27 = vpop.xlane.xlu1 %5591 }
 0xd2f   : > { %v5657_v47 = vadd.f32 1e-05, %v5625_v39  ;;  %v5626_v62 = vmul.f32 0.0078125, %v5592_v27 }
 0xd30   : > { %v11974_v19 = vadd.f32 %v11825_v45, %v5755_v52  ;;  %v5756_v24 = vmul.f32 %v11820_v30, %v5718_v54 }
 0xd31   : > { %8209 = vrsqrt.f32 %v5657_v47  ;;  %v5658_v18 = vadd.f32 1e-05, %v5626_v62  ;;  %v8863_v62 = vmov (!%p6750_p2), 0  }
 0xd32   : > { %5825 = vst [vmem:[#allocation2 + $0xc0] sm:$0xff] %v11974_v19  ;;  %v11979_v7 = vadd.f32 %v11825_v45, %v5756_v24  ;;  %8257 = vset.pattern.permute.xlu0 (!%p6750_p2), %v8863_v62 }
 0xd33   : > { %v8206_v6 = vpop.eup %8205  ;;  %8211 = vrsqrt.f32 %v5658_v18 }
 0xd34   : > { %5826 = vst [vmem:[#allocation2 + $0xc8] sm:$0xff] %v11979_v7  ;;  %v5719_v1 = vmul.f32 %v8206_v6, %v11789_v53  ;;  %v5594_v25 = vpop.xlane.xlu0 %5593 }
 0xd35   : > { %v8208_v17 = vpop.eup %8207  ;;  %v5627_v13 = vmul.f32 0.0078125, %v5594_v25 }
 0xd36   : > { %v5757_v55 = vmul.f32 %v11820_v30, %v5719_v1  ;;  %v5720_v11 = vmul.f32 %v8208_v17, %v11792_v29  ;;  %v5596_v58 = vpop.xlane.xlu1 %5595 }
 0xd37   : > { %v5659_v38 = vadd.f32 1e-05, %v5627_v13  ;;  %v5628_v12 = vmul.f32 0.0078125, %v5596_v58 }
 0xd38   : > { %v11986_v23 = vadd.f32 %v11825_v45, %v5757_v55  ;;  %v5758_v61 = vmul.f32 %v11820_v30, %v5720_v11 }
 0xd39   : > { %8213 = vrsqrt.f32 %v5659_v38  ;;  %v5660_v41 = vadd.f32 1e-05, %v5628_v12 }
 0xd3a   : > { %5827 = vst [vmem:[#allocation2 + $0xd0] sm:$0xff] %v11986_v23  ;;  %v11991_v53 = vadd.f32 %v11825_v45, %v5758_v61 }
 0xd3b   : > { %v8210_v37 = vpop.eup %8209  ;;  %8215 = vrsqrt.f32 %v5660_v41 }
 0xd3c   : > { %5828 = vst [vmem:[#allocation2 + $0xd8] sm:$0xff] %v11991_v53  ;;  %v5721_v29 = vmul.f32 %v8210_v37, %v11799_v16 }
 0xd3d   : > { %v8212_v32 = vpop.eup %8211 }
 0xd3e   : > { %v5759_v20 = vmul.f32 %v11820_v30, %v5721_v29  ;;  %v5722_v0 = vmul.f32 %v8212_v32, %v11802_v36 }
 0xd40   : > { %v11998_v21 = vadd.f32 %v11825_v45, %v5759_v20  ;;  %v5760_v44 = vmul.f32 %v11820_v30, %v5722_v0 }
 0xd42   : > { %5829 = vst [vmem:[#allocation2 + $0xe0] sm:$0xff] %v11998_v21  ;;  %v12003_v49 = vadd.f32 %v11825_v45, %v5760_v44 }
 0xd43   : > { %v8214_v59 = vpop.eup %8213 }
 0xd44   : > { %5830 = vst [vmem:[#allocation2 + $0xe8] sm:$0xff] %v12003_v49  ;;  %v5723_v16 = vmul.f32 %v8214_v59, %v11809_v2  ;;  %v12019_v2 = vld [vmem:[#allocation22] ss:$0 sm:$0xff] (!%p6750_p2) }
 0xd45   : > { %v8216_v9 = vpop.eup %8215  ;;  %v5844_v47 = vmul.f32 (!%p6750_p2), %v12019_v2, %v11830_v56  ;;  %v5862_v24 = vmul.f32 (!%p6750_p2), %v12019_v2, %v11938_v43  ;;  %v5863_v56 = vmul.f32 (!%p6750_p2), %v12019_v2, %v11943_v31  ;;  %v5847_v18 = vmul.f32 (!%p6750_p2), %v12019_v2, %v11848_v42 }
 0xd46   : > { %v5761_v39 = vmul.f32 %v11820_v30, %v5723_v16  ;;  %v5724_v36 = vmul.f32 %v8216_v9, %v11812_v48  ;;  %5836 = sbr.rel (%p6750_p2) target bundleno = 3637 (0xe35), region = 152  ;;  %v5860_v48 = vmul.f32 (!%p6750_p2), %v12019_v2, %v11926_v63  ;;  %v5846_v63 = vmul.f32 (!%p6750_p2), %v12019_v2, %v11842_v14 }
 0xd47   : > { %5876 = vadd.xlane.f32.xlu0 (!%p6750_p2), %v5844_v47  ;;  %v5865_v14 = vmul.f32 (!%p6750_p2), %v12019_v2, %v11955_v10  ;;  %v5849_v43 = vmul.f32 (!%p6750_p2), %v12019_v2, %v11860_v4  ;;  %v5866_v42 = vmul.f32 (!%p6750_p2), %v12019_v2, %v11962_v8  ;;  %v5850_v31 = vmul.f32 (!%p6750_p2), %v12019_v2, %v11866_v35 }
 0xd48   : > { %v12010_v52 = vadd.f32 %v11825_v45, %v5761_v39  ;;  %v5762_v54 = vmul.f32 %v11820_v30, %v5724_v36  ;;  %5908 = vadd.xlane.f32.xlu1 (!%p6750_p2), %v5860_v48  ;;  %v5861_v30 = vmul.f32 (!%p6750_p2), %v12019_v2, %v11931_v26  ;;  %v5848_v26 = vmul.f32 (!%p6750_p2), %v12019_v2, %v11854_v60  ;;  %v12582_v48 = vld [vmem:[#allocation41_spill] sm:$0xff] (!%p6750_p2) }
 0xd49   : > { %v5867_v60 = vmul.f32 (!%p6750_p2), %v12019_v2, %v11967_v51  ;;  %v5868_v4 = vmul.f32 (!%p6750_p2), %v12019_v2, %v11974_v19  ;;  %v5852_v10 = vmul.f32 (!%p6750_p2), %v12019_v2, %v11878_v33  ;;  %v5853_v35 = vmul.f32 (!%p6750_p2), %v12019_v2, %v11884_v57  ;;  %v6752_v19 = vld [vmem:[#allocation4] ss:$0 sm:$0xff] (!%p6750_p2) }
 0xd4a   : > { %5831 = vst [vmem:[#allocation2 + $0xf0] sm:$0xff] %v12010_v52  ;;  %v12015_v27 = vadd.f32 %v11825_v45, %v5762_v54  ;;  %v5845_v45 = vmul.f32 (!%p6750_p2), %v12019_v2, %v11836_v28  ;;  %v5864_v28 = vmul.f32 (!%p6750_p2), %v12019_v2, %v11950_v40  ;;  %v5851_v40 = vmul.f32 (!%p6750_p2), %v12019_v2, %v11872_v46 }
 0xd4b   : > { %v5869_v8 = vmul.f32 (!%p6750_p2), %v12019_v2, %v11979_v7  ;;  %v5854_v46 = vmul.f32 (!%p6750_p2), %v12019_v2, %v11890_v5  ;;  %v5870_v51 = vmul.f32 (!%p6750_p2), %v12019_v2, %v11986_v23  ;;  %v5855_v33 = vmul.f32 (!%p6750_p2), %v12019_v2, %v11896_v50 }
 0xd4c   : > { %5832 = vst [vmem:[#allocation2 + $0xf8] sm:$0xff] %v12015_v27  ;;  %5910 = vadd.xlane.f32.xlu1 (!%p6750_p2), %v5861_v30  ;;  %5878 = vadd.xlane.f32.xlu0 (!%p6750_p2), %v5845_v45  ;;  %v5871_v57 = vmul.f32 (!%p6750_p2), %v12019_v2, %v11991_v53  ;;  %v5856_v7 = vmul.f32 (!%p6750_p2), %v12019_v2, %v11902_v22 }
 0xd4d   : > { %v5872_v5 = vmul.f32 %v12019_v2, %v11998_v21  ;;  %v5857_v6 = vmul.f32 %v12019_v2, %v11908_v15  ;;  %v5873_v50 = vmul.f32 %v12019_v2, %v12003_v49  ;;  %v5858_v1 = vmul.f32 %v12019_v2, %v11914_v34 }
 0xd4e   : > { %v5859_v22 = vmul.f32 %v12019_v2, %v11919_v3  ;;  %v5875_v25 = vmul.f32 %v12019_v2, %v12015_v27  ;;  %v5874_v17 = vmul.f32 %v12019_v2, %v12010_v52  ;;  %v12581_v49 = vlaneseq }
 0xd50   : > { %5912 = vadd.xlane.f32.xlu1 %v5862_v24  ;;  %5880 = vadd.xlane.f32.xlu0 %v5846_v63  ;;  %v12104_v59 = vand.u32 127, %v12581_v49 }
 0xd52   : > { %v6052_v39 = vadd.s32 4294967288, %v12104_v59  ;;  %v6050_v47 = vsub.s32 %v12104_v59, %v12582_v48  ;;  %v6059_v62 = vadd.s32 4294967280, %v12104_v59  ;;  %v6108_v49 = vadd.s32 4294967224, %v12104_v59 }
 0xd54   : > { %5914 = vadd.xlane.f32.xlu1 %v5863_v56  ;;  %5882 = vadd.xlane.f32.xlu0 %v5847_v18  ;;  %v6055_v45 = vsub.s32 %v6052_v39, %v12582_v48 }
 0xd58   : > { %5916 = vadd.xlane.f32.xlu1 %v5864_v28  ;;  %5884 = vadd.xlane.f32.xlu0 %v5848_v26 }
 0xd5c   : > { %5918 = vadd.xlane.f32.xlu1 %v5865_v14  ;;  %5886 = vadd.xlane.f32.xlu0 %v5849_v43  ;;  %v6062_v14 = vsub.s32 %v6059_v62, %v12582_v48  ;;  %v6066_v43 = vadd.s32 4294967272, %v12104_v59 }
 0xd60   : > { %5920 = vadd.xlane.f32.xlu1 %v5866_v42  ;;  %5888 = vadd.xlane.f32.xlu0 %v5850_v31 }
 0xd64   : > { %5922 = vadd.xlane.f32.xlu1 %v5867_v60  ;;  %5890 = vadd.xlane.f32.xlu0 %v5851_v40 }
 0xd68   : > { %5924 = vadd.xlane.f32.xlu1 %v5868_v4  ;;  %5892 = vadd.xlane.f32.xlu0 %v5852_v10 }
 0xd6c   : > { %5894 = vadd.xlane.f32.xlu1 %v5853_v35 }
 0xd70   : > { %5926 = vadd.xlane.f32.xlu1 %v5869_v8 }
 0xd74   : > { %5896 = vadd.xlane.f32.xlu1 %v5854_v46 }
 0xd78   : > { %5928 = vadd.xlane.f32.xlu1 %v5870_v51  ;;  %v6073_v51 = vadd.s32 4294967264, %v12104_v59 }
 0xd7c   : > { %5898 = vadd.xlane.f32.xlu1 %v5855_v33  ;;  %v6080_v33 = vadd.s32 4294967256, %v12104_v59 }
 0xd7e   : > { %5947 = vperm.xlu0 %8257, %v6752_v19   ;;  %v6087_v19 = vadd.s32 4294967248, %v12104_v59 }
 0xd80   : > { %5930 = vadd.xlane.f32.xlu1 %v5871_v57  ;;  %v6069_v57 = vsub.s32 %v6066_v43, %v12582_v48  ;;  %v6129_v43 = vadd.s32 4294967200, %v12104_v59 }
 0xd84   : > { %5900 = vadd.xlane.f32.xlu1 %v5856_v7 }
 0xd88   : > { %5932 = vadd.xlane.f32.xlu1 %v5872_v5 }
 0xd8c   : > { %5902 = vadd.xlane.f32.xlu1 %v5857_v6 }
 0xd90   : > { %5934 = vadd.xlane.f32.xlu1 %v5873_v50 }
 0xd94   : > { %5904 = vadd.xlane.f32.xlu1 %v5858_v1 }
 0xd98   : > { %5906 = vadd.xlane.f32.xlu1 %v5859_v22 }
 0xd9c   : > { %5938 = vadd.xlane.f32.xlu1 %v5875_v25 }
 0xd9d   : > { %5936 = vadd.xlane.f32.xlu0 %v5874_v17 }
 0xdd4   : > { %v5877_v13 = vpop.xlane.xlu0 %5876 }
 0xdd5   : > { %v5909_v15 = vpop.xlane.xlu1 %5908 }
 0xdd9   : > { %v5911_v55 = vpop.xlane.xlu1 %5910  ;;  %v5879_v11 = vpop.xlane.xlu0 %5878 }
 0xddd   : > { %v5913_v58 = vpop.xlane.xlu1 %5912  ;;  %v5881_v38 = vpop.xlane.xlu0 %5880 }
 0xde1   : > { %v5915_v34 = vpop.xlane.xlu1 %5914  ;;  %v5883_v12 = vpop.xlane.xlu0 %5882 }
 0xde5   : > { %v5917_v23 = vpop.xlane.xlu1 %5916  ;;  %v5885_v61 = vpop.xlane.xlu0 %5884 }
 0xde9   : > { %v12085_v3 = vpop.xlane.xlu1 %5918  ;;  %v5887_v41 = vpop.xlane.xlu0 %5886 }
 0xded   : > { %v12087_v53 = vpop.xlane.xlu1 %5920  ;;  %v12091_v29 = vpop.xlane.xlu0 %5888 }
 0xdf1   : > { %v12089_v37 = vpop.xlane.xlu1 %5922  ;;  %v12095_v20 = vpop.xlane.xlu0 %5890 }
 0xdf5   : > { %v12093_v32 = vpop.xlane.xlu1 %5924  ;;  %v12101_v44 = vpop.xlane.xlu0 %5892 }
 0xdf9   : > { %v12097_v0 = vpop.xlane.xlu1 %5894 }
 0xdfd   : > { %v12099_v21 = vpop.xlane.xlu1 %5926  ;;  %v12108_v9 = vpop.permute.xlu0 %5947 }
 0xdfe   : > { %v5950_v36 = vadd.f32 %v12108_v9, %v5877_v13  ;;  %v5951_v52 = vadd.f32 %v12108_v9, %v5879_v11  ;;  %v5966_v27 = vadd.f32 %v12108_v9, %v5909_v15  ;;  %v5967_v2 = vadd.f32 %v12108_v9, %v5911_v55 }
 0xdff   : > { %v5952_v30 = vadd.f32 %v12108_v9, %v5881_v38  ;;  %v5968_v56 = vadd.f32 %v12108_v9, %v5913_v58  ;;  %v5953_v31 = vadd.f32 %v12108_v9, %v5883_v12  ;;  %v5969_v35 = vadd.f32 %v12108_v9, %v5915_v34 }
 0xe00   : > { %v5982_v24 = vmax.f32 %v5950_v36, 0.0  ;;  %v5983_v63 = vmax.f32 %v5951_v52, 0.0  ;;  %v5998_v28 = vmax.f32 %v5966_v27, 0.0  ;;  %v5999_v26 = vmax.f32 %v5967_v2, 0.0 }
 0xe01   : > { %v12106_v16 = vpop.xlane.xlu1 %5896  ;;  %v5984_v42 = vmax.f32 %v5952_v30, 0.0  ;;  %v6000_v4 = vmax.f32 %v5968_v56, 0.0  ;;  %v5954_v7 = vadd.f32 %v12108_v9, %v5885_v61  ;;  %v5985_v50 = vmax.f32 %v5953_v31, 0.0 }
 0xe02   : > { %v6051_v60 = vrot.slane %v5982_v24, %v6050_v47  ;;  %v6056_v40 = vrot.slane %v5983_v63, %v6055_v45  ;;  %v6160_v8 = vrot.slane %v5998_v28, %v6050_v47  ;;  %v6164_v46 = vrot.slane %v5999_v26, %v6055_v45 }
 0xe03   : > { %v6063_v5 = vrot.slane %v5984_v42, %v6062_v14  ;;  %v5970_v22 = vadd.f32 %v12108_v9, %v5917_v23  ;;  %v6169_v25 = vrot.slane %v6000_v4, %v6062_v14  ;;  %v6094_v15 = vadd.s32 4294967240, %v12104_v59 }
 0xe04   : > { %v6165_v6 = vsel %vm6057_vm1, %v6164_v46, %v6160_v8  ;;  %v6058_v1 = vsel %vm6057_vm1, %v6056_v40, %v6051_v60  ;;  %v6001_v13 = vmax.f32 %v5969_v35, 0.0  ;;  %v6076_v55 = vsub.s32 %v6073_v51, %v12582_v48 }
 0xe05   : > { %v12113_v54 = vpop.xlane.xlu1 %5928  ;;  %v6083_v11 = vsub.s32 %v6080_v33, %v12582_v48  ;;  %v6101_v58 = vadd.s32 4294967232, %v12104_v59  ;;  %v5955_v38 = vadd.f32 %v12108_v9, %v5887_v41  ;;  %v6090_v34 = vsub.s32 %v6087_v19, %v12582_v48 }
 0xe06   : > { %v5986_v12 = vmax.f32 %v5954_v7, 0.0  ;;  %v6065_v23 = vsel %vm6064_vm2, %v6063_v5, %v6058_v1  ;;  %v5971_v61 = vadd.f32 %v12108_v9, %v12085_v3  ;;  %v6070_v39 = vrot.slane %v5985_v50, %v6069_v57 }
 0xe07   : > { %v6002_v36 = vmax.f32 %v5970_v22, 0.0  ;;  %v6170_v52 = vsel %vm6064_vm2, %v6169_v25, %v6165_v6  ;;  %v6097_v2 = vsub.s32 %v6094_v15, %v12582_v48  ;;  %v6115_v41 = vadd.s32 4294967216, %v12104_v59 }
 0xe08   : > { %v5956_v47 = vadd.f32 %v12108_v9, %v12091_v29  ;;  %v6174_v62 = vrot.slane %v6001_v13, %v6069_v57  ;;  %v12159_v30 = vsub.s32 %v6101_v58, %v12582_v48  ;;  %v5987_v3 = vmax.f32 %v5955_v38, 0.0 }
 0xe09   : > { %v12123_v18 = vpop.xlane.xlu1 %5898  ;;  %v6072_v45 = vsel %vm6071_vm3, %v6070_v39, %v6065_v23  ;;  %v5972_v24 = vadd.f32 %v12108_v9, %v12087_v53  ;;  %v5957_v63 = vadd.f32 %v12108_v9, %v12095_v20  ;;  %v6077_v56 = vrot.slane %v5986_v12, %v6076_v55 }
 0xe0a   : > { %v6003_v28 = vmax.f32 %v5971_v61, 0.0  ;;  %v6175_v26 = vsel %vm6071_vm3, %v6174_v62, %v6170_v52  ;;  %v6179_v14 = vrot.slane %v6002_v36, %v6076_v55  ;;  %v6122_v29 = vadd.s32 4294967208, %v12104_v59 }
 0xe0b   : > { %v6136_v42 = vadd.s32 4294967192, %v12104_v59  ;;  %v5988_v60 = vmax.f32 %v5956_v47, 0.0  ;;  %v6079_v40 = vsel %vm6078_vm4, %v6077_v56, %v6072_v45  ;;  %v5973_v53 = vadd.f32 %v12108_v9, %v12089_v37 }
 0xe0c   : > { %v6143_v20 = vadd.s32 4294967184, %v12104_v59  ;;  %v5958_v4 = vadd.f32 %v12108_v9, %v12101_v44  ;;  %v6084_v35 = vrot.slane %v5987_v3, %v6083_v11  ;;  %v6004_v8 = vmax.f32 %v5972_v24, 0.0 }
 0xe0d   : > { %v12128_v10 = vpop.xlane.xlu1 %5930  ;;  %v6180_v46 = vsel %vm6078_vm4, %v6179_v14, %v6175_v26  ;;  %v6111_v51 = vsub.s32 %v6108_v49, %v12582_v48  ;;  %v12179_v33 = vsub.s32 %v6115_v41, %v12582_v48  ;;  %v5989_v19 = vmax.f32 %v5957_v63, 0.0 }
 0xe0e   : > { %v6184_v57 = vrot.slane %v6003_v28, %v6083_v11  ;;  %v6086_v7 = vsel %vm6085_vm5, %v6084_v35, %v6079_v40  ;;  %v5974_v37 = vadd.f32 %v12108_v9, %v12093_v32  ;;  %v6125_v5 = vsub.s32 %v6122_v29, %v12582_v48 }
 0xe0f   : > { %v12186_v44 = vsub.s32 %v6129_v43, %v12582_v48  ;;  %v5959_v50 = vadd.f32 %v12108_v9, %v12097_v0  ;;  %v6091_v1 = vrot.slane %v5988_v60, %v6090_v34  ;;  %v6005_v22 = vmax.f32 %v5973_v53, 0.0 }
 0xe10   : > { %v6185_v25 = vsel %vm6085_vm5, %v6184_v57, %v6180_v46  ;;  %v5990_v15 = vmax.f32 %v5958_v4, 0.0  ;;  %v6189_v13 = vrot.slane %v6004_v8, %v6090_v34  ;;  %v6139_v55 = vsub.s32 %v6136_v42, %v12582_v48 }
 0xe11   : > { %v12139_v17 = vpop.xlane.xlu1 %5900  ;;  %v12193_v32 = vsub.s32 %v6143_v20, %v12582_v48  ;;  %v6093_v11 = vsel %vm6092_vm6, %v6091_v1, %v6086_v7  ;;  %v6098_v58 = vrot.slane %v5989_v19, %v6097_v2  ;;  %v5975_v38 = vadd.f32 %v12108_v9, %v12099_v21 }
 0xe12   : > { %v6150_v12 = vadd.s32 4294967176, %v12104_v59  ;;  %v5976_v0 = vadd.f32 %v12108_v9, %v12113_v54  ;;  %v6006_v23 = vmax.f32 %v5974_v37, 0.0  ;;  %v6190_v61 = vsel %vm6092_vm6, %v6189_v13, %v6185_v25 }
 0xe13   : > { %v5961_v34 = vadd.f32 %v12108_v9, %v12123_v18  ;;  %v5960_v39 = vadd.f32 %v12108_v9, %v12106_v16  ;;  %v5991_v36 = vmax.f32 %v5959_v50, 0.0  ;;  %v6194_v52 = vrot.slane %v6005_v22, %v6097_v2 }
 0xe14   : > { %v5977_v21 = vadd.f32 %v12108_v9, %v12128_v10  ;;  %v6100_v59 = vsel %vm6099_vm7, %v6098_v58, %v6093_v11  ;;  %v6105_v54 = vrot.slane %v5990_v15, %v12159_v30  ;;  %v5962_v41 = vadd.f32 %v12108_v9, %v12139_v17 }
 0xe15   : > { %v12152_v27 = vpop.xlane.xlu1 %5932  ;;  %v6007_v47 = vmax.f32 %v5975_v38, 0.0  ;;  %v6195_v62 = vsel %vm6099_vm7, %v6194_v52, %v6190_v61  ;;  %v6008_v10 = vmax.f32 %v5976_v0, 0.0  ;;  %v6199_v3 = vrot.slane %v6006_v23, %v12159_v30 }
 0xe16   : > { %v5978_v18 = vadd.f32 %v12108_v9, %v12152_v27  ;;  %v5993_v45 = vmax.f32 %v5961_v34, 0.0  ;;  %v5992_v56 = vmax.f32 %v5960_v39, 0.0  ;;  %v6107_v17 = vsel %vm6106_vm8, %v6105_v54, %v6100_v59 }
 0xe17   : > { %v6009_v28 = vmax.f32 %v5977_v21, 0.0  ;;  %v6112_v26 = vrot.slane %v5991_v36, %v6111_v51  ;;  %v6200_v14 = vsel %vm6106_vm8, %v6199_v3, %v6195_v62  ;;  %v5994_v29 = vmax.f32 %v5962_v41, 0.0 }
 0xe18   : > { %v6010_v43 = vmax.f32 %v5978_v18, 0.0  ;;  %v6204_v42 = vrot.slane %v6007_v47, %v6111_v51  ;;  %v6153_v30 = vsub.s32 %v6150_v12, %v12582_v48  ;;  %v6209_v53 = vrot.slane %v6008_v10, %v12179_v33 }
 0xe19   : > { %v5903_v31 = vpop.xlane.xlu1 %5902  ;;  %v6114_v40 = vsel %vm6113_vm9, %v6112_v26, %v6107_v17  ;;  %v6126_v20 = vrot.slane %v5993_v45, %v6125_v5  ;;  %v6214_v46 = vrot.slane %v6009_v28, %v6125_v5  ;;  %v6119_v51 = vrot.slane %v5992_v56, %v12179_v33 }
 0xe1a   : > { %v5963_v16 = vadd.f32 %v12108_v9, %v5903_v31  ;;  %v6205_v8 = vsel %vm6113_vm9, %v6204_v42, %v6200_v14  ;;  %v6133_v37 = vrot.slane %v5994_v29, %v12186_v44  ;;  %v6219_v48 = vrot.slane %v6010_v43, %v12186_v44 }
 0xe1b   : > { %v6121_v25 = vsel %vm6120_vm10, %v6119_v51, %v6114_v40  ;;  %v6210_v5 = vsel %vm6120_vm10, %v6209_v53, %v6205_v8 }
 0xe1c   : > { %v5995_v31 = vmax.f32 %v5963_v16, 0.0  ;;  %v6128_v11 = vsel %vm6127_vm11, %v6126_v20, %v6121_v25  ;;  %v6215_v33 = vsel %vm6127_vm11, %v6214_v46, %v6210_v5 }
 0xe1d   : > { %v5935_v6 = vpop.xlane.xlu1 %5934  ;;  %v6220_v58 = vsel %vm6134_vm12, %v6219_v48, %v6215_v33 }
 0xe1e   : > { %v5979_v2 = vadd.f32 %v12108_v9, %v5935_v6  ;;  %v6140_v50 = vrot.slane %v5995_v31, %v6139_v55 }
 0xe20   : > { %v6011_v60 = vmax.f32 %v5979_v2, 0.0 }
 0xe21   : > { %v5905_v49 = vpop.xlane.xlu1 %5904 }
 0xe22   : > { %v5964_v24 = vadd.f32 %v12108_v9, %v5905_v49  ;;  %v6224_v1 = vrot.slane %v6011_v60, %v6139_v55 }
 0xe24   : > { %v5996_v4 = vmax.f32 %v5964_v24, 0.0  ;;  %v6225_v12 = vsel %vm6141_vm13, %v6224_v1, %v6220_v58 }
 0xe25   : > { %v5907_v63 = vpop.xlane.xlu1 %5906 }
 0xe26   : > { %v5965_v27 = vadd.f32 %v12108_v9, %v5907_v63  ;;  %v6147_v15 = vrot.slane %v5996_v4, %v12193_v32 }
 0xe28   : > { %v5997_v19 = vmax.f32 %v5965_v27, 0.0 }
 0xe29   : > { %v5939_v35 = vpop.xlane.xlu1 %5938 }
 0xe2a   : > { %v5981_v57 = vadd.f32 %v12108_v9, %v5939_v35  ;;  %v5937_v7 = vpop.xlane.xlu0 %5936  ;;  %v6154_v44 = vrot.slane %v5997_v19, %v6153_v30 }
 0xe2b   : > { %v5980_v6 = vadd.f32 %v12108_v9, %v5937_v7  ;;  %v6135_v9 = vsel %vm6134_vm12, %v6133_v37, %v6128_v11 }
 0xe2c   : > { %v6013_v22 = vmax.f32 %v5981_v57, 0.0  ;;  %v6142_v38 = vsel %vm6141_vm13, %v6140_v50, %v6135_v9 }
 0xe2d   : > { %v6012_v13 = vmax.f32 %v5980_v6, 0.0  ;;  %v6149_v23 = vsel %vm6148_vm14, %v6147_v15, %v6142_v38 }
 0xe2e   : > { %v6234_v0 = vrot.slane %v6013_v22, %v6153_v30  ;;  %v6156_v34 = vsel %vm6155_vm15, %v6154_v44, %v6149_v23 }
 0xe2f   : > { %v6229_v55 = vrot.slane %v6012_v13, %v12193_v32 }
 0xe31   : > { %v6230_v61 = vsel %vm6148_vm14, %v6229_v55, %v6225_v12 }
 0xe32   : > { %v6235_v49 = vsel %vm6155_vm15, %v6234_v0, %v6230_v61 }
 0xe33   : > { %v6237_v39 = vsel %vm6236_vm0, %v6235_v49, %v6156_v34 }
 0xe34   : > { %6239 = vst [vmem:[%s9603_s12] sm:$0x3] %v6237_v39 }
 0xe35 PF: > { %s12583_s23 = sld [smem:[#allocation35_spill]]  ;;  %s12584_s0 = sld [smem:[#allocation91_spill]] }
 0xe36   : > { %s6254_s5 = sshll.u32 %s9603_s12, 4  ;;  %s6241_s20 = scalar_lea.sflag [#allocation7], %s9555_s25  ;;  %s6255_s5 = int_to_ptr.vmem [resolvable:$true] %s6254_s5 }
 0xe37   : > { %s8704_s1 = scalar_lea.vmem %s6255_s5, 32  ;;  %p12586_p12 = scmp.ne.s32.totalorder %s12468_s29, 0 }
 0xe38   : > { %p8705_p5 = scmp.ne.s32.totalorder %s6255_s5, %s8704_s1  ;;  %s8864_s18 = smov [#allocation23]  }
 0xe39   : > { %s8708_s15 = sshll.u32 %s8864_s18, 4  ;;  %s8709_s15 = int_to_ptr.vmem [resolvable:$false] %s8708_s15 }
 0xe3a   : > { %p8706_p7 = pnand %p8705_p5, %p12586_p12  ;;  %s8710_s21 = scalar_lea.vmem %s8709_s15, 64 }
 0xe3b   : > { %s6754_s8 = sshll.u32 %s12583_s23, 5  ;;  %s12585_s9 = smov %s12584_s0 }
 0xe3c   : > { %s12246_s7 = scalar_lea.hbm %s12584_s0, %s6754_s8  ;;  %p8707_p0 = pneg %p8706_p7 }
 0xe3d   : > { %p8711_p6 = scmp.lt.s32.totalorder %s6255_s5, %s8709_s15  ;;  %p8712_p13 = scmp.lt.s32.totalorder %s8710_s21, %s8704_s1 }
 0xe3f   : > { %p8713_p10 = por %p8712_p13, %p8711_p6 }
 0xe41   : > { %p8714_p3 = pnand %p8713_p10, %p8707_p0 }
 0xe43   : > { %8717 = shalt.err (!%p8714_p3)
}
 0xe44   : > { %s8718_s25 = scalar_lea.hbm %s12246_s7, 32  ;;  %s8722_s14 = scalar_lea.hbm %s12585_s9, 64 }
 0xe45   : > { %p8719_p9 = scmp.ne.s32.totalorder %s12246_s7, %s8718_s25  ;;  %p8723_p11 = scmp.lt.u32.totalorder %s12246_s7, %s12585_s9 }
 0xe46   : > { %p8724_p4 = scmp.lt.u32.totalorder %s8722_s14, %s8718_s25  ;;  %p8726_p5 = scmp.lt.u32.totalorder %s8718_s25, %s12246_s7 }
 0xe47   : > { %p8720_p8 = pnand %p8719_p9, %p12586_p12 }
 0xe48   : > { %p8725_p2 = por %p8724_p4, %p8723_p11 }
 0xe49   : > { %p8721_p1 = pneg %p8720_p8 }
 0xe4a   : > { %p8727_p7 = por %p8726_p5, %p8725_p2 }
 0xe4c   : > { %p8728_p0 = pnand %p8727_p7, %p8721_p1 }
 0xe4e   : > { %8731 = shalt.err (!%p8728_p0)
}
 0xe4f   : > { %7595 = dma.vmem_to_hbm [thread:$0]  (%p12586_p12), %s6255_s5, 32, %s12246_s7, %s6241_s20  }
 0xe50 PF: > { %s12587_s12 = sld [smem:[#allocation32_spill]]  ;;  %p7653_p6 = scmp.ge.s32.totalorder %s8838_s17, 2 }
 0xe51   : > { %p12588_p13 = scmp.ne.s32.totalorder %s12469_s11, 0 }
 0xe53   : > { %p7645_p10 = pnand %p7653_p6, %p12588_p13 }
 0xe56   : > { %s6266_s13 = sand.u32 1, %s12587_s12  }
 0xe57   : > { %s6267_s27 = scalar_lea.sflag [#allocation7], %s6266_s13 }
 0xe58   : > { %8793 = dma.done.wait (!%p7645_p10), %s6267_s27, 32  }
 0xe59   : > { %8795 = vsyncadd (!%p7645_p10), %s6267_s27, 4294967264  ;;  %s35_s17 = sadd.s32 1, %s8838_s17   ;;  %s12589_s23 = sld [smem:[#allocation30_spill]] }
 0xe5a   : > { %p32_p3 = scmp.ge.s32.totalorder %s35_s17, 6   ;;  %s12590_s24 = sld [smem:[#allocation31_spill]] }
 0xe5b   : > { %s12591_s25 = sld [smem:[#allocation39_spill]]  ;;  %s12592_s26 = sld [smem:[#allocation33_spill]] }
 0xe5c   : > { %s12593_s29 = sld [smem:[#allocation40_spill]]  ;;  %s12594_s15 = sld [smem:[#allocation36_spill]] }
 0xe5d   : > { %s12595_s2 = sld [smem:[#allocation37_spill]]  ;;  %s12596_s0 = sld [smem:[#allocation38_spill]] }
 0xe5e   : > { %s12597_s27 = smov %s8818_s28  ;;  %34 = sbr.rel (!%p32_p3) target bundleno = 27 (0x1b), region = 277 }
 0xe62   : > { %s12598_s28 = smov %s12593_s29  ;;  %s12599_s29 = smov %s8830_s30 }
 0xe63   : > { %s12600_s30 = smov %s12595_s2 }
 0xe65   :  { %6272 = vsyncpa [#allocation6], 1 }
 0xe66   :  { %6274 = vsyncpa [#allocation6 + $0x1], 1 }
 0xe67   :  { %6275 = vsyncpa [#allocation9], 1 }
 0xe68   :  { %6276 = vsyncpa [#allocation7], 1 }
 0xe69   :  { %6278 = vsyncpa [#allocation7 + $0x1], 1 }

</bundles_post_ra>
